<compile_context>
chip_gen: v7x
topology: tpu7x:2x2x1
jax: 0.10.0
libtpu: 0.0.40
codegen_flags: <defaults>
</compile_context>

<pallas_src>
import functools

import jax
import jax.numpy as jnp
from jax.experimental import pallas as pl
from jax.experimental.pallas import tpu as pltpu

# ---------------- small, ViT-consistent config ----------------
IMG = 16           # image height/width
PATCH = 8          # patch size  -> 2x2 = 4 patches
CIN = 3            # RGB
HIDDEN = 64        # hidden dim
HEADS = 4          # attention heads (head_dim = 16)
MLP = 128          # MLP hidden dim
LAYERS = 3         # scaled-down from 12; last layer has no PatchScaler
NUM_CLASSES = 10   # e.g. cifar10 head
LN_EPS = 1e-6
HEAD_PAD = 128     # lane-dense padded width of the classification head output
SEQ_REAL = (IMG // PATCH) ** 2 + 1   # 5 real tokens (CLS + 4 patches)
SEQ_PAD = 8                          # sublane-aligned padded sequence length
VEC_W = max(3 * HIDDEN, MLP)         # lane width of the packed f32 vector slab


# ---------------- fused Pallas kernel ----------------
def slim_vit_kernel(patch_ref, convw_ref, base_ref, bias_ref,
                    qkvw_ref, projw_ref, fc1w_ref, fc2w_ref,
                    vecs_ref, scale_ref, headw_ref, headb_ref,
                    out_ref,
                    *, num_layers, num_heads, eps):
    """Full SlimViT forward for one batch tile; tokens flattened to (M, D)."""
    M, P = patch_ref.shape
    D = convw_ref.shape[1]
    hd = D // num_heads
    mlp_d = fc1w_ref.shape[2]
    att_scale = 1.0 / (hd ** 0.5)

    def layernorm(v, w, b):
        mu = jnp.mean(v, axis=-1, keepdims=True)
        var = jnp.mean((v - mu) ** 2, axis=-1, keepdims=True)
        return (v - mu) * jax.lax.rsqrt(var + eps) * w + b

    # --- patch embedding + CLS + positional embedding ---
    # Row 0 of each 8-token group is a zero "CLS patch", rows 5..7 are zero
    # padding tokens; `base` carries cls/pos/conv-bias per row, so ONE
    # (M,P)@(P,D) matmul covers every token (no concat, no reshape).
    x = jnp.dot(patch_ref[...], convw_ref[...],
                preferred_element_type=jnp.float32) + base_ref[...]          # (M, D) f32

    bias = bias_ref[...]                 # (M, M) block-diag mask (pad keys masked)

    for l in range(num_layers):
        vl = vecs_ref[l]                 # (8, VEC_W) f32 packed per-layer vectors
        ln1_w, ln1_b = vl[0:1, :D], vl[1:2, :D]
        qkv_b = vl[2:3, :3 * D]
        proj_b = vl[3:4, :D]
        ln2_w, ln2_b = vl[4:5, :D], vl[5:6, :D]
        fc1_b = vl[6:7, :mlp_d]
        fc2_b = vl[7:8, :D]

        # ---- multi-head self attention (pre-LN), fused QKV projection ----
        h = layernorm(x, ln1_w, ln1_b)                                       # (M, D) f32
        qkv = jnp.dot(h.astype(jnp.bfloat16), qkvw_ref[l],
                      preferred_element_type=jnp.float32) + qkv_b            # (M, 3D) f32

        ctx_heads = []
        for hh in range(num_heads):
            qh = qkv[:, hh * hd:(hh + 1) * hd].astype(jnp.bfloat16)          # (M, hd)
            kh = qkv[:, D + hh * hd:D + (hh + 1) * hd].astype(jnp.bfloat16)
            vh = qkv[:, 2 * D + hh * hd:2 * D + (hh + 1) * hd].astype(jnp.bfloat16)

            sc = jax.lax.dot_general(qh, kh, (((1,), (1,)), ((), ())),
                                     preferred_element_type=jnp.float32)      # (M, M)
            sc = sc * att_scale + bias
            sc = sc - jnp.max(sc, axis=-1, keepdims=True)
            p = jnp.exp(sc)
            p = p / jnp.sum(p, axis=-1, keepdims=True)                        # exact softmax

            ctx_heads.append(jnp.dot(p.astype(jnp.bfloat16), vh,
                                     preferred_element_type=jnp.float32))     # (M, hd)

        # heads recombined via lane concat + the original (D,D) projection
        ctx = jnp.concatenate(ctx_heads, axis=-1)                              # (M, D)
        attn = jnp.dot(ctx.astype(jnp.bfloat16), projw_ref[l],
                       preferred_element_type=jnp.float32) + proj_b
        x = x + attn

        # ---- MLP ----
        h2 = layernorm(x, ln2_w, ln2_b)
        h2 = jnp.dot(h2.astype(jnp.bfloat16), fc1w_ref[l],
                     preferred_element_type=jnp.float32) + fc1_b
        h2 = jax.nn.gelu(h2, approximate=True)   # TODO(synk): exact erf-GELU in torchvision
        h2 = jnp.dot(h2.astype(jnp.bfloat16), fc2w_ref[l],
                     preferred_element_type=jnp.float32) + fc2_b
        x = x + h2

        # ---- PatchScaler gate (all but the last layer; CLS/pad rows gate == 1.0) ----
        if l != num_layers - 1:
            x = x * scale_ref[l]                                               # (M,1) lane bcast

    # Reference calls encoder.ln(x) and discards the result -> intentionally skipped.

    # ---- classification head, lane-dense for ALL rows (CLS rows sliced outside) ----
    logits = jnp.dot(x.astype(jnp.bfloat16), headw_ref[...],
                     preferred_element_type=jnp.float32) + headb_ref[...]      # (M, HEAD_PAD)
    out_ref[...] = logits.astype(out_ref.dtype)


# ---------------- parameter packing (host-side glue, runs under jit) ----------------
def prepare_params(params, b_tile):
    """Stack per-layer params, pack all small f32 vectors into one slab, cast
    matmul weights to bf16, fold cls/pos/conv-bias into `base`, build the
    block-diagonal mask with padded keys masked, pad the head to 128 lanes."""
    D, L = HIDDEN, LAYERS
    S, S_real = SEQ_PAD, SEQ_REAL
    M = b_tile * S

    conv_w = params['conv_w'].astype(jnp.bfloat16)                            # (P, D)

    # base rows per sequence: row 0 -> cls + pos[0]; rows 1..4 -> pos + conv_b;
    # rows 5..7 -> 0 (padding tokens).
    base_seq = jnp.zeros((S, D), jnp.float32)
    base_seq = base_seq.at[0].set((params['cls'] + params['pos'][0:1])[0])
    base_seq = base_seq.at[1:S_real].set(params['pos'][1:] + params['conv_b'])
    base = jnp.tile(base_seq, (b_tile, 1)).astype(jnp.float32)                # (M, D)

    # block-diagonal additive mask: attend only within the same image and only
    # to REAL (non-padding) keys.
    tok = jnp.arange(M, dtype=jnp.int32)
    img = tok // S
    real_key = (tok % S) < S_real
    allowed = (img[:, None] == img[None, :]) & real_key[None, :]
    attn_bias = jnp.where(allowed, 0.0, -1e30).astype(jnp.float32)            # (M, M)

    def stack(key):
        return jnp.stack([lp[key] for lp in params['layers']], axis=0)

    qkv_w = stack('qkv_w').astype(jnp.bfloat16)                               # (L, D, 3D)
    proj_w = stack('proj_w').astype(jnp.bfloat16)                             # (L, D, D)
    fc1_w = stack('fc1_w').astype(jnp.bfloat16)                               # (L, D, MLP)
    fc2_w = stack('fc2_w').astype(jnp.bfloat16)                               # (L, MLP, D)

    def padw(v):
        v = v.reshape(L, -1)
        return jnp.pad(v, ((0, 0), (0, VEC_W - v.shape[1])))

    # one f32 slab for every per-layer vector (8 sublane rows per layer)
    vecs = jnp.stack([
        padw(stack('ln1_w')), padw(stack('ln1_b')),
        padw(stack('qkv_b')), padw(stack('proj_b')),
        padw(stack('ln2_w')), padw(stack('ln2_b')),
        padw(stack('fc1_b')), padw(stack('fc2_b')),
    ], axis=1).astype(jnp.float32)                                            # (L, 8, VEC_W)

    # PatchScaler gates as a per-token column (lane-broadcast inside the kernel)
    scale_cols = []
    for s in params['scales']:                                                # (S_real, 1)
        col = jnp.concatenate([s, jnp.ones((S - S_real, 1), jnp.float32)], axis=0)
        scale_cols.append(jnp.tile(col, (b_tile, 1)))
    scales = jnp.stack(scale_cols, axis=0).astype(jnp.float32)                # (L-1, M, 1)

    head_w = jnp.zeros((D, HEAD_PAD), jnp.float32).at[:, :NUM_CLASSES].set(params['head_w'])
    head_w = head_w.astype(jnp.bfloat16)
    head_b = jnp.zeros((1, HEAD_PAD), jnp.float32).at[:, :NUM_CLASSES].set(params['head_b'])

    return [conv_w, base, attn_bias, qkv_w, proj_w, fc1_w, fc2_w,
            vecs, scales, head_w, head_b]


# ---------------- full forward (single pallas_call) ----------------
def _full_spec(shape):
    nd = len(shape)
    return pl.BlockSpec(shape, lambda t, _n=nd: (0,) * _n)


def _pick_num_tiles():
    """Generation-aware tiling: 1 tile on single-TC chips (v5e/v6e), 2 tiles on
    2-TensorCore chips (v7x-class) so both cores get work."""
    kind = ""
    try:
        kind = jax.devices()[0].device_kind.lower()
    except Exception:
        pass
    if ("v7" in kind) or ("tpu7" in kind):
        return 2
    return 1


def slim_vit_forward(x, params):
    B, C, H_img, W_img = x.shape
    p = PATCH
    nh, nw = H_img // p, W_img // p
    N = nh * nw
    S, S_real = SEQ_PAD, SEQ_REAL
    P = C * p * p

    num_tiles = _pick_num_tiles()
    B_pad = ((B + num_tiles - 1) // num_tiles) * num_tiles
    if B_pad != B:
        x = jnp.concatenate(
            [x, jnp.zeros((B_pad - B, C, H_img, W_img), x.dtype)], axis=0)
    Bt = B_pad // num_tiles
    M = Bt * S

    # _process_input: conv(k=stride=p) == extract patches (C, p, p order) then matmul.
    patches = (x.reshape(B_pad, C, nh, p, nw, p)
                .transpose(0, 2, 4, 1, 3, 5)
                .reshape(B_pad, N, P))
    # row 0: zero "CLS patch"; rows S_real..S-1: zero padding tokens
    patches_ext = jnp.zeros((B_pad, S, P), jnp.float32)
    patches_ext = patches_ext.at[:, 1:S_real, :].set(patches)
    patches_flat = patches_ext.reshape(B_pad * S, P).astype(jnp.bfloat16)     # (B_pad*S, P)

    packed = prepare_params(params, Bt)

    in_specs = [pl.BlockSpec((M, P), lambda t: (t, 0))]
    in_specs += [_full_spec(a.shape) for a in packed]

    out = pl.pallas_call(
        functools.partial(slim_vit_kernel,
                          num_layers=LAYERS, num_heads=HEADS, eps=LN_EPS),
        grid=(num_tiles,),
        in_specs=in_specs,
        out_specs=pl.BlockSpec((M, HEAD_PAD), lambda t: (t, 0)),
        out_shape=jax.ShapeDtypeStruct((B_pad * S, HEAD_PAD), jnp.float32),
        compiler_params=pltpu.CompilerParams(dimension_semantics=("parallel",)),
    )(patches_flat, *packed)

    # CLS rows + real classes extracted outside the kernel (plain XLA slice).
    logits = out.reshape(B_pad, S, HEAD_PAD)[:B, 0, :NUM_CLASSES]
    return logits


# ---------------- deterministic parameter init (torch-like shapes, f32) ----------------
def init_params(key):
    keys = iter(jax.random.split(key, 32))

    def nrm(shape, s=0.02):
        return (s * jax.random.normal(next(keys), shape)).astype(jnp.float32)

    P = CIN * PATCH * PATCH
    N = (IMG // PATCH) ** 2
    S = N + 1
    params = {
        'conv_w': nrm((P, HIDDEN)),                       # conv_proj weight, (C*p*p, D)
        'conv_b': jnp.zeros((1, HIDDEN), jnp.float32),
        'cls': nrm((1, HIDDEN)),
        'pos': nrm((S, HIDDEN)),
        'layers': [],
        'scales': [],
        'head_w': nrm((HIDDEN, NUM_CLASSES)),
        'head_b': jnp.zeros((1, NUM_CLASSES), jnp.float32),
    }
    for _ in range(LAYERS):
        params['layers'].append(dict(
            ln1_w=jnp.ones((1, HIDDEN), jnp.float32),
            ln1_b=jnp.zeros((1, HIDDEN), jnp.float32),
            qkv_w=nrm((HIDDEN, 3 * HIDDEN)),
            qkv_b=jnp.zeros((1, 3 * HIDDEN), jnp.float32),
            proj_w=nrm((HIDDEN, HIDDEN)),
            proj_b=jnp.zeros((1, HIDDEN), jnp.float32),
            ln2_w=jnp.ones((1, HIDDEN), jnp.float32),
            ln2_b=jnp.zeros((1, HIDDEN), jnp.float32),
            fc1_w=nrm((HIDDEN, MLP)),
            fc1_b=jnp.zeros((1, MLP), jnp.float32),
            fc2_w=nrm((MLP, HIDDEN)),
            fc2_b=jnp.zeros((1, HIDDEN), jnp.float32),
        ))
    for _ in range(LAYERS - 1):
        s = 1.0 + 0.01 * jax.random.normal(next(keys), (N, 1))
        s = jnp.concatenate([jnp.ones((1, 1)), s], axis=0).astype(jnp.float32)
        params['scales'].append(s)        # row 0 (CLS) not scaled
    return params


if __name__ == "__main__":
    B = 8
    root = jax.random.PRNGKey(0)
    kx, kp = jax.random.split(root)
    x = jax.random.normal(kx, (B, CIN, IMG, IMG), jnp.float32)
    params = init_params(kp)
    fwd = jax.jit(lambda inp: slim_vit_forward(inp, params))
    logits = fwd(x)
    jax.block_until_ready(logits)
    assert logits.shape == (B, NUM_CLASSES)
    assert bool(jnp.all(jnp.isfinite(logits)))
    print("KERNEL_OK")
</pallas_src>

<mosaic_0001>
module attributes {stable_mosaic.version = 11 : i64} {
  func.func @slim_vit_kernel(%arg0: i32, %arg1: memref<64x192xbf16, #tpu.memory_space<vmem>>, %arg2: memref<192x64xbf16, #tpu.memory_space<vmem>>, %arg3: memref<64x64xf32, #tpu.memory_space<vmem>>, %arg4: memref<64x64xf32, #tpu.memory_space<vmem>>, %arg5: memref<3x64x192xbf16, #tpu.memory_space<vmem>>, %arg6: memref<3x64x64xbf16, #tpu.memory_space<vmem>>, %arg7: memref<3x64x128xbf16, #tpu.memory_space<vmem>>, %arg8: memref<3x128x64xbf16, #tpu.memory_space<vmem>>, %arg9: memref<3x8x192xf32, #tpu.memory_space<vmem>>, %arg10: memref<2x64x1xf32, #tpu.memory_space<vmem>>, %arg11: memref<64x128xbf16, #tpu.memory_space<vmem>>, %arg12: memref<1x128xf32, #tpu.memory_space<vmem>>, %arg13: memref<64x128xf32, #tpu.memory_space<vmem>>) attributes {dimension_semantics = [#tpu.dimension_semantics<parallel>], iteration_bounds = array<i64: 1>, scalar_prefetch = 0 : i64, scratch_operands = 0 : i64, tpu.core_type = #tpu.core_type<tc>, window_params = [{transform_indices = @transform_0, window_bounds = array<i64: 64, 192>}, {pipeline_mode = #tpu.pipeline_mode<synchronous>, transform_indices = @transform_1, window_bounds = array<i64: 192, 64>}, {pipeline_mode = #tpu.pipeline_mode<synchronous>, transform_indices = @transform_2, window_bounds = array<i64: 64, 64>}, {pipeline_mode = #tpu.pipeline_mode<synchronous>, transform_indices = @transform_3, window_bounds = array<i64: 64, 64>}, {pipeline_mode = #tpu.pipeline_mode<synchronous>, transform_indices = @transform_4, window_bounds = array<i64: 3, 64, 192>}, {pipeline_mode = #tpu.pipeline_mode<synchronous>, transform_indices = @transform_5, window_bounds = array<i64: 3, 64, 64>}, {pipeline_mode = #tpu.pipeline_mode<synchronous>, transform_indices = @transform_6, window_bounds = array<i64: 3, 64, 128>}, {pipeline_mode = #tpu.pipeline_mode<synchronous>, transform_indices = @transform_7, window_bounds = array<i64: 3, 128, 64>}, {pipeline_mode = #tpu.pipeline_mode<synchronous>, transform_indices = @transform_8, window_bounds = array<i64: 3, 8, 192>}, {pipeline_mode = #tpu.pipeline_mode<synchronous>, transform_indices = @transform_9, window_bounds = array<i64: 2, 64, 1>}, {pipeline_mode = #tpu.pipeline_mode<synchronous>, transform_indices = @transform_10, window_bounds = array<i64: 64, 128>}, {pipeline_mode = #tpu.pipeline_mode<synchronous>, transform_indices = @transform_11, window_bounds = array<i64: 1, 128>}, {transform_indices = @transform_12, window_bounds = array<i64: 64, 128>}]} {
    %c0 = arith.constant 0 : index
    %c0_0 = arith.constant 0 : index
    %0 = vector.load %arg1[%c0, %c0_0] : memref<64x192xbf16, #tpu.memory_space<vmem>>, vector<64x192xbf16>
    %c0_1 = arith.constant 0 : index
    %c0_2 = arith.constant 0 : index
    %1 = vector.load %arg2[%c0_1, %c0_2] : memref<192x64xbf16, #tpu.memory_space<vmem>>, vector<192x64xbf16>
    %cst = arith.constant dense<0.000000e+00> : vector<64x64xf32>
    %2 = tpu.matmul %0, %1, %cst {dimension_numbers = #tpu.dot_dimension_numbers<[1], [0], [0], [1], [0, 0, 1, 1], [], []>} : vector<64x192xbf16>, vector<192x64xbf16>, vector<64x64xf32> -> vector<64x64xf32>
    %c0_3 = arith.constant 0 : index
    %c0_4 = arith.constant 0 : index
    %3 = vector.load %arg3[%c0_3, %c0_4] : memref<64x64xf32, #tpu.memory_space<vmem>>, vector<64x64xf32>
    %4 = arith.addf %2, %3 : vector<64x64xf32>
    %c0_5 = arith.constant 0 : index
    %c0_6 = arith.constant 0 : index
    %5 = vector.load %arg4[%c0_5, %c0_6] : memref<64x64xf32, #tpu.memory_space<vmem>>, vector<64x64xf32>
    %c0_7 = arith.constant 0 : index
    %c0_8 = arith.constant 0 : index
    %c0_9 = arith.constant 0 : index
    %6 = vector.load %arg9[%c0_7, %c0_8, %c0_9] : memref<3x8x192xf32, #tpu.memory_space<vmem>>, vector<1x8x192xf32>
    %7 = vector.shape_cast %6 : vector<1x8x192xf32> to vector<8x192xf32>
    %8 = vector.extract_strided_slice %7 {offsets = [0, 0], sizes = [1, 64], strides = [1, 1]} : vector<8x192xf32> to vector<1x64xf32>
    %9 = vector.extract_strided_slice %7 {offsets = [1, 0], sizes = [1, 64], strides = [1, 1]} : vector<8x192xf32> to vector<1x64xf32>
    %10 = vector.extract_strided_slice %7 {offsets = [2, 0], sizes = [1, 192], strides = [1, 1]} : vector<8x192xf32> to vector<1x192xf32>
    %11 = vector.extract_strided_slice %7 {offsets = [3, 0], sizes = [1, 64], strides = [1, 1]} : vector<8x192xf32> to vector<1x64xf32>
    %12 = vector.extract_strided_slice %7 {offsets = [4, 0], sizes = [1, 64], strides = [1, 1]} : vector<8x192xf32> to vector<1x64xf32>
    %13 = vector.extract_strided_slice %7 {offsets = [5, 0], sizes = [1, 64], strides = [1, 1]} : vector<8x192xf32> to vector<1x64xf32>
    %14 = vector.extract_strided_slice %7 {offsets = [6, 0], sizes = [1, 128], strides = [1, 1]} : vector<8x192xf32> to vector<1x128xf32>
    %15 = vector.extract_strided_slice %7 {offsets = [7, 0], sizes = [1, 64], strides = [1, 1]} : vector<8x192xf32> to vector<1x64xf32>
    %cst_10 = arith.constant dense<0.000000e+00> : vector<64xf32>
    %16 = vector.multi_reduction <add>, %4, %cst_10 [1] : vector<64x64xf32> to vector<64xf32>
    %17 = vector.shape_cast %16 : vector<64xf32> to vector<64x1xf32>
    %cst_11 = arith.constant 6.400000e+01 : f32
    %18 = vector.broadcast %cst_11 : f32 to vector<64x1xf32>
    %19 = arith.divf %17, %18 : vector<64x1xf32>
    %20 = vector.broadcast %19 : vector<64x1xf32> to vector<64x64xf32>
    %21 = arith.subf %4, %20 : vector<64x64xf32>
    %22 = arith.mulf %21, %21 : vector<64x64xf32>
    %cst_12 = arith.constant dense<0.000000e+00> : vector<64xf32>
    %23 = vector.multi_reduction <add>, %22, %cst_12 [1] : vector<64x64xf32> to vector<64xf32>
    %24 = vector.shape_cast %23 : vector<64xf32> to vector<64x1xf32>
    %cst_13 = arith.constant 6.400000e+01 : f32
    %25 = vector.broadcast %cst_13 : f32 to vector<64x1xf32>
    %26 = arith.divf %24, %25 : vector<64x1xf32>
    %27 = vector.broadcast %19 : vector<64x1xf32> to vector<64x64xf32>
    %28 = arith.subf %4, %27 : vector<64x64xf32>
    %cst_14 = arith.constant 9.99999997E-7 : f32
    %29 = vector.broadcast %cst_14 : f32 to vector<64x1xf32>
    %30 = arith.addf %26, %29 : vector<64x1xf32>
    %31 = math.rsqrt %30 : vector<64x1xf32>
    %32 = vector.broadcast %31 : vector<64x1xf32> to vector<64x64xf32>
    %33 = arith.mulf %28, %32 : vector<64x64xf32>
    %34 = vector.broadcast %8 : vector<1x64xf32> to vector<64x64xf32>
    %35 = arith.mulf %33, %34 : vector<64x64xf32>
    %36 = vector.broadcast %9 : vector<1x64xf32> to vector<64x64xf32>
    %37 = arith.addf %35, %36 : vector<64x64xf32>
    %38 = arith.truncf %37 : vector<64x64xf32> to vector<64x64xbf16>
    %c0_15 = arith.constant 0 : index
    %c0_16 = arith.constant 0 : index
    %c0_17 = arith.constant 0 : index
    %39 = vector.load %arg5[%c0_15, %c0_16, %c0_17] : memref<3x64x192xbf16, #tpu.memory_space<vmem>>, vector<1x64x192xbf16>
    %40 = vector.shape_cast %39 : vector<1x64x192xbf16> to vector<64x192xbf16>
    %cst_18 = arith.constant dense<0.000000e+00> : vector<64x192xf32>
    %41 = tpu.matmul %38, %40, %cst_18 {dimension_numbers = #tpu.dot_dimension_numbers<[1], [0], [0], [1], [0, 0, 1, 1], [], []>} : vector<64x64xbf16>, vector<64x192xbf16>, vector<64x192xf32> -> vector<64x192xf32>
    %42 = vector.broadcast %10 : vector<1x192xf32> to vector<64x192xf32>
    %43 = arith.addf %41, %42 : vector<64x192xf32>
    %44 = vector.extract_strided_slice %43 {offsets = [0, 0], sizes = [64, 16], strides = [1, 1]} : vector<64x192xf32> to vector<64x16xf32>
    %45 = arith.truncf %44 : vector<64x16xf32> to vector<64x16xbf16>
    %46 = vector.extract_strided_slice %43 {offsets = [0, 64], sizes = [64, 16], strides = [1, 1]} : vector<64x192xf32> to vector<64x16xf32>
    %47 = arith.truncf %46 : vector<64x16xf32> to vector<64x16xbf16>
    %48 = vector.extract_strided_slice %43 {offsets = [0, 128], sizes = [64, 16], strides = [1, 1]} : vector<64x192xf32> to vector<64x16xf32>
    %49 = arith.truncf %48 : vector<64x16xf32> to vector<64x16xbf16>
    %cst_19 = arith.constant dense<0.000000e+00> : vector<64x64xf32>
    %50 = tpu.matmul %45, %47, %cst_19 {dimension_numbers = #tpu.dot_dimension_numbers<[1], [1], [0], [0], [0, 0, 1, 0], [], []>} : vector<64x16xbf16>, vector<64x16xbf16>, vector<64x64xf32> -> vector<64x64xf32>
    %cst_20 = arith.constant 2.500000e-01 : f32
    %51 = vector.broadcast %cst_20 : f32 to vector<64x64xf32>
    %52 = arith.mulf %50, %51 : vector<64x64xf32>
    %53 = arith.addf %52, %5 : vector<64x64xf32>
    %cst_21 = arith.constant dense<0xFF800000> : vector<64xf32>
    %54 = vector.multi_reduction <maximumf>, %53, %cst_21 [1] : vector<64x64xf32> to vector<64xf32>
    %55 = vector.shape_cast %54 : vector<64xf32> to vector<64x1xf32>
    %56 = vector.broadcast %55 : vector<64x1xf32> to vector<64x64xf32>
    %57 = arith.subf %53, %56 : vector<64x64xf32>
    %58 = math.exp %57 : vector<64x64xf32>
    %cst_22 = arith.constant dense<0.000000e+00> : vector<64xf32>
    %59 = vector.multi_reduction <add>, %58, %cst_22 [1] : vector<64x64xf32> to vector<64xf32>
    %60 = vector.shape_cast %59 : vector<64xf32> to vector<64x1xf32>
    %61 = vector.broadcast %60 : vector<64x1xf32> to vector<64x64xf32>
    %62 = arith.divf %58, %61 : vector<64x64xf32>
    %63 = arith.truncf %62 : vector<64x64xf32> to vector<64x64xbf16>
    %cst_23 = arith.constant dense<0.000000e+00> : vector<64x16xf32>
    %64 = tpu.matmul %63, %49, %cst_23 {dimension_numbers = #tpu.dot_dimension_numbers<[1], [0], [0], [1], [0, 0, 1, 1], [], []>} : vector<64x64xbf16>, vector<64x16xbf16>, vector<64x16xf32> -> vector<64x16xf32>
    %65 = vector.extract_strided_slice %43 {offsets = [0, 16], sizes = [64, 16], strides = [1, 1]} : vector<64x192xf32> to vector<64x16xf32>
    %66 = arith.truncf %65 : vector<64x16xf32> to vector<64x16xbf16>
    %67 = vector.extract_strided_slice %43 {offsets = [0, 80], sizes = [64, 16], strides = [1, 1]} : vector<64x192xf32> to vector<64x16xf32>
    %68 = arith.truncf %67 : vector<64x16xf32> to vector<64x16xbf16>
    %69 = vector.extract_strided_slice %43 {offsets = [0, 144], sizes = [64, 16], strides = [1, 1]} : vector<64x192xf32> to vector<64x16xf32>
    %70 = arith.truncf %69 : vector<64x16xf32> to vector<64x16xbf16>
    %cst_24 = arith.constant dense<0.000000e+00> : vector<64x64xf32>
    %71 = tpu.matmul %66, %68, %cst_24 {dimension_numbers = #tpu.dot_dimension_numbers<[1], [1], [0], [0], [0, 0, 1, 0], [], []>} : vector<64x16xbf16>, vector<64x16xbf16>, vector<64x64xf32> -> vector<64x64xf32>
    %cst_25 = arith.constant 2.500000e-01 : f32
    %72 = vector.broadcast %cst_25 : f32 to vector<64x64xf32>
    %73 = arith.mulf %71, %72 : vector<64x64xf32>
    %74 = arith.addf %73, %5 : vector<64x64xf32>
    %cst_26 = arith.constant dense<0xFF800000> : vector<64xf32>
    %75 = vector.multi_reduction <maximumf>, %74, %cst_26 [1] : vector<64x64xf32> to vector<64xf32>
    %76 = vector.shape_cast %75 : vector<64xf32> to vector<64x1xf32>
    %77 = vector.broadcast %76 : vector<64x1xf32> to vector<64x64xf32>
    %78 = arith.subf %74, %77 : vector<64x64xf32>
    %79 = math.exp %78 : vector<64x64xf32>
    %cst_27 = arith.constant dense<0.000000e+00> : vector<64xf32>
    %80 = vector.multi_reduction <add>, %79, %cst_27 [1] : vector<64x64xf32> to vector<64xf32>
    %81 = vector.shape_cast %80 : vector<64xf32> to vector<64x1xf32>
    %82 = vector.broadcast %81 : vector<64x1xf32> to vector<64x64xf32>
    %83 = arith.divf %79, %82 : vector<64x64xf32>
    %84 = arith.truncf %83 : vector<64x64xf32> to vector<64x64xbf16>
    %cst_28 = arith.constant dense<0.000000e+00> : vector<64x16xf32>
    %85 = tpu.matmul %84, %70, %cst_28 {dimension_numbers = #tpu.dot_dimension_numbers<[1], [0], [0], [1], [0, 0, 1, 1], [], []>} : vector<64x64xbf16>, vector<64x16xbf16>, vector<64x16xf32> -> vector<64x16xf32>
    %86 = vector.extract_strided_slice %43 {offsets = [0, 32], sizes = [64, 16], strides = [1, 1]} : vector<64x192xf32> to vector<64x16xf32>
    %87 = arith.truncf %86 : vector<64x16xf32> to vector<64x16xbf16>
    %88 = vector.extract_strided_slice %43 {offsets = [0, 96], sizes = [64, 16], strides = [1, 1]} : vector<64x192xf32> to vector<64x16xf32>
    %89 = arith.truncf %88 : vector<64x16xf32> to vector<64x16xbf16>
    %90 = vector.extract_strided_slice %43 {offsets = [0, 160], sizes = [64, 16], strides = [1, 1]} : vector<64x192xf32> to vector<64x16xf32>
    %91 = arith.truncf %90 : vector<64x16xf32> to vector<64x16xbf16>
    %cst_29 = arith.constant dense<0.000000e+00> : vector<64x64xf32>
    %92 = tpu.matmul %87, %89, %cst_29 {dimension_numbers = #tpu.dot_dimension_numbers<[1], [1], [0], [0], [0, 0, 1, 0], [], []>} : vector<64x16xbf16>, vector<64x16xbf16>, vector<64x64xf32> -> vector<64x64xf32>
    %cst_30 = arith.constant 2.500000e-01 : f32
    %93 = vector.broadcast %cst_30 : f32 to vector<64x64xf32>
    %94 = arith.mulf %92, %93 : vector<64x64xf32>
    %95 = arith.addf %94, %5 : vector<64x64xf32>
    %cst_31 = arith.constant dense<0xFF800000> : vector<64xf32>
    %96 = vector.multi_reduction <maximumf>, %95, %cst_31 [1] : vector<64x64xf32> to vector<64xf32>
    %97 = vector.shape_cast %96 : vector<64xf32> to vector<64x1xf32>
    %98 = vector.broadcast %97 : vector<64x1xf32> to vector<64x64xf32>
    %99 = arith.subf %95, %98 : vector<64x64xf32>
    %100 = math.exp %99 : vector<64x64xf32>
    %cst_32 = arith.constant dense<0.000000e+00> : vector<64xf32>
    %101 = vector.multi_reduction <add>, %100, %cst_32 [1] : vector<64x64xf32> to vector<64xf32>
    %102 = vector.shape_cast %101 : vector<64xf32> to vector<64x1xf32>
    %103 = vector.broadcast %102 : vector<64x1xf32> to vector<64x64xf32>
    %104 = arith.divf %100, %103 : vector<64x64xf32>
    %105 = arith.truncf %104 : vector<64x64xf32> to vector<64x64xbf16>
    %cst_33 = arith.constant dense<0.000000e+00> : vector<64x16xf32>
    %106 = tpu.matmul %105, %91, %cst_33 {dimension_numbers = #tpu.dot_dimension_numbers<[1], [0], [0], [1], [0, 0, 1, 1], [], []>} : vector<64x64xbf16>, vector<64x16xbf16>, vector<64x16xf32> -> vector<64x16xf32>
    %107 = vector.extract_strided_slice %43 {offsets = [0, 48], sizes = [64, 16], strides = [1, 1]} : vector<64x192xf32> to vector<64x16xf32>
    %108 = arith.truncf %107 : vector<64x16xf32> to vector<64x16xbf16>
    %109 = vector.extract_strided_slice %43 {offsets = [0, 112], sizes = [64, 16], strides = [1, 1]} : vector<64x192xf32> to vector<64x16xf32>
    %110 = arith.truncf %109 : vector<64x16xf32> to vector<64x16xbf16>
    %111 = vector.extract_strided_slice %43 {offsets = [0, 176], sizes = [64, 16], strides = [1, 1]} : vector<64x192xf32> to vector<64x16xf32>
    %112 = arith.truncf %111 : vector<64x16xf32> to vector<64x16xbf16>
    %cst_34 = arith.constant dense<0.000000e+00> : vector<64x64xf32>
    %113 = tpu.matmul %108, %110, %cst_34 {dimension_numbers = #tpu.dot_dimension_numbers<[1], [1], [0], [0], [0, 0, 1, 0], [], []>} : vector<64x16xbf16>, vector<64x16xbf16>, vector<64x64xf32> -> vector<64x64xf32>
    %cst_35 = arith.constant 2.500000e-01 : f32
    %114 = vector.broadcast %cst_35 : f32 to vector<64x64xf32>
    %115 = arith.mulf %113, %114 : vector<64x64xf32>
    %116 = arith.addf %115, %5 : vector<64x64xf32>
    %cst_36 = arith.constant dense<0xFF800000> : vector<64xf32>
    %117 = vector.multi_reduction <maximumf>, %116, %cst_36 [1] : vector<64x64xf32> to vector<64xf32>
    %118 = vector.shape_cast %117 : vector<64xf32> to vector<64x1xf32>
    %119 = vector.broadcast %118 : vector<64x1xf32> to vector<64x64xf32>
    %120 = arith.subf %116, %119 : vector<64x64xf32>
    %121 = math.exp %120 : vector<64x64xf32>
    %cst_37 = arith.constant dense<0.000000e+00> : vector<64xf32>
    %122 = vector.multi_reduction <add>, %121, %cst_37 [1] : vector<64x64xf32> to vector<64xf32>
    %123 = vector.shape_cast %122 : vector<64xf32> to vector<64x1xf32>
    %124 = vector.broadcast %123 : vector<64x1xf32> to vector<64x64xf32>
    %125 = arith.divf %121, %124 : vector<64x64xf32>
    %126 = arith.truncf %125 : vector<64x64xf32> to vector<64x64xbf16>
    %cst_38 = arith.constant dense<0.000000e+00> : vector<64x16xf32>
    %127 = tpu.matmul %126, %112, %cst_38 {dimension_numbers = #tpu.dot_dimension_numbers<[1], [0], [0], [1], [0, 0, 1, 1], [], []>} : vector<64x64xbf16>, vector<64x16xbf16>, vector<64x16xf32> -> vector<64x16xf32>
    %128 = tpu.concatenate %64, %85, %106, %127 in 1 : vector<64x16xf32>, vector<64x16xf32>, vector<64x16xf32>, vector<64x16xf32> -> vector<64x64xf32>
    %129 = arith.truncf %128 : vector<64x64xf32> to vector<64x64xbf16>
    %c0_39 = arith.constant 0 : index
    %c0_40 = arith.constant 0 : index
    %c0_41 = arith.constant 0 : index
    %130 = vector.load %arg6[%c0_39, %c0_40, %c0_41] : memref<3x64x64xbf16, #tpu.memory_space<vmem>>, vector<1x64x64xbf16>
    %131 = vector.shape_cast %130 : vector<1x64x64xbf16> to vector<64x64xbf16>
    %cst_42 = arith.constant dense<0.000000e+00> : vector<64x64xf32>
    %132 = tpu.matmul %129, %131, %cst_42 {dimension_numbers = #tpu.dot_dimension_numbers<[1], [0], [0], [1], [0, 0, 1, 1], [], []>} : vector<64x64xbf16>, vector<64x64xbf16>, vector<64x64xf32> -> vector<64x64xf32>
    %133 = vector.broadcast %11 : vector<1x64xf32> to vector<64x64xf32>
    %134 = arith.addf %132, %133 : vector<64x64xf32>
    %135 = arith.addf %4, %134 : vector<64x64xf32>
    %cst_43 = arith.constant dense<0.000000e+00> : vector<64xf32>
    %136 = vector.multi_reduction <add>, %135, %cst_43 [1] : vector<64x64xf32> to vector<64xf32>
    %137 = vector.shape_cast %136 : vector<64xf32> to vector<64x1xf32>
    %cst_44 = arith.constant 6.400000e+01 : f32
    %138 = vector.broadcast %cst_44 : f32 to vector<64x1xf32>
    %139 = arith.divf %137, %138 : vector<64x1xf32>
    %140 = vector.broadcast %139 : vector<64x1xf32> to vector<64x64xf32>
    %141 = arith.subf %135, %140 : vector<64x64xf32>
    %142 = arith.mulf %141, %141 : vector<64x64xf32>
    %cst_45 = arith.constant dense<0.000000e+00> : vector<64xf32>
    %143 = vector.multi_reduction <add>, %142, %cst_45 [1] : vector<64x64xf32> to vector<64xf32>
    %144 = vector.shape_cast %143 : vector<64xf32> to vector<64x1xf32>
    %cst_46 = arith.constant 6.400000e+01 : f32
    %145 = vector.broadcast %cst_46 : f32 to vector<64x1xf32>
    %146 = arith.divf %144, %145 : vector<64x1xf32>
    %147 = vector.broadcast %139 : vector<64x1xf32> to vector<64x64xf32>
    %148 = arith.subf %135, %147 : vector<64x64xf32>
    %cst_47 = arith.constant 9.99999997E-7 : f32
    %149 = vector.broadcast %cst_47 : f32 to vector<64x1xf32>
    %150 = arith.addf %146, %149 : vector<64x1xf32>
    %151 = math.rsqrt %150 : vector<64x1xf32>
    %152 = vector.broadcast %151 : vector<64x1xf32> to vector<64x64xf32>
    %153 = arith.mulf %148, %152 : vector<64x64xf32>
    %154 = vector.broadcast %12 : vector<1x64xf32> to vector<64x64xf32>
    %155 = arith.mulf %153, %154 : vector<64x64xf32>
    %156 = vector.broadcast %13 : vector<1x64xf32> to vector<64x64xf32>
    %157 = arith.addf %155, %156 : vector<64x64xf32>
    %158 = arith.truncf %157 : vector<64x64xf32> to vector<64x64xbf16>
    %c0_48 = arith.constant 0 : index
    %c0_49 = arith.constant 0 : index
    %c0_50 = arith.constant 0 : index
    %159 = vector.load %arg7[%c0_48, %c0_49, %c0_50] : memref<3x64x128xbf16, #tpu.memory_space<vmem>>, vector<1x64x128xbf16>
    %160 = vector.shape_cast %159 : vector<1x64x128xbf16> to vector<64x128xbf16>
    %cst_51 = arith.constant dense<0.000000e+00> : vector<64x128xf32>
    %161 = tpu.matmul %158, %160, %cst_51 {dimension_numbers = #tpu.dot_dimension_numbers<[1], [0], [0], [1], [0, 0, 1, 1], [], []>} : vector<64x64xbf16>, vector<64x128xbf16>, vector<64x128xf32> -> vector<64x128xf32>
    %162 = vector.broadcast %14 : vector<1x128xf32> to vector<64x128xf32>
    %163 = arith.addf %161, %162 : vector<64x128xf32>
    %164 = arith.mulf %163, %163 : vector<64x128xf32>
    %165 = arith.mulf %163, %164 : vector<64x128xf32>
    %cst_52 = arith.constant 4.471500e-02 : f32
    %166 = vector.broadcast %cst_52 : f32 to vector<64x128xf32>
    %167 = arith.mulf %166, %165 : vector<64x128xf32>
    %168 = arith.addf %163, %167 : vector<64x128xf32>
    %cst_53 = arith.constant 0.797884583 : f32
    %169 = vector.broadcast %cst_53 : f32 to vector<64x128xf32>
    %170 = arith.mulf %169, %168 : vector<64x128xf32>
    %171 = math.tanh %170 : vector<64x128xf32>
    %cst_54 = arith.constant 1.000000e+00 : f32
    %172 = vector.broadcast %cst_54 : f32 to vector<64x128xf32>
    %173 = arith.addf %172, %171 : vector<64x128xf32>
    %cst_55 = arith.constant 5.000000e-01 : f32
    %174 = vector.broadcast %cst_55 : f32 to vector<64x128xf32>
    %175 = arith.mulf %174, %173 : vector<64x128xf32>
    %176 = arith.mulf %163, %175 : vector<64x128xf32>
    %177 = arith.truncf %176 : vector<64x128xf32> to vector<64x128xbf16>
    %c0_56 = arith.constant 0 : index
    %c0_57 = arith.constant 0 : index
    %c0_58 = arith.constant 0 : index
    %178 = vector.load %arg8[%c0_56, %c0_57, %c0_58] : memref<3x128x64xbf16, #tpu.memory_space<vmem>>, vector<1x128x64xbf16>
    %179 = vector.shape_cast %178 : vector<1x128x64xbf16> to vector<128x64xbf16>
    %cst_59 = arith.constant dense<0.000000e+00> : vector<64x64xf32>
    %180 = tpu.matmul %177, %179, %cst_59 {dimension_numbers = #tpu.dot_dimension_numbers<[1], [0], [0], [1], [0, 0, 1, 1], [], []>} : vector<64x128xbf16>, vector<128x64xbf16>, vector<64x64xf32> -> vector<64x64xf32>
    %181 = vector.broadcast %15 : vector<1x64xf32> to vector<64x64xf32>
    %182 = arith.addf %180, %181 : vector<64x64xf32>
    %183 = arith.addf %135, %182 : vector<64x64xf32>
    %c0_60 = arith.constant 0 : index
    %c0_61 = arith.constant 0 : index
    %c0_62 = arith.constant 0 : index
    %184 = vector.load %arg10[%c0_60, %c0_61, %c0_62] : memref<2x64x1xf32, #tpu.memory_space<vmem>>, vector<1x64x1xf32>
    %185 = vector.shape_cast %184 : vector<1x64x1xf32> to vector<64x1xf32>
    %186 = vector.broadcast %185 : vector<64x1xf32> to vector<64x64xf32>
    %187 = arith.mulf %183, %186 : vector<64x64xf32>
    %c1 = arith.constant 1 : index
    %c0_63 = arith.constant 0 : index
    %c0_64 = arith.constant 0 : index
    %188 = vector.load %arg9[%c1, %c0_63, %c0_64] : memref<3x8x192xf32, #tpu.memory_space<vmem>>, vector<1x8x192xf32>
    %189 = vector.shape_cast %188 : vector<1x8x192xf32> to vector<8x192xf32>
    %190 = vector.extract_strided_slice %189 {offsets = [0, 0], sizes = [1, 64], strides = [1, 1]} : vector<8x192xf32> to vector<1x64xf32>
    %191 = vector.extract_strided_slice %189 {offsets = [1, 0], sizes = [1, 64], strides = [1, 1]} : vector<8x192xf32> to vector<1x64xf32>
    %192 = vector.extract_strided_slice %189 {offsets = [2, 0], sizes = [1, 192], strides = [1, 1]} : vector<8x192xf32> to vector<1x192xf32>
    %193 = vector.extract_strided_slice %189 {offsets = [3, 0], sizes = [1, 64], strides = [1, 1]} : vector<8x192xf32> to vector<1x64xf32>
    %194 = vector.extract_strided_slice %189 {offsets = [4, 0], sizes = [1, 64], strides = [1, 1]} : vector<8x192xf32> to vector<1x64xf32>
    %195 = vector.extract_strided_slice %189 {offsets = [5, 0], sizes = [1, 64], strides = [1, 1]} : vector<8x192xf32> to vector<1x64xf32>
    %196 = vector.extract_strided_slice %189 {offsets = [6, 0], sizes = [1, 128], strides = [1, 1]} : vector<8x192xf32> to vector<1x128xf32>
    %197 = vector.extract_strided_slice %189 {offsets = [7, 0], sizes = [1, 64], strides = [1, 1]} : vector<8x192xf32> to vector<1x64xf32>
    %cst_65 = arith.constant dense<0.000000e+00> : vector<64xf32>
    %198 = vector.multi_reduction <add>, %187, %cst_65 [1] : vector<64x64xf32> to vector<64xf32>
    %199 = vector.shape_cast %198 : vector<64xf32> to vector<64x1xf32>
    %cst_66 = arith.constant 6.400000e+01 : f32
    %200 = vector.broadcast %cst_66 : f32 to vector<64x1xf32>
    %201 = arith.divf %199, %200 : vector<64x1xf32>
    %202 = vector.broadcast %201 : vector<64x1xf32> to vector<64x64xf32>
    %203 = arith.subf %187, %202 : vector<64x64xf32>
    %204 = arith.mulf %203, %203 : vector<64x64xf32>
    %cst_67 = arith.constant dense<0.000000e+00> : vector<64xf32>
    %205 = vector.multi_reduction <add>, %204, %cst_67 [1] : vector<64x64xf32> to vector<64xf32>
    %206 = vector.shape_cast %205 : vector<64xf32> to vector<64x1xf32>
    %cst_68 = arith.constant 6.400000e+01 : f32
    %207 = vector.broadcast %cst_68 : f32 to vector<64x1xf32>
    %208 = arith.divf %206, %207 : vector<64x1xf32>
    %209 = vector.broadcast %201 : vector<64x1xf32> to vector<64x64xf32>
    %210 = arith.subf %187, %209 : vector<64x64xf32>
    %cst_69 = arith.constant 9.99999997E-7 : f32
    %211 = vector.broadcast %cst_69 : f32 to vector<64x1xf32>
    %212 = arith.addf %208, %211 : vector<64x1xf32>
    %213 = math.rsqrt %212 : vector<64x1xf32>
    %214 = vector.broadcast %213 : vector<64x1xf32> to vector<64x64xf32>
    %215 = arith.mulf %210, %214 : vector<64x64xf32>
    %216 = vector.broadcast %190 : vector<1x64xf32> to vector<64x64xf32>
    %217 = arith.mulf %215, %216 : vector<64x64xf32>
    %218 = vector.broadcast %191 : vector<1x64xf32> to vector<64x64xf32>
    %219 = arith.addf %217, %218 : vector<64x64xf32>
    %220 = arith.truncf %219 : vector<64x64xf32> to vector<64x64xbf16>
    %c1_70 = arith.constant 1 : index
    %c0_71 = arith.constant 0 : index
    %c0_72 = arith.constant 0 : index
    %221 = vector.load %arg5[%c1_70, %c0_71, %c0_72] : memref<3x64x192xbf16, #tpu.memory_space<vmem>>, vector<1x64x192xbf16>
    %222 = vector.shape_cast %221 : vector<1x64x192xbf16> to vector<64x192xbf16>
    %cst_73 = arith.constant dense<0.000000e+00> : vector<64x192xf32>
    %223 = tpu.matmul %220, %222, %cst_73 {dimension_numbers = #tpu.dot_dimension_numbers<[1], [0], [0], [1], [0, 0, 1, 1], [], []>} : vector<64x64xbf16>, vector<64x192xbf16>, vector<64x192xf32> -> vector<64x192xf32>
    %224 = vector.broadcast %192 : vector<1x192xf32> to vector<64x192xf32>
    %225 = arith.addf %223, %224 : vector<64x192xf32>
    %226 = vector.extract_strided_slice %225 {offsets = [0, 0], sizes = [64, 16], strides = [1, 1]} : vector<64x192xf32> to vector<64x16xf32>
    %227 = arith.truncf %226 : vector<64x16xf32> to vector<64x16xbf16>
    %228 = vector.extract_strided_slice %225 {offsets = [0, 64], sizes = [64, 16], strides = [1, 1]} : vector<64x192xf32> to vector<64x16xf32>
    %229 = arith.truncf %228 : vector<64x16xf32> to vector<64x16xbf16>
    %230 = vector.extract_strided_slice %225 {offsets = [0, 128], sizes = [64, 16], strides = [1, 1]} : vector<64x192xf32> to vector<64x16xf32>
    %231 = arith.truncf %230 : vector<64x16xf32> to vector<64x16xbf16>
    %cst_74 = arith.constant dense<0.000000e+00> : vector<64x64xf32>
    %232 = tpu.matmul %227, %229, %cst_74 {dimension_numbers = #tpu.dot_dimension_numbers<[1], [1], [0], [0], [0, 0, 1, 0], [], []>} : vector<64x16xbf16>, vector<64x16xbf16>, vector<64x64xf32> -> vector<64x64xf32>
    %cst_75 = arith.constant 2.500000e-01 : f32
    %233 = vector.broadcast %cst_75 : f32 to vector<64x64xf32>
    %234 = arith.mulf %232, %233 : vector<64x64xf32>
    %235 = arith.addf %234, %5 : vector<64x64xf32>
    %cst_76 = arith.constant dense<0xFF800000> : vector<64xf32>
    %236 = vector.multi_reduction <maximumf>, %235, %cst_76 [1] : vector<64x64xf32> to vector<64xf32>
    %237 = vector.shape_cast %236 : vector<64xf32> to vector<64x1xf32>
    %238 = vector.broadcast %237 : vector<64x1xf32> to vector<64x64xf32>
    %239 = arith.subf %235, %238 : vector<64x64xf32>
    %240 = math.exp %239 : vector<64x64xf32>
    %cst_77 = arith.constant dense<0.000000e+00> : vector<64xf32>
    %241 = vector.multi_reduction <add>, %240, %cst_77 [1] : vector<64x64xf32> to vector<64xf32>
    %242 = vector.shape_cast %241 : vector<64xf32> to vector<64x1xf32>
    %243 = vector.broadcast %242 : vector<64x1xf32> to vector<64x64xf32>
    %244 = arith.divf %240, %243 : vector<64x64xf32>
    %245 = arith.truncf %244 : vector<64x64xf32> to vector<64x64xbf16>
    %cst_78 = arith.constant dense<0.000000e+00> : vector<64x16xf32>
    %246 = tpu.matmul %245, %231, %cst_78 {dimension_numbers = #tpu.dot_dimension_numbers<[1], [0], [0], [1], [0, 0, 1, 1], [], []>} : vector<64x64xbf16>, vector<64x16xbf16>, vector<64x16xf32> -> vector<64x16xf32>
    %247 = vector.extract_strided_slice %225 {offsets = [0, 16], sizes = [64, 16], strides = [1, 1]} : vector<64x192xf32> to vector<64x16xf32>
    %248 = arith.truncf %247 : vector<64x16xf32> to vector<64x16xbf16>
    %249 = vector.extract_strided_slice %225 {offsets = [0, 80], sizes = [64, 16], strides = [1, 1]} : vector<64x192xf32> to vector<64x16xf32>
    %250 = arith.truncf %249 : vector<64x16xf32> to vector<64x16xbf16>
    %251 = vector.extract_strided_slice %225 {offsets = [0, 144], sizes = [64, 16], strides = [1, 1]} : vector<64x192xf32> to vector<64x16xf32>
    %252 = arith.truncf %251 : vector<64x16xf32> to vector<64x16xbf16>
    %cst_79 = arith.constant dense<0.000000e+00> : vector<64x64xf32>
    %253 = tpu.matmul %248, %250, %cst_79 {dimension_numbers = #tpu.dot_dimension_numbers<[1], [1], [0], [0], [0, 0, 1, 0], [], []>} : vector<64x16xbf16>, vector<64x16xbf16>, vector<64x64xf32> -> vector<64x64xf32>
    %cst_80 = arith.constant 2.500000e-01 : f32
    %254 = vector.broadcast %cst_80 : f32 to vector<64x64xf32>
    %255 = arith.mulf %253, %254 : vector<64x64xf32>
    %256 = arith.addf %255, %5 : vector<64x64xf32>
    %cst_81 = arith.constant dense<0xFF800000> : vector<64xf32>
    %257 = vector.multi_reduction <maximumf>, %256, %cst_81 [1] : vector<64x64xf32> to vector<64xf32>
    %258 = vector.shape_cast %257 : vector<64xf32> to vector<64x1xf32>
    %259 = vector.broadcast %258 : vector<64x1xf32> to vector<64x64xf32>
    %260 = arith.subf %256, %259 : vector<64x64xf32>
    %261 = math.exp %260 : vector<64x64xf32>
    %cst_82 = arith.constant dense<0.000000e+00> : vector<64xf32>
    %262 = vector.multi_reduction <add>, %261, %cst_82 [1] : vector<64x64xf32> to vector<64xf32>
    %263 = vector.shape_cast %262 : vector<64xf32> to vector<64x1xf32>
    %264 = vector.broadcast %263 : vector<64x1xf32> to vector<64x64xf32>
    %265 = arith.divf %261, %264 : vector<64x64xf32>
    %266 = arith.truncf %265 : vector<64x64xf32> to vector<64x64xbf16>
    %cst_83 = arith.constant dense<0.000000e+00> : vector<64x16xf32>
    %267 = tpu.matmul %266, %252, %cst_83 {dimension_numbers = #tpu.dot_dimension_numbers<[1], [0], [0], [1], [0, 0, 1, 1], [], []>} : vector<64x64xbf16>, vector<64x16xbf16>, vector<64x16xf32> -> vector<64x16xf32>
    %268 = vector.extract_strided_slice %225 {offsets = [0, 32], sizes = [64, 16], strides = [1, 1]} : vector<64x192xf32> to vector<64x16xf32>
    %269 = arith.truncf %268 : vector<64x16xf32> to vector<64x16xbf16>
    %270 = vector.extract_strided_slice %225 {offsets = [0, 96], sizes = [64, 16], strides = [1, 1]} : vector<64x192xf32> to vector<64x16xf32>
    %271 = arith.truncf %270 : vector<64x16xf32> to vector<64x16xbf16>
    %272 = vector.extract_strided_slice %225 {offsets = [0, 160], sizes = [64, 16], strides = [1, 1]} : vector<64x192xf32> to vector<64x16xf32>
    %273 = arith.truncf %272 : vector<64x16xf32> to vector<64x16xbf16>
    %cst_84 = arith.constant dense<0.000000e+00> : vector<64x64xf32>
    %274 = tpu.matmul %269, %271, %cst_84 {dimension_numbers = #tpu.dot_dimension_numbers<[1], [1], [0], [0], [0, 0, 1, 0], [], []>} : vector<64x16xbf16>, vector<64x16xbf16>, vector<64x64xf32> -> vector<64x64xf32>
    %cst_85 = arith.constant 2.500000e-01 : f32
    %275 = vector.broadcast %cst_85 : f32 to vector<64x64xf32>
    %276 = arith.mulf %274, %275 : vector<64x64xf32>
    %277 = arith.addf %276, %5 : vector<64x64xf32>
    %cst_86 = arith.constant dense<0xFF800000> : vector<64xf32>
    %278 = vector.multi_reduction <maximumf>, %277, %cst_86 [1] : vector<64x64xf32> to vector<64xf32>
    %279 = vector.shape_cast %278 : vector<64xf32> to vector<64x1xf32>
    %280 = vector.broadcast %279 : vector<64x1xf32> to vector<64x64xf32>
    %281 = arith.subf %277, %280 : vector<64x64xf32>
    %282 = math.exp %281 : vector<64x64xf32>
    %cst_87 = arith.constant dense<0.000000e+00> : vector<64xf32>
    %283 = vector.multi_reduction <add>, %282, %cst_87 [1] : vector<64x64xf32> to vector<64xf32>
    %284 = vector.shape_cast %283 : vector<64xf32> to vector<64x1xf32>
    %285 = vector.broadcast %284 : vector<64x1xf32> to vector<64x64xf32>
    %286 = arith.divf %282, %285 : vector<64x64xf32>
    %287 = arith.truncf %286 : vector<64x64xf32> to vector<64x64xbf16>
    %cst_88 = arith.constant dense<0.000000e+00> : vector<64x16xf32>
    %288 = tpu.matmul %287, %273, %cst_88 {dimension_numbers = #tpu.dot_dimension_numbers<[1], [0], [0], [1], [0, 0, 1, 1], [], []>} : vector<64x64xbf16>, vector<64x16xbf16>, vector<64x16xf32> -> vector<64x16xf32>
    %289 = vector.extract_strided_slice %225 {offsets = [0, 48], sizes = [64, 16], strides = [1, 1]} : vector<64x192xf32> to vector<64x16xf32>
    %290 = arith.truncf %289 : vector<64x16xf32> to vector<64x16xbf16>
    %291 = vector.extract_strided_slice %225 {offsets = [0, 112], sizes = [64, 16], strides = [1, 1]} : vector<64x192xf32> to vector<64x16xf32>
    %292 = arith.truncf %291 : vector<64x16xf32> to vector<64x16xbf16>
    %293 = vector.extract_strided_slice %225 {offsets = [0, 176], sizes = [64, 16], strides = [1, 1]} : vector<64x192xf32> to vector<64x16xf32>
    %294 = arith.truncf %293 : vector<64x16xf32> to vector<64x16xbf16>
    %cst_89 = arith.constant dense<0.000000e+00> : vector<64x64xf32>
    %295 = tpu.matmul %290, %292, %cst_89 {dimension_numbers = #tpu.dot_dimension_numbers<[1], [1], [0], [0], [0, 0, 1, 0], [], []>} : vector<64x16xbf16>, vector<64x16xbf16>, vector<64x64xf32> -> vector<64x64xf32>
    %cst_90 = arith.constant 2.500000e-01 : f32
    %296 = vector.broadcast %cst_90 : f32 to vector<64x64xf32>
    %297 = arith.mulf %295, %296 : vector<64x64xf32>
    %298 = arith.addf %297, %5 : vector<64x64xf32>
    %cst_91 = arith.constant dense<0xFF800000> : vector<64xf32>
    %299 = vector.multi_reduction <maximumf>, %298, %cst_91 [1] : vector<64x64xf32> to vector<64xf32>
    %300 = vector.shape_cast %299 : vector<64xf32> to vector<64x1xf32>
    %301 = vector.broadcast %300 : vector<64x1xf32> to vector<64x64xf32>
    %302 = arith.subf %298, %301 : vector<64x64xf32>
    %303 = math.exp %302 : vector<64x64xf32>
    %cst_92 = arith.constant dense<0.000000e+00> : vector<64xf32>
    %304 = vector.multi_reduction <add>, %303, %cst_92 [1] : vector<64x64xf32> to vector<64xf32>
    %305 = vector.shape_cast %304 : vector<64xf32> to vector<64x1xf32>
    %306 = vector.broadcast %305 : vector<64x1xf32> to vector<64x64xf32>
    %307 = arith.divf %303, %306 : vector<64x64xf32>
    %308 = arith.truncf %307 : vector<64x64xf32> to vector<64x64xbf16>
    %cst_93 = arith.constant dense<0.000000e+00> : vector<64x16xf32>
    %309 = tpu.matmul %308, %294, %cst_93 {dimension_numbers = #tpu.dot_dimension_numbers<[1], [0], [0], [1], [0, 0, 1, 1], [], []>} : vector<64x64xbf16>, vector<64x16xbf16>, vector<64x16xf32> -> vector<64x16xf32>
    %310 = tpu.concatenate %246, %267, %288, %309 in 1 : vector<64x16xf32>, vector<64x16xf32>, vector<64x16xf32>, vector<64x16xf32> -> vector<64x64xf32>
    %311 = arith.truncf %310 : vector<64x64xf32> to vector<64x64xbf16>
    %c1_94 = arith.constant 1 : index
    %c0_95 = arith.constant 0 : index
    %c0_96 = arith.constant 0 : index
    %312 = vector.load %arg6[%c1_94, %c0_95, %c0_96] : memref<3x64x64xbf16, #tpu.memory_space<vmem>>, vector<1x64x64xbf16>
    %313 = vector.shape_cast %312 : vector<1x64x64xbf16> to vector<64x64xbf16>
    %cst_97 = arith.constant dense<0.000000e+00> : vector<64x64xf32>
    %314 = tpu.matmul %311, %313, %cst_97 {dimension_numbers = #tpu.dot_dimension_numbers<[1], [0], [0], [1], [0, 0, 1, 1], [], []>} : vector<64x64xbf16>, vector<64x64xbf16>, vector<64x64xf32> -> vector<64x64xf32>
    %315 = vector.broadcast %193 : vector<1x64xf32> to vector<64x64xf32>
    %316 = arith.addf %314, %315 : vector<64x64xf32>
    %317 = arith.addf %187, %316 : vector<64x64xf32>
    %cst_98 = arith.constant dense<0.000000e+00> : vector<64xf32>
    %318 = vector.multi_reduction <add>, %317, %cst_98 [1] : vector<64x64xf32> to vector<64xf32>
    %319 = vector.shape_cast %318 : vector<64xf32> to vector<64x1xf32>
    %cst_99 = arith.constant 6.400000e+01 : f32
    %320 = vector.broadcast %cst_99 : f32 to vector<64x1xf32>
    %321 = arith.divf %319, %320 : vector<64x1xf32>
    %322 = vector.broadcast %321 : vector<64x1xf32> to vector<64x64xf32>
    %323 = arith.subf %317, %322 : vector<64x64xf32>
    %324 = arith.mulf %323, %323 : vector<64x64xf32>
    %cst_100 = arith.constant dense<0.000000e+00> : vector<64xf32>
    %325 = vector.multi_reduction <add>, %324, %cst_100 [1] : vector<64x64xf32> to vector<64xf32>
    %326 = vector.shape_cast %325 : vector<64xf32> to vector<64x1xf32>
    %cst_101 = arith.constant 6.400000e+01 : f32
    %327 = vector.broadcast %cst_101 : f32 to vector<64x1xf32>
    %328 = arith.divf %326, %327 : vector<64x1xf32>
    %329 = vector.broadcast %321 : vector<64x1xf32> to vector<64x64xf32>
    %330 = arith.subf %317, %329 : vector<64x64xf32>
    %cst_102 = arith.constant 9.99999997E-7 : f32
    %331 = vector.broadcast %cst_102 : f32 to vector<64x1xf32>
    %332 = arith.addf %328, %331 : vector<64x1xf32>
    %333 = math.rsqrt %332 : vector<64x1xf32>
    %334 = vector.broadcast %333 : vector<64x1xf32> to vector<64x64xf32>
    %335 = arith.mulf %330, %334 : vector<64x64xf32>
    %336 = vector.broadcast %194 : vector<1x64xf32> to vector<64x64xf32>
    %337 = arith.mulf %335, %336 : vector<64x64xf32>
    %338 = vector.broadcast %195 : vector<1x64xf32> to vector<64x64xf32>
    %339 = arith.addf %337, %338 : vector<64x64xf32>
    %340 = arith.truncf %339 : vector<64x64xf32> to vector<64x64xbf16>
    %c1_103 = arith.constant 1 : index
    %c0_104 = arith.constant 0 : index
    %c0_105 = arith.constant 0 : index
    %341 = vector.load %arg7[%c1_103, %c0_104, %c0_105] : memref<3x64x128xbf16, #tpu.memory_space<vmem>>, vector<1x64x128xbf16>
    %342 = vector.shape_cast %341 : vector<1x64x128xbf16> to vector<64x128xbf16>
    %cst_106 = arith.constant dense<0.000000e+00> : vector<64x128xf32>
    %343 = tpu.matmul %340, %342, %cst_106 {dimension_numbers = #tpu.dot_dimension_numbers<[1], [0], [0], [1], [0, 0, 1, 1], [], []>} : vector<64x64xbf16>, vector<64x128xbf16>, vector<64x128xf32> -> vector<64x128xf32>
    %344 = vector.broadcast %196 : vector<1x128xf32> to vector<64x128xf32>
    %345 = arith.addf %343, %344 : vector<64x128xf32>
    %346 = arith.mulf %345, %345 : vector<64x128xf32>
    %347 = arith.mulf %345, %346 : vector<64x128xf32>
    %cst_107 = arith.constant 4.471500e-02 : f32
    %348 = vector.broadcast %cst_107 : f32 to vector<64x128xf32>
    %349 = arith.mulf %348, %347 : vector<64x128xf32>
    %350 = arith.addf %345, %349 : vector<64x128xf32>
    %cst_108 = arith.constant 0.797884583 : f32
    %351 = vector.broadcast %cst_108 : f32 to vector<64x128xf32>
    %352 = arith.mulf %351, %350 : vector<64x128xf32>
    %353 = math.tanh %352 : vector<64x128xf32>
    %cst_109 = arith.constant 1.000000e+00 : f32
    %354 = vector.broadcast %cst_109 : f32 to vector<64x128xf32>
    %355 = arith.addf %354, %353 : vector<64x128xf32>
    %cst_110 = arith.constant 5.000000e-01 : f32
    %356 = vector.broadcast %cst_110 : f32 to vector<64x128xf32>
    %357 = arith.mulf %356, %355 : vector<64x128xf32>
    %358 = arith.mulf %345, %357 : vector<64x128xf32>
    %359 = arith.truncf %358 : vector<64x128xf32> to vector<64x128xbf16>
    %c1_111 = arith.constant 1 : index
    %c0_112 = arith.constant 0 : index
    %c0_113 = arith.constant 0 : index
    %360 = vector.load %arg8[%c1_111, %c0_112, %c0_113] : memref<3x128x64xbf16, #tpu.memory_space<vmem>>, vector<1x128x64xbf16>
    %361 = vector.shape_cast %360 : vector<1x128x64xbf16> to vector<128x64xbf16>
    %cst_114 = arith.constant dense<0.000000e+00> : vector<64x64xf32>
    %362 = tpu.matmul %359, %361, %cst_114 {dimension_numbers = #tpu.dot_dimension_numbers<[1], [0], [0], [1], [0, 0, 1, 1], [], []>} : vector<64x128xbf16>, vector<128x64xbf16>, vector<64x64xf32> -> vector<64x64xf32>
    %363 = vector.broadcast %197 : vector<1x64xf32> to vector<64x64xf32>
    %364 = arith.addf %362, %363 : vector<64x64xf32>
    %365 = arith.addf %317, %364 : vector<64x64xf32>
    %c1_115 = arith.constant 1 : index
    %c0_116 = arith.constant 0 : index
    %c0_117 = arith.constant 0 : index
    %366 = vector.load %arg10[%c1_115, %c0_116, %c0_117] : memref<2x64x1xf32, #tpu.memory_space<vmem>>, vector<1x64x1xf32>
    %367 = vector.shape_cast %366 : vector<1x64x1xf32> to vector<64x1xf32>
    %368 = vector.broadcast %367 : vector<64x1xf32> to vector<64x64xf32>
    %369 = arith.mulf %365, %368 : vector<64x64xf32>
    %c2 = arith.constant 2 : index
    %c0_118 = arith.constant 0 : index
    %c0_119 = arith.constant 0 : index
    %370 = vector.load %arg9[%c2, %c0_118, %c0_119] : memref<3x8x192xf32, #tpu.memory_space<vmem>>, vector<1x8x192xf32>
    %371 = vector.shape_cast %370 : vector<1x8x192xf32> to vector<8x192xf32>
    %372 = vector.extract_strided_slice %371 {offsets = [0, 0], sizes = [1, 64], strides = [1, 1]} : vector<8x192xf32> to vector<1x64xf32>
    %373 = vector.extract_strided_slice %371 {offsets = [1, 0], sizes = [1, 64], strides = [1, 1]} : vector<8x192xf32> to vector<1x64xf32>
    %374 = vector.extract_strided_slice %371 {offsets = [2, 0], sizes = [1, 192], strides = [1, 1]} : vector<8x192xf32> to vector<1x192xf32>
    %375 = vector.extract_strided_slice %371 {offsets = [3, 0], sizes = [1, 64], strides = [1, 1]} : vector<8x192xf32> to vector<1x64xf32>
    %376 = vector.extract_strided_slice %371 {offsets = [4, 0], sizes = [1, 64], strides = [1, 1]} : vector<8x192xf32> to vector<1x64xf32>
    %377 = vector.extract_strided_slice %371 {offsets = [5, 0], sizes = [1, 64], strides = [1, 1]} : vector<8x192xf32> to vector<1x64xf32>
    %378 = vector.extract_strided_slice %371 {offsets = [6, 0], sizes = [1, 128], strides = [1, 1]} : vector<8x192xf32> to vector<1x128xf32>
    %379 = vector.extract_strided_slice %371 {offsets = [7, 0], sizes = [1, 64], strides = [1, 1]} : vector<8x192xf32> to vector<1x64xf32>
    %cst_120 = arith.constant dense<0.000000e+00> : vector<64xf32>
    %380 = vector.multi_reduction <add>, %369, %cst_120 [1] : vector<64x64xf32> to vector<64xf32>
    %381 = vector.shape_cast %380 : vector<64xf32> to vector<64x1xf32>
    %cst_121 = arith.constant 6.400000e+01 : f32
    %382 = vector.broadcast %cst_121 : f32 to vector<64x1xf32>
    %383 = arith.divf %381, %382 : vector<64x1xf32>
    %384 = vector.broadcast %383 : vector<64x1xf32> to vector<64x64xf32>
    %385 = arith.subf %369, %384 : vector<64x64xf32>
    %386 = arith.mulf %385, %385 : vector<64x64xf32>
    %cst_122 = arith.constant dense<0.000000e+00> : vector<64xf32>
    %387 = vector.multi_reduction <add>, %386, %cst_122 [1] : vector<64x64xf32> to vector<64xf32>
    %388 = vector.shape_cast %387 : vector<64xf32> to vector<64x1xf32>
    %cst_123 = arith.constant 6.400000e+01 : f32
    %389 = vector.broadcast %cst_123 : f32 to vector<64x1xf32>
    %390 = arith.divf %388, %389 : vector<64x1xf32>
    %391 = vector.broadcast %383 : vector<64x1xf32> to vector<64x64xf32>
    %392 = arith.subf %369, %391 : vector<64x64xf32>
    %cst_124 = arith.constant 9.99999997E-7 : f32
    %393 = vector.broadcast %cst_124 : f32 to vector<64x1xf32>
    %394 = arith.addf %390, %393 : vector<64x1xf32>
    %395 = math.rsqrt %394 : vector<64x1xf32>
    %396 = vector.broadcast %395 : vector<64x1xf32> to vector<64x64xf32>
    %397 = arith.mulf %392, %396 : vector<64x64xf32>
    %398 = vector.broadcast %372 : vector<1x64xf32> to vector<64x64xf32>
    %399 = arith.mulf %397, %398 : vector<64x64xf32>
    %400 = vector.broadcast %373 : vector<1x64xf32> to vector<64x64xf32>
    %401 = arith.addf %399, %400 : vector<64x64xf32>
    %402 = arith.truncf %401 : vector<64x64xf32> to vector<64x64xbf16>
    %c2_125 = arith.constant 2 : index
    %c0_126 = arith.constant 0 : index
    %c0_127 = arith.constant 0 : index
    %403 = vector.load %arg5[%c2_125, %c0_126, %c0_127] : memref<3x64x192xbf16, #tpu.memory_space<vmem>>, vector<1x64x192xbf16>
    %404 = vector.shape_cast %403 : vector<1x64x192xbf16> to vector<64x192xbf16>
    %cst_128 = arith.constant dense<0.000000e+00> : vector<64x192xf32>
    %405 = tpu.matmul %402, %404, %cst_128 {dimension_numbers = #tpu.dot_dimension_numbers<[1], [0], [0], [1], [0, 0, 1, 1], [], []>} : vector<64x64xbf16>, vector<64x192xbf16>, vector<64x192xf32> -> vector<64x192xf32>
    %406 = vector.broadcast %374 : vector<1x192xf32> to vector<64x192xf32>
    %407 = arith.addf %405, %406 : vector<64x192xf32>
    %408 = vector.extract_strided_slice %407 {offsets = [0, 0], sizes = [64, 16], strides = [1, 1]} : vector<64x192xf32> to vector<64x16xf32>
    %409 = arith.truncf %408 : vector<64x16xf32> to vector<64x16xbf16>
    %410 = vector.extract_strided_slice %407 {offsets = [0, 64], sizes = [64, 16], strides = [1, 1]} : vector<64x192xf32> to vector<64x16xf32>
    %411 = arith.truncf %410 : vector<64x16xf32> to vector<64x16xbf16>
    %412 = vector.extract_strided_slice %407 {offsets = [0, 128], sizes = [64, 16], strides = [1, 1]} : vector<64x192xf32> to vector<64x16xf32>
    %413 = arith.truncf %412 : vector<64x16xf32> to vector<64x16xbf16>
    %cst_129 = arith.constant dense<0.000000e+00> : vector<64x64xf32>
    %414 = tpu.matmul %409, %411, %cst_129 {dimension_numbers = #tpu.dot_dimension_numbers<[1], [1], [0], [0], [0, 0, 1, 0], [], []>} : vector<64x16xbf16>, vector<64x16xbf16>, vector<64x64xf32> -> vector<64x64xf32>
    %cst_130 = arith.constant 2.500000e-01 : f32
    %415 = vector.broadcast %cst_130 : f32 to vector<64x64xf32>
    %416 = arith.mulf %414, %415 : vector<64x64xf32>
    %417 = arith.addf %416, %5 : vector<64x64xf32>
    %cst_131 = arith.constant dense<0xFF800000> : vector<64xf32>
    %418 = vector.multi_reduction <maximumf>, %417, %cst_131 [1] : vector<64x64xf32> to vector<64xf32>
    %419 = vector.shape_cast %418 : vector<64xf32> to vector<64x1xf32>
    %420 = vector.broadcast %419 : vector<64x1xf32> to vector<64x64xf32>
    %421 = arith.subf %417, %420 : vector<64x64xf32>
    %422 = math.exp %421 : vector<64x64xf32>
    %cst_132 = arith.constant dense<0.000000e+00> : vector<64xf32>
    %423 = vector.multi_reduction <add>, %422, %cst_132 [1] : vector<64x64xf32> to vector<64xf32>
    %424 = vector.shape_cast %423 : vector<64xf32> to vector<64x1xf32>
    %425 = vector.broadcast %424 : vector<64x1xf32> to vector<64x64xf32>
    %426 = arith.divf %422, %425 : vector<64x64xf32>
    %427 = arith.truncf %426 : vector<64x64xf32> to vector<64x64xbf16>
    %cst_133 = arith.constant dense<0.000000e+00> : vector<64x16xf32>
    %428 = tpu.matmul %427, %413, %cst_133 {dimension_numbers = #tpu.dot_dimension_numbers<[1], [0], [0], [1], [0, 0, 1, 1], [], []>} : vector<64x64xbf16>, vector<64x16xbf16>, vector<64x16xf32> -> vector<64x16xf32>
    %429 = vector.extract_strided_slice %407 {offsets = [0, 16], sizes = [64, 16], strides = [1, 1]} : vector<64x192xf32> to vector<64x16xf32>
    %430 = arith.truncf %429 : vector<64x16xf32> to vector<64x16xbf16>
    %431 = vector.extract_strided_slice %407 {offsets = [0, 80], sizes = [64, 16], strides = [1, 1]} : vector<64x192xf32> to vector<64x16xf32>
    %432 = arith.truncf %431 : vector<64x16xf32> to vector<64x16xbf16>
    %433 = vector.extract_strided_slice %407 {offsets = [0, 144], sizes = [64, 16], strides = [1, 1]} : vector<64x192xf32> to vector<64x16xf32>
    %434 = arith.truncf %433 : vector<64x16xf32> to vector<64x16xbf16>
    %cst_134 = arith.constant dense<0.000000e+00> : vector<64x64xf32>
    %435 = tpu.matmul %430, %432, %cst_134 {dimension_numbers = #tpu.dot_dimension_numbers<[1], [1], [0], [0], [0, 0, 1, 0], [], []>} : vector<64x16xbf16>, vector<64x16xbf16>, vector<64x64xf32> -> vector<64x64xf32>
    %cst_135 = arith.constant 2.500000e-01 : f32
    %436 = vector.broadcast %cst_135 : f32 to vector<64x64xf32>
    %437 = arith.mulf %435, %436 : vector<64x64xf32>
    %438 = arith.addf %437, %5 : vector<64x64xf32>
    %cst_136 = arith.constant dense<0xFF800000> : vector<64xf32>
    %439 = vector.multi_reduction <maximumf>, %438, %cst_136 [1] : vector<64x64xf32> to vector<64xf32>
    %440 = vector.shape_cast %439 : vector<64xf32> to vector<64x1xf32>
    %441 = vector.broadcast %440 : vector<64x1xf32> to vector<64x64xf32>
    %442 = arith.subf %438, %441 : vector<64x64xf32>
    %443 = math.exp %442 : vector<64x64xf32>
    %cst_137 = arith.constant dense<0.000000e+00> : vector<64xf32>
    %444 = vector.multi_reduction <add>, %443, %cst_137 [1] : vector<64x64xf32> to vector<64xf32>
    %445 = vector.shape_cast %444 : vector<64xf32> to vector<64x1xf32>
    %446 = vector.broadcast %445 : vector<64x1xf32> to vector<64x64xf32>
    %447 = arith.divf %443, %446 : vector<64x64xf32>
    %448 = arith.truncf %447 : vector<64x64xf32> to vector<64x64xbf16>
    %cst_138 = arith.constant dense<0.000000e+00> : vector<64x16xf32>
    %449 = tpu.matmul %448, %434, %cst_138 {dimension_numbers = #tpu.dot_dimension_numbers<[1], [0], [0], [1], [0, 0, 1, 1], [], []>} : vector<64x64xbf16>, vector<64x16xbf16>, vector<64x16xf32> -> vector<64x16xf32>
    %450 = vector.extract_strided_slice %407 {offsets = [0, 32], sizes = [64, 16], strides = [1, 1]} : vector<64x192xf32> to vector<64x16xf32>
    %451 = arith.truncf %450 : vector<64x16xf32> to vector<64x16xbf16>
    %452 = vector.extract_strided_slice %407 {offsets = [0, 96], sizes = [64, 16], strides = [1, 1]} : vector<64x192xf32> to vector<64x16xf32>
    %453 = arith.truncf %452 : vector<64x16xf32> to vector<64x16xbf16>
    %454 = vector.extract_strided_slice %407 {offsets = [0, 160], sizes = [64, 16], strides = [1, 1]} : vector<64x192xf32> to vector<64x16xf32>
    %455 = arith.truncf %454 : vector<64x16xf32> to vector<64x16xbf16>
    %cst_139 = arith.constant dense<0.000000e+00> : vector<64x64xf32>
    %456 = tpu.matmul %451, %453, %cst_139 {dimension_numbers = #tpu.dot_dimension_numbers<[1], [1], [0], [0], [0, 0, 1, 0], [], []>} : vector<64x16xbf16>, vector<64x16xbf16>, vector<64x64xf32> -> vector<64x64xf32>
    %cst_140 = arith.constant 2.500000e-01 : f32
    %457 = vector.broadcast %cst_140 : f32 to vector<64x64xf32>
    %458 = arith.mulf %456, %457 : vector<64x64xf32>
    %459 = arith.addf %458, %5 : vector<64x64xf32>
    %cst_141 = arith.constant dense<0xFF800000> : vector<64xf32>
    %460 = vector.multi_reduction <maximumf>, %459, %cst_141 [1] : vector<64x64xf32> to vector<64xf32>
    %461 = vector.shape_cast %460 : vector<64xf32> to vector<64x1xf32>
    %462 = vector.broadcast %461 : vector<64x1xf32> to vector<64x64xf32>
    %463 = arith.subf %459, %462 : vector<64x64xf32>
    %464 = math.exp %463 : vector<64x64xf32>
    %cst_142 = arith.constant dense<0.000000e+00> : vector<64xf32>
    %465 = vector.multi_reduction <add>, %464, %cst_142 [1] : vector<64x64xf32> to vector<64xf32>
    %466 = vector.shape_cast %465 : vector<64xf32> to vector<64x1xf32>
    %467 = vector.broadcast %466 : vector<64x1xf32> to vector<64x64xf32>
    %468 = arith.divf %464, %467 : vector<64x64xf32>
    %469 = arith.truncf %468 : vector<64x64xf32> to vector<64x64xbf16>
    %cst_143 = arith.constant dense<0.000000e+00> : vector<64x16xf32>
    %470 = tpu.matmul %469, %455, %cst_143 {dimension_numbers = #tpu.dot_dimension_numbers<[1], [0], [0], [1], [0, 0, 1, 1], [], []>} : vector<64x64xbf16>, vector<64x16xbf16>, vector<64x16xf32> -> vector<64x16xf32>
    %471 = vector.extract_strided_slice %407 {offsets = [0, 48], sizes = [64, 16], strides = [1, 1]} : vector<64x192xf32> to vector<64x16xf32>
    %472 = arith.truncf %471 : vector<64x16xf32> to vector<64x16xbf16>
    %473 = vector.extract_strided_slice %407 {offsets = [0, 112], sizes = [64, 16], strides = [1, 1]} : vector<64x192xf32> to vector<64x16xf32>
    %474 = arith.truncf %473 : vector<64x16xf32> to vector<64x16xbf16>
    %475 = vector.extract_strided_slice %407 {offsets = [0, 176], sizes = [64, 16], strides = [1, 1]} : vector<64x192xf32> to vector<64x16xf32>
    %476 = arith.truncf %475 : vector<64x16xf32> to vector<64x16xbf16>
    %cst_144 = arith.constant dense<0.000000e+00> : vector<64x64xf32>
    %477 = tpu.matmul %472, %474, %cst_144 {dimension_numbers = #tpu.dot_dimension_numbers<[1], [1], [0], [0], [0, 0, 1, 0], [], []>} : vector<64x16xbf16>, vector<64x16xbf16>, vector<64x64xf32> -> vector<64x64xf32>
    %cst_145 = arith.constant 2.500000e-01 : f32
    %478 = vector.broadcast %cst_145 : f32 to vector<64x64xf32>
    %479 = arith.mulf %477, %478 : vector<64x64xf32>
    %480 = arith.addf %479, %5 : vector<64x64xf32>
    %cst_146 = arith.constant dense<0xFF800000> : vector<64xf32>
    %481 = vector.multi_reduction <maximumf>, %480, %cst_146 [1] : vector<64x64xf32> to vector<64xf32>
    %482 = vector.shape_cast %481 : vector<64xf32> to vector<64x1xf32>
    %483 = vector.broadcast %482 : vector<64x1xf32> to vector<64x64xf32>
    %484 = arith.subf %480, %483 : vector<64x64xf32>
    %485 = math.exp %484 : vector<64x64xf32>
    %cst_147 = arith.constant dense<0.000000e+00> : vector<64xf32>
    %486 = vector.multi_reduction <add>, %485, %cst_147 [1] : vector<64x64xf32> to vector<64xf32>
    %487 = vector.shape_cast %486 : vector<64xf32> to vector<64x1xf32>
    %488 = vector.broadcast %487 : vector<64x1xf32> to vector<64x64xf32>
    %489 = arith.divf %485, %488 : vector<64x64xf32>
    %490 = arith.truncf %489 : vector<64x64xf32> to vector<64x64xbf16>
    %cst_148 = arith.constant dense<0.000000e+00> : vector<64x16xf32>
    %491 = tpu.matmul %490, %476, %cst_148 {dimension_numbers = #tpu.dot_dimension_numbers<[1], [0], [0], [1], [0, 0, 1, 1], [], []>} : vector<64x64xbf16>, vector<64x16xbf16>, vector<64x16xf32> -> vector<64x16xf32>
    %492 = tpu.concatenate %428, %449, %470, %491 in 1 : vector<64x16xf32>, vector<64x16xf32>, vector<64x16xf32>, vector<64x16xf32> -> vector<64x64xf32>
    %493 = arith.truncf %492 : vector<64x64xf32> to vector<64x64xbf16>
    %c2_149 = arith.constant 2 : index
    %c0_150 = arith.constant 0 : index
    %c0_151 = arith.constant 0 : index
    %494 = vector.load %arg6[%c2_149, %c0_150, %c0_151] : memref<3x64x64xbf16, #tpu.memory_space<vmem>>, vector<1x64x64xbf16>
    %495 = vector.shape_cast %494 : vector<1x64x64xbf16> to vector<64x64xbf16>
    %cst_152 = arith.constant dense<0.000000e+00> : vector<64x64xf32>
    %496 = tpu.matmul %493, %495, %cst_152 {dimension_numbers = #tpu.dot_dimension_numbers<[1], [0], [0], [1], [0, 0, 1, 1], [], []>} : vector<64x64xbf16>, vector<64x64xbf16>, vector<64x64xf32> -> vector<64x64xf32>
    %497 = vector.broadcast %375 : vector<1x64xf32> to vector<64x64xf32>
    %498 = arith.addf %496, %497 : vector<64x64xf32>
    %499 = arith.addf %369, %498 : vector<64x64xf32>
    %cst_153 = arith.constant dense<0.000000e+00> : vector<64xf32>
    %500 = vector.multi_reduction <add>, %499, %cst_153 [1] : vector<64x64xf32> to vector<64xf32>
    %501 = vector.shape_cast %500 : vector<64xf32> to vector<64x1xf32>
    %cst_154 = arith.constant 6.400000e+01 : f32
    %502 = vector.broadcast %cst_154 : f32 to vector<64x1xf32>
    %503 = arith.divf %501, %502 : vector<64x1xf32>
    %504 = vector.broadcast %503 : vector<64x1xf32> to vector<64x64xf32>
    %505 = arith.subf %499, %504 : vector<64x64xf32>
    %506 = arith.mulf %505, %505 : vector<64x64xf32>
    %cst_155 = arith.constant dense<0.000000e+00> : vector<64xf32>
    %507 = vector.multi_reduction <add>, %506, %cst_155 [1] : vector<64x64xf32> to vector<64xf32>
    %508 = vector.shape_cast %507 : vector<64xf32> to vector<64x1xf32>
    %cst_156 = arith.constant 6.400000e+01 : f32
    %509 = vector.broadcast %cst_156 : f32 to vector<64x1xf32>
    %510 = arith.divf %508, %509 : vector<64x1xf32>
    %511 = vector.broadcast %503 : vector<64x1xf32> to vector<64x64xf32>
    %512 = arith.subf %499, %511 : vector<64x64xf32>
    %cst_157 = arith.constant 9.99999997E-7 : f32
    %513 = vector.broadcast %cst_157 : f32 to vector<64x1xf32>
    %514 = arith.addf %510, %513 : vector<64x1xf32>
    %515 = math.rsqrt %514 : vector<64x1xf32>
    %516 = vector.broadcast %515 : vector<64x1xf32> to vector<64x64xf32>
    %517 = arith.mulf %512, %516 : vector<64x64xf32>
    %518 = vector.broadcast %376 : vector<1x64xf32> to vector<64x64xf32>
    %519 = arith.mulf %517, %518 : vector<64x64xf32>
    %520 = vector.broadcast %377 : vector<1x64xf32> to vector<64x64xf32>
    %521 = arith.addf %519, %520 : vector<64x64xf32>
    %522 = arith.truncf %521 : vector<64x64xf32> to vector<64x64xbf16>
    %c2_158 = arith.constant 2 : index
    %c0_159 = arith.constant 0 : index
    %c0_160 = arith.constant 0 : index
    %523 = vector.load %arg7[%c2_158, %c0_159, %c0_160] : memref<3x64x128xbf16, #tpu.memory_space<vmem>>, vector<1x64x128xbf16>
    %524 = vector.shape_cast %523 : vector<1x64x128xbf16> to vector<64x128xbf16>
    %cst_161 = arith.constant dense<0.000000e+00> : vector<64x128xf32>
    %525 = tpu.matmul %522, %524, %cst_161 {dimension_numbers = #tpu.dot_dimension_numbers<[1], [0], [0], [1], [0, 0, 1, 1], [], []>} : vector<64x64xbf16>, vector<64x128xbf16>, vector<64x128xf32> -> vector<64x128xf32>
    %526 = vector.broadcast %378 : vector<1x128xf32> to vector<64x128xf32>
    %527 = arith.addf %525, %526 : vector<64x128xf32>
    %528 = arith.mulf %527, %527 : vector<64x128xf32>
    %529 = arith.mulf %527, %528 : vector<64x128xf32>
    %cst_162 = arith.constant 4.471500e-02 : f32
    %530 = vector.broadcast %cst_162 : f32 to vector<64x128xf32>
    %531 = arith.mulf %530, %529 : vector<64x128xf32>
    %532 = arith.addf %527, %531 : vector<64x128xf32>
    %cst_163 = arith.constant 0.797884583 : f32
    %533 = vector.broadcast %cst_163 : f32 to vector<64x128xf32>
    %534 = arith.mulf %533, %532 : vector<64x128xf32>
    %535 = math.tanh %534 : vector<64x128xf32>
    %cst_164 = arith.constant 1.000000e+00 : f32
    %536 = vector.broadcast %cst_164 : f32 to vector<64x128xf32>
    %537 = arith.addf %536, %535 : vector<64x128xf32>
    %cst_165 = arith.constant 5.000000e-01 : f32
    %538 = vector.broadcast %cst_165 : f32 to vector<64x128xf32>
    %539 = arith.mulf %538, %537 : vector<64x128xf32>
    %540 = arith.mulf %527, %539 : vector<64x128xf32>
    %541 = arith.truncf %540 : vector<64x128xf32> to vector<64x128xbf16>
    %c2_166 = arith.constant 2 : index
    %c0_167 = arith.constant 0 : index
    %c0_168 = arith.constant 0 : index
    %542 = vector.load %arg8[%c2_166, %c0_167, %c0_168] : memref<3x128x64xbf16, #tpu.memory_space<vmem>>, vector<1x128x64xbf16>
    %543 = vector.shape_cast %542 : vector<1x128x64xbf16> to vector<128x64xbf16>
    %cst_169 = arith.constant dense<0.000000e+00> : vector<64x64xf32>
    %544 = tpu.matmul %541, %543, %cst_169 {dimension_numbers = #tpu.dot_dimension_numbers<[1], [0], [0], [1], [0, 0, 1, 1], [], []>} : vector<64x128xbf16>, vector<128x64xbf16>, vector<64x64xf32> -> vector<64x64xf32>
    %545 = vector.broadcast %379 : vector<1x64xf32> to vector<64x64xf32>
    %546 = arith.addf %544, %545 : vector<64x64xf32>
    %547 = arith.addf %499, %546 : vector<64x64xf32>
    %548 = arith.truncf %547 : vector<64x64xf32> to vector<64x64xbf16>
    %c0_170 = arith.constant 0 : index
    %c0_171 = arith.constant 0 : index
    %549 = vector.load %arg11[%c0_170, %c0_171] : memref<64x128xbf16, #tpu.memory_space<vmem>>, vector<64x128xbf16>
    %cst_172 = arith.constant dense<0.000000e+00> : vector<64x128xf32>
    %550 = tpu.matmul %548, %549, %cst_172 {dimension_numbers = #tpu.dot_dimension_numbers<[1], [0], [0], [1], [0, 0, 1, 1], [], []>} : vector<64x64xbf16>, vector<64x128xbf16>, vector<64x128xf32> -> vector<64x128xf32>
    %c0_173 = arith.constant 0 : index
    %c0_174 = arith.constant 0 : index
    %551 = vector.load %arg12[%c0_173, %c0_174] : memref<1x128xf32, #tpu.memory_space<vmem>>, vector<1x128xf32>
    %552 = vector.broadcast %551 : vector<1x128xf32> to vector<64x128xf32>
    %553 = arith.addf %550, %552 : vector<64x128xf32>
    %c0_175 = arith.constant 0 : index
    %c0_176 = arith.constant 0 : index
    %554 = vector.load %arg13[%c0_175, %c0_176] : memref<64x128xf32, #tpu.memory_space<vmem>>, vector<64x128xf32>
    tpu.vector_store %arg13[%c0_175, %c0_176], %553 {strides = array<i32>} : memref<64x128xf32, #tpu.memory_space<vmem>>, vector<64x128xf32>,
    return
  }
  func.func @transform_0(%arg0: i32) -> (i32, i32) {
    %c0_i32 = arith.constant 0 : i32
    %c0_i32_0 = arith.constant 0 : i32
    return %arg0, %c0_i32 : i32, i32
  }
  func.func @transform_1(%arg0: i32) -> (i32, i32) {
    %c0_i32 = arith.constant 0 : i32
    %c0_i32_0 = arith.constant 0 : i32
    %c0_i32_1 = arith.constant 0 : i32
    return %c0_i32, %c0_i32_0 : i32, i32
  }
  func.func @transform_2(%arg0: i32) -> (i32, i32) {
    %c0_i32 = arith.constant 0 : i32
    %c0_i32_0 = arith.constant 0 : i32
    %c0_i32_1 = arith.constant 0 : i32
    return %c0_i32, %c0_i32_0 : i32, i32
  }
  func.func @transform_3(%arg0: i32) -> (i32, i32) {
    %c0_i32 = arith.constant 0 : i32
    %c0_i32_0 = arith.constant 0 : i32
    %c0_i32_1 = arith.constant 0 : i32
    return %c0_i32, %c0_i32_0 : i32, i32
  }
  func.func @transform_4(%arg0: i32) -> (i32, i32, i32) {
    %c0_i32 = arith.constant 0 : i32
    %c0_i32_0 = arith.constant 0 : i32
    %c0_i32_1 = arith.constant 0 : i32
    %c0_i32_2 = arith.constant 0 : i32
    return %c0_i32, %c0_i32_0, %c0_i32_1 : i32, i32, i32
  }
  func.func @transform_5(%arg0: i32) -> (i32, i32, i32) {
    %c0_i32 = arith.constant 0 : i32
    %c0_i32_0 = arith.constant 0 : i32
    %c0_i32_1 = arith.constant 0 : i32
    %c0_i32_2 = arith.constant 0 : i32
    return %c0_i32, %c0_i32_0, %c0_i32_1 : i32, i32, i32
  }
  func.func @transform_6(%arg0: i32) -> (i32, i32, i32) {
    %c0_i32 = arith.constant 0 : i32
    %c0_i32_0 = arith.constant 0 : i32
    %c0_i32_1 = arith.constant 0 : i32
    %c0_i32_2 = arith.constant 0 : i32
    return %c0_i32, %c0_i32_0, %c0_i32_1 : i32, i32, i32
  }
  func.func @transform_7(%arg0: i32) -> (i32, i32, i32) {
    %c0_i32 = arith.constant 0 : i32
    %c0_i32_0 = arith.constant 0 : i32
    %c0_i32_1 = arith.constant 0 : i32
    %c0_i32_2 = arith.constant 0 : i32
    return %c0_i32, %c0_i32_0, %c0_i32_1 : i32, i32, i32
  }
  func.func @transform_8(%arg0: i32) -> (i32, i32, i32) {
    %c0_i32 = arith.constant 0 : i32
    %c0_i32_0 = arith.constant 0 : i32
    %c0_i32_1 = arith.constant 0 : i32
    %c0_i32_2 = arith.constant 0 : i32
    return %c0_i32, %c0_i32_0, %c0_i32_1 : i32, i32, i32
  }
  func.func @transform_9(%arg0: i32) -> (i32, i32, i32) {
    %c0_i32 = arith.constant 0 : i32
    %c0_i32_0 = arith.constant 0 : i32
    %c0_i32_1 = arith.constant 0 : i32
    %c0_i32_2 = arith.constant 0 : i32
    return %c0_i32, %c0_i32_0, %c0_i32_1 : i32, i32, i32
  }
  func.func @transform_10(%arg0: i32) -> (i32, i32) {
    %c0_i32 = arith.constant 0 : i32
    %c0_i32_0 = arith.constant 0 : i32
    %c0_i32_1 = arith.constant 0 : i32
    return %c0_i32, %c0_i32_0 : i32, i32
  }
  func.func @transform_11(%arg0: i32) -> (i32, i32) {
    %c0_i32 = arith.constant 0 : i32
    %c0_i32_0 = arith.constant 0 : i32
    %c0_i32_1 = arith.constant 0 : i32
    return %c0_i32, %c0_i32_0 : i32, i32
  }
  func.func @transform_12(%arg0: i32) -> (i32, i32) {
    %c0_i32 = arith.constant 0 : i32
    %c0_i32_0 = arith.constant 0 : i32
    return %arg0, %c0_i32 : i32, i32
  }
}

</mosaic_0001>

<bundles_post_ra>
// kernel: _lambda_.1
= control target key start
LH: loop header
LB: loop body
LE: loop exit
PB: predicated region body
PF: predicated region fallthrough
CT: control target
= control target key end

     0   :  { %v12288_v0 = vmov 0   ;;  %vm190_vm0 = vcmask 523264   ;;  %vm572_vm1 = vcmask 130048   ;;  %s9189_s19 = smov 48   ;;  %s9191_s20 = smov 32   ;;  %vm1861_vm2 = vcmask 261120   ;;  %s12275_s1 = inlined_call_operand.vmem [shape: bf16[192,64], index: 1, kind: input, shape index: {}]   ;;  %s12276_s0 = inlined_call_operand.vmem [shape: bf16[64,192], index: 0, kind: input, shape index: {}]   ;;  %s12277_s2 = inlined_call_operand.vmem [shape: f32[64,64], index: 2, kind: input, shape index: {}]   ;;  %s12278_s4 = inlined_call_operand.vmem [shape: bf16[3,64,192], index: 4, kind: input, shape index: {}]   ;;  %s12279_s8 = inlined_call_operand.vmem [shape: f32[3,8,192], index: 8, kind: input, shape index: {}]   ;;  %s12280_s3 = inlined_call_operand.vmem [shape: f32[64,64], index: 3, kind: input, shape index: {}]   ;;  %s12281_s5 = inlined_call_operand.vmem [shape: bf16[3,64,64], index: 5, kind: input, shape index: {}]   ;;  %s12282_s6 = inlined_call_operand.vmem [shape: bf16[3,64,128], index: 6, kind: input, shape index: {}]   ;;  %s12283_s7 = inlined_call_operand.vmem [shape: bf16[3,128,64], index: 7, kind: input, shape index: {}]   ;;  %s12284_s9 = inlined_call_operand.vmem [shape: f32[2,64,1], index: 9, kind: input, shape index: {}]   ;;  %s12285_s10 = inlined_call_operand.vmem [shape: bf16[64,128], index: 10, kind: input, shape index: {}]   ;;  %s12286_s11 = inlined_call_operand.vmem [shape: f32[1,128], index: 11, kind: input, shape index: {}]   ;;  %s12287_s12 = inlined_call_operand.vmem [shape: f32[64,128], index: 12, kind: output, shape index: {}]  }
   0x1   :  { %203 = vmatprep.subr.bf16.mxu0 %v12288_v0  ;;  %v8512_v1 = vld [vmem:[%s12275_s1] sm:$0xff]   ;;  %511 = vmatprep.mubr.bf16.mxu1 %v12288_v0  ;;  %v8513_v2 = vld [vmem:[%s12275_s1 + $0x8] sm:$0xff]   ;;  %v8514_v3 = vld [vmem:[%s12275_s1 + $0x10] sm:$0xff]   ;;  %s9192_s21 = smov 112   ;;  %s9193_s22 = smov 96   ;;  %vm1870_vm3 = vcmask 392192  }
   0x2   :  { %8391 = vset.pattern.permute.xlu1 %v12288_v0  ;;  %8390 = vset.pattern.permute.xlu0 %v12288_v0  ;;  %v8515_v4 = vld [vmem:[%s12275_s1 + $0x18] sm:$0xff]   ;;  %v8526_v5 = vld [vmem:[%s12276_s0 + $0x4] ss:$8 sps:$4 sm:$0xff]   ;;  %v8518_v8 = vld [vmem:[%s12275_s1 + $0x30] sm:$0xff]   ;;  %s9194_s23 = smov 16   ;;  %s9195_s24 = smov 80  }
   0x3   :  { %204 = vmatpush1.bf16.msra.mxu0 %v8512_v1  ;;  %v8516_v6 = vld [vmem:[%s12275_s1 + $0x20] sm:$0xff]   ;;  %7113 = vmatprep.mubr.msk.bf16.mxu0 %vm190_vm0, %v8526_v5  ;;  %v8517_v7 = vld [vmem:[%s12275_s1 + $0x28] sm:$0xff]   ;;  %v8519_v9 = vld [vmem:[%s12275_s1 + $0x38] sm:$0xff]  }
   0x4   :  { %205 = vmatprep.subr.bf16.mxu0 %v12288_v0  ;;  %v8520_v10 = vld [vmem:[%s12275_s1 + $0x40] sm:$0xff]   ;;  %v8521_v11 = vld [vmem:[%s12275_s1 + $0x48] sm:$0xff]   ;;  %v8522_v12 = vld [vmem:[%s12275_s1 + $0x50] sm:$0xff]  }
   0x5   :  { %v8523_v13 = vld [vmem:[%s12275_s1 + $0x58] sm:$0xff]   ;;  %v8524_v14 = vld [vmem:[%s12276_s0] ss:$8 sps:$4 sm:$0xff]   ;;  %v8530_v17 = vld [vmem:[%s12276_s0 + $0x24] ss:$8 sps:$4 sm:$0xff]  }
   0x6   :  { %v8527_v15 = vld [vmem:[%s12276_s0 + $0x14] ss:$8 sps:$4 sm:$0xff]   ;;  %v8529_v16 = vld [vmem:[%s12276_s0 + $0x10] ss:$8 sps:$4 sm:$0xff]   ;;  %v8532_v18 = vld [vmem:[%s12276_s0 + $0x20] ss:$8 sps:$4 sm:$0xff]  }
   0x7   :  { %206 = vmatpush1.bf16.msra.mxu0 %v8513_v2  ;;  %v8533_v19 = vld [vmem:[%s12276_s0 + $0x34] ss:$8 sps:$4 sm:$0xff]   ;;  %v8535_v20 = vld [vmem:[%s12276_s0 + $0x30] ss:$8 sps:$4 sm:$0xff]   ;;  %v74_v21 = vld [vmem:[%s12277_s2] sm:$0xff] }
   0x8   :  { %207 = vmatprep.subr.bf16.mxu0 %v12288_v0  ;;  %v75_v23 = vld [vmem:[%s12277_s2 + $0x8] sm:$0xff]  ;;  %v76_v30 = vld [vmem:[%s12277_s2 + $0x10] sm:$0xff]  ;;  %v77_v33 = vld [vmem:[%s12277_s2 + $0x18] sm:$0xff] }
   0x9   :  { %v78_v40 = vld [vmem:[%s12277_s2 + $0x20] sm:$0xff]  ;;  %v79_v43 = vld [vmem:[%s12277_s2 + $0x28] sm:$0xff]  ;;  %v80_v51 = vld [vmem:[%s12277_s2 + $0x30] sm:$0xff] }
   0xa   :  { %v81_v53 = vld [vmem:[%s12277_s2 + $0x38] sm:$0xff]  ;;  %s9190_s2 = smov 64  }
   0xb   :  { %208 = vmatpush1.bf16.msra.mxu0 %v8514_v3 }
   0xc   :  { %209 = vmatprep.subr.bf16.mxu0 %v12288_v0 }
   0xf   :  { %210 = vmatpush1.bf16.msra.mxu0 %v8515_v4 }
  0x10   :  { %211 = vmatprep.subr.bf16.mxu0 %v12288_v0 }
  0x13   :  { %212 = vmatpush1.bf16.msra.mxu0 %v8516_v6 }
  0x14   :  { %213 = vmatprep.subr.bf16.mxu0 %v12288_v0 }
  0x17   :  { %214 = vmatpush1.bf16.msra.mxu0 %v8517_v7 }
  0x18   :  { %215 = vmatprep.subr.bf16.mxu0 %v12288_v0 }
  0x1b   :  { %216 = vmatpush1.bf16.msra.mxu0 %v8518_v8 }
  0x1c   :  { %217 = vmatprep.subr.bf16.mxu0 %v12288_v0 }
  0x1f   :  { %218 = vmatpush1.bf16.msra.mxu0 %v8519_v9 }
  0x20   :  { %219 = vmatprep.subr.bf16.mxu0 %v12288_v0 }
  0x23   :  { %220 = vmatpush1.bf16.msra.mxu0 %v8520_v10 }
  0x24   :  { %221 = vmatprep.subr.bf16.mxu0 %v12288_v0 }
  0x27   :  { %222 = vmatpush1.bf16.msra.mxu0 %v8521_v11 }
  0x28   :  { %223 = vmatprep.subr.bf16.mxu0 %v12288_v0 }
  0x2b   :  { %224 = vmatpush1.bf16.msra.mxu0 %v8522_v12 }
  0x2c   :  { %225 = vmatprep.subr.bf16.mxu0 %v12288_v0 }
  0x2f   :  { %226 = vmatpush1.bf16.msra.mxu0 %v8523_v13 }
  0x32   :  { %236 = vmatmul.mubr.bf16.vlgmr.msra.gmra.mrb[0].mxu0 %v8524_v14 }
  0x33   :  { %7114 = vmatprep.mubr.msk.bf16.mxu0 %vm190_vm0, %v8527_v15 }
  0x3a   :  { %244 = vmatmul.mubr.bf16.gmra.mrb[4].mxu0 %v8529_v16 }
  0x3b   :  { %7115 = vmatprep.mubr.msk.bf16.mxu0 %vm190_vm0, %v8530_v17 }
  0x42   :  { %252 = vmatmul.mubr.bf16.gmra.mrb[8].mxu0 %v8532_v18 }
  0x43   :  { %7116 = vmatprep.mubr.msk.bf16.mxu0 %vm190_vm0, %v8533_v19 }
  0x4a   :  { %260 = vmatmul.mubr.bf16.gmra.mrb[12].mxu0 %v8535_v20 }
 0x105   :  { %v237_v22 = vpop.f32.mrb[0].mxu0 }
 0x106   :  { %v9346_v24 = vadd.f32 %v237_v22, %v74_v21  ;;  %v239_v25 = vpop.f32.mrb[1].mxu0 }
 0x107   :  { %v240_v26 = vpop.f32.mrb[2].mxu0 }
 0x108   :  { %12310 = vst [vmem:[#allocation2_spill] sm:$0xff] %v9346_v24  ;;  %v9348_v27 = vadd.f32 %v240_v26, %v75_v23  ;;  %v242_v28 = vpop.f32.mrb[3].mxu0  ;;  %v278_v29 = vsel %vm190_vm0, %v9346_v24, 0.0 }
 0x109   :  { %279 = vadd.xlane.f32.xlu0 %v278_v29 }
 0x10a   :  { %12311 = vst [vmem:[#allocation3_spill] sm:$0xff] %v9348_v27  ;;  %v281_v31 = vsel %vm190_vm0, %v9348_v27, 0.0 }
 0x10d   :  { %v245_v32 = vpop.f32.mrb[4].mxu0  ;;  %282 = vadd.xlane.f32.xlu0 %v281_v31 }
 0x10e   :  { %v9360_v34 = vadd.f32 %v245_v32, %v76_v30  ;;  %v247_v35 = vpop.f32.mrb[5].mxu0 }
 0x10f   :  { %v248_v36 = vpop.f32.mrb[6].mxu0 }
 0x110   :  { %12312 = vst [vmem:[#allocation4_spill] sm:$0xff] %v9360_v34  ;;  %v9362_v37 = vadd.f32 %v248_v36, %v77_v33  ;;  %v250_v38 = vpop.f32.mrb[7].mxu0  ;;  %v284_v39 = vsel %vm190_vm0, %v9360_v34, 0.0 }
 0x111   :  { %285 = vadd.xlane.f32.xlu1 %v284_v39 }
 0x112   :  { %12313 = vst [vmem:[#allocation5_spill] sm:$0xff] %v9362_v37  ;;  %v287_v41 = vsel %vm190_vm0, %v9362_v37, 0.0 }
 0x115   :  { %v253_v42 = vpop.f32.mrb[8].mxu0  ;;  %288 = vadd.xlane.f32.xlu1 %v287_v41  ;;  %v8536_v41 = vld [vmem:[%s12278_s4 + $0x4] ss:$8 sps:$4 sm:$0xff]  }
 0x116   :  { %v9374_v44 = vadd.f32 %v253_v42, %v78_v40  ;;  %v255_v45 = vpop.f32.mrb[9].mxu0  ;;  %v8538_v42 = vld [vmem:[%s12278_s4] ss:$8 sps:$4 sm:$0xff]   ;;  %479 = vmatprep.subr.bf16.mxu1 %v8536_v41 }
 0x117   :  { %v256_v46 = vpop.f32.mrb[10].mxu0  ;;  %480 = vmatpush1.bf16.msra.mxu1 %v8538_v42  ;;  %v8539_v45 = vld [vmem:[%s12278_s4 + $0x14] ss:$8 sps:$4 sm:$0xff]  }
 0x118   :  { %12314 = vst [vmem:[#allocation6_spill] sm:$0xff] %v9374_v44  ;;  %v9376_v47 = vadd.f32 %v256_v46, %v79_v43  ;;  %v290_v48 = vsel %vm190_vm0, %v9374_v44, 0.0  ;;  %v258_v49 = vpop.f32.mrb[11].mxu0  ;;  %v8541_v46 = vld [vmem:[%s12278_s4 + $0x10] ss:$8 sps:$4 sm:$0xff]   ;;  %481 = vmatprep.subr.bf16.mxu1 %v8539_v45 }
 0x119   :  { %291 = vadd.xlane.f32.xlu0 %v290_v48  ;;  %v8542_v48 = vld [vmem:[%s12278_s4 + $0x24] ss:$8 sps:$4 sm:$0xff]   ;;  %v8544_v49 = vld [vmem:[%s12278_s4 + $0x20] ss:$8 sps:$4 sm:$0xff]  }
 0x11a   :  { %12315 = vst [vmem:[#allocation7_spill] sm:$0xff] %v9376_v47  ;;  %v293_v50 = vsel %vm190_vm0, %v9376_v47, 0.0 }
 0x11b   :  { %294 = vadd.xlane.f32.xlu1 %v293_v50  ;;  %482 = vmatpush1.bf16.msra.mxu1 %v8541_v46  ;;  %v8545_v50 = vld [vmem:[%s12278_s4 + $0x34] ss:$8 sps:$4 sm:$0xff]  }
 0x11c   :  { %483 = vmatprep.subr.bf16.mxu1 %v8542_v48 }
 0x11d   :  { %v261_v52 = vpop.f32.mrb[12].mxu0 }
 0x11e   :  { %v9388_v54 = vadd.f32 %v261_v52, %v80_v51  ;;  %v263_v55 = vpop.f32.mrb[13].mxu0  ;;  %v8547_v51 = vld [vmem:[%s12278_s4 + $0x30] ss:$8 sps:$4 sm:$0xff]  }
 0x11f   :  { %v264_v56 = vpop.f32.mrb[14].mxu0  ;;  %484 = vmatpush1.bf16.msra.mxu1 %v8544_v49 }
 0x120   :  { %12316 = vst [vmem:[#allocation8_spill] sm:$0xff] %v9388_v54  ;;  %v9390_v57 = vadd.f32 %v264_v56, %v81_v53  ;;  %v296_v58 = vsel %vm190_vm0, %v9388_v54, 0.0  ;;  %v266_v59 = vpop.f32.mrb[15].mxu0  ;;  %485 = vmatprep.subr.bf16.mxu1 %v8545_v50 }
 0x121   :  { %297 = vadd.xlane.f32.xlu0 %v296_v58  ;;  %v383_v58 = vlaneseq }
 0x122   :  { %12317 = vst [vmem:[#allocation9_spill] sm:$0xff] %v9390_v57  ;;  %v299_v60 = vsel %vm190_vm0, %v9390_v57, 0.0 }
 0x123   :  { %300 = vadd.xlane.f32.xlu1 %v299_v60  ;;  %486 = vmatpush1.bf16.msra.mxu1 %v8547_v51 }
 0x196   :  { %v280_v61 = vpop.xlane.xlu0 %279 }
 0x197   :  { %v303_v62 = vmul.f32 0.015625, %v280_v61 }
 0x199   :  { %v9397_v63 = vsub.f32 %v9346_v24, %v303_v62  ;;  %v9468_v62 = vshrl.u32 %v383_v58, 7 }
 0x19a   :  { %v283_v1 = vpop.xlane.xlu0 %282 }
 0x19b   :  { %v304_v2 = vmul.f32 0.015625, %v283_v1  ;;  %v319_v3 = vmul.f32 %v9397_v63, %v9397_v63 }
 0x19d   :  { %v9402_v4 = vsub.f32 %v9348_v27, %v304_v2  ;;  %v327_v5 = vsel %vm190_vm0, %v319_v3, 0.0 }
 0x19e   :  { %v286_v6 = vpop.xlane.xlu1 %285  ;;  %328 = vadd.xlane.f32.xlu0 %v327_v5  ;;  %v9471_v5 = vsub.s32 0, %v9468_v62 }
 0x19f   :  { %v305_v7 = vmul.f32 0.015625, %v286_v6  ;;  %v320_v8 = vmul.f32 %v9402_v4, %v9402_v4 }
 0x1a0   :  { %12318 = vst [vmem:[#allocation10_spill] sm:$0xff] %v9471_v5 }
 0x1a1   :  { %v9408_v9 = vsub.f32 %v9360_v34, %v305_v7  ;;  %v330_v10 = vsel %vm190_vm0, %v320_v8, 0.0  ;;  %v9476_v7 = vld [vmem:[%s12279_s8] sm:$0xff] }
 0x1a2   :  { %v289_v11 = vpop.xlane.xlu1 %288  ;;  %331 = vadd.xlane.f32.xlu1 %v330_v10 }
 0x1a3   :  { %v306_v12 = vmul.f32 0.015625, %v289_v11  ;;  %v321_v13 = vmul.f32 %v9408_v9, %v9408_v9 }
 0x1a5   :  { %v9414_v14 = vsub.f32 %v9362_v37, %v306_v12  ;;  %v333_v15 = vsel %vm190_vm0, %v321_v13, 0.0  ;;  %v386_v13 = vrot.slane %v9476_v7, %v9471_v5 }
 0x1a6   :  { %334 = vadd.xlane.f32.xlu0 %v333_v15  ;;  %v292_v16 = vpop.xlane.xlu0 %291  ;;  %v9482_v15 = vsub.s32 1, %v9468_v62 }
 0x1a7   :  { %v307_v17 = vmul.f32 0.015625, %v292_v16  ;;  %v322_v18 = vmul.f32 %v9414_v14, %v9414_v14 }
 0x1a8   :  { %v295_v19 = vpop.xlane.xlu1 %294  ;;  %12319 = vst [vmem:[#allocation11_spill] sm:$0xff] %v9482_v15 }
 0x1a9   :  { %v9420_v20 = vsub.f32 %v9374_v44, %v307_v17  ;;  %v308_v21 = vmul.f32 0.015625, %v295_v19  ;;  %v336_v22 = vsel %vm190_vm0, %v322_v18, 0.0 }
 0x1aa   :  { %337 = vadd.xlane.f32.xlu1 %v336_v22 }
 0x1ab   :  { %v9424_v23 = vsub.f32 %v9376_v47, %v308_v21  ;;  %v323_v25 = vmul.f32 %v9420_v20, %v9420_v20 }
 0x1ad   :  { %v339_v26 = vsel %vm190_vm0, %v323_v25, 0.0  ;;  %v324_v28 = vmul.f32 %v9424_v23, %v9424_v23 }
 0x1ae   :  { %340 = vadd.xlane.f32.xlu0 %v339_v26  ;;  %v298_v29 = vpop.xlane.xlu0 %297  ;;  %v398_v26 = vrot.slane %v9476_v7, %v9482_v15 }
 0x1af   :  { %v309_v30 = vmul.f32 0.015625, %v298_v29  ;;  %v342_v31 = vsel %vm190_vm0, %v324_v28, 0.0 }
 0x1b0   :  { %v301_v32 = vpop.xlane.xlu1 %300  ;;  %343 = vadd.xlane.f32.xlu1 %v342_v31 }
 0x1b1   :  { %v9433_v33 = vsub.f32 %v9388_v54, %v309_v30  ;;  %v310_v35 = vmul.f32 0.015625, %v301_v32 }
 0x1b3   :  { %v9436_v36 = vsub.f32 %v9390_v57, %v310_v35  ;;  %v325_v38 = vmul.f32 %v9433_v33, %v9433_v33 }
 0x1b5   :  { %v345_v39 = vsel %vm190_vm0, %v325_v38, 0.0  ;;  %v326_v40 = vmul.f32 %v9436_v36, %v9436_v36 }
 0x1b6   :  { %346 = vadd.xlane.f32.xlu0 %v345_v39 }
 0x1b7   :  { %v348_v43 = vsel %vm190_vm0, %v326_v40, 0.0 }
 0x1b8   :  { %349 = vadd.xlane.f32.xlu1 %v348_v43 }
 0x22b   :  { %v329_v52 = vpop.xlane.xlu0 %328 }
 0x22c   :  { %v351_v53 = vmul.f32 0.015625, %v329_v52 }
 0x22e   :  { %v359_v55 = vadd.f32 1e-06, %v351_v53 }
 0x22f   :  { %v332_v56 = vpop.xlane.xlu1 %331 }
 0x230   :  { %8624 = vrsqrt.f32 %v359_v55  ;;  %v352_v59 = vmul.f32 0.015625, %v332_v56 }
 0x232   :  { %v360_v60 = vadd.f32 1e-06, %v352_v59 }
 0x233   :  { %v335_v61 = vpop.xlane.xlu0 %334 }
 0x234   :  { %8626 = vrsqrt.f32 %v360_v60  ;;  %v353_v1 = vmul.f32 0.015625, %v335_v61 }
 0x236   :  { %v361_v2 = vadd.f32 1e-06, %v353_v1 }
 0x237   :  { %v338_v3 = vpop.xlane.xlu1 %337 }
 0x238   :  { %8628 = vrsqrt.f32 %v361_v2  ;;  %v354_v6 = vmul.f32 0.015625, %v338_v3 }
 0x23a   :  { %v8625_v8 = vpop.eup %8624  ;;  %v362_v10 = vadd.f32 1e-06, %v354_v6 }
 0x23b   :  { %v341_v11 = vpop.xlane.xlu0 %340  ;;  %v375_v12 = vmul.f32 %v8625_v8, %v9397_v63 }
 0x23c   :  { %8630 = vrsqrt.f32 %v362_v10  ;;  %v355_v16 = vmul.f32 0.015625, %v341_v11  ;;  %v9501_v11 = vsub.s32 2, %v9468_v62 }
 0x23d   :  { %v344_v17 = vpop.xlane.xlu1 %343  ;;  %v387_v25 = vmul.f32 %v386_v13, %v375_v12 }
 0x23e   :  { %v8627_v18 = vpop.eup %8626  ;;  %v363_v19 = vadd.f32 1e-06, %v355_v16  ;;  %v356_v21 = vmul.f32 0.015625, %v344_v17  ;;  %12320 = vst [vmem:[#allocation12_spill] sm:$0xff] %v9501_v11 }
 0x23f   :  { %v376_v22 = vmul.f32 %v8627_v18, %v9402_v4  ;;  %v399_v31 = vadd.f32 %v398_v26, %v387_v25 }
 0x240   :  { %8632 = vrsqrt.f32 %v363_v19  ;;  %v364_v63 = vadd.f32 1e-06, %v356_v21 }
 0x241   :  { %v388_v28 = vmul.f32 %v386_v13, %v376_v22 }
 0x242   :  { %v8629_v29 = vpop.eup %8628  ;;  %8634 = vrsqrt.f32 %v364_v63 }
 0x243   :  { %v347_v30 = vpop.xlane.xlu0 %346  ;;  %v400_v32 = vadd.f32 %v398_v26, %v388_v28  ;;  %v377_v35 = vmul.f32 %v8629_v29, %v9408_v9 }
 0x244   :  { %v357_v38 = vmul.f32 0.015625, %v347_v30 }
 0x245   :  { %v350_v39 = vpop.xlane.xlu1 %349  ;;  %v407_v40 = vpack.c.bf16 %v400_v32, %v399_v31  ;;  %v389_v45 = vmul.f32 %v386_v13, %v377_v35 }
 0x246   :  { %v8631_v41 = vpop.eup %8630  ;;  %v365_v42 = vadd.f32 1e-06, %v357_v38  ;;  %v358_v4 = vmul.f32 0.015625, %v350_v39 }
 0x247   :  { %7125 = vmatmul.mubr.msk.bf16.vlgmr.msra.gmra.mrb[0].mxu1 %vm190_vm0, %v407_v40  ;;  %v378_v43 = vmul.f32 %v8631_v41, %v9414_v14  ;;  %v401_v50 = vadd.f32 %v398_v26, %v389_v45 }
 0x248   :  { %8636 = vrsqrt.f32 %v365_v42  ;;  %v366_v46 = vadd.f32 1e-06, %v358_v4  ;;  %521 = vmatprep.mubr.bf16.mxu1 %v12288_v0 }
 0x249   :  { %v390_v48 = vmul.f32 %v386_v13, %v378_v43 }
 0x24a   :  { %v8633_v49 = vpop.eup %8632  ;;  %8638 = vrsqrt.f32 %v366_v46 }
 0x24b   :  { %v402_v9 = vadd.f32 %v398_v26, %v390_v48  ;;  %v379_v51 = vmul.f32 %v8633_v49, %v9420_v20 }
 0x24c   :  { %v8635_v52 = vpop.eup %8634 }
 0x24d   :  { %v408_v53 = vpack.c.bf16 %v402_v9, %v401_v50  ;;  %v380_v55 = vmul.f32 %v8635_v52, %v9424_v23  ;;  %v391_v56 = vmul.f32 %v386_v13, %v379_v51 }
 0x24f   :  { %7126 = vmatmul.mubr.msk.bf16.gmra.mrb[4].mxu1 %vm190_vm0, %v408_v53  ;;  %v392_v14 = vmul.f32 %v386_v13, %v380_v55  ;;  %v403_v60 = vadd.f32 %v398_v26, %v391_v56 }
 0x250   :  { %531 = vmatprep.mubr.bf16.mxu1 %v12288_v0 }
 0x251   :  { %v404_v58 = vadd.f32 %v398_v26, %v392_v14 }
 0x252   :  { %v8637_v59 = vpop.eup %8636 }
 0x253   :  { %v381_v61 = vmul.f32 %v8637_v59, %v9433_v33  ;;  %v409_v2 = vpack.c.bf16 %v404_v58, %v403_v60  ;;  %v277_v33 = vld [vmem:[%s12279_s8 + $0x8] sm:$0xff] }
 0x254   :  { %v8639_v1 = vpop.eup %8638 }
 0x255   :  { %v382_v3 = vmul.f32 %v8639_v1, %v9436_v36  ;;  %v393_v20 = vmul.f32 %v386_v13, %v381_v61  ;;  %v422_v36 = vrot.slane %v9476_v7, %v9501_v11 }
 0x257   :  { %7127 = vmatmul.mubr.msk.bf16.gmra.mrb[8].mxu1 %vm190_vm0, %v409_v2  ;;  %v394_v6 = vmul.f32 %v386_v13, %v382_v3  ;;  %v405_v8 = vadd.f32 %v398_v26, %v393_v20  ;;  %v426_v13 = vrot.slane %v277_v33, %v9501_v11 }
 0x258   :  { %541 = vmatprep.mubr.bf16.mxu1 %v12288_v0 }
 0x259   :  { %v406_v23 = vadd.f32 %v398_v26, %v394_v6 }
 0x25b   :  { %v410_v10 = vpack.c.bf16 %v406_v23, %v405_v8 }
 0x25f   :  { %7128 = vmatmul.mubr.msk.bf16.gmra.mrb[12].mxu1 %vm190_vm0, %v410_v10 }
 0x31a   :  { %v513_v12 = vpop.f32.mrb[0].mxu1 }
 0x31b   :  { %v515_v16 = vpop.f32.mrb[1].mxu1  ;;  %v514_v18 = vadd.f32 %v513_v12, %v422_v36 }
 0x31c   :  { %v517_v17 = vpop.f32.mrb[2].mxu1  ;;  %v516_v22 = vadd.f32 %v515_v16, %v426_v13 }
 0x31d   :  { %v518_v19 = vadd.f32 %v517_v17, %v422_v36  ;;  %v519_v21 = vpop.f32.mrb[3].mxu1 }
 0x31e   :  { %v520_v25 = vadd.f32 %v519_v21, %v426_v13 }
 0x31f   :  { %v9509_v26 = vpack.c.bf16 %v518_v19, %v514_v18 }
 0x320   :  { %v9511_v63 = vpack.c.bf16 %v520_v25, %v516_v22 }
 0x321   :  { %855 = vrot.lane.b32.xlu1 %v9509_v26, %s9189_s19  ;;  %564 = vrot.lane.b32.xlu0 %v9509_v26, %s9190_s2 }
 0x322   :  { %7714 = vmatprep.mubr.msk.bf16.mxu1 %vm572_vm1, %v9509_v26  ;;  %v523_v7 = vpop.f32.mrb[4].mxu1 }
 0x323   :  { %v525_v28 = vpop.f32.mrb[5].mxu1  ;;  %v524_v30 = vadd.f32 %v523_v7, %v422_v36 }
 0x324   :  { %v527_v29 = vpop.f32.mrb[6].mxu1  ;;  %v526_v35 = vadd.f32 %v525_v28, %v426_v13 }
 0x325   :  { %v528_v31 = vadd.f32 %v527_v29, %v422_v36  ;;  %v529_v32 = vpop.f32.mrb[7].mxu1 }
 0x326   :  { %v530_v38 = vadd.f32 %v529_v32, %v426_v13 }
 0x327   :  { %v9519_v39 = vpack.c.bf16 %v528_v31, %v524_v30 }
 0x328   :  { %v9521_v40 = vpack.c.bf16 %v530_v38, %v526_v35 }
 0x329   :  { %566 = vrot.lane.b32.xlu1 %v9519_v39, %s9190_s2 }
 0x32a   :  { %v533_v41 = vpop.f32.mrb[8].mxu1 }
 0x32b   :  { %v535_v42 = vpop.f32.mrb[9].mxu1  ;;  %v534_v43 = vadd.f32 %v533_v41, %v422_v36 }
 0x32c   :  { %v537_v4 = vpop.f32.mrb[10].mxu1  ;;  %v536_v48 = vadd.f32 %v535_v42, %v426_v13 }
 0x32d   :  { %v538_v45 = vadd.f32 %v537_v4, %v422_v36  ;;  %857 = vrot.lane.b32.xlu1 %v9519_v39, %s9189_s19  ;;  %v539_v46 = vpop.f32.mrb[11].mxu1 }
 0x32e   :  { %v540_v49 = vadd.f32 %v539_v46, %v426_v13 }
 0x32f   :  { %v9527_v50 = vpack.c.bf16 %v538_v45, %v534_v43 }
 0x330   :  { %v9529_v9 = vpack.c.bf16 %v540_v49, %v536_v48  ;;  %v9627_v49 = vld [vmem:[%s12280_s3 + $0x10] sm:$0xff] }
 0x331   :  { %859 = vrot.lane.b32.xlu1 %v9527_v50, %s9189_s19  ;;  %568 = vrot.lane.b32.xlu0 %v9527_v50, %s9190_s2 }
 0x332   :  { %v543_v51 = vpop.f32.mrb[12].mxu1 }
 0x333   :  { %v545_v52 = vpop.f32.mrb[13].mxu1  ;;  %v544_v55 = vadd.f32 %v543_v51, %v422_v36 }
 0x334   :  { %v547_v53 = vpop.f32.mrb[14].mxu1  ;;  %v546_v58 = vadd.f32 %v545_v52, %v426_v13 }
 0x335   :  { %v548_v56 = vadd.f32 %v547_v53, %v422_v36  ;;  %v549_v14 = vpop.f32.mrb[15].mxu1 }
 0x336   :  { %v550_v59 = vadd.f32 %v549_v14, %v426_v13 }
 0x337   :  { %v9535_v60 = vpack.c.bf16 %v548_v56, %v544_v55 }
 0x338   :  { %v9537_v61 = vpack.c.bf16 %v550_v59, %v546_v58 }
 0x339   :  { %861 = vrot.lane.b32.xlu1 %v9535_v60, %s9189_s19  ;;  %570 = vrot.lane.b32.xlu0 %v9535_v60, %s9190_s2 }
 0x33d   :  { %1161 = vrot.lane.b32.xlu1 %v9509_v26, %s9191_s20  ;;  %847 = vrot.lane.b32.xlu0 %v9509_v26, %s9192_s21 }
 0x341   :  { %1163 = vrot.lane.b32.xlu1 %v9519_v39, %s9191_s20  ;;  %849 = vrot.lane.b32.xlu0 %v9519_v39, %s9192_s21 }
 0x345   :  { %851 = vrot.lane.b32.xlu1 %v9527_v50, %s9192_s21  ;;  %1165 = vrot.lane.b32.xlu0 %v9527_v50, %s9191_s20 }
 0x349   :  { %1167 = vrot.lane.b32.xlu1 %v9535_v60, %s9191_s20  ;;  %853 = vrot.lane.b32.xlu0 %v9535_v60, %s9192_s21 }
 0x34d   :  { %1155 = vrot.lane.b32.xlu1 %v9519_v39, %s9193_s22  ;;  %1153 = vrot.lane.b32.xlu0 %v9509_v26, %s9193_s22 }
 0x351   :  { %1159 = vrot.lane.b32.xlu1 %v9535_v60, %s9193_s22  ;;  %1157 = vrot.lane.b32.xlu0 %v9527_v50, %s9193_s22 }
 0x355   :  { %1066 = vrot.lane.b32.xlu1 %v9521_v40, %s9192_s21  ;;  %1064 = vrot.lane.b32.xlu0 %v9511_v63, %s9192_s21 }
 0x359   :  { %1070 = vrot.lane.b32.xlu1 %v9537_v61, %s9192_s21  ;;  %1068 = vrot.lane.b32.xlu0 %v9529_v9, %s9192_s21 }
 0x393   :  { %v856_v1 = vpop.permute.xlu1 %855  ;;  %v565_v2 = vpop.permute.xlu0 %564 }
 0x394   :  { %8274 = vmatprep.subr.msk.bf16.mxu1 %vm572_vm1, %v565_v2  ;;  %8278 = vmatprep.subr.msk.bf16.mxu0 %vm572_vm1, %v856_v1  ;;  %v586_v3 = vsel %vm572_vm1, %v565_v2, 0  ;;  %v876_v20 = vsel %vm572_vm1, %v856_v1, 0 }
 0x395   :  { %7707 = vmatpush3.bf16.xpose.msra.mxu1 %v586_v3  ;;  %7739 = vmatpush3.bf16.xpose.msra.mxu0 %v876_v20  ;;  %v9637_v20 = vld [vmem:[%s12280_s3] sm:$0xff] }
 0x39b   :  { %v567_v6 = vpop.permute.xlu1 %566 }
 0x39c   :  { %8275 = vmatprep.subr.msk.bf16.mxu1 %vm572_vm1, %v567_v6  ;;  %v589_v23 = vsel %vm572_vm1, %v567_v6, 0 }
 0x39d   :  { %7709 = vmatpush3.bf16.xpose.msra.mxu1 %v589_v23 }
 0x39f   :  { %v858_v8 = vpop.permute.xlu1 %857 }
 0x3a0   :  { %8279 = vmatprep.subr.msk.bf16.mxu0 %vm572_vm1, %v858_v8  ;;  %v879_v10 = vsel %vm572_vm1, %v858_v8, 0 }
 0x3a1   :  { %7741 = vmatpush3.bf16.xpose.msra.mxu0 %v879_v10 }
 0x3a3   :  { %v860_v33 = vpop.permute.xlu1 %859  ;;  %v569_v36 = vpop.permute.xlu0 %568 }
 0x3a4   :  { %8276 = vmatprep.subr.msk.bf16.mxu1 %vm572_vm1, %v569_v36  ;;  %8280 = vmatprep.subr.msk.bf16.mxu0 %vm572_vm1, %v860_v33  ;;  %v592_v12 = vsel %vm572_vm1, %v569_v36, 0  ;;  %v882_v13 = vsel %vm572_vm1, %v860_v33, 0  ;;  %v9645_v36 = vld [vmem:[%s12280_s3 + $0x18] sm:$0xff] }
 0x3a5   :  { %7711 = vmatpush3.bf16.xpose.msra.mxu1 %v592_v12  ;;  %v9650_v12 = vld [vmem:[%s12280_s3 + $0x8] sm:$0xff] }
 0x3a9   :  { %7743 = vmatpush3.bf16.xpose.msra.mxu0 %v882_v13 }
 0x3ab   :  { %v862_v16 = vpop.permute.xlu1 %861  ;;  %v571_v17 = vpop.permute.xlu0 %570 }
 0x3ac   :  { %8277 = vmatprep.subr.msk.bf16.mxu1 %vm572_vm1, %v571_v17  ;;  %8281 = vmatprep.subr.msk.bf16.mxu0 %vm572_vm1, %v862_v16  ;;  %v595_v18 = vsel %vm572_vm1, %v571_v17, 0  ;;  %v885_v22 = vsel %vm572_vm1, %v862_v16, 0 }
 0x3ad   :  { %7713 = vmatpush3.bf16.xpose.msra.mxu1 %v595_v18 }
 0x3ae   :  { %7722 = vmatprep.subr.bf16.mxu1 %v9511_v63 }
 0x3af   :  { %v1162_v19 = vpop.permute.xlu1 %1161  ;;  %v848_v21 = vpop.permute.xlu0 %847 }
 0x3b0   :  { %7746 = vmatprep.mubr.msk.bf16.mxu0 %vm572_vm1, %v848_v21  ;;  %v1182_v30 = vsel %vm572_vm1, %v1162_v19, 0 }
 0x3b1   :  { %7745 = vmatpush3.bf16.xpose.msra.mxu0 %v885_v22 }
 0x3b2   :  { %8282 = vmatprep.subr.msk.bf16.mxu0 %vm572_vm1, %v1162_v19 }
 0x3b3   :  { %v1164_v25 = vpop.permute.xlu1 %1163  ;;  %v850_v7 = vpop.permute.xlu0 %849 }
 0x3b4   :  { %7715 = vmatmul.mubr.msk.bf16.vlgmr.msra.gmra.mrb[16].mxu1 %vm572_vm1, %v9519_v39  ;;  %v1185_v35 = vsel %vm572_vm1, %v1164_v25, 0 }
 0x3b5   :  { %7718 = vmatprep.mubr.msk.bf16.mxu1 %vm572_vm1, %v9527_v50  ;;  %7723 = vmatpush3.bf16.msra.mxu1 %v9511_v63 }
 0x3b6   :  { %7724 = vmatprep.subr.bf16.mxu1 %v9521_v40 }
 0x3b7   :  { %v852_v28 = vpop.permute.xlu1 %851  ;;  %v1166_v29 = vpop.permute.xlu0 %1165 }
 0x3b8   :  { %7747 = vmatmul.mubr.msk.bf16.vlgmr.msra.gmra.mrb[16].mxu0 %vm572_vm1, %v850_v7  ;;  %v1188_v42 = vsel %vm572_vm1, %v1166_v29, 0 }
 0x3b9   :  { %7725 = vmatpush3.bf16.msra.mxu1 %v9521_v40  ;;  %7750 = vmatprep.mubr.msk.bf16.mxu0 %vm572_vm1, %v852_v28 }
 0x3ba   :  { %7771 = vmatpush3.bf16.xpose.msra.mxu0 %v1182_v30  ;;  %7726 = vmatprep.subr.bf16.mxu1 %v9529_v9 }
 0x3bb   :  { %8283 = vmatprep.subr.msk.bf16.mxu0 %vm572_vm1, %v1164_v25  ;;  %v854_v31 = vpop.permute.xlu0 %853  ;;  %v1168_v4 = vpop.permute.xlu1 %1167 }
 0x3bc   :  { %7719 = vmatmul.mubr.msk.bf16.gmra.mrb[20].mxu1 %vm572_vm1, %v9535_v60  ;;  %v1191_v43 = vsel %vm572_vm1, %v1168_v4, 0 }
 0x3bd   :  { %7727 = vmatpush3.bf16.msra.mxu1 %v9529_v9 }
 0x3be   :  { %7728 = vmatprep.subr.bf16.mxu1 %v9537_v61 }
 0x3bf   :  { %v1154_v32 = vpop.permute.xlu0 %1153  ;;  %v1156_v45 = vpop.permute.xlu1 %1155 }
 0x3c0   :  { %7751 = vmatmul.mubr.msk.bf16.gmra.mrb[20].mxu0 %vm572_vm1, %v854_v31 }
 0x3c1   :  { %7729 = vmatpush3.bf16.msra.mxu1 %v9537_v61  ;;  %7778 = vmatprep.mubr.msk.bf16.mxu0 %vm572_vm1, %v1154_v32 }
 0x3c2   :  { %7773 = vmatpush3.bf16.xpose.msra.mxu0 %v1185_v35 }
 0x3c3   :  { %8284 = vmatprep.subr.msk.bf16.mxu0 %vm572_vm1, %v1166_v29  ;;  %v1158_v38 = vpop.permute.xlu0 %1157  ;;  %v1160_v46 = vpop.permute.xlu1 %1159 }
 0x3c7   :  { %v9615_v41 = vpop.permute.xlu0 %1064 }
 0x3c8   :  { %7754 = vmatprep.subr.bf16.mxu1 %v9615_v41 }
 0x3ca   :  { %7775 = vmatpush3.bf16.xpose.msra.mxu0 %v1188_v42 }
 0x3cb   :  { %8285 = vmatprep.subr.msk.bf16.mxu0 %vm572_vm1, %v1168_v4 }
 0x3d2   :  { %7777 = vmatpush3.bf16.xpose.msra.mxu0 %v1191_v43 }
 0x3d9   :  { %7779 = vmatmul.mubr.msk.bf16.vlgmr.msra.gmra.mrb[24].mxu0 %vm572_vm1, %v1156_v45 }
 0x3da   :  { %7782 = vmatprep.mubr.msk.bf16.mxu0 %vm572_vm1, %v1158_v38 }
 0x3e1   :  { %7783 = vmatmul.mubr.msk.bf16.gmra.mrb[28].mxu0 %vm572_vm1, %v1160_v46  ;;  %v9678_v46 = vld [vmem:[%s12280_s3 + $0x38] sm:$0xff] }
 0x487   :  { %v7716_v48 = vpop.f32.mrb[16].mxu1 }
 0x488   :  { %v664_v51 = vmul.f32 0.25, %v7716_v48  ;;  %v631_v52 = vpop.f32.mrb[17].mxu1 }
 0x489   :  { %v7717_v53 = vpop.f32.mrb[18].mxu1  ;;  %v662_v58 = vmul.f32 0.25, %v631_v52 }
 0x48a   :  { %v634_v55 = vpop.f32.mrb[19].mxu1  ;;  %v9630_v56 = vadd.f32 %v664_v51, %v9627_v49  ;;  %v665_v30 = vmul.f32 0.25, %v7717_v53  ;;  %v9688_v53 = vld [vmem:[%s12280_s3 + $0x30] sm:$0xff] }
 0x48b   :  { %v7748_v14 = vpop.f32.mrb[16].mxu0  ;;  %v663_v6 = vmul.f32 0.25, %v634_v55  ;;  %v9658_v19 = vadd.f32 %v662_v58, %v9637_v20 }
 0x48c   :  { %v954_v59 = vmul.f32 0.25, %v7748_v14  ;;  %v921_v1 = vpop.f32.mrb[17].mxu0  ;;  %v684_v2 = vsel %vm190_vm0, %v9630_v56, -inf  ;;  %v9683_v52 = vadd.f32 %v665_v30, %v9645_v36 }
 0x48d   :  { %685 = vmax.xlane.f32.xlu0 %v684_v2  ;;  %v7749_v3 = vpop.f32.mrb[18].mxu0  ;;  %v952_v13 = vmul.f32 0.25, %v921_v1  ;;  %v9663_v28 = vadd.f32 %v663_v6, %v9650_v12  ;;  %v678_v32 = vsel %vm190_vm0, %v9658_v19, -inf }
 0x48e   :  { %v955_v23 = vmul.f32 0.25, %v7749_v3  ;;  %v924_v8 = vpop.f32.mrb[19].mxu0  ;;  %v9640_v10 = vadd.f32 %v954_v59, %v9627_v49  ;;  %v687_v1 = vsel %vm190_vm0, %v9683_v52, -inf }
 0x48f   :  { %v7720_v33 = vpop.f32.mrb[20].mxu1  ;;  %v953_v22 = vmul.f32 0.25, %v924_v8  ;;  %v9668_v35 = vadd.f32 %v952_v13, %v9637_v20  ;;  %v681_v43 = vsel %vm190_vm0, %v9663_v28, -inf  ;;  %v9708_v8 = vld [vmem:[%s12280_s3 + $0x28] sm:$0xff] }
 0x490   :  { %v647_v16 = vpop.f32.mrb[21].mxu1  ;;  %v974_v17 = vsel %vm190_vm0, %v9640_v10, -inf  ;;  %v9655_v18 = vadd.f32 %v955_v23, %v9645_v36  ;;  %v668_v48 = vmul.f32 0.25, %v7720_v33 }
 0x491   :  { %v7721_v21 = vpop.f32.mrb[22].mxu1  ;;  %975 = vmax.xlane.f32.xlu0 %v974_v17  ;;  %v9673_v45 = vadd.f32 %v953_v22, %v9650_v12  ;;  %v968_v51 = vsel %vm190_vm0, %v9668_v35, -inf  ;;  %v666_v33 = vmul.f32 0.25, %v647_v16 }
 0x492   :  { %v650_v25 = vpop.f32.mrb[23].mxu1  ;;  %v977_v7 = vsel %vm190_vm0, %v9655_v18, -inf  ;;  %v669_v42 = vmul.f32 0.25, %v7721_v21  ;;  %v9698_v2 = vadd.f32 %v668_v48, %v9688_v53  ;;  %v9718_v21 = vld [vmem:[%s12280_s3 + $0x20] sm:$0xff] }
 0x493   :  { %978 = vmax.xlane.f32.xlu1 %v977_v7  ;;  %v7752_v29 = vpop.f32.mrb[20].mxu0  ;;  %v971_v14 = vsel %vm190_vm0, %v9673_v45, -inf  ;;  %v667_v3 = vmul.f32 0.25, %v650_v25  ;;  %v9728_v30 = vadd.f32 %v666_v33, %v9718_v21 }
 0x494   :  { %v937_v31 = vpop.f32.mrb[21].mxu0  ;;  %v9693_v58 = vadd.f32 %v669_v42, %v9678_v46  ;;  %v958_v59 = vmul.f32 0.25, %v7752_v29  ;;  %v696_v13 = vsel %vm190_vm0, %v9698_v2, -inf }
 0x495   :  { %679 = vmax.xlane.f32.xlu0 %v678_v32  ;;  %v7753_v38 = vpop.f32.mrb[22].mxu0  ;;  %v9723_v7 = vadd.f32 %v667_v3, %v9708_v8  ;;  %v956_v16 = vmul.f32 0.25, %v937_v31  ;;  %v690_v42 = vsel %vm190_vm0, %v9728_v30, -inf }
 0x496   :  { %v940_v4 = vpop.f32.mrb[23].mxu0  ;;  %v959_v55 = vmul.f32 0.25, %v7753_v38  ;;  %v699_v6 = vsel %vm190_vm0, %v9693_v58, -inf  ;;  %v9713_v17 = vadd.f32 %v958_v59, %v9688_v53 }
 0x497   :  { %682 = vmax.xlane.f32.xlu1 %v681_v43  ;;  %v957_v22 = vmul.f32 0.25, %v940_v4  ;;  %v693_v32 = vsel %vm190_vm0, %v9723_v7, -inf  ;;  %v9738_v4 = vadd.f32 %v956_v16, %v9718_v21 }
 0x498   :  { %v9703_v23 = vadd.f32 %v959_v55, %v9678_v46  ;;  %v986_v29 = vsel %vm190_vm0, %v9713_v17, -inf }
 0x499   :  { %969 = vmax.xlane.f32.xlu0 %v968_v51  ;;  %v9733_v38 = vadd.f32 %v957_v22, %v9708_v8  ;;  %v980_v48 = vsel %vm190_vm0, %v9738_v4, -inf }
 0x49a   :  { %v989_v25 = vsel %vm190_vm0, %v9703_v23, -inf }
 0x49b   :  { %972 = vmax.xlane.f32.xlu1 %v971_v14  ;;  %v983_v31 = vsel %vm190_vm0, %v9733_v38, -inf }
 0x49d   :  { %688 = vmax.xlane.f32.xlu0 %v687_v1 }
 0x49f   :  { %700 = vmax.xlane.f32.xlu1 %v699_v6 }
 0x4a1   :  { %697 = vmax.xlane.f32.xlu0 %v696_v13 }
 0x4a3   :  { %990 = vmax.xlane.f32.xlu1 %v989_v25 }
 0x4a5   :  { %987 = vmax.xlane.f32.xlu0 %v986_v29 }
 0x4a7   :  { %694 = vmax.xlane.f32.xlu1 %v693_v32 }
 0x4a9   :  { %691 = vmax.xlane.f32.xlu0 %v690_v42 }
 0x4ab   :  { %984 = vmax.xlane.f32.xlu1 %v983_v31 }
 0x4ac   :  { %v7780_v43 = vpop.f32.mrb[24].mxu0 }
 0x4ad   :  { %v1260_v51 = vmul.f32 0.25, %v7780_v43  ;;  %v1227_v55 = vpop.f32.mrb[25].mxu0  ;;  %981 = vmax.xlane.f32.xlu0 %v980_v48 }
 0x4ae   :  { %v1258_v14 = vmul.f32 0.25, %v1227_v55  ;;  %v7781_v59 = vpop.f32.mrb[26].mxu0 }
 0x4af   :  { %v1261_v1 = vmul.f32 0.25, %v7781_v59  ;;  %v1230_v3 = vpop.f32.mrb[27].mxu0  ;;  %v9745_v6 = vadd.f32 %v1260_v51, %v9627_v49 }
 0x4b0   :  { %v1259_v33 = vmul.f32 0.25, %v1230_v3  ;;  %v9753_v25 = vadd.f32 %v1258_v14, %v9637_v20 }
 0x4b1   :  { %v1280_v13 = vsel %vm190_vm0, %v9745_v6, -inf  ;;  %v9750_v22 = vadd.f32 %v1261_v1, %v9645_v36 }
 0x4b2   :  { %1281 = vmax.xlane.f32.xlu0 %v1280_v13  ;;  %v9758_v29 = vadd.f32 %v1259_v33, %v9650_v12  ;;  %v1274_v31 = vsel %vm190_vm0, %v9753_v25, -inf }
 0x4b3   :  { %v1283_v16 = vsel %vm190_vm0, %v9750_v22, -inf }
 0x4b4   :  { %1284 = vmax.xlane.f32.xlu1 %v1283_v16  ;;  %v7784_v49 = vpop.f32.mrb[28].mxu0  ;;  %v1277_v55 = vsel %vm190_vm0, %v9758_v29, -inf }
 0x4b5   :  { %v1264_v32 = vmul.f32 0.25, %v7784_v49  ;;  %v1243_v42 = vpop.f32.mrb[29].mxu0 }
 0x4b6   :  { %v1262_v43 = vmul.f32 0.25, %v1243_v42  ;;  %1275 = vmax.xlane.f32.xlu0 %v1274_v31  ;;  %v7785_v48 = vpop.f32.mrb[30].mxu0  ;;  %v9792_v31 = vpop.permute.xlu1 %1066 }
 0x4b7   :  { %v1246_v51 = vpop.f32.mrb[31].mxu0  ;;  %v9765_v14 = vadd.f32 %v1264_v32, %v9688_v53  ;;  %v1265_v33 = vmul.f32 0.25, %v7785_v48 }
 0x4b8   :  { %1278 = vmax.xlane.f32.xlu1 %v1277_v55  ;;  %v9770_v1 = vadd.f32 %v1262_v43, %v9718_v21  ;;  %v1263_v13 = vmul.f32 0.25, %v1246_v51  ;;  %v9794_v43 = vpop.permute.xlu0 %1068 }
 0x4b9   :  { %v1292_v59 = vsel %vm190_vm0, %v9765_v14, -inf  ;;  %v9783_v16 = vadd.f32 %v1265_v33, %v9678_v46 }
 0x4ba   :  { %1293 = vmax.xlane.f32.xlu0 %v1292_v59  ;;  %v1286_v3 = vsel %vm190_vm0, %v9770_v1, -inf  ;;  %v9788_v32 = vadd.f32 %v1263_v13, %v9708_v8  ;;  %v9797_v55 = vpop.permute.xlu1 %1070 }
 0x4bb   :  { %v1295_v49 = vsel %vm190_vm0, %v9783_v16, -inf }
 0x4bc   :  { %v1289_v42 = vsel %vm190_vm0, %v9788_v32, -inf }
 0x4be   :  { %1287 = vmax.xlane.f32.xlu0 %v1286_v3 }
 0x4c9   :  { %1368 = vrot.lane.b32.xlu1 %v9521_v40, %s9193_s22 }
 0x4cd   :  { %1370 = vrot.lane.b32.xlu1 %v9529_v9, %s9193_s22 }
 0x4d1   :  { %1372 = vrot.lane.b32.xlu1 %v9537_v61, %s9193_s22 }
 0x4d4   :  { %1366 = vrot.lane.b32.xlu0 %v9511_v63, %s9193_s22 }
 0x4f5   :  { %1296 = vmax.xlane.f32.xlu1 %v1295_v49 }
 0x4f9   :  { %1290 = vmax.xlane.f32.xlu1 %v1289_v42 }
 0x51a   :  { %v686_v48 = vpop.xlane.xlu0 %685 }
 0x51b   :  { %v704_v51 = vsub.f32 %v9630_v56, %v686_v48 }
 0x51d   :  { %v714_v59 = vmul.f32 1.442695, %v704_v51 }
 0x51e   :  { %v976_v3 = vpop.xlane.xlu0 %975 }
 0x51f   :  { %8640 = vpow2.f32 %v714_v59  ;;  %v994_v33 = vsub.f32 %v9640_v10, %v976_v3 }
 0x520   :  { %v979_v13 = vpop.xlane.xlu1 %978 }
 0x521   :  { %v1004_v49 = vmul.f32 1.442695, %v994_v33  ;;  %v995_v51 = vsub.f32 %v9655_v18, %v979_v13 }
 0x522   :  { %v680_v0 = vpop.xlane.xlu0 %679 }
 0x523   :  { %8642 = vpow2.f32 %v1004_v49  ;;  %v702_v42 = vsub.f32 %v9658_v19, %v680_v0 }
 0x524   :  { %v683_v11 = vpop.xlane.xlu1 %682 }
 0x525   :  { %v710_v15 = vmul.f32 1.442695, %v702_v42 }
 0x526   :  { %v970_v5 = vpop.xlane.xlu0 %969 }
 0x527   :  { %8644 = vpow2.f32 %v710_v15  ;;  %v992_v57 = vsub.f32 %v9668_v35, %v970_v5  ;;  %v1006_v15 = vmul.f32 1.442695, %v995_v51  ;;  %v703_v5 = vsub.f32 %v9663_v28, %v683_v11 }
 0x528   :  { %v973_v56 = vpop.xlane.xlu1 %972 }
 0x529   :  { %v9802_v48 = vpop.eup %8640  ;;  %v1000_v59 = vmul.f32 1.442695, %v992_v57 }
 0x52a   :  { %v689_v47 = vpop.xlane.xlu0 %688  ;;  %v732_v10 = vsel %vm190_vm0, %v9802_v48, 0.0 }
 0x52b   :  { %8646 = vpow2.f32 %v1000_v59  ;;  %v705_v3 = vsub.f32 %v9683_v52, %v689_v47  ;;  %733 = vadd.xlane.f32.xlu0 %v732_v10  ;;  %v712_v47 = vmul.f32 1.442695, %v703_v5  ;;  %v993_v52 = vsub.f32 %v9673_v45, %v973_v56 }
 0x52c   :  { %v701_v0 = vpop.xlane.xlu1 %700 }
 0x52d   :  { %v9808_v19 = vpop.eup %8642  ;;  %v716_v35 = vmul.f32 1.442695, %v705_v3  ;;  %v1002_v59 = vmul.f32 1.442695, %v993_v52  ;;  %v709_v5 = vsub.f32 %v9693_v58, %v701_v0 }
 0x52e   :  { %v698_v33 = vpop.xlane.xlu0 %697  ;;  %v1022_v18 = vsel %vm190_vm0, %v9808_v19, 0.0 }
 0x52f   :  { %8648 = vpow2.f32 %v716_v35  ;;  %v708_v57 = vsub.f32 %v9698_v2, %v698_v33  ;;  %1023 = vadd.xlane.f32.xlu0 %v1022_v18 }
 0x530   :  { %8650 = vpow2.f32 %v1006_v15  ;;  %v991_v42 = vpop.xlane.xlu1 %990 }
 0x531   :  { %v9814_v13 = vpop.eup %8644  ;;  %v722_v49 = vmul.f32 1.442695, %v708_v57 }
 0x532   :  { %v988_v51 = vpop.xlane.xlu0 %987  ;;  %v726_v11 = vsel %vm190_vm0, %v9814_v13, 0.0 }
 0x533   :  { %8652 = vpow2.f32 %v722_v49  ;;  %727 = vadd.xlane.f32.xlu0 %v726_v11  ;;  %v998_v2 = vsub.f32 %v9713_v17, %v988_v51  ;;  %v999_v49 = vsub.f32 %v9703_v23, %v991_v42 }
 0x534   :  { %8654 = vpow2.f32 %v712_v47  ;;  %v695_v15 = vpop.xlane.xlu1 %694 }
 0x535   :  { %v9819_v28 = vpop.eup %8646  ;;  %8656 = vpow2.f32 %v1002_v59  ;;  %v1012_v35 = vmul.f32 1.442695, %v998_v2  ;;  %v707_v23 = vsub.f32 %v9723_v7, %v695_v15 }
 0x536   :  { %v692_v10 = vpop.xlane.xlu0 %691  ;;  %v1016_v3 = vsel %vm190_vm0, %v9819_v28, 0.0 }
 0x537   :  { %v706_v45 = vsub.f32 %v9728_v30, %v692_v10  ;;  %1017 = vadd.xlane.f32.xlu0 %v1016_v3  ;;  %v724_v30 = vmul.f32 1.442695, %v709_v5  ;;  %v1014_v10 = vmul.f32 1.442695, %v999_v49 }
 0x538   :  { %v985_v51 = vpop.xlane.xlu1 %984 }
 0x539   :  { %v9825_v56 = vpop.eup %8648  ;;  %v718_v33 = vmul.f32 1.442695, %v706_v45 }
 0x53a   :  { %v982_v18 = vpop.xlane.xlu0 %981  ;;  %v735_v57 = vsel %vm190_vm0, %v9825_v56, 0.0  ;;  %v9830_v17 = vpop.eup %8650 }
 0x53b   :  { %8658 = vpow2.f32 %v718_v33  ;;  %v996_v47 = vsub.f32 %v9738_v4, %v982_v18  ;;  %736 = vadd.xlane.f32.xlu1 %v735_v57  ;;  %v1025_v0 = vsel %vm190_vm0, %v9830_v17, 0.0 }
 0x53c   :  { %8660 = vpow2.f32 %v1012_v35 }
 0x53d   :  { %v9833_v52 = vpop.eup %8652  ;;  %v1008_v58 = vmul.f32 1.442695, %v996_v47  ;;  %v997_v47 = vsub.f32 %v9733_v38, %v985_v51 }
 0x53e   :  { %v744_v11 = vsel %vm190_vm0, %v9833_v52, 0.0  ;;  %v9840_v59 = vpop.eup %8654 }
 0x53f   :  { %8662 = vpow2.f32 %v1008_v58  ;;  %v1282_v2 = vpop.xlane.xlu0 %1281  ;;  %1026 = vadd.xlane.f32.xlu1 %v1025_v0  ;;  %745 = vadd.xlane.f32.xlu0 %v744_v11  ;;  %v729_v5 = vsel %vm190_vm0, %v9840_v59, 0.0  ;;  %v9847_v35 = vpop.eup %8656  ;;  %v1010_v38 = vmul.f32 1.442695, %v997_v47 }
 0x540   :  { %v1300_v4 = vsub.f32 %v9745_v6, %v1282_v2  ;;  %8664 = vpow2.f32 %v724_v30  ;;  %v720_v6 = vmul.f32 1.442695, %v707_v23 }
 0x541   :  { %v1285_v42 = vpop.xlane.xlu1 %1284 }
 0x542   :  { %v1310_v3 = vmul.f32 1.442695, %v1300_v4  ;;  %v1301_v45 = vsub.f32 %v9750_v22, %v1285_v42  ;;  %v1019_v22 = vsel %vm190_vm0, %v9847_v35, 0.0 }
 0x543   :  { %v1276_v33 = vpop.xlane.xlu0 %1275  ;;  %730 = vadd.xlane.f32.xlu1 %v729_v5 }
 0x544   :  { %8666 = vpow2.f32 %v1310_v3  ;;  %v1312_v18 = vmul.f32 1.442695, %v1301_v45 }
 0x545   :  { %v9849_v57 = vpop.eup %8658  ;;  %8668 = vpow2.f32 %v1014_v10  ;;  %v1279_v7 = vpop.xlane.xlu1 %1278 }
 0x546   :  { %8670 = vpow2.f32 %v1312_v18  ;;  %v1299_v15 = vsub.f32 %v9758_v29, %v1279_v7  ;;  %v738_v30 = vsel %vm190_vm0, %v9849_v57, 0.0  ;;  %v9857_v49 = vpop.eup %8660  ;;  %v1298_v29 = vsub.f32 %v9753_v25, %v1276_v33 }
 0x547   :  { %v1294_v58 = vpop.xlane.xlu0 %1293  ;;  %1020 = vadd.xlane.f32.xlu1 %v1019_v22  ;;  %739 = vadd.xlane.f32.xlu0 %v738_v30  ;;  %8672 = vpow2.f32 %v720_v6  ;;  %v1034_v4 = vsel %vm190_vm0, %v9857_v49, 0.0 }
 0x548   :  { %v1308_v0 = vmul.f32 1.442695, %v1299_v15  ;;  %v1304_v11 = vsub.f32 %v9765_v14, %v1294_v58  ;;  %v1306_v3 = vmul.f32 1.442695, %v1298_v29 }
 0x549   :  { %v9860_v2 = vpop.eup %8662 }
 0x54a   :  { %8674 = vpow2.f32 %v1308_v0  ;;  %v1318_v51 = vmul.f32 1.442695, %v1304_v11  ;;  %v1028_v10 = vsel %vm190_vm0, %v9860_v2, 0.0  ;;  %v9867_v23 = vpop.eup %8664 }
 0x54b   :  { %v1288_v42 = vpop.xlane.xlu0 %1287  ;;  %1035 = vadd.xlane.f32.xlu1 %v1034_v4  ;;  %1029 = vadd.xlane.f32.xlu0 %v1028_v10  ;;  %8676 = vpow2.f32 %v1010_v38  ;;  %v747_v5 = vsel %vm190_vm0, %v9867_v23, 0.0 }
 0x54c   :  { %v1302_v14 = vsub.f32 %v9770_v1, %v1288_v42  ;;  %8678 = vpow2.f32 %v1318_v51  ;;  %v9910_v42 = vpop.permute.xlu1 %1368 }
 0x54d   :  { %8680 = vpow2.f32 %v1306_v3 }
 0x54e   :  { %v9870_v45 = vpop.eup %8666  ;;  %v1314_v25 = vmul.f32 1.442695, %v1302_v14 }
 0x54f   :  { %v9874_v33 = vpop.eup %8668  ;;  %748 = vadd.xlane.f32.xlu1 %v747_v5  ;;  %v1328_v18 = vsel %vm190_vm0, %v9870_v45, 0.0 }
 0x550   :  { %v9878_v6 = vpop.eup %8670  ;;  %1329 = vadd.xlane.f32.xlu0 %v1328_v18  ;;  %8682 = vpow2.f32 %v1314_v25  ;;  %v1037_v1 = vsel %vm190_vm0, %v9874_v33, 0.0  ;;  %v9914_v14 = vpop.permute.xlu1 %1370 }
 0x551   :  { %v9882_v47 = vpop.eup %8672  ;;  %v1331_v7 = vsel %vm190_vm0, %v9878_v6, 0.0 }
 0x552   :  { %v741_v22 = vsel %vm190_vm0, %v9882_v47, 0.0 }
 0x553   :  { %1038 = vadd.xlane.f32.xlu1 %v1037_v1 }
 0x554   :  { %v9886_v15 = vpop.eup %8674  ;;  %1332 = vadd.xlane.f32.xlu0 %v1331_v7  ;;  %v9916_v3 = vpop.permute.xlu1 %1372 }
 0x555   :  { %v9890_v30 = vpop.eup %8676  ;;  %v1325_v58 = vsel %vm190_vm0, %v9886_v15, 0.0 }
 0x556   :  { %v9894_v0 = vpop.eup %8678  ;;  %v1031_v11 = vsel %vm190_vm0, %v9890_v30, 0.0 }
 0x557   :  { %742 = vadd.xlane.f32.xlu1 %v741_v22  ;;  %v9898_v38 = vpop.eup %8680  ;;  %v1340_v29 = vsel %vm190_vm0, %v9894_v0, 0.0 }
 0x558   :  { %1326 = vadd.xlane.f32.xlu0 %v1325_v58  ;;  %v1322_v4 = vsel %vm190_vm0, %v9898_v38, 0.0 }
 0x55a   :  { %v9902_v51 = vpop.eup %8682 }
 0x55b   :  { %1032 = vadd.xlane.f32.xlu1 %v1031_v11  ;;  %v1334_v10 = vsel %vm190_vm0, %v9902_v51, 0.0 }
 0x55c   :  { %1341 = vadd.xlane.f32.xlu0 %v1340_v29 }
 0x55f   :  { %1323 = vadd.xlane.f32.xlu1 %v1322_v4 }
 0x560   :  { %1335 = vadd.xlane.f32.xlu0 %v1334_v10 }
 0x570   :  { %1465 = vrot.lane.b32.xlu1 %v9519_v39, %s9194_s23 }
 0x574   :  { %1467 = vrot.lane.b32.xlu1 %v9527_v50, %s9194_s23 }
 0x582   :  { %v1297_v25 = vpop.xlane.xlu1 %1296 }
 0x583   :  { %v1305_v5 = vsub.f32 %v9783_v16, %v1297_v25  ;;  %v9940_v16 = vpop.permute.xlu0 %1366 }
 0x585   :  { %v1320_v18 = vmul.f32 1.442695, %v1305_v5 }
 0x586   :  { %v1291_v1 = vpop.xlane.xlu1 %1290 }
 0x587   :  { %8684 = vpow2.f32 %v1320_v18  ;;  %v1303_v7 = vsub.f32 %v9788_v32, %v1291_v1 }
 0x589   :  { %v1316_v22 = vmul.f32 1.442695, %v1303_v7 }
 0x58b   :  { %8686 = vpow2.f32 %v1316_v22 }
 0x591   :  { %v9920_v58 = vpop.eup %8684 }
 0x592   :  { %v1343_v11 = vsel %vm190_vm0, %v9920_v58, 0.0 }
 0x593   :  { %1344 = vadd.xlane.f32.xlu0 %v1343_v11 }
 0x595   :  { %v9924_v29 = vpop.eup %8686 }
 0x596   :  { %v1337_v4 = vsel %vm190_vm0, %v9924_v29, 0.0 }
 0x598   :  { %1338 = vadd.xlane.f32.xlu1 %v1337_v4 }
 0x5a9   :  { %1463 = vrot.lane.b32.xlu0 %v9509_v26, %s9194_s23  ;;  %1469 = vrot.lane.b32.xlu1 %v9535_v60, %s9194_s23 }
 0x5ad   :  { %1455 = vrot.lane.b32.xlu0 %v9509_v26, %s9195_s24  ;;  %1457 = vrot.lane.b32.xlu1 %v9519_v39, %s9195_s24 }
 0x5b1   :  { %1459 = vrot.lane.b32.xlu0 %v9527_v50, %s9195_s24  ;;  %1461 = vrot.lane.b32.xlu1 %v9535_v60, %s9195_s24 }
 0x5b8   :  { %v734_v32 = vpop.xlane.xlu0 %733 }
 0x5bc   :  { %v1024_v10 = vpop.xlane.xlu0 %1023 }
 0x5c0   :  { %v728_v5 = vpop.xlane.xlu0 %727 }
 0x5c4   :  { %v1018_v1 = vpop.xlane.xlu0 %1017 }
 0x5c8   :  { %v737_v25 = vpop.xlane.xlu1 %736 }
 0x5c9   :  { %8688 = vrcp.f32 %v737_v25 }
 0x5ca   :  { %8690 = vrcp.f32 %v728_v5 }
 0x5cb   :  { %8692 = vrcp.f32 %v734_v32 }
 0x5cc   :  { %v1027_v18 = vpop.xlane.xlu1 %1026  ;;  %v746_v7 = vpop.xlane.xlu0 %745 }
 0x5d0   :  { %v731_v26 = vpop.xlane.xlu1 %730 }
 0x5d1   :  { %8694 = vrcp.f32 %v731_v26 }
 0x5d2   :  { %8696 = vrcp.f32 %v1018_v1 }
 0x5d3   :  { %v8689_v22 = vpop.eup %8688 }
 0x5d4   :  { %v1021_v39 = vpop.xlane.xlu1 %1020  ;;  %v8691_v11 = vpop.eup %8690  ;;  %v757_v44 = vmul.f32 %v8689_v22, %v9825_v56 }
 0x5d5   :  { %v8693_v4 = vpop.eup %8692  ;;  %v740_v60 = vpop.xlane.xlu0 %739  ;;  %v751_v27 = vmul.f32 %v8691_v11, %v9814_v13  ;;  %8698 = vrcp.f32 %v1021_v39 }
 0x5d6   :  { %v755_v32 = vmul.f32 %v8693_v4, %v9802_v48 }
 0x5d8   :  { %v1036_v50 = vpop.xlane.xlu1 %1035  ;;  %v767_v26 = vpack.c.bf16 %v757_v44, %v755_v32 }
 0x5d9   :  { %v1030_v34 = vpop.xlane.xlu0 %1029 }
 0x5db   :  { %v8695_v54 = vpop.eup %8694 }
 0x5dc   :  { %v749_v37 = vpop.xlane.xlu1 %748  ;;  %v753_v25 = vmul.f32 %v8695_v54, %v9840_v59  ;;  %v8697_v44 = vpop.eup %8696 }
 0x5dd   :  { %8700 = vrcp.f32 %v749_v37  ;;  %v1330_v48 = vpop.xlane.xlu0 %1329  ;;  %v1041_v11 = vmul.f32 %v8697_v44, %v9819_v28 }
 0x5de   :  { %v766_v5 = vpack.c.bf16 %v753_v25, %v751_v27  ;;  %8702 = vrcp.f32 %v740_v60 }
 0x5df   :  { %8704 = vrcp.f32 %v746_v7  ;;  %v8699_v13 = vpop.eup %8698 }
 0x5e0   :  { %v1039_v24 = vpop.xlane.xlu1 %1038  ;;  %7730 = vmatprep.mubr.msk.bf16.mxu1 %vm190_vm0, %v766_v5  ;;  %v1043_v7 = vmul.f32 %v8699_v13, %v9847_v35 }
 0x5e1   :  { %7731 = vmatmul.mubr.msk.bf16.vlgmr.msra.gmra.mrb[24].mxu1 %vm190_vm0, %v767_v26 }
 0x5e2   :  { %7755 = vmatpush3.bf16.msra.mxu1 %v9615_v41  ;;  %v1333_v41 = vpop.xlane.xlu0 %1332 }
 0x5e3   :  { %7756 = vmatprep.subr.bf16.mxu1 %v9792_v31 }
 0x5e4   :  { %v743_v54 = vpop.xlane.xlu1 %742 }
 0x5e5   :  { %8706 = vrcp.f32 %v743_v54 }
 0x5e6   :  { %7757 = vmatpush3.bf16.msra.mxu1 %v9792_v31  ;;  %8708 = vrcp.f32 %v1027_v18  ;;  %v1327_v22 = vpop.xlane.xlu0 %1326 }
 0x5e7   :  { %7758 = vmatprep.subr.bf16.mxu1 %v9794_v43  ;;  %v8701_v37 = vpop.eup %8700 }
 0x5e8   :  { %v1033_v27 = vpop.xlane.xlu1 %1032  ;;  %v8703_v56 = vpop.eup %8702  ;;  %v765_v1 = vmul.f32 %v8701_v37, %v9867_v23  ;;  %v1056_v23 = vpack.c.bf16 %v1043_v7, %v1041_v11 }
 0x5e9   :  { %8710 = vrcp.f32 %v1033_v27  ;;  %v8705_v59 = vpop.eup %8704 }
 0x5ea   :  { %7759 = vmatpush3.bf16.msra.mxu1 %v9794_v43  ;;  %8712 = vrcp.f32 %v1024_v10  ;;  %v759_v43 = vmul.f32 %v8703_v56, %v9849_v57  ;;  %v763_v10 = vmul.f32 %v8705_v59, %v9833_v52 }
 0x5eb   :  { %7760 = vmatprep.subr.bf16.mxu1 %v9797_v55  ;;  %8714 = vrcp.f32 %v1030_v34 }
 0x5ec   :  { %v1324_v18 = vpop.xlane.xlu1 %1323  ;;  %8716 = vrcp.f32 %v1039_v24 }
 0x5ed   :  { %8718 = vrcp.f32 %v1324_v18 }
 0x5ee   :  { %7761 = vmatpush3.bf16.msra.mxu1 %v9797_v55  ;;  %v769_v55 = vpack.c.bf16 %v765_v1, %v763_v10  ;;  %8720 = vrcp.f32 %v1036_v50 }
 0x5ef   :  { %v8707_v31 = vpop.eup %8706  ;;  %7786 = vmatprep.subr.bf16.mxu1 %v9940_v16  ;;  %8722 = vrcp.f32 %v1327_v22 }
 0x5f0   :  { %v761_v39 = vmul.f32 %v8707_v31, %v9882_v47  ;;  %v8709_v4 = vpop.eup %8708  ;;  %8724 = vrcp.f32 %v1333_v41 }
 0x5f1   :  { %v1047_v24 = vmul.f32 %v8709_v4, %v9830_v17  ;;  %8726 = vrcp.f32 %v1330_v48 }
 0x5f2   :  { %v768_v34 = vpack.c.bf16 %v761_v39, %v759_v43 }
 0x5f3   :  { %v8711_v60 = vpop.eup %8710 }
 0x5f4   :  { %7734 = vmatprep.mubr.msk.bf16.mxu1 %vm190_vm0, %v768_v34  ;;  %v8713_v57 = vpop.eup %8712  ;;  %v1051_v35 = vmul.f32 %v8711_v60, %v9890_v30 }
 0x5f5   :  { %7735 = vmatmul.mubr.msk.bf16.gmra.mrb[28].mxu1 %vm190_vm0, %v769_v55  ;;  %v8715_v52 = vpop.eup %8714  ;;  %v1045_v28 = vmul.f32 %v8713_v57, %v9808_v19 }
 0x5f6   :  { %7762 = vmatprep.mubr.msk.bf16.mxu1 %vm190_vm0, %v1056_v23  ;;  %v1049_v47 = vmul.f32 %v8715_v52, %v9860_v2  ;;  %v8717_v25 = vpop.eup %8716 }
 0x5f7   :  { %v1057_v50 = vpack.c.bf16 %v1047_v24, %v1045_v28  ;;  %v8719_v5 = vpop.eup %8718  ;;  %v1055_v19 = vmul.f32 %v8717_v25, %v9874_v33 }
 0x5f8   :  { %v1058_v32 = vpack.c.bf16 %v1051_v35, %v1049_v47  ;;  %v8721_v26 = vpop.eup %8720  ;;  %v1347_v30 = vmul.f32 %v8719_v5, %v9898_v38  ;;  %v1342_v38 = vpop.xlane.xlu0 %1341 }
 0x5f9   :  { %v8723_v17 = vpop.eup %8722  ;;  %v1053_v2 = vmul.f32 %v8721_v26, %v9857_v49 }
 0x5fa   :  { %v1349_v54 = vmul.f32 %v8723_v17, %v9886_v15  ;;  %v8725_v27 = vpop.eup %8724 }
 0x5fb   :  { %v1059_v48 = vpack.c.bf16 %v1055_v19, %v1053_v2  ;;  %v8727_v44 = vpop.eup %8726  ;;  %v1353_v33 = vmul.f32 %v8725_v27, %v9878_v6 }
 0x5fc   :  { %v1351_v49 = vmul.f32 %v8727_v44, %v9870_v45  ;;  %v1336_v13 = vpop.xlane.xlu0 %1335 }
 0x5fd   :  { %7763 = vmatmul.mubr.msk.bf16.vlgmr.msra.gmra.mrb[32].mxu1 %vm190_vm0, %v1057_v50  ;;  %8728 = vrcp.f32 %v1336_v13 }
 0x5fe   :  { %7787 = vmatpush3.bf16.msra.mxu1 %v9940_v16  ;;  %7766 = vmatprep.mubr.msk.bf16.mxu1 %vm190_vm0, %v1058_v32  ;;  %v1362_v16 = vpack.c.bf16 %v1349_v54, %v1347_v30  ;;  %v1363_v15 = vpack.c.bf16 %v1353_v33, %v1351_v49 }
 0x5ff   :  { %7788 = vmatprep.subr.bf16.mxu1 %v9910_v42 }
 0x602   :  { %7789 = vmatpush3.bf16.msra.mxu1 %v9910_v42  ;;  %v1466_v42 = vpop.permute.xlu1 %1465 }
 0x603   :  { %7790 = vmatprep.subr.bf16.mxu1 %v9914_v14 }
 0x605   :  { %7767 = vmatmul.mubr.msk.bf16.gmra.mrb[36].mxu1 %vm190_vm0, %v1059_v48 }
 0x606   :  { %7791 = vmatpush3.bf16.msra.mxu1 %v9914_v14  ;;  %7794 = vmatprep.mubr.msk.bf16.mxu1 %vm190_vm0, %v1362_v16  ;;  %v1468_v41 = vpop.permute.xlu1 %1467 }
 0x607   :  { %7792 = vmatprep.subr.bf16.mxu1 %v9916_v3  ;;  %v8729_v45 = vpop.eup %8728  ;;  %v1490_v22 = vsel %vm572_vm1, %v1468_v41, 0 }
 0x608   :  { %v1355_v18 = vmul.f32 %v8729_v45, %v9902_v51 }
 0x60a   :  { %7793 = vmatpush3.bf16.msra.mxu1 %v9916_v3  ;;  %v1487_v3 = vsel %vm572_vm1, %v1466_v42, 0 }
 0x60d   :  { %7795 = vmatmul.mubr.msk.bf16.vlgmr.msra.gmra.mrb[40].mxu1 %vm190_vm0, %v1363_v15 }
 0x620   :  { %v1345_v37 = vpop.xlane.xlu0 %1344 }
 0x621   :  { %8730 = vrcp.f32 %v1345_v37 }
 0x622   :  { %8732 = vrcp.f32 %v1342_v38 }
 0x624   :  { %v1464_v14 = vpop.permute.xlu0 %1463 }
 0x625   :  { %8286 = vmatprep.subr.msk.bf16.mxu1 %vm572_vm1, %v1464_v14  ;;  %v1339_v6 = vpop.xlane.xlu1 %1338  ;;  %v1484_v56 = vsel %vm572_vm1, %v1464_v14, 0 }
 0x626   :  { %8734 = vrcp.f32 %v1339_v6  ;;  %7803 = vmatpush3.bf16.xpose.msra.mxu1 %v1484_v56 }
 0x627   :  { %8287 = vmatprep.subr.msk.bf16.mxu1 %vm572_vm1, %v1466_v42 }
 0x628   :  { %v1456_v55 = vpop.permute.xlu0 %1455 }
 0x629   :  { %v1470_v11 = vpop.permute.xlu1 %1469 }
 0x62a   :  { %v1493_v51 = vsel %vm572_vm1, %v1470_v11, 0 }
 0x62b   :  { %v8731_v59 = vpop.eup %8730 }
 0x62c   :  { %v8733_v31 = vpop.eup %8732  ;;  %v1361_v39 = vmul.f32 %v8731_v59, %v9920_v58 }
 0x62d   :  { %v1359_v10 = vmul.f32 %v8733_v31, %v9894_v0  ;;  %v1458_v58 = vpop.permute.xlu1 %1457 }
 0x62e   :  { %7805 = vmatpush3.bf16.xpose.msra.mxu1 %v1487_v3 }
 0x62f   :  { %8288 = vmatprep.subr.msk.bf16.mxu1 %vm572_vm1, %v1468_v41  ;;  %v1365_v34 = vpack.c.bf16 %v1361_v39, %v1359_v10 }
 0x630   :  { %v8735_v1 = vpop.eup %8734 }
 0x631   :  { %v1357_v43 = vmul.f32 %v8735_v1, %v9924_v29  ;;  %v1460_v29 = vpop.permute.xlu0 %1459  ;;  %v1462_v0 = vpop.permute.xlu1 %1461 }
 0x633   :  { %v1364_v7 = vpack.c.bf16 %v1357_v43, %v1355_v18  ;;  %v9152_v43 = vld [vmem:[%s12280_s3 + $0x10] sm:$0xff] }
 0x635   :  { %7798 = vmatprep.mubr.msk.bf16.mxu1 %vm190_vm0, %v1364_v7 }
 0x636   :  { %7807 = vmatpush3.bf16.xpose.msra.mxu1 %v1490_v22 }
 0x637   :  { %7799 = vmatmul.mubr.msk.bf16.gmra.mrb[44].mxu1 %vm190_vm0, %v1365_v34  ;;  %8289 = vmatprep.subr.msk.bf16.mxu1 %vm572_vm1, %v1470_v11 }
 0x638   :  { %7810 = vmatprep.mubr.msk.bf16.mxu1 %vm572_vm1, %v1456_v55 }
 0x63e   :  { %7809 = vmatpush3.bf16.xpose.msra.mxu1 %v1493_v51 }
 0x645   :  { %7811 = vmatmul.mubr.msk.bf16.vlgmr.msra.gmra.mrb[48].mxu1 %vm572_vm1, %v1458_v58 }
 0x646   :  { %7814 = vmatprep.mubr.msk.bf16.mxu1 %vm572_vm1, %v1460_v29 }
 0x64d   :  { %7815 = vmatmul.mubr.msk.bf16.gmra.mrb[52].mxu1 %vm572_vm1, %v1462_v0 }
 0x6b4   :  { %v10005_v4 = vpop.f32.mrb[24].mxu1 }
 0x6b5   :  { %v10007_v23 = vpop.f32.mrb[25].mxu1 }
 0x6b6   :  { %v10009_v60 = vpop.f32.mrb[26].mxu1 }
 0x6b7   :  { %v10011_v57 = vpop.f32.mrb[27].mxu1 }
 0x6c8   :  { %v10013_v52 = vpop.f32.mrb[28].mxu1 }
 0x6c9   :  { %v10015_v24 = vpop.f32.mrb[29].mxu1 }
 0x6ca   :  { %v10017_v35 = vpop.f32.mrb[30].mxu1 }
 0x6cb   :  { %v10019_v28 = vpop.f32.mrb[31].mxu1 }
 0x6d0   :  { %v10021_v47 = vpop.f32.mrb[32].mxu1 }
 0x6d1   :  { %v10023_v50 = vpop.f32.mrb[33].mxu1 }
 0x6d2   :  { %v10025_v25 = vpop.f32.mrb[34].mxu1 }
 0x6d3   :  { %v8335_v32 = vpack.i.bf16 %v10025_v25, %v10021_v47  ;;  %v10029_v5 = vpop.f32.mrb[35].mxu1 }
 0x6d4   :  { %v8330_v26 = vpack.i.bf16 %v10029_v5, %v10023_v50 }
 0x6d8   :  { %v10033_v17 = vpop.f32.mrb[36].mxu1 }
 0x6d9   :  { %v10035_v19 = vpop.f32.mrb[37].mxu1 }
 0x6da   :  { %v10037_v30 = vpop.f32.mrb[38].mxu1 }
 0x6db   :  { %v8365_v2 = vpack.i.bf16 %v10037_v30, %v10033_v17  ;;  %v10041_v54 = vpop.f32.mrb[39].mxu1 }
 0x6dc   :  { %v8360_v48 = vpack.i.bf16 %v10041_v54, %v10035_v19 }
 0x6e0   :  { %v10045_v27 = vpop.f32.mrb[40].mxu1 }
 0x6e1   :  { %v10047_v16 = vpop.f32.mrb[41].mxu1 }
 0x6e2   :  { %v10049_v44 = vpop.f32.mrb[42].mxu1 }
 0x6e3   :  { %v8345_v33 = vpack.i.bf16 %v10049_v44, %v10045_v27  ;;  %v10053_v49 = vpop.f32.mrb[43].mxu1 }
 0x6e4   :  { %v8340_v15 = vpack.i.bf16 %v10053_v49, %v10047_v16 }
 0x70a   :  { %v10057_v38 = vpop.f32.mrb[44].mxu1 }
 0x70b   :  { %v10059_v42 = vpop.f32.mrb[45].mxu1 }
 0x70c   :  { %v10061_v13 = vpop.f32.mrb[46].mxu1 }
 0x70d   :  { %v8375_v37 = vpack.i.bf16 %v10061_v13, %v10057_v38  ;;  %v10065_v41 = vpop.f32.mrb[47].mxu1 }
 0x70e   :  { %v8370_v14 = vpack.i.bf16 %v10065_v41, %v10059_v42 }
 0x718   :  { %v7812_v6 = vpop.f32.mrb[48].mxu1 }
 0x719   :  { %v1529_v56 = vpop.f32.mrb[49].mxu1  ;;  %v1562_v45 = vmul.f32 0.25, %v7812_v6 }
 0x71a   :  { %v1560_v3 = vmul.f32 0.25, %v1529_v56  ;;  %v7813_v59 = vpop.f32.mrb[50].mxu1 }
 0x71b   :  { %v1532_v31 = vpop.f32.mrb[51].mxu1  ;;  %v1570_v39 = vadd.f32 %v9152_v43, %v1562_v45  ;;  %v1563_v7 = vmul.f32 0.25, %v7813_v59 }
 0x71c   :  { %v1568_v1 = vadd.f32 %v1560_v3, %v9637_v20  ;;  %v1561_v18 = vmul.f32 0.25, %v1532_v31 }
 0x71d   :  { %v1571_v51 = vadd.f32 %v1563_v7, %v9645_v36  ;;  %v1582_v29 = vsel %vm190_vm0, %v1570_v39, -inf }
 0x71e   :  { %v1569_v10 = vadd.f32 %v1561_v18, %v9650_v12  ;;  %v1576_v22 = vsel %vm190_vm0, %v1568_v1, -inf }
 0x71f   :  { %1577 = vmax.xlane.f32.xlu0 %v1576_v22  ;;  %v1585_v59 = vsel %vm190_vm0, %v1571_v51, -inf }
 0x720   :  { %v7816_v34 = vpop.f32.mrb[52].mxu1  ;;  %v1579_v11 = vsel %vm190_vm0, %v1569_v10, -inf }
 0x721   :  { %1580 = vmax.xlane.f32.xlu1 %v1579_v11  ;;  %v1545_v55 = vpop.f32.mrb[53].mxu1  ;;  %v1566_v45 = vmul.f32 0.25, %v7816_v34 }
 0x722   :  { %v1564_v20 = vmul.f32 0.25, %v1545_v55  ;;  %v7817_v58 = vpop.f32.mrb[54].mxu1 }
 0x723   :  { %1583 = vmax.xlane.f32.xlu0 %v1582_v29  ;;  %v1548_v0 = vpop.f32.mrb[55].mxu1  ;;  %v1567_v6 = vmul.f32 0.25, %v7817_v58  ;;  %v1574_v18 = vadd.f32 %v1566_v45, %v9688_v53 }
 0x724   :  { %v1565_v56 = vmul.f32 0.25, %v1548_v0  ;;  %v1572_v12 = vadd.f32 %v1564_v20, %v9718_v21 }
 0x725   :  { %v1575_v31 = vadd.f32 %v1567_v6, %v9678_v46  ;;  %v1594_v21 = vsel %vm190_vm0, %v1574_v18, -inf }
 0x726   :  { %v1573_v3 = vadd.f32 %v1565_v56, %v9708_v8  ;;  %v1588_v43 = vsel %vm190_vm0, %v1572_v12, -inf }
 0x727   :  { %1586 = vmax.xlane.f32.xlu0 %v1585_v59  ;;  %v1597_v7 = vsel %vm190_vm0, %v1575_v31, -inf }
 0x728   :  { %v1591_v36 = vsel %vm190_vm0, %v1573_v3, -inf }
 0x729   :  { %1592 = vmax.xlane.f32.xlu1 %v1591_v36 }
 0x72b   :  { %1589 = vmax.xlane.f32.xlu0 %v1588_v43 }
 0x72d   :  { %1598 = vmax.xlane.f32.xlu1 %v1597_v7 }
 0x72f   :  { %1595 = vmax.xlane.f32.xlu0 %v1594_v21 }
 0x745   :  { %1668 = vrot.lane.b32.xlu0 %v9511_v63, %s9195_s24 }
 0x7ac   :  { %v1578_v8 = vpop.xlane.xlu0 %1577 }
 0x7ad   :  { %v1600_v22 = vsub.f32 %v1568_v1, %v1578_v8 }
 0x7ae   :  { %v1581_v46 = vpop.xlane.xlu1 %1580 }
 0x7af   :  { %v1608_v55 = vmul.f32 1.442695, %v1600_v22  ;;  %v1601_v20 = vsub.f32 %v1569_v10, %v1581_v46 }
 0x7b0   :  { %v1584_v34 = vpop.xlane.xlu0 %1583 }
 0x7b1   :  { %v1602_v11 = vsub.f32 %v1570_v39, %v1584_v34  ;;  %v1610_v6 = vmul.f32 1.442695, %v1601_v20 }
 0x7b3   :  { %v1612_v53 = vmul.f32 1.442695, %v1602_v11 }
 0x7b4   :  { %v1587_v58 = vpop.xlane.xlu0 %1586 }
 0x7b5   :  { %8736 = vpow2.f32 %v1612_v53  ;;  %v1603_v29 = vsub.f32 %v1571_v51, %v1587_v58 }
 0x7b6   :  { %v1593_v0 = vpop.xlane.xlu1 %1592  ;;  %8738 = vpow2.f32 %v1608_v55 }
 0x7b7   :  { %v1614_v56 = vmul.f32 1.442695, %v1603_v29 }
 0x7b8   :  { %v1590_v45 = vpop.xlane.xlu0 %1589 }
 0x7b9   :  { %8740 = vpow2.f32 %v1614_v56  ;;  %v1604_v59 = vsub.f32 %v1572_v12, %v1590_v45  ;;  %v1605_v12 = vsub.f32 %v1573_v3, %v1593_v0 }
 0x7ba   :  { %8742 = vpow2.f32 %v1610_v6  ;;  %v1599_v63 = vpop.xlane.xlu1 %1598 }
 0x7bb   :  { %v1616_v39 = vmul.f32 1.442695, %v1604_v59  ;;  %v1607_v7 = vsub.f32 %v1575_v31, %v1599_v63  ;;  %v1618_v11 = vmul.f32 1.442695, %v1605_v12 }
 0x7bc   :  { %v1596_v36 = vpop.xlane.xlu0 %1595 }
 0x7bd   :  { %v1606_v1 = vsub.f32 %v1574_v18, %v1596_v36  ;;  %v1622_v46 = vmul.f32 1.442695, %v1607_v7 }
 0x7bf   :  { %v10089_v43 = vpop.eup %8736  ;;  %v1620_v10 = vmul.f32 1.442695, %v1606_v1 }
 0x7c0   :  { %v1669_v21 = vpop.permute.xlu0 %1668  ;;  %v1630_v51 = vsel %vm190_vm0, %v10089_v43, 0.0  ;;  %v8739_v8 = vpop.eup %8738 }
 0x7c1   :  { %8744 = vpow2.f32 %v1620_v10  ;;  %1631 = vadd.xlane.f32.xlu0 %v1630_v51  ;;  %7818 = vmatprep.subr.bf16.mxu0 %v1669_v21  ;;  %v1624_v18 = vsel %vm190_vm0, %v8739_v8, 0.0 }
 0x7c2   :  { %7819 = vmatpush3.bf16.msra.mxu0 %v1669_v21  ;;  %8746 = vpow2.f32 %v1616_v39 }
 0x7c3   :  { %v10093_v22 = vpop.eup %8740  ;;  %8748 = vpow2.f32 %v1622_v46 }
 0x7c4   :  { %v1633_v31 = vsel %vm190_vm0, %v10093_v22, 0.0  ;;  %v8743_v34 = vpop.eup %8742  ;;  %8750 = vpow2.f32 %v1618_v11  ;;  %v8550_v11 = vld [vmem:[%s12281_s5 + $0x10] sm:$0xff]  }
 0x7c5   :  { %1625 = vadd.xlane.f32.xlu0 %v1624_v18  ;;  %1634 = vadd.xlane.f32.xlu1 %v1633_v31  ;;  %v1627_v55 = vsel %vm190_vm0, %v8743_v34, 0.0 }
 0x7c9   :  { %1628 = vadd.xlane.f32.xlu1 %v1627_v55  ;;  %v8551_v55 = vld [vmem:[%s12281_s5 + $0x18] sm:$0xff]  }
 0x7cb   :  { %v10099_v20 = vpop.eup %8744 }
 0x7cc   :  { %v1642_v3 = vsel %vm190_vm0, %v10099_v20, 0.0  ;;  %v8747_v53 = vpop.eup %8746 }
 0x7cd   :  { %1643 = vadd.xlane.f32.xlu1 %v1642_v3  ;;  %v1636_v58 = vsel %vm190_vm0, %v8747_v53, 0.0  ;;  %v8749_v29 = vpop.eup %8748 }
 0x7ce   :  { %v1645_v0 = vsel %vm190_vm0, %v8749_v29, 0.0  ;;  %v8751_v6 = vpop.eup %8750 }
 0x7cf   :  { %v1639_v56 = vsel %vm190_vm0, %v8751_v6, 0.0 }
 0x7d1   :  { %1637 = vadd.xlane.f32.xlu1 %v1636_v58 }
 0x7d5   :  { %1646 = vadd.xlane.f32.xlu1 %v1645_v0 }
 0x7d9   :  { %1640 = vadd.xlane.f32.xlu1 %v1639_v56 }
 0x7db   :  { %1672 = vrot.lane.b32.xlu0 %v9529_v9, %s9195_s24 }
 0x7df   :  { %1674 = vrot.lane.b32.xlu0 %v9537_v61, %s9195_s24 }
 0x7e3   :  { %8331 = vrot.lane.b32.xlu0 %v8330_v26, %s9194_s23 }
 0x7e7   :  { %8341 = vrot.lane.b32.xlu0 %v8340_v15, %s9191_s20 }
 0x7ea   :  { %1670 = vrot.lane.b32.xlu1 %v9521_v40, %s9195_s24 }
 0x7ee   :  { %8336 = vrot.lane.b32.xlu1 %v8335_v32, %s9194_s23 }
 0x7f2   :  { %8346 = vrot.lane.b32.xlu1 %v8345_v33, %s9191_s20 }
 0x84e   :  { %v1632_v9 = vpop.xlane.xlu0 %1631 }
 0x852   :  { %v1635_v61 = vpop.xlane.xlu1 %1634  ;;  %v1626_v50 = vpop.xlane.xlu0 %1625 }
 0x853   :  { %8752 = vrcp.f32 %v1626_v50 }
 0x856   :  { %v1629_v5 = vpop.xlane.xlu1 %1628  ;;  %v1673_v32 = vpop.permute.xlu0 %1672 }
 0x857   :  { %8754 = vrcp.f32 %v1629_v5 }
 0x858   :  { %8756 = vrcp.f32 %v1635_v61 }
 0x859   :  { %8758 = vrcp.f32 %v1632_v9 }
 0x85a   :  { %v1644_v26 = vpop.xlane.xlu1 %1643  ;;  %v1675_v36 = vpop.permute.xlu0 %1674 }
 0x85d   :  { %v8753_v49 = vpop.eup %8752 }
 0x85e   :  { %v1638_v16 = vpop.xlane.xlu1 %1637  ;;  %v1649_v45 = vmul.f32 %v8753_v49, %v8739_v8  ;;  %v8332_v19 = vpop.permute.xlu0 %8331 }
 0x85f   :  { %8760 = vrcp.f32 %v1638_v16  ;;  %v8333_v54 = vunpack.i.l.bf16 %v8332_v19 }
 0x861   :  { %v8755_v40 = vpop.eup %8754  ;;  %v1853_v41 = vsel %vm572_vm1, %v10007_v23, %v8333_v54 }
 0x862   :  { %v1647_v15 = vpop.xlane.xlu1 %1646  ;;  %v1651_v59 = vmul.f32 %v8755_v40, %v8743_v34  ;;  %v8757_v44 = vpop.eup %8756 }
 0x863   :  { %v8759_v33 = vpop.eup %8758  ;;  %v1655_v39 = vmul.f32 %v8757_v44, %v10093_v22  ;;  %v8549_v22 = vld [vmem:[%s12281_s5 + $0x8] sm:$0xff]  }
 0x864   :  { %v1664_v47 = vpack.c.bf16 %v1651_v59, %v1649_v45  ;;  %v1653_v10 = vmul.f32 %v8759_v33, %v10089_v43  ;;  %v8548_v43 = vld [vmem:[%s12281_s5] sm:$0xff]  }
 0x866   :  { %v1641_v25 = vpop.xlane.xlu1 %1640  ;;  %7826 = vmatprep.mubr.msk.bf16.mxu0 %vm190_vm0, %v1664_v47  ;;  %v1665_v51 = vpack.c.bf16 %v1655_v39, %v1653_v10 }
 0x867   :  { %8762 = vrcp.f32 %v1641_v25 }
 0x868   :  { %8764 = vrcp.f32 %v1647_v15 }
 0x869   :  { %8766 = vrcp.f32 %v1644_v26  ;;  %v8761_v63 = vpop.eup %8760 }
 0x86a   :  { %v1671_v27 = vpop.permute.xlu1 %1670  ;;  %v1657_v21 = vmul.f32 %v8761_v63, %v8747_v53 }
 0x86b   :  { %7820 = vmatprep.subr.bf16.mxu0 %v1671_v27 }
 0x86c   :  { %7821 = vmatpush3.bf16.msra.mxu0 %v1671_v27 }
 0x86d   :  { %7822 = vmatprep.subr.bf16.mxu0 %v1673_v32 }
 0x86e   :  { %v8337_v17 = vpop.permute.xlu1 %8336 }
 0x86f   :  { %v8339_v26 = vunpack.i.h.bf16 %v8337_v17  ;;  %v8338_v16 = vunpack.i.l.bf16 %v8337_v17 }
 0x870   :  { %7823 = vmatpush3.bf16.msra.mxu0 %v1673_v32 }
 0x871   :  { %v8763_v1 = vpop.eup %8762  ;;  %7824 = vmatprep.subr.bf16.mxu0 %v1675_v36  ;;  %v1856_v40 = vsel %vm572_vm1, %v10009_v60, %v8339_v26  ;;  %v1855_v15 = vsel %vm572_vm1, %v10005_v4, %v8338_v16 }
 0x872   :  { %v1659_v7 = vmul.f32 %v8763_v1, %v8751_v6  ;;  %v8765_v8 = vpop.eup %8764  ;;  %v8347_v30 = vpop.permute.xlu1 %8346 }
 0x873   :  { %v8767_v46 = vpop.eup %8766  ;;  %v1663_v18 = vmul.f32 %v8765_v8, %v8749_v29  ;;  %v8349_v49 = vunpack.i.h.bf16 %v8347_v30  ;;  %v8348_v38 = vunpack.i.l.bf16 %v8347_v30  ;;  %v10209_v30 = vld [vmem:[%s12279_s8] sm:$0xff] }
 0x874   :  { %7825 = vmatpush3.bf16.msra.mxu0 %v1675_v36  ;;  %v1666_v12 = vpack.c.bf16 %v1659_v7, %v1657_v21  ;;  %v1661_v31 = vmul.f32 %v8767_v46, %v10099_v20 }
 0x875   :  { %7834 = vmatprep.subr.bf16.mxu0 %v8548_v43  ;;  %v1864_v25 = vsel %vm1861_vm2, %v1855_v15, %v8348_v38  ;;  %v1865_v32 = vsel %vm1861_vm2, %v1856_v40, %v8349_v49  ;;  %v12323_v15 = vld [vmem:[#allocation3_spill] sm:$0xff] }
 0x876   :  { %v1667_v34 = vpack.c.bf16 %v1663_v18, %v1661_v31 }
 0x877   :  { %7827 = vmatmul.mubr.msk.bf16.vlgmr.msra.gmra.mrb[32].mxu0 %vm190_vm0, %v1665_v51 }
 0x878   :  { %7830 = vmatprep.mubr.msk.bf16.mxu0 %vm190_vm0, %v1666_v12  ;;  %7835 = vmatpush3.bf16.msra.mxu0 %v8548_v43 }
 0x879   :  { %7836 = vmatprep.subr.bf16.mxu0 %v8549_v22 }
 0x87c   :  { %7837 = vmatpush3.bf16.msra.mxu0 %v8549_v22 }
 0x87d   :  { %7838 = vmatprep.subr.bf16.mxu0 %v8550_v11 }
 0x87f   :  { %7831 = vmatmul.mubr.msk.bf16.gmra.mrb[36].mxu0 %vm190_vm0, %v1667_v34 }
 0x880   :  { %7839 = vmatpush3.bf16.msra.mxu0 %v8550_v11 }
 0x881   :  { %7840 = vmatprep.subr.bf16.mxu0 %v8551_v55 }
 0x884   :  { %7841 = vmatpush3.bf16.msra.mxu0 %v8551_v55 }
 0x94a   :  { %v7828_v20 = vpop.f32.mrb[32].mxu0 }
 0x94b   :  { %v1726_v3 = vpop.f32.mrb[33].mxu0 }
 0x94c   :  { %v7829_v53 = vpop.f32.mrb[34].mxu0 }
 0x94d   :  { %v8355_v58 = vpack.i.bf16 %v7829_v53, %v7828_v20  ;;  %v1729_v29 = vpop.f32.mrb[35].mxu0 }
 0x94e   :  { %v8350_v0 = vpack.i.bf16 %v1729_v29, %v1726_v3 }
 0x94f   :  { %8356 = vrot.lane.b32.xlu1 %v8355_v58, %s9189_s19 }
 0x950   :  { %8351 = vrot.lane.b32.xlu0 %v8350_v0, %s9189_s19 }
 0x952   :  { %v7832_v6 = vpop.f32.mrb[36].mxu0 }
 0x953   :  { %8366 = vrot.lane.b32.xlu1 %v8365_v2, %s9194_s23  ;;  %v1742_v56 = vpop.f32.mrb[37].mxu0  ;;  %v8334_v2 = vunpack.i.h.bf16 %v8332_v19  ;;  %v10204_v19 = vsub.s32 3, %v9468_v62 }
 0x954   :  { %8361 = vrot.lane.b32.xlu0 %v8360_v48, %s9194_s23  ;;  %v7833_v9 = vpop.f32.mrb[38].mxu0  ;;  %v8342_v48 = vpop.permute.xlu0 %8341 }
 0x955   :  { %v8385_v61 = vpack.i.bf16 %v7833_v9, %v7832_v6  ;;  %v1745_v50 = vpop.f32.mrb[39].mxu0  ;;  %v8344_v13 = vunpack.i.h.bf16 %v8342_v48  ;;  %v1854_v42 = vsel %vm572_vm1, %v10011_v57, %v8334_v2  ;;  %v1894_v2 = vrot.slane %v10209_v30, %v10204_v19 }
 0x956   :  { %v8380_v5 = vpack.i.bf16 %v1745_v50, %v1742_v56 }
 0x957   :  { %8376 = vrot.lane.b32.xlu1 %v8375_v37, %s9191_s20  ;;  %v8343_v37 = vunpack.i.l.bf16 %v8342_v48  ;;  %v1863_v44 = vsel %vm1861_vm2, %v1854_v42, %v8344_v13  ;;  %v12321_v13 = vld [vmem:[#allocation2_spill] sm:$0xff] }
 0x958   :  { %8371 = vrot.lane.b32.xlu0 %v8370_v14, %s9191_s20 }
 0x959   :  { %v1862_v23 = vsel %vm1861_vm2, %v1853_v41, %v8343_v37  ;;  %v12322_v41 = vld [vmem:[#allocation4_spill] sm:$0xff] }
 0x95b   :  { %8386 = vrot.lane.b32.xlu1 %v8385_v61, %s9189_s19 }
 0x95c   :  { %8381 = vrot.lane.b32.xlu0 %v8380_v5, %s9189_s19 }
 0x9c1   :  { %v8357_v14 = vpop.permute.xlu1 %8356 }
 0x9c2   :  { %v8359_v45 = vunpack.i.h.bf16 %v8357_v14  ;;  %v8358_v59 = vunpack.i.l.bf16 %v8357_v14  ;;  %v8352_v47 = vpop.permute.xlu0 %8351 }
 0x9c3   :  { %v8354_v57 = vunpack.i.h.bf16 %v8352_v47  ;;  %v8353_v27 = vunpack.i.l.bf16 %v8352_v47 }
 0x9c4   :  { %v1874_v33 = vsel %vm1870_vm3, %v1865_v32, %v8359_v45  ;;  %v1873_v60 = vsel %vm1870_vm3, %v1864_v25, %v8358_v59  ;;  %v12324_v25 = vld [vmem:[#allocation5_spill] sm:$0xff] }
 0x9c5   :  { %v1880_v63 = vpack.c.bf16 %v1874_v33, %v1873_v60  ;;  %v1871_v4 = vsel %vm1870_vm3, %v1862_v23, %v8353_v27  ;;  %v1872_v36 = vsel %vm1870_vm3, %v1863_v44, %v8354_v57  ;;  %v8367_v1 = vpop.permute.xlu1 %8366 }
 0x9c6   :  { %v8362_v39 = vpop.permute.xlu0 %8361  ;;  %v1879_v7 = vpack.c.bf16 %v1872_v36, %v1871_v4  ;;  %v8369_v10 = vunpack.i.h.bf16 %v8367_v1  ;;  %v8368_v21 = vunpack.i.l.bf16 %v8367_v1  ;;  %v12325_v36 = vld [vmem:[#allocation6_spill] sm:$0xff] }
 0x9c7   :  { %v8364_v8 = vunpack.i.h.bf16 %v8362_v39  ;;  %v8363_v12 = vunpack.i.l.bf16 %v8362_v39 }
 0x9c8   :  { %7842 = vmatprep.mubr.msk.bf16.mxu0 %vm190_vm0, %v1879_v7  ;;  %v1860_v22 = vsel %vm572_vm1, %v10017_v35, %v8369_v10  ;;  %v1859_v11 = vsel %vm572_vm1, %v10013_v52, %v8368_v21  ;;  %v12326_v10 = vld [vmem:[#allocation8_spill] sm:$0xff] }
 0x9c9   :  { %v8377_v51 = vpop.permute.xlu1 %8376  ;;  %7843 = vmatmul.mubr.msk.bf16.vlgmr.msra.gmra.mrb[40].mxu0 %vm190_vm0, %v1880_v63  ;;  %v1858_v20 = vsel %vm572_vm1, %v10019_v28, %v8364_v8  ;;  %v1857_v3 = vsel %vm572_vm1, %v10015_v24, %v8363_v12 }
 0x9ca   :  { %v8372_v46 = vpop.permute.xlu0 %8371  ;;  %v8379_v18 = vunpack.i.h.bf16 %v8377_v51  ;;  %v8378_v31 = vunpack.i.l.bf16 %v8377_v51  ;;  %v12327_v51 = vld [vmem:[#allocation7_spill] sm:$0xff] }
 0x9cb   :  { %v8374_v34 = vunpack.i.h.bf16 %v8372_v46  ;;  %v8373_v43 = vunpack.i.l.bf16 %v8372_v46  ;;  %v12328_v46 = vld [vmem:[#allocation9_spill] sm:$0xff] }
 0x9cc   :  { %v1868_v0 = vsel %vm1861_vm2, %v1859_v11, %v8378_v31  ;;  %v1869_v6 = vsel %vm1861_vm2, %v1860_v22, %v8379_v18 }
 0x9cd   :  { %v8387_v55 = vpop.permute.xlu1 %8386  ;;  %v1866_v35 = vsel %vm1861_vm2, %v1857_v3, %v8373_v43  ;;  %v1867_v52 = vsel %vm1861_vm2, %v1858_v20, %v8374_v34 }
 0x9ce   :  { %v8389_v53 = vunpack.i.h.bf16 %v8387_v55  ;;  %v8388_v58 = vunpack.i.l.bf16 %v8387_v55  ;;  %v8382_v29 = vpop.permute.xlu0 %8381 }
 0x9cf   :  { %v8384_v56 = vunpack.i.h.bf16 %v8382_v29  ;;  %v8383_v9 = vunpack.i.l.bf16 %v8382_v29 }
 0x9d0   :  { %v1878_v61 = vsel %vm1870_vm3, %v1869_v6, %v8389_v53  ;;  %v1877_v28 = vsel %vm1870_vm3, %v1868_v0, %v8388_v58 }
 0x9d1   :  { %v1875_v50 = vsel %vm1870_vm3, %v1866_v35, %v8383_v9  ;;  %v1876_v24 = vsel %vm1870_vm3, %v1867_v52, %v8384_v56  ;;  %v1882_v5 = vpack.c.bf16 %v1878_v61, %v1877_v28 }
 0x9d2   :  { %v1881_v17 = vpack.c.bf16 %v1876_v24, %v1875_v50 }
 0x9d4   :  { %7846 = vmatprep.mubr.msk.bf16.mxu0 %vm190_vm0, %v1881_v17 }
 0x9d5   :  { %7847 = vmatmul.mubr.msk.bf16.gmra.mrb[44].mxu0 %vm190_vm0, %v1882_v5 }
 0xa9c   :  { %v7844_v54 = vpop.f32.mrb[40].mxu0 }
 0xa9d   :  { %v1965_v48 = vpop.f32.mrb[41].mxu0  ;;  %v1974_v26 = vadd.f32 %v7844_v54, %v1894_v2 }
 0xa9e   :  { %v1966_v16 = vadd.f32 %v1965_v48, %v1894_v2  ;;  %v7845_v49 = vpop.f32.mrb[42].mxu0 }
 0xa9f   :  { %v1968_v38 = vpop.f32.mrb[43].mxu0  ;;  %v10217_v14 = vadd.f32 %v1974_v26, %v12322_v41  ;;  %v1977_v40 = vadd.f32 %v7845_v49, %v1894_v2 }
 0xaa0   :  { %v10214_v37 = vadd.f32 %v1966_v16, %v12321_v13  ;;  %v1969_v42 = vadd.f32 %v1968_v38, %v1894_v2 }
 0xaa1   :  { %v10227_v32 = vadd.f32 %v1977_v40, %v12324_v25  ;;  %v2010_v57 = vsel %vm190_vm0, %v10217_v14, 0.0 }
 0xaa2   :  { %v10220_v45 = vadd.f32 %v1969_v42, %v12323_v15  ;;  %v2004_v59 = vsel %vm190_vm0, %v10214_v37, 0.0 }
 0xaa3   :  { %2005 = vadd.xlane.f32.xlu0 %v2004_v59  ;;  %v2013_v63 = vsel %vm190_vm0, %v10227_v32, 0.0 }
 0xaa4   :  { %v2007_v47 = vsel %vm190_vm0, %v10220_v45, 0.0 }
 0xaa5   :  { %2008 = vadd.xlane.f32.xlu1 %v2007_v47 }
 0xaa7   :  { %2011 = vadd.xlane.f32.xlu0 %v2010_v57 }
 0xaa8   :  { %v7848_v27 = vpop.f32.mrb[44].mxu0 }
 0xaa9   :  { %v1981_v23 = vpop.f32.mrb[45].mxu0  ;;  %v1990_v44 = vadd.f32 %v7848_v27, %v1894_v2 }
 0xaaa   :  { %v1982_v33 = vadd.f32 %v1981_v23, %v1894_v2  ;;  %v7849_v60 = vpop.f32.mrb[46].mxu0 }
 0xaab   :  { %v1984_v4 = vpop.f32.mrb[47].mxu0  ;;  %2014 = vadd.xlane.f32.xlu0 %v2013_v63  ;;  %v1993_v39 = vadd.f32 %v7849_v60, %v1894_v2  ;;  %v10237_v21 = vadd.f32 %v1990_v44, %v12326_v10  ;;  %v8552_v60 = vld [vmem:[%s12282_s6] sm:$0xff]   ;;  %v8553_v63 = vld [vmem:[%s12282_s6 + $0x8] sm:$0xff]  }
 0xaac   :  { %v10234_v1 = vadd.f32 %v1982_v33, %v12325_v36  ;;  %v1985_v7 = vadd.f32 %v1984_v4, %v1894_v2  ;;  %7850 = vmatprep.subr.bf16.mxu1 %v8552_v60  ;;  %v8554_v4 = vld [vmem:[%s12282_s6 + $0x10] sm:$0xff]   ;;  %v8555_v36 = vld [vmem:[%s12282_s6 + $0x18] sm:$0xff]  }
 0xaad   :  { %v10245_v18 = vadd.f32 %v1993_v39, %v12328_v46  ;;  %v2022_v34 = vsel %vm190_vm0, %v10237_v21, 0.0  ;;  %7851 = vmatpush3.bf16.msra.mxu1 %v8552_v60 }
 0xaae   :  { %v10240_v8 = vadd.f32 %v1985_v7, %v12327_v51  ;;  %v2016_v12 = vsel %vm190_vm0, %v10234_v1, 0.0  ;;  %7852 = vmatprep.subr.bf16.mxu1 %v8553_v63 }
 0xaaf   :  { %2017 = vadd.xlane.f32.xlu0 %v2016_v12  ;;  %v2025_v43 = vsel %vm190_vm0, %v10245_v18, 0.0 }
 0xab0   :  { %v2019_v31 = vsel %vm190_vm0, %v10240_v8, 0.0 }
 0xab1   :  { %2020 = vadd.xlane.f32.xlu1 %v2019_v31  ;;  %7853 = vmatpush3.bf16.msra.mxu1 %v8553_v63 }
 0xab2   :  { %7854 = vmatprep.subr.bf16.mxu1 %v8554_v4 }
 0xab3   :  { %2023 = vadd.xlane.f32.xlu0 %v2022_v34 }
 0xab5   :  { %2026 = vadd.xlane.f32.xlu1 %v2025_v43  ;;  %7855 = vmatpush3.bf16.msra.mxu1 %v8554_v4 }
 0xab6   :  { %7856 = vmatprep.subr.bf16.mxu1 %v8555_v36 }
 0xab9   :  { %7857 = vmatpush3.bf16.msra.mxu1 %v8555_v36 }
 0xb30   :  { %v2006_v22 = vpop.xlane.xlu0 %2005 }
 0xb31   :  { %v2028_v11 = vmul.f32 0.015625, %v2006_v22 }
 0xb32   :  { %v2009_v55 = vpop.xlane.xlu1 %2008 }
 0xb33   :  { %v10254_v20 = vsub.f32 %v10214_v37, %v2028_v11  ;;  %v2029_v3 = vmul.f32 0.015625, %v2009_v55  ;;  %v10314_v55 = vsub.s32 4, %v9468_v62 }
 0xb34   :  { %v2012_v53 = vpop.xlane.xlu0 %2011 }
 0xb35   :  { %v10257_v58 = vsub.f32 %v10220_v45, %v2029_v3  ;;  %v2030_v29 = vmul.f32 0.015625, %v2012_v53  ;;  %v2044_v0 = vmul.f32 %v10254_v20, %v10254_v20 }
 0xb37   :  { %v10262_v6 = vsub.f32 %v10217_v14, %v2030_v29  ;;  %v2052_v56 = vsel %vm190_vm0, %v2044_v0, 0.0  ;;  %v2045_v9 = vmul.f32 %v10257_v58, %v10257_v58  ;;  %v2111_v0 = vrot.slane %v10209_v30, %v10314_v55 }
 0xb38   :  { %2053 = vadd.xlane.f32.xlu0 %v2052_v56  ;;  %v2015_v35 = vpop.xlane.xlu0 %2014  ;;  %v10319_v56 = vsub.s32 5, %v9468_v62 }
 0xb39   :  { %v2031_v52 = vmul.f32 0.015625, %v2015_v35  ;;  %v2055_v61 = vsel %vm190_vm0, %v2045_v9, 0.0  ;;  %v2046_v28 = vmul.f32 %v10262_v6, %v10262_v6 }
 0xb3a   :  { %2056 = vadd.xlane.f32.xlu1 %v2055_v61 }
 0xb3b   :  { %v10271_v50 = vsub.f32 %v10227_v32, %v2031_v52  ;;  %v2058_v24 = vsel %vm190_vm0, %v2046_v28, 0.0 }
 0xb3c   :  { %2059 = vadd.xlane.f32.xlu0 %v2058_v24  ;;  %v2018_v5 = vpop.xlane.xlu0 %2017 }
 0xb3d   :  { %v2032_v17 = vmul.f32 0.015625, %v2018_v5  ;;  %v2047_v2 = vmul.f32 %v10271_v50, %v10271_v50 }
 0xb3e   :  { %v2021_v54 = vpop.xlane.xlu1 %2020 }
 0xb3f   :  { %v10277_v48 = vsub.f32 %v10234_v1, %v2032_v17  ;;  %v2033_v26 = vmul.f32 0.015625, %v2021_v54  ;;  %v2061_v16 = vsel %vm190_vm0, %v2047_v2, 0.0  ;;  %v2123_v54 = vrot.slane %v10209_v30, %v10319_v56 }
 0xb40   :  { %2062 = vadd.xlane.f32.xlu1 %v2061_v16  ;;  %v2024_v49 = vpop.xlane.xlu0 %2023 }
 0xb41   :  { %v10281_v38 = vsub.f32 %v10240_v8, %v2033_v26  ;;  %v2034_v13 = vmul.f32 0.015625, %v2024_v49  ;;  %v2048_v42 = vmul.f32 %v10277_v48, %v10277_v48 }
 0xb42   :  { %v2027_v41 = vpop.xlane.xlu1 %2026 }
 0xb43   :  { %v10286_v40 = vsub.f32 %v10237_v21, %v2034_v13  ;;  %v2035_v15 = vmul.f32 0.015625, %v2027_v41  ;;  %v2064_v59 = vsel %vm190_vm0, %v2048_v42, 0.0  ;;  %v2049_v47 = vmul.f32 %v10281_v38, %v10281_v38 }
 0xb44   :  { %2065 = vadd.xlane.f32.xlu0 %v2064_v59 }
 0xb45   :  { %v10292_v25 = vsub.f32 %v10245_v18, %v2035_v15  ;;  %v2067_v57 = vsel %vm190_vm0, %v2049_v47, 0.0  ;;  %v2050_v27 = vmul.f32 %v10286_v40, %v10286_v40 }
 0xb46   :  { %2068 = vadd.xlane.f32.xlu1 %v2067_v57 }
 0xb47   :  { %v2070_v23 = vsel %vm190_vm0, %v2050_v27, 0.0  ;;  %v2051_v44 = vmul.f32 %v10292_v25, %v10292_v25 }
 0xb48   :  { %2071 = vadd.xlane.f32.xlu0 %v2070_v23 }
 0xb49   :  { %v2073_v33 = vsel %vm190_vm0, %v2051_v44, 0.0 }
 0xb4a   :  { %2074 = vadd.xlane.f32.xlu1 %v2073_v33 }
 0xbc5   :  { %v2054_v39 = vpop.xlane.xlu0 %2053 }
 0xbc6   :  { %v2076_v7 = vmul.f32 0.015625, %v2054_v39 }
 0xbc7   :  { %v2057_v10 = vpop.xlane.xlu1 %2056 }
 0xbc8   :  { %v2084_v51 = vadd.f32 1e-06, %v2076_v7  ;;  %v2077_v12 = vmul.f32 0.015625, %v2057_v10 }
 0xbc9   :  { %v2060_v46 = vpop.xlane.xlu0 %2059 }
 0xbca   :  { %8768 = vrsqrt.f32 %v2084_v51  ;;  %v2085_v31 = vadd.f32 1e-06, %v2077_v12  ;;  %v2078_v34 = vmul.f32 0.015625, %v2060_v46 }
 0xbcc   :  { %8770 = vrsqrt.f32 %v2085_v31  ;;  %v2086_v43 = vadd.f32 1e-06, %v2078_v34 }
 0xbcd   :  { %v2063_v22 = vpop.xlane.xlu1 %2062 }
 0xbce   :  { %8772 = vrsqrt.f32 %v2086_v43  ;;  %v2079_v11 = vmul.f32 0.015625, %v2063_v22 }
 0xbd0   :  { %v2087_v3 = vadd.f32 1e-06, %v2079_v11 }
 0xbd1   :  { %v2066_v53 = vpop.xlane.xlu0 %2065 }
 0xbd2   :  { %8774 = vrsqrt.f32 %v2087_v3  ;;  %v2080_v29 = vmul.f32 0.015625, %v2066_v53 }
 0xbd3   :  { %v2069_v9 = vpop.xlane.xlu1 %2068 }
 0xbd4   :  { %v8769_v35 = vpop.eup %8768  ;;  %v2088_v52 = vadd.f32 1e-06, %v2080_v29  ;;  %v2081_v61 = vmul.f32 0.015625, %v2069_v9  ;;  %v12329_v29 = vmov 0   ;;  %v8559_v9 = vld [vmem:[%s12283_s7 + $0x18] sm:$0xff]  }
 0xbd5   :  { %v2072_v28 = vpop.xlane.xlu0 %2071  ;;  %v2100_v24 = vmul.f32 %v8769_v35, %v10254_v20  ;;  %v8560_v35 = vld [vmem:[%s12283_s7 + $0x20] sm:$0xff]  }
 0xbd6   :  { %v8771_v5 = vpop.eup %8770  ;;  %8776 = vrsqrt.f32 %v2088_v52  ;;  %v2089_v17 = vadd.f32 1e-06, %v2081_v61  ;;  %v2082_v2 = vmul.f32 0.015625, %v2072_v28  ;;  %v8561_v52 = vld [vmem:[%s12283_s7 + $0x28] sm:$0xff]   ;;  %v8562_v61 = vld [vmem:[%s12283_s7 + $0x30] sm:$0xff]   ;;  %v8563_v28 = vld [vmem:[%s12283_s7 + $0x38] sm:$0xff]  }
 0xbd7   :  { %v2075_v26 = vpop.xlane.xlu1 %2074  ;;  %v2101_v16 = vmul.f32 %v8771_v5, %v10257_v58  ;;  %v2112_v49 = vmul.f32 %v2111_v0, %v2100_v24  ;;  %v2467_v24 = vld [vmem:[%s12284_s9 + $0x8] sm:$0xff]  ;;  %v2468_v5 = vld [vmem:[%s12284_s9 + $0x10] sm:$0xff] }
 0xbd8   :  { %v8773_v13 = vpop.eup %8772  ;;  %8778 = vrsqrt.f32 %v2089_v17  ;;  %v2090_v42 = vadd.f32 1e-06, %v2082_v2  ;;  %v2083_v41 = vmul.f32 0.015625, %v2075_v26  ;;  %2481 = vperm.xlu1 %8391, %v2467_v24   ;;  %v2466_v17 = vld [vmem:[%s12284_s9] sm:$0xff]  ;;  %v2469_v2 = vld [vmem:[%s12284_s9 + $0x18] sm:$0xff]  ;;  %v2471_v26 = vld [vmem:[%s12284_s9 + $0x28] sm:$0xff] }
 0xbd9   :  { %v2102_v15 = vmul.f32 %v8773_v13, %v10262_v6  ;;  %v2113_v59 = vmul.f32 %v2111_v0, %v2101_v16  ;;  %v2124_v47 = vadd.f32 %v2123_v54, %v2112_v49  ;;  %2476 = vperm.xlu0 %8390, %v2466_v17   ;;  %v2472_v16 = vld [vmem:[%s12284_s9 + $0x30] sm:$0xff]  ;;  %v2473_v49 = vld [vmem:[%s12284_s9 + $0x38] sm:$0xff]  ;;  %v10385_v13 = vsub.s32 6, %v9468_v62 }
 0xbda   :  { %8780 = vrsqrt.f32 %v2090_v42  ;;  %v2091_v20 = vadd.f32 1e-06, %v2083_v41 }
 0xbdb   :  { %v2125_v57 = vadd.f32 %v2123_v54, %v2113_v59  ;;  %v2114_v23 = vmul.f32 %v2111_v0, %v2102_v15  ;;  %12330 = vst [vmem:[#allocation2_spill] sm:$0xff] %v10385_v13  ;;  %v2147_v42 = vrot.slane %v10209_v30, %v10385_v13 }
 0xbdc   :  { %v8775_v27 = vpop.eup %8774  ;;  %8782 = vrsqrt.f32 %v2091_v20  ;;  %2486 = vperm.xlu1 %8391, %v2468_v5  }
 0xbdd   :  { %v2103_v44 = vmul.f32 %v8775_v27, %v10271_v50  ;;  %v2132_v33 = vpack.c.bf16 %v2125_v57, %v2124_v47  ;;  %v2126_v63 = vadd.f32 %v2123_v54, %v2114_v23 }
 0xbdf   :  { %v2115_v60 = vmul.f32 %v2111_v0, %v2103_v44  ;;  %7858 = vmatprep.mubr.msk.bf16.mxu1 %vm190_vm0, %v2132_v33 }
 0xbe0   :  { %v8777_v58 = vpop.eup %8776  ;;  %2491 = vperm.xlu1 %8391, %v2469_v2  }
 0xbe1   :  { %v2127_v4 = vadd.f32 %v2123_v54, %v2115_v60  ;;  %v2104_v36 = vmul.f32 %v8777_v58, %v10277_v48 }
 0xbe2   :  { %v8779_v6 = vpop.eup %8778 }
 0xbe3   :  { %v2133_v39 = vpack.c.bf16 %v2127_v4, %v2126_v63  ;;  %v2105_v7 = vmul.f32 %v8779_v6, %v10281_v38  ;;  %v2116_v10 = vmul.f32 %v2111_v0, %v2104_v36 }
 0xbe4   :  { %v8781_v51 = vpop.eup %8780 }
 0xbe5   :  { %7859 = vmatmul.mubr.msk.bf16.vlgmr.msra.gmra.mrb[56].mxu1 %vm190_vm0, %v2133_v39  ;;  %v2117_v12 = vmul.f32 %v2111_v0, %v2105_v7  ;;  %v2106_v50 = vmul.f32 %v8781_v51, %v10286_v40  ;;  %v2128_v31 = vadd.f32 %v2123_v54, %v2116_v10  ;;  %v8556_v40 = vld [vmem:[%s12283_s7] sm:$0xff]  }
 0xbe6   :  { %v8783_v46 = vpop.eup %8782  ;;  %7866 = vmatprep.subr.bf16.mxu0 %v8556_v40 }
 0xbe7   :  { %v2129_v34 = vadd.f32 %v2123_v54, %v2117_v12  ;;  %v2107_v43 = vmul.f32 %v8783_v46, %v10292_v25  ;;  %v2118_v22 = vmul.f32 %v2111_v0, %v2106_v50  ;;  %7867 = vmatpush3.bf16.msra.mxu0 %v8556_v40  ;;  %v8557_v25 = vld [vmem:[%s12283_s7 + $0x8] sm:$0xff]  }
 0xbe8   :  { %7868 = vmatprep.subr.bf16.mxu0 %v8557_v25 }
 0xbe9   :  { %v2134_v11 = vpack.c.bf16 %v2129_v34, %v2128_v31  ;;  %v2119_v3 = vmul.f32 %v2111_v0, %v2107_v43  ;;  %v2130_v48 = vadd.f32 %v2123_v54, %v2118_v22  ;;  %v8558_v0 = vld [vmem:[%s12283_s7 + $0x10] sm:$0xff]  }
 0xbeb   :  { %7862 = vmatprep.mubr.msk.bf16.mxu1 %vm190_vm0, %v2134_v11  ;;  %v2131_v53 = vadd.f32 %v2123_v54, %v2119_v3  ;;  %7869 = vmatpush3.bf16.msra.mxu0 %v8557_v25  ;;  %v2470_v54 = vld [vmem:[%s12284_s9 + $0x20] sm:$0xff] }
 0xbec   :  { %7870 = vmatprep.subr.bf16.mxu0 %v8558_v0  ;;  %2496 = vperm.xlu1 %8391, %v2470_v54  }
 0xbed   :  { %v2135_v38 = vpack.c.bf16 %v2131_v53, %v2130_v48 }
 0xbef   :  { %7863 = vmatmul.mubr.msk.bf16.gmra.mrb[60].mxu1 %vm190_vm0, %v2135_v38  ;;  %7871 = vmatpush3.bf16.msra.mxu0 %v8558_v0 }
 0xbf0   :  { %2758 = vmatprep.mubr.bf16.mxu1 %v12329_v29  ;;  %7872 = vmatprep.subr.bf16.mxu0 %v8559_v9 }
 0xbf1   :  { %2501 = vperm.xlu1 %8391, %v2471_v26  }
 0xbf3   :  { %7873 = vmatpush3.bf16.msra.mxu0 %v8559_v9 }
 0xbf4   :  { %7874 = vmatprep.subr.bf16.mxu0 %v8560_v35 }
 0xbf5   :  { %2506 = vperm.xlu1 %8391, %v2472_v16  }
 0xbf7   :  { %7875 = vmatpush3.bf16.msra.mxu0 %v8560_v35 }
 0xbf8   :  { %7876 = vmatprep.subr.bf16.mxu0 %v8561_v52 }
 0xbf9   :  { %2511 = vperm.xlu1 %8391, %v2473_v49  }
 0xbfb   :  { %7877 = vmatpush3.bf16.msra.mxu0 %v8561_v52 }
 0xbfc   :  { %7878 = vmatprep.subr.bf16.mxu0 %v8562_v61 }
 0xbff   :  { %7879 = vmatpush3.bf16.msra.mxu0 %v8562_v61 }
 0xc00   :  { %7880 = vmatprep.subr.bf16.mxu0 %v8563_v28 }
 0xc03   :  { %7881 = vmatpush3.bf16.msra.mxu0 %v8563_v28 }
 0xcb8   :  { %v7860_v41 = vpop.f32.mrb[56].mxu1 }
 0xcb9   :  { %v10389_v15 = vadd.f32 %v7860_v41, %v2147_v42  ;;  %v2218_v59 = vpop.f32.mrb[57].mxu1 }
 0xcba   :  { %v10391_v20 = vadd.f32 %v2218_v59, %v2147_v42  ;;  %v7861_v47 = vpop.f32.mrb[58].mxu1 }
 0xcbb   :  { %v2251_v57 = vmul.f32 %v10389_v15, %v10389_v15  ;;  %v10395_v27 = vadd.f32 %v7861_v47, %v2147_v42  ;;  %v2221_v23 = vpop.f32.mrb[59].mxu1 }
 0xcbc   :  { %v2249_v44 = vmul.f32 %v10391_v20, %v10391_v20  ;;  %v10399_v33 = vadd.f32 %v2221_v23, %v2147_v42 }
 0xcbd   :  { %v2259_v60 = vmul.f32 %v2251_v57, %v10389_v15  ;;  %v2252_v58 = vmul.f32 %v10395_v27, %v10395_v27 }
 0xcbe   :  { %v2257_v63 = vmul.f32 %v2249_v44, %v10391_v20  ;;  %v2250_v4 = vmul.f32 %v10399_v33, %v10399_v33 }
 0xcbf   :  { %v2267_v36 = vmul.f32 0.044715, %v2259_v60  ;;  %v2260_v6 = vmul.f32 %v2252_v58, %v10395_v27 }
 0xcc0   :  { %v2265_v39 = vmul.f32 0.044715, %v2257_v63  ;;  %v2258_v7 = vmul.f32 %v2250_v4, %v10399_v33 }
 0xcc1   :  { %v2275_v10 = vadd.f32 %v2267_v36, %v10389_v15  ;;  %v2268_v51 = vmul.f32 0.044715, %v2260_v6 }
 0xcc2   :  { %v2273_v12 = vadd.f32 %v2265_v39, %v10391_v20  ;;  %v2266_v50 = vmul.f32 0.044715, %v2258_v7  ;;  %v7864_v46 = vpop.f32.mrb[60].mxu1 }
 0xcc3   :  { %v2283_v31 = vmul.f32 0.7978846, %v2275_v10  ;;  %v2276_v34 = vadd.f32 %v2268_v51, %v10395_v27  ;;  %v10412_v43 = vadd.f32 %v7864_v46, %v2147_v42  ;;  %v2234_v22 = vpop.f32.mrb[61].mxu1 }
 0xcc4   :  { %v2281_v11 = vmul.f32 0.7978846, %v2273_v12  ;;  %v2274_v3 = vadd.f32 %v2266_v50, %v10399_v33  ;;  %v10415_v48 = vadd.f32 %v2234_v22, %v2147_v42  ;;  %v7865_v53 = vpop.f32.mrb[62].mxu1 }
 0xcc5   :  { %8784 = vtanh.f32 %v2283_v31  ;;  %v2284_v38 = vmul.f32 0.7978846, %v2276_v34  ;;  %v2255_v40 = vmul.f32 %v10412_v43, %v10412_v43  ;;  %v10419_v25 = vadd.f32 %v7865_v53, %v2147_v42  ;;  %v2237_v0 = vpop.f32.mrb[63].mxu1 }
 0xcc6   :  { %8786 = vtanh.f32 %v2281_v11  ;;  %v2282_v9 = vmul.f32 0.7978846, %v2274_v3  ;;  %v2253_v35 = vmul.f32 %v10415_v48, %v10415_v48  ;;  %v2238_v52 = vadd.f32 %v2237_v0, %v2147_v42 }
 0xcc7   :  { %8788 = vtanh.f32 %v2284_v38  ;;  %v2263_v61 = vmul.f32 %v2255_v40, %v10412_v43  ;;  %v2256_v28 = vmul.f32 %v10419_v25, %v10419_v25 }
 0xcc8   :  { %8790 = vtanh.f32 %v2282_v9  ;;  %v2261_v24 = vmul.f32 %v2253_v35, %v10415_v48  ;;  %v2254_v5 = vmul.f32 %v2238_v52, %v2238_v52 }
 0xcc9   :  { %v2271_v17 = vmul.f32 0.044715, %v2263_v61  ;;  %v2264_v2 = vmul.f32 %v2256_v28, %v10419_v25 }
 0xcca   :  { %v2269_v54 = vmul.f32 0.044715, %v2261_v24  ;;  %v2262_v26 = vmul.f32 %v2254_v5, %v2238_v52 }
 0xccb   :  { %v2279_v16 = vadd.f32 %v2271_v17, %v10412_v43  ;;  %v2272_v49 = vmul.f32 0.044715, %v2264_v2 }
 0xccc   :  { %v2277_v42 = vadd.f32 %v2269_v54, %v10415_v48  ;;  %v2270_v41 = vmul.f32 0.044715, %v2262_v26 }
 0xccd   :  { %v2287_v59 = vmul.f32 0.7978846, %v2279_v16  ;;  %v2280_v47 = vadd.f32 %v2272_v49, %v10419_v25  ;;  %v2482_v49 = vpop.permute.xlu1 %2481 }
 0xcce   :  { %v2285_v57 = vmul.f32 0.7978846, %v2277_v42  ;;  %v2278_v23 = vadd.f32 %v2270_v41, %v2238_v52  ;;  %v10439_v41 = vsub.s32 7, %v9468_v62 }
 0xccf   :  { %v8785_v44 = vpop.eup %8784  ;;  %8792 = vtanh.f32 %v2287_v59  ;;  %v2288_v60 = vmul.f32 0.7978846, %v2280_v47 }
 0xcd0   :  { %v8787_v58 = vpop.eup %8786  ;;  %v2299_v63 = vadd.f32 1.0, %v8785_v44  ;;  %8794 = vtanh.f32 %v2285_v57  ;;  %v2286_v4 = vmul.f32 0.7978846, %v2278_v23  ;;  %12331 = vst [vmem:[#allocation4_spill] sm:$0xff] %v10439_v41  ;;  %v2344_v47 = vrot.slane %v10209_v30, %v10439_v41 }
 0xcd1   :  { %v8789_v36 = vpop.eup %8788  ;;  %8796 = vtanh.f32 %v2288_v60  ;;  %v2297_v6 = vadd.f32 1.0, %v8787_v58  ;;  %v2487_v42 = vpop.permute.xlu1 %2486 }
 0xcd2   :  { %v8791_v39 = vpop.eup %8790  ;;  %v2307_v7 = vmul.f32 0.5, %v2299_v63  ;;  %v2300_v10 = vadd.f32 1.0, %v8789_v36  ;;  %8798 = vtanh.f32 %v2286_v4  ;;  %v2477_v58 = vpop.permute.xlu0 %2476 }
 0xcd3   :  { %v2298_v51 = vadd.f32 1.0, %v8791_v39  ;;  %v2305_v12 = vmul.f32 0.5, %v2297_v6 }
 0xcd4   :  { %v2308_v50 = vmul.f32 0.5, %v2300_v10  ;;  %v2315_v31 = vmul.f32 %v2307_v7, %v10389_v15 }
 0xcd5   :  { %v2306_v46 = vmul.f32 0.5, %v2298_v51  ;;  %v2313_v22 = vmul.f32 %v2305_v12, %v10391_v20  ;;  %v2492_v59 = vpop.permute.xlu1 %2491 }
 0xcd6   :  { %v2316_v34 = vmul.f32 %v2308_v50, %v10395_v27 }
 0xcd7   :  { %v2314_v11 = vmul.f32 %v2306_v46, %v10399_v33 }
 0xcd8   :  { %v2322_v3 = vpack.c.bf16 %v2316_v34, %v2315_v31 }
 0xcd9   :  { %v8793_v53 = vpop.eup %8792  ;;  %v2321_v38 = vpack.c.bf16 %v2314_v11, %v2313_v22 }
 0xcda   :  { %v8795_v40 = vpop.eup %8794  ;;  %v2303_v0 = vadd.f32 1.0, %v8793_v53 }
 0xcdb   :  { %v8797_v9 = vpop.eup %8796  ;;  %7882 = vmatprep.mubr.bf16.mxu0 %v2321_v38  ;;  %v2301_v35 = vadd.f32 1.0, %v8795_v40 }
 0xcdc   :  { %v8799_v61 = vpop.eup %8798  ;;  %7883 = vmatmul.mubr.bf16.vlgmr.msra.gmra.mrb[48].mxu0 %v2322_v3  ;;  %v2304_v28 = vadd.f32 1.0, %v8797_v9  ;;  %v2311_v24 = vmul.f32 0.5, %v2303_v0 }
 0xcdd   :  { %v2302_v5 = vadd.f32 1.0, %v8799_v61  ;;  %v2309_v15 = vmul.f32 0.5, %v2301_v35 }
 0xcde   :  { %v2312_v17 = vmul.f32 0.5, %v2304_v28  ;;  %v2319_v20 = vmul.f32 %v2311_v24, %v10412_v43  ;;  %v2497_v43 = vpop.permute.xlu1 %2496 }
 0xcdf   :  { %v2310_v27 = vmul.f32 0.5, %v2302_v5  ;;  %v2317_v2 = vmul.f32 %v2309_v15, %v10415_v48 }
 0xce0   :  { %v2320_v33 = vmul.f32 %v2312_v17, %v10419_v25 }
 0xce1   :  { %v2318_v54 = vmul.f32 %v2310_v27, %v2238_v52 }
 0xce2   :  { %v2324_v26 = vpack.c.bf16 %v2320_v33, %v2319_v20  ;;  %v2502_v30 = vpop.permute.xlu1 %2501 }
 0xce3   :  { %v2323_v16 = vpack.c.bf16 %v2318_v54, %v2317_v2 }
 0xce5   :  { %7886 = vmatprep.mubr.bf16.mxu0 %v2323_v16 }
 0xce6   :  { %7887 = vmatmul.mubr.bf16.gmra.mrb[52].mxu0 %v2324_v26  ;;  %v2507_v34 = vpop.permute.xlu1 %2506 }
 0xcea   :  { %v2512_v24 = vpop.permute.xlu1 %2511 }
 0xdaf   :  { %v7884_v57 = vpop.f32.mrb[48].mxu0 }
 0xdb0   :  { %v2427_v23 = vpop.f32.mrb[49].mxu0  ;;  %v2436_v25 = vadd.f32 %v7884_v57, %v2344_v47 }
 0xdb1   :  { %v2428_v44 = vadd.f32 %v2427_v23, %v2344_v47  ;;  %v7885_v48 = vpop.f32.mrb[50].mxu0 }
 0xdb2   :  { %v2439_v52 = vadd.f32 %v7885_v48, %v2344_v47  ;;  %v2430_v60 = vpop.f32.mrb[51].mxu0  ;;  %v2460_v62 = vadd.f32 %v2436_v25, %v10217_v14 }
 0xdb3   :  { %v2458_v63 = vadd.f32 %v2428_v44, %v10214_v37  ;;  %v2431_v4 = vadd.f32 %v2430_v60, %v2344_v47 }
 0xdb4   :  { %v2461_v36 = vadd.f32 %v2439_v52, %v10227_v32  ;;  %v10455_v12 = vmul.f32 %v2487_v42, %v2460_v62 }
 0xdb5   :  { %v2459_v6 = vadd.f32 %v2431_v4, %v10220_v45  ;;  %v10447_v39 = vmul.f32 %v2477_v58, %v2458_v63 }
 0xdb6   :  { %v10449_v7 = vmul.f32 %v2492_v59, %v2461_v36  ;;  %v2531_v40 = vsel %vm190_vm0, %v10455_v12, 0.0 }
 0xdb7   :  { %v10451_v10 = vmul.f32 %v2482_v49, %v2459_v6  ;;  %v2525_v51 = vsel %vm190_vm0, %v10447_v39, 0.0 }
 0xdb8   :  { %2526 = vadd.xlane.f32.xlu1 %v2525_v51  ;;  %v2534_v31 = vsel %vm190_vm0, %v10449_v7, 0.0 }
 0xdb9   :  { %v7888_v37 = vpop.f32.mrb[52].mxu0  ;;  %v2528_v32 = vsel %vm190_vm0, %v10451_v10, 0.0 }
 0xdba   :  { %v2452_v14 = vadd.f32 %v7888_v37, %v2344_v47  ;;  %2529 = vadd.xlane.f32.xlu0 %v2528_v32  ;;  %v2443_v45 = vpop.f32.mrb[53].mxu0 }
 0xdbb   :  { %v2444_v50 = vadd.f32 %v2443_v45, %v2344_v47  ;;  %v7889_v46 = vpop.f32.mrb[54].mxu0 }
 0xdbc   :  { %v2455_v22 = vadd.f32 %v7889_v46, %v2344_v47  ;;  %v2446_v11 = vpop.f32.mrb[55].mxu0  ;;  %2535 = vadd.xlane.f32.xlu1 %v2534_v31  ;;  %v2464_v3 = vadd.f32 %v2452_v14, %v10237_v21 }
 0xdbd   :  { %v2462_v53 = vadd.f32 %v2444_v50, %v10234_v1  ;;  %v2447_v38 = vadd.f32 %v2446_v11, %v2344_v47 }
 0xdbe   :  { %2532 = vadd.xlane.f32.xlu0 %v2531_v40  ;;  %v2465_v9 = vadd.f32 %v2455_v22, %v10245_v18  ;;  %v10469_v61 = vmul.f32 %v2507_v34, %v2464_v3  ;;  %v8569_v40 = vld [vmem:[%s12278_s4 + $0x54] ss:$8 sps:$4 sm:$0xff]  }
 0xdbf   :  { %v10465_v0 = vmul.f32 %v2497_v43, %v2462_v53  ;;  %v2463_v35 = vadd.f32 %v2447_v38, %v10240_v8  ;;  %v8566_v53 = vld [vmem:[%s12278_s4 + $0x44] ss:$8 sps:$4 sm:$0xff]   ;;  %v8564_v38 = vld [vmem:[%s12278_s4 + $0x40] ss:$8 sps:$4 sm:$0xff]  }
 0xdc0   :  { %v10475_v1 = vmul.f32 %v2512_v24, %v2465_v9  ;;  %v2543_v18 = vsel %vm190_vm0, %v10469_v61, 0.0  ;;  %2726 = vmatprep.subr.bf16.mxu1 %v8566_v53  ;;  %v8567_v9 = vld [vmem:[%s12278_s4 + $0x50] ss:$8 sps:$4 sm:$0xff]   ;;  %v8575_v24 = vld [vmem:[%s12278_s4 + $0x74] ss:$8 sps:$4 sm:$0xff]  }
 0xdc1   :  { %v10471_v28 = vmul.f32 %v2502_v30, %v2463_v35  ;;  %v2537_v21 = vsel %vm190_vm0, %v10465_v0, 0.0  ;;  %2727 = vmatpush1.bf16.msra.mxu1 %v8564_v38  ;;  %v8572_v35 = vld [vmem:[%s12278_s4 + $0x64] ss:$8 sps:$4 sm:$0xff]  }
 0xdc2   :  { %2538 = vadd.xlane.f32.xlu0 %v2537_v21  ;;  %v2546_v8 = vsel %vm190_vm0, %v10475_v1, 0.0  ;;  %2728 = vmatprep.subr.bf16.mxu1 %v8569_v40  ;;  %v8570_v21 = vld [vmem:[%s12278_s4 + $0x60] ss:$8 sps:$4 sm:$0xff]  }
 0xdc3   :  { %v2540_v5 = vsel %vm190_vm0, %v10471_v28, 0.0 }
 0xdc4   :  { %2541 = vadd.xlane.f32.xlu1 %v2540_v5  ;;  %v8573_v5 = vld [vmem:[%s12278_s4 + $0x70] ss:$8 sps:$4 sm:$0xff]  }
 0xdc5   :  { %2729 = vmatpush1.bf16.msra.mxu1 %v8567_v9 }
 0xdc6   :  { %2544 = vadd.xlane.f32.xlu0 %v2543_v18  ;;  %2730 = vmatprep.subr.bf16.mxu1 %v8572_v35 }
 0xdc8   :  { %2547 = vadd.xlane.f32.xlu1 %v2546_v8 }
 0xdc9   :  { %2731 = vmatpush1.bf16.msra.mxu1 %v8570_v21 }
 0xdca   :  { %2732 = vmatprep.subr.bf16.mxu1 %v8575_v24 }
 0xdcd   :  { %2733 = vmatpush1.bf16.msra.mxu1 %v8573_v5 }
 0xe45   :  { %v2527_v15 = vpop.xlane.xlu1 %2526 }
 0xe46   :  { %v2549_v17 = vmul.f32 0.015625, %v2527_v15 }
 0xe47   :  { %v2530_v27 = vpop.xlane.xlu0 %2529 }
 0xe48   :  { %v10484_v20 = vsub.f32 %v10447_v39, %v2549_v17  ;;  %v2550_v33 = vmul.f32 0.015625, %v2530_v27 }
 0xe49   :  { %v2536_v2 = vpop.xlane.xlu1 %2535 }
 0xe4a   :  { %v10487_v54 = vsub.f32 %v10451_v10, %v2550_v33  ;;  %v2552_v26 = vmul.f32 0.015625, %v2536_v2  ;;  %v2565_v16 = vmul.f32 %v10484_v20, %v10484_v20 }
 0xe4b   :  { %v2533_v49 = vpop.xlane.xlu0 %2532 }
 0xe4c   :  { %v10492_v42 = vsub.f32 %v10449_v7, %v2552_v26  ;;  %v2551_v59 = vmul.f32 0.015625, %v2533_v49  ;;  %v2573_v47 = vsel %vm190_vm0, %v2565_v16, 0.0  ;;  %v2566_v57 = vmul.f32 %v10487_v54, %v10487_v54 }
 0xe4d   :  { %2574 = vadd.xlane.f32.xlu0 %v2573_v47 }
 0xe4e   :  { %v10498_v43 = vsub.f32 %v10455_v12, %v2551_v59  ;;  %v2576_v23 = vsel %vm190_vm0, %v2566_v57, 0.0  ;;  %v2568_v25 = vmul.f32 %v10492_v42, %v10492_v42 }
 0xe4f   :  { %2577 = vadd.xlane.f32.xlu1 %v2576_v23  ;;  %v2539_v44 = vpop.xlane.xlu0 %2538  ;;  %v10558_v23 = vld [vmem:[%s12279_s8 + $0x10] sm:$0xff] }
 0xe50   :  { %v2553_v48 = vmul.f32 0.015625, %v2539_v44  ;;  %v2567_v52 = vmul.f32 %v10498_v43, %v10498_v43  ;;  %v2582_v4 = vsel %vm190_vm0, %v2568_v25, 0.0 }
 0xe51   :  { %v2542_v60 = vpop.xlane.xlu1 %2541 }
 0xe52   :  { %v10506_v58 = vsub.f32 %v10465_v0, %v2553_v48  ;;  %v2554_v63 = vmul.f32 0.015625, %v2542_v60  ;;  %v2579_v36 = vsel %vm190_vm0, %v2567_v52, 0.0  ;;  %v12332_v60 = vld [vmem:[#allocation10_spill] sm:$0xff] }
 0xe53   :  { %2583 = vadd.xlane.f32.xlu1 %v2582_v4  ;;  %2580 = vadd.xlane.f32.xlu0 %v2579_v36  ;;  %v2545_v62 = vpop.xlane.xlu0 %2544 }
 0xe54   :  { %v10511_v6 = vsub.f32 %v10471_v28, %v2554_v63  ;;  %v2555_v30 = vmul.f32 0.015625, %v2545_v62  ;;  %v2569_v51 = vmul.f32 %v10506_v58, %v10506_v58  ;;  %v2632_v63 = vrot.slane %v10558_v23, %v12332_v60 }
 0xe55   :  { %v2548_v37 = vpop.xlane.xlu1 %2547 }
 0xe56   :  { %v10516_v32 = vsub.f32 %v10469_v61, %v2555_v30  ;;  %v2556_v14 = vmul.f32 0.015625, %v2548_v37  ;;  %v2585_v45 = vsel %vm190_vm0, %v2569_v51, 0.0  ;;  %v2570_v50 = vmul.f32 %v10511_v6, %v10511_v6 }
 0xe57   :  { %2586 = vadd.xlane.f32.xlu0 %v2585_v45 }
 0xe58   :  { %v10522_v46 = vsub.f32 %v10475_v1, %v2556_v14  ;;  %v2588_v31 = vsel %vm190_vm0, %v2570_v50, 0.0  ;;  %v2571_v34 = vmul.f32 %v10516_v32, %v10516_v32  ;;  %v12333_v50 = vld [vmem:[#allocation11_spill] sm:$0xff] }
 0xe59   :  { %2589 = vadd.xlane.f32.xlu1 %v2588_v31  ;;  %v2644_v31 = vrot.slane %v10558_v23, %v12333_v50 }
 0xe5a   :  { %v2591_v22 = vsel %vm190_vm0, %v2571_v34, 0.0  ;;  %v2572_v11 = vmul.f32 %v10522_v46, %v10522_v46 }
 0xe5b   :  { %2592 = vadd.xlane.f32.xlu0 %v2591_v22 }
 0xe5c   :  { %v2594_v3 = vsel %vm190_vm0, %v2572_v11, 0.0 }
 0xe5d   :  { %2595 = vadd.xlane.f32.xlu1 %v2594_v3 }
 0xeda   :  { %v2575_v18 = vpop.xlane.xlu0 %2574 }
 0xedb   :  { %v2597_v8 = vmul.f32 0.015625, %v2575_v18 }
 0xedc   :  { %v2578_v15 = vpop.xlane.xlu1 %2577 }
 0xedd   :  { %v2605_v17 = vadd.f32 1e-06, %v2597_v8  ;;  %v2598_v27 = vmul.f32 0.015625, %v2578_v15 }
 0xedf   :  { %8800 = vrsqrt.f32 %v2605_v17  ;;  %v2606_v33 = vadd.f32 1e-06, %v2598_v27 }
 0xee0   :  { %v2584_v2 = vpop.xlane.xlu1 %2583  ;;  %v2581_v26 = vpop.xlane.xlu0 %2580 }
 0xee1   :  { %8802 = vrsqrt.f32 %v2606_v33  ;;  %v2600_v16 = vmul.f32 0.015625, %v2584_v2  ;;  %v2599_v49 = vmul.f32 0.015625, %v2581_v26 }
 0xee3   :  { %v2608_v59 = vadd.f32 1e-06, %v2600_v16  ;;  %v2607_v47 = vadd.f32 1e-06, %v2599_v49 }
 0xee4   :  { %v2587_v57 = vpop.xlane.xlu0 %2586 }
 0xee5   :  { %8804 = vrsqrt.f32 %v2608_v59  ;;  %v2601_v25 = vmul.f32 0.015625, %v2587_v57 }
 0xee6   :  { %8806 = vrsqrt.f32 %v2607_v47  ;;  %v2590_v44 = vpop.xlane.xlu1 %2589 }
 0xee7   :  { %v2609_v48 = vadd.f32 1e-06, %v2601_v25  ;;  %v2602_v52 = vmul.f32 0.015625, %v2590_v44 }
 0xee8   :  { %v2593_v4 = vpop.xlane.xlu0 %2592 }
 0xee9   :  { %v8801_v36 = vpop.eup %8800  ;;  %v2610_v62 = vadd.f32 1e-06, %v2602_v52  ;;  %8808 = vrsqrt.f32 %v2609_v48  ;;  %v2603_v14 = vmul.f32 0.015625, %v2593_v4  ;;  %v7186_v4 = vld [vmem:[%s12279_s8 + $0x18] sm:$0xff] }
 0xeea   :  { %v2621_v30 = vmul.f32 %v8801_v36, %v10484_v20  ;;  %v2596_v51 = vpop.xlane.xlu1 %2595 }
 0xeeb   :  { %v8803_v37 = vpop.eup %8802  ;;  %8810 = vrsqrt.f32 %v2610_v62  ;;  %v2604_v45 = vmul.f32 0.015625, %v2596_v51  ;;  %v2611_v38 = vadd.f32 1e-06, %v2603_v14 }
 0xeec   :  { %v2633_v34 = vmul.f32 %v2632_v63, %v2621_v30  ;;  %v2622_v22 = vmul.f32 %v8803_v37, %v10487_v54 }
 0xeed   :  { %v2612_v11 = vadd.f32 1e-06, %v2604_v45 }
 0xeee   :  { %v2634_v3 = vmul.f32 %v2632_v63, %v2622_v22  ;;  %v2645_v9 = vadd.f32 %v2644_v31, %v2633_v34 }
 0xeef   :  { %v8805_v53 = vpop.eup %8804  ;;  %8812 = vrsqrt.f32 %v2612_v11 }
 0xef0   :  { %v8807_v40 = vpop.eup %8806  ;;  %v2646_v35 = vadd.f32 %v2644_v31, %v2634_v3  ;;  %v2624_v20 = vmul.f32 %v8805_v53, %v10492_v42  ;;  %8814 = vrsqrt.f32 %v2611_v38 }
 0xef1   :  { %v2623_v21 = vmul.f32 %v8807_v40, %v10498_v43 }
 0xef2   :  { %v2653_v24 = vpack.c.bf16 %v2646_v35, %v2645_v9  ;;  %v2636_v5 = vmul.f32 %v2632_v63, %v2624_v20 }
 0xef3   :  { %v2635_v18 = vmul.f32 %v2632_v63, %v2623_v21  ;;  %v8809_v8 = vpop.eup %8808 }
 0xef4   :  { %7203 = vmatmul.mubr.msk.bf16.vlgmr.msra.gmra.mrb[64].mxu1 %vm190_vm0, %v2653_v24  ;;  %v2648_v17 = vadd.f32 %v2644_v31, %v2636_v5  ;;  %v2625_v33 = vmul.f32 %v8809_v8, %v10506_v58 }
 0xef5   :  { %v8811_v54 = vpop.eup %8810  ;;  %2768 = vmatprep.mubr.bf16.mxu1 %v12329_v29  ;;  %v2647_v15 = vadd.f32 %v2644_v31, %v2635_v18 }
 0xef6   :  { %v2626_v27 = vmul.f32 %v8811_v54, %v10511_v6  ;;  %v2637_v43 = vmul.f32 %v2632_v63, %v2625_v33 }
 0xef7   :  { %v2654_v42 = vpack.c.bf16 %v2648_v17, %v2647_v15 }
 0xef8   :  { %v2638_v2 = vmul.f32 %v2632_v63, %v2626_v27  ;;  %v2649_v47 = vadd.f32 %v2644_v31, %v2637_v43 }
 0xef9   :  { %v8813_v26 = vpop.eup %8812 }
 0xefa   :  { %v8815_v16 = vpop.eup %8814  ;;  %v2650_v49 = vadd.f32 %v2644_v31, %v2638_v2  ;;  %v2628_v59 = vmul.f32 %v8813_v26, %v10522_v46  ;;  %v12334_v46 = vld [vmem:[#allocation12_spill] sm:$0xff] }
 0xefb   :  { %v2627_v57 = vmul.f32 %v8815_v16, %v10516_v32  ;;  %v2669_v36 = vrot.slane %v10558_v23, %v12334_v46  ;;  %v2673_v62 = vrot.slane %v7186_v4, %v12334_v46 }
 0xefc   :  { %7204 = vmatmul.mubr.msk.bf16.gmra.mrb[68].mxu1 %vm190_vm0, %v2654_v42  ;;  %v2655_v25 = vpack.c.bf16 %v2650_v49, %v2649_v47  ;;  %v2640_v44 = vmul.f32 %v2632_v63, %v2628_v59 }
 0xefd   :  { %2778 = vmatprep.mubr.bf16.mxu1 %v12329_v29  ;;  %v2639_v58 = vmul.f32 %v2632_v63, %v2627_v57 }
 0xefe   :  { %v2652_v6 = vadd.f32 %v2644_v31, %v2640_v44 }
 0xeff   :  { %v2651_v48 = vadd.f32 %v2644_v31, %v2639_v58 }
 0xf01   :  { %v2656_v52 = vpack.c.bf16 %v2652_v6, %v2651_v48 }
 0xf04   :  { %7205 = vmatmul.mubr.msk.bf16.gmra.mrb[72].mxu1 %vm190_vm0, %v2655_v25 }
 0xf05   :  { %2788 = vmatprep.mubr.bf16.mxu1 %v12329_v29 }
 0xf0c   :  { %7206 = vmatmul.mubr.msk.bf16.gmra.mrb[76].mxu1 %vm190_vm0, %v2656_v52 }
 0xfc7   :  { %v2760_v32 = vpop.f32.mrb[64].mxu1 }
 0xfc8   :  { %v2762_v30 = vpop.f32.mrb[65].mxu1  ;;  %v2761_v63 = vadd.f32 %v2760_v32, %v2669_v36 }
 0xfc9   :  { %v2764_v51 = vpop.f32.mrb[66].mxu1  ;;  %v2763_v45 = vadd.f32 %v2762_v30, %v2673_v62 }
 0xfca   :  { %v2765_v37 = vadd.f32 %v2764_v51, %v2669_v36  ;;  %v2766_v14 = vpop.f32.mrb[67].mxu1 }
 0xfcb   :  { %v2767_v31 = vadd.f32 %v2766_v14, %v2673_v62 }
 0xfcc   :  { %v10585_v34 = vpack.c.bf16 %v2765_v37, %v2761_v63 }
 0xfcd   :  { %v10587_v22 = vpack.c.bf16 %v2767_v31, %v2763_v45 }
 0xfce   :  { %2811 = vrot.lane.b32.xlu0 %v10585_v34, %s9190_s2  ;;  %7898 = vmatprep.mubr.msk.bf16.mxu1 %vm572_vm1, %v10585_v34 }
 0xfcf   :  { %v2770_v23 = vpop.f32.mrb[68].mxu1  ;;  %7906 = vmatprep.subr.bf16.mxu0 %v10587_v22 }
 0xfd0   :  { %v2772_v11 = vpop.f32.mrb[69].mxu1  ;;  %7907 = vmatpush3.bf16.msra.mxu0 %v10587_v22  ;;  %v2771_v53 = vadd.f32 %v2770_v23, %v2669_v36  ;;  %v10636_v23 = vld [vmem:[%s12280_s3] sm:$0xff] }
 0xfd1   :  { %v2774_v3 = vpop.f32.mrb[70].mxu1  ;;  %v2773_v9 = vadd.f32 %v2772_v11, %v2673_v62 }
 0xfd2   :  { %v2775_v38 = vadd.f32 %v2774_v3, %v2669_v36  ;;  %v2776_v40 = vpop.f32.mrb[71].mxu1 }
 0xfd3   :  { %v2777_v35 = vadd.f32 %v2776_v40, %v2673_v62  ;;  %v10648_v40 = vld [vmem:[%s12280_s3 + $0x8] sm:$0xff] }
 0xfd4   :  { %v10595_v20 = vpack.c.bf16 %v2775_v38, %v2771_v53  ;;  %v10642_v53 = vld [vmem:[%s12280_s3 + $0x18] sm:$0xff] }
 0xfd5   :  { %v10597_v21 = vpack.c.bf16 %v2777_v35, %v2773_v9 }
 0xfd6   :  { %2813 = vrot.lane.b32.xlu1 %v10595_v20, %s9190_s2 }
 0xfd7   :  { %v2780_v24 = vpop.f32.mrb[72].mxu1  ;;  %7908 = vmatprep.subr.bf16.mxu0 %v10597_v21 }
 0xfd8   :  { %v2782_v5 = vpop.f32.mrb[73].mxu1  ;;  %7909 = vmatpush3.bf16.msra.mxu0 %v10597_v21  ;;  %v2781_v8 = vadd.f32 %v2780_v24, %v2669_v36  ;;  %v10655_v24 = vld [vmem:[%s12280_s3 + $0x10] sm:$0xff] }
 0xfd9   :  { %v2784_v18 = vpop.f32.mrb[74].mxu1  ;;  %v2783_v17 = vadd.f32 %v2782_v5, %v2673_v62 }
 0xfda   :  { %v2785_v54 = vadd.f32 %v2784_v18, %v2669_v36  ;;  %v2786_v15 = vpop.f32.mrb[75].mxu1 }
 0xfdb   :  { %v2787_v27 = vadd.f32 %v2786_v15, %v2673_v62 }
 0xfdc   :  { %v10603_v33 = vpack.c.bf16 %v2785_v54, %v2781_v8 }
 0xfdd   :  { %v10605_v42 = vpack.c.bf16 %v2787_v27, %v2783_v17 }
 0xfde   :  { %2815 = vrot.lane.b32.xlu1 %v10603_v33, %s9190_s2 }
 0xfdf   :  { %v2790_v2 = vpop.f32.mrb[76].mxu1  ;;  %7910 = vmatprep.subr.bf16.mxu0 %v10605_v42 }
 0xfe0   :  { %v2792_v26 = vpop.f32.mrb[77].mxu1  ;;  %7911 = vmatpush3.bf16.msra.mxu0 %v10605_v42  ;;  %v2791_v16 = vadd.f32 %v2790_v2, %v2669_v36 }
 0xfe1   :  { %v2794_v43 = vpop.f32.mrb[78].mxu1  ;;  %v2793_v47 = vadd.f32 %v2792_v26, %v2673_v62 }
 0xfe2   :  { %v2795_v49 = vadd.f32 %v2794_v43, %v2669_v36  ;;  %v2796_v59 = vpop.f32.mrb[79].mxu1 }
 0xfe3   :  { %v2797_v57 = vadd.f32 %v2796_v59, %v2673_v62 }
 0xfe4   :  { %v10611_v25 = vpack.c.bf16 %v2795_v49, %v2791_v16  ;;  %v10664_v16 = vld [vmem:[%s12280_s3 + $0x20] sm:$0xff] }
 0xfe5   :  { %v10613_v44 = vpack.c.bf16 %v2797_v57, %v2793_v47  ;;  %v10670_v57 = vld [vmem:[%s12280_s3 + $0x28] sm:$0xff] }
 0xfe6   :  { %2817 = vrot.lane.b32.xlu0 %v10611_v25, %s9190_s2 }
 0xfe7   :  { %7912 = vmatprep.subr.bf16.mxu0 %v10613_v44 }
 0xfe8   :  { %7913 = vmatpush3.bf16.msra.mxu0 %v10613_v44 }
0x1040   :  { %v2812_v58 = vpop.permute.xlu0 %2811 }
0x1041   :  { %8290 = vmatprep.subr.msk.bf16.mxu1 %vm572_vm1, %v2812_v58  ;;  %v2832_v6 = vsel %vm572_vm1, %v2812_v58, 0 }
0x1042   :  { %7891 = vmatpush3.bf16.xpose.msra.mxu1 %v2832_v6  ;;  %v10676_v6 = vld [vmem:[%s12280_s3 + $0x30] sm:$0xff] }
0x1048   :  { %v2814_v48 = vpop.permute.xlu1 %2813 }
0x1049   :  { %8291 = vmatprep.subr.msk.bf16.mxu1 %vm572_vm1, %v2814_v48  ;;  %v2835_v52 = vsel %vm572_vm1, %v2814_v48, 0 }
0x104a   :  { %7893 = vmatpush3.bf16.xpose.msra.mxu1 %v2835_v52  ;;  %v10682_v52 = vld [vmem:[%s12280_s3 + $0x38] sm:$0xff] }
0x1050   :  { %v2816_v4 = vpop.permute.xlu1 %2815 }
0x1051   :  { %8292 = vmatprep.subr.msk.bf16.mxu1 %vm572_vm1, %v2816_v4  ;;  %v2838_v36 = vsel %vm572_vm1, %v2816_v4, 0 }
0x1052   :  { %7895 = vmatpush3.bf16.xpose.msra.mxu1 %v2838_v36 }
0x1058   :  { %v2818_v32 = vpop.permute.xlu0 %2817 }
0x1059   :  { %8293 = vmatprep.subr.msk.bf16.mxu1 %vm572_vm1, %v2818_v32  ;;  %v2841_v62 = vsel %vm572_vm1, %v2818_v32, 0 }
0x105a   :  { %7897 = vmatpush3.bf16.xpose.msra.mxu1 %v2841_v62 }
0x1061   :  { %7899 = vmatmul.mubr.msk.bf16.vlgmr.msra.gmra.mrb[80].mxu1 %vm572_vm1, %v10595_v20 }
0x1062   :  { %7902 = vmatprep.mubr.msk.bf16.mxu1 %vm572_vm1, %v10603_v33 }
0x1069   :  { %7903 = vmatmul.mubr.msk.bf16.gmra.mrb[84].mxu1 %vm572_vm1, %v10611_v25 }
0x1134   :  { %v7900_v30 = vpop.f32.mrb[80].mxu1 }
0x1135   :  { %v2877_v51 = vpop.f32.mrb[81].mxu1  ;;  %v2910_v14 = vmul.f32 0.25, %v7900_v30 }
0x1136   :  { %v2908_v63 = vmul.f32 0.25, %v2877_v51  ;;  %v7901_v37 = vpop.f32.mrb[82].mxu1 }
0x1137   :  { %v2911_v45 = vmul.f32 0.25, %v7901_v37  ;;  %v2880_v31 = vpop.f32.mrb[83].mxu1  ;;  %v2918_v5 = vadd.f32 %v10655_v24, %v2910_v14 }
0x1138   :  { %v2916_v11 = vadd.f32 %v10636_v23, %v2908_v63  ;;  %v2909_v3 = vmul.f32 0.25, %v2880_v31 }
0x1139   :  { %v2919_v38 = vadd.f32 %v10642_v53, %v2911_v45  ;;  %v2930_v26 = vsel %vm190_vm0, %v2918_v5, -inf }
0x113a   :  { %v2917_v9 = vadd.f32 %v10648_v40, %v2909_v3  ;;  %v2924_v35 = vsel %vm190_vm0, %v2916_v11, -inf }
0x113b   :  { %2925 = vmax.xlane.f32.xlu1 %v2924_v35  ;;  %v2933_v27 = vsel %vm190_vm0, %v2919_v38, -inf }
0x113c   :  { %v7904_v18 = vpop.f32.mrb[84].mxu1  ;;  %v2927_v8 = vsel %vm190_vm0, %v2917_v9, -inf }
0x113d   :  { %2928 = vmax.xlane.f32.xlu0 %v2927_v8  ;;  %v2893_v54 = vpop.f32.mrb[85].mxu1  ;;  %v2914_v43 = vmul.f32 0.25, %v7904_v18 }
0x113e   :  { %v2912_v15 = vmul.f32 0.25, %v2893_v54  ;;  %v7905_v17 = vpop.f32.mrb[86].mxu1 }
0x113f   :  { %2934 = vmax.xlane.f32.xlu1 %v2933_v27  ;;  %v2896_v2 = vpop.f32.mrb[87].mxu1  ;;  %v2915_v59 = vmul.f32 0.25, %v7905_v17  ;;  %v2922_v48 = vadd.f32 %v10676_v6, %v2914_v43 }
0x1140   :  { %v2920_v49 = vadd.f32 %v10664_v16, %v2912_v15  ;;  %v2913_v47 = vmul.f32 0.25, %v2896_v2 }
0x1141   :  { %2931 = vmax.xlane.f32.xlu0 %v2930_v26  ;;  %v2923_v4 = vadd.f32 %v10682_v52, %v2915_v59  ;;  %v2942_v62 = vsel %vm190_vm0, %v2922_v48, -inf }
0x1142   :  { %v2921_v58 = vadd.f32 %v10670_v57, %v2913_v47  ;;  %v2936_v36 = vsel %vm190_vm0, %v2920_v49, -inf }
0x1143   :  { %v2945_v30 = vsel %vm190_vm0, %v2923_v4, -inf }
0x1144   :  { %v2939_v32 = vsel %vm190_vm0, %v2921_v58, -inf }
0x1145   :  { %2937 = vmax.xlane.f32.xlu0 %v2936_v36  ;;  %2940 = vmax.xlane.f32.xlu1 %v2939_v32 }
0x1149   :  { %2943 = vmax.xlane.f32.xlu0 %v2942_v62  ;;  %2946 = vmax.xlane.f32.xlu1 %v2945_v30 }
0x11c8   :  { %v2926_v51 = vpop.xlane.xlu1 %2925 }
0x11c9   :  { %v2948_v45 = vsub.f32 %v2916_v11, %v2926_v51 }
0x11ca   :  { %v2929_v63 = vpop.xlane.xlu0 %2928 }
0x11cb   :  { %v2949_v37 = vsub.f32 %v2917_v9, %v2929_v63  ;;  %v2956_v54 = vmul.f32 1.442695, %v2948_v45 }
0x11cc   :  { %v2935_v14 = vpop.xlane.xlu1 %2934 }
0x11cd   :  { %v2951_v31 = vsub.f32 %v2919_v38, %v2935_v14  ;;  %v2958_v3 = vmul.f32 1.442695, %v2949_v37 }
0x11ce   :  { %v2932_v35 = vpop.xlane.xlu0 %2931 }
0x11cf   :  { %v2962_v18 = vmul.f32 1.442695, %v2951_v31  ;;  %v2950_v8 = vsub.f32 %v2918_v5, %v2932_v35 }
0x11d1   :  { %8816 = vpow2.f32 %v2962_v18  ;;  %v2960_v15 = vmul.f32 1.442695, %v2950_v8 }
0x11d2   :  { %8818 = vpow2.f32 %v2958_v3  ;;  %v2941_v43 = vpop.xlane.xlu1 %2940  ;;  %v2938_v59 = vpop.xlane.xlu0 %2937 }
0x11d3   :  { %8820 = vpow2.f32 %v2960_v15  ;;  %v2953_v30 = vsub.f32 %v2921_v58, %v2941_v43  ;;  %v2952_v63 = vsub.f32 %v2920_v49, %v2938_v59 }
0x11d4   :  { %8822 = vpow2.f32 %v2956_v54 }
0x11d5   :  { %v2966_v14 = vmul.f32 1.442695, %v2953_v30  ;;  %v2964_v45 = vmul.f32 1.442695, %v2952_v63 }
0x11d6   :  { %v2947_v47 = vpop.xlane.xlu1 %2946  ;;  %v2944_v36 = vpop.xlane.xlu0 %2943 }
0x11d7   :  { %v2955_v32 = vsub.f32 %v2923_v4, %v2947_v47  ;;  %v2954_v62 = vsub.f32 %v2922_v48, %v2944_v36 }
0x11d9   :  { %v2970_v51 = vmul.f32 1.442695, %v2955_v32  ;;  %v2968_v37 = vmul.f32 1.442695, %v2954_v62 }
0x11db   :  { %v10689_v17 = vpop.eup %8816  ;;  %8824 = vpow2.f32 %v2970_v51 }
0x11dc   :  { %v10691_v27 = vpop.eup %8818  ;;  %v2981_v9 = vsel %vm190_vm0, %v10689_v17, 0.0  ;;  %8826 = vpow2.f32 %v2968_v37 }
0x11dd   :  { %v8821_v2 = vpop.eup %8820  ;;  %2982 = vadd.xlane.f32.xlu1 %v2981_v9  ;;  %v2975_v5 = vsel %vm190_vm0, %v10691_v27, 0.0  ;;  %8828 = vpow2.f32 %v2966_v14 }
0x11de   :  { %v2978_v11 = vsel %vm190_vm0, %v8821_v2, 0.0  ;;  %v8823_v38 = vpop.eup %8822  ;;  %8830 = vpow2.f32 %v2964_v45 }
0x11df   :  { %2979 = vadd.xlane.f32.xlu0 %v2978_v11  ;;  %v2972_v26 = vsel %vm190_vm0, %v8823_v38, 0.0 }
0x11e1   :  { %2976 = vadd.xlane.f32.xlu1 %v2975_v5 }
0x11e3   :  { %2973 = vadd.xlane.f32.xlu0 %v2972_v26 }
0x11e5   :  { %v10703_v31 = vpop.eup %8824 }
0x11e6   :  { %v10705_v3 = vpop.eup %8826  ;;  %v2993_v35 = vsel %vm190_vm0, %v10703_v31, 0.0 }
0x11e7   :  { %v10709_v18 = vpop.eup %8828  ;;  %v2990_v49 = vsel %vm190_vm0, %v10705_v3, 0.0 }
0x11e8   :  { %v10713_v58 = vpop.eup %8830  ;;  %v2987_v48 = vsel %vm190_vm0, %v10709_v18, 0.0 }
0x11e9   :  { %v2984_v4 = vsel %vm190_vm0, %v10713_v58, 0.0 }
0x11f2   :  { %3103 = vrot.lane.b32.xlu1 %v10595_v20, %s9189_s19 }
0x11f9   :  { %3101 = vrot.lane.b32.xlu0 %v10585_v34, %s9189_s19 }
0x1216   :  { %2994 = vadd.xlane.f32.xlu1 %v2993_v35 }
0x1218   :  { %2991 = vadd.xlane.f32.xlu0 %v2990_v49 }
0x121a   :  { %2988 = vadd.xlane.f32.xlu1 %v2987_v48 }
0x121c   :  { %2985 = vadd.xlane.f32.xlu0 %v2984_v4 }
0x122b   :  { %3105 = vrot.lane.b32.xlu1 %v10603_v33, %s9189_s19 }
0x122f   :  { %3093 = vrot.lane.b32.xlu1 %v10585_v34, %s9192_s21 }
0x1232   :  { %3107 = vrot.lane.b32.xlu0 %v10611_v25, %s9189_s19 }
0x1233   :  { %3097 = vrot.lane.b32.xlu1 %v10603_v33, %s9192_s21 }
0x1236   :  { %3095 = vrot.lane.b32.xlu0 %v10595_v20, %s9192_s21 }
0x1237   :  { %3312 = vrot.lane.b32.xlu1 %v10597_v21, %s9192_s21 }
0x123a   :  { %3099 = vrot.lane.b32.xlu0 %v10611_v25, %s9192_s21 }
0x123b   :  { %3314 = vrot.lane.b32.xlu1 %v10605_v42, %s9192_s21 }
0x123e   :  { %3310 = vrot.lane.b32.xlu0 %v10587_v22, %s9192_s21 }
0x126a   :  { %v2983_v8 = vpop.xlane.xlu1 %2982 }
0x126c   :  { %v2980_v54 = vpop.xlane.xlu0 %2979 }
0x126d   :  { %8832 = vrcp.f32 %v2980_v54 }
0x126e   :  { %v2977_v15 = vpop.xlane.xlu1 %2976 }
0x126f   :  { %8834 = vrcp.f32 %v2977_v15 }
0x1270   :  { %8836 = vrcp.f32 %v2983_v8  ;;  %v2974_v9 = vpop.xlane.xlu0 %2973 }
0x1271   :  { %8838 = vrcp.f32 %v2974_v9 }
0x1272   :  { %v3104_v37 = vpop.permute.xlu1 %3103 }
0x1273   :  { %v3125_v14 = vsel %vm572_vm1, %v3104_v37, 0 }
0x1274   :  { %v3102_v11 = vpop.permute.xlu0 %3101 }
0x1275   :  { %8294 = vmatprep.subr.msk.bf16.mxu0 %vm572_vm1, %v3102_v11  ;;  %v3122_v63 = vsel %vm572_vm1, %v3102_v11, 0 }
0x1277   :  { %v8833_v5 = vpop.eup %8832 }
0x1278   :  { %v3001_v47 = vmul.f32 %v8833_v5, %v8821_v2 }
0x1279   :  { %v8835_v26 = vpop.eup %8834 }
0x127a   :  { %v8837_v43 = vpop.eup %8836  ;;  %v2999_v32 = vmul.f32 %v8835_v26, %v10691_v27 }
0x127b   :  { %v8839_v59 = vpop.eup %8838  ;;  %v3003_v62 = vmul.f32 %v8837_v43, %v10689_v17 }
0x127c   :  { %v2997_v36 = vmul.f32 %v8839_v59, %v8823_v38 }
0x127d   :  { %v3013_v51 = vpack.c.bf16 %v3003_v62, %v3001_v47 }
0x127e   :  { %v3012_v30 = vpack.c.bf16 %v2999_v32, %v2997_v36 }
0x1280   :  { %7914 = vmatprep.mubr.msk.bf16.mxu0 %vm190_vm0, %v3012_v30 }
0x1281   :  { %7915 = vmatmul.mubr.msk.bf16.vlgmr.msra.gmra.mrb[56].mxu0 %vm190_vm0, %v3013_v51 }
0x1282   :  { %7923 = vmatpush3.bf16.xpose.msra.mxu0 %v3122_v63 }
0x1283   :  { %8295 = vmatprep.subr.msk.bf16.mxu0 %vm572_vm1, %v3104_v37 }
0x128a   :  { %7925 = vmatpush3.bf16.xpose.msra.mxu0 %v3125_v14 }
0x12a3   :  { %v2995_v2 = vpop.xlane.xlu1 %2994 }
0x12a5   :  { %v2992_v38 = vpop.xlane.xlu0 %2991 }
0x12a6   :  { %8840 = vrcp.f32 %v2992_v38 }
0x12a7   :  { %v2989_v27 = vpop.xlane.xlu1 %2988 }
0x12a8   :  { %8842 = vrcp.f32 %v2989_v27 }
0x12a9   :  { %8844 = vrcp.f32 %v2995_v2  ;;  %v2986_v17 = vpop.xlane.xlu0 %2985 }
0x12aa   :  { %8846 = vrcp.f32 %v2986_v17 }
0x12ab   :  { %v3106_v45 = vpop.permute.xlu1 %3105 }
0x12ac   :  { %8296 = vmatprep.subr.msk.bf16.mxu0 %vm572_vm1, %v3106_v45  ;;  %v3128_v35 = vsel %vm572_vm1, %v3106_v45, 0 }
0x12ad   :  { %v3108_v49 = vpop.permute.xlu0 %3107  ;;  %7927 = vmatpush3.bf16.xpose.msra.mxu0 %v3128_v35 }
0x12ae   :  { %8297 = vmatprep.subr.msk.bf16.mxu0 %vm572_vm1, %v3108_v49  ;;  %v3131_v5 = vsel %vm572_vm1, %v3108_v49, 0 }
0x12af   :  { %v3094_v48 = vpop.permute.xlu1 %3093 }
0x12b0   :  { %v8841_v4 = vpop.eup %8840 }
0x12b1   :  { %v3096_v8 = vpop.permute.xlu0 %3095  ;;  %v3009_v26 = vmul.f32 %v8841_v4, %v10705_v3 }
0x12b2   :  { %v8843_v54 = vpop.eup %8842 }
0x12b3   :  { %v8845_v15 = vpop.eup %8844  ;;  %v3098_v9 = vpop.permute.xlu1 %3097  ;;  %v3007_v47 = vmul.f32 %v8843_v54, %v10709_v18 }
0x12b4   :  { %v8847_v11 = vpop.eup %8846  ;;  %v3011_v36 = vmul.f32 %v8845_v15, %v10703_v31 }
0x12b5   :  { %v3100_v43 = vpop.permute.xlu0 %3099  ;;  %7929 = vmatpush3.bf16.xpose.msra.mxu0 %v3131_v5  ;;  %v3005_v59 = vmul.f32 %v8847_v11, %v10713_v58 }
0x12b6   :  { %v3015_v62 = vpack.c.bf16 %v3011_v36, %v3009_v26 }
0x12b7   :  { %v3014_v32 = vpack.c.bf16 %v3007_v47, %v3005_v59  ;;  %v3313_v30 = vpop.permute.xlu1 %3312 }
0x12b9   :  { %v3311_v51 = vpop.permute.xlu0 %3310  ;;  %7918 = vmatprep.mubr.msk.bf16.mxu0 %vm190_vm0, %v3014_v32 }
0x12ba   :  { %7919 = vmatmul.mubr.msk.bf16.gmra.mrb[60].mxu0 %vm190_vm0, %v3015_v62  ;;  %7938 = vmatprep.subr.bf16.mxu1 %v3311_v51 }
0x12bb   :  { %7930 = vmatprep.mubr.msk.bf16.mxu0 %vm572_vm1, %v3094_v48  ;;  %7939 = vmatpush3.bf16.msra.mxu1 %v3311_v51  ;;  %v3315_v3 = vpop.permute.xlu1 %3314 }
0x12bc   :  { %7940 = vmatprep.subr.bf16.mxu1 %v3313_v30 }
0x12bf   :  { %7941 = vmatpush3.bf16.msra.mxu1 %v3313_v30 }
0x12c0   :  { %7942 = vmatprep.subr.bf16.mxu1 %v3315_v3 }
0x12c2   :  { %7931 = vmatmul.mubr.msk.bf16.vlgmr.msra.gmra.mrb[64].mxu0 %vm572_vm1, %v3096_v8 }
0x12c3   :  { %7934 = vmatprep.mubr.msk.bf16.mxu0 %vm572_vm1, %v3098_v9  ;;  %7943 = vmatpush3.bf16.msra.mxu1 %v3315_v3 }
0x12ca   :  { %7935 = vmatmul.mubr.msk.bf16.gmra.mrb[68].mxu0 %vm572_vm1, %v3100_v43 }
0x1354   :  { %v10759_v31 = vpop.f32.mrb[56].mxu0 }
0x1355   :  { %v10761_v18 = vpop.f32.mrb[57].mxu0 }
0x1356   :  { %v10763_v58 = vpop.f32.mrb[58].mxu0 }
0x1357   :  { %v10765_v63 = vpop.f32.mrb[59].mxu0 }
0x138d   :  { %v10767_v37 = vpop.f32.mrb[60].mxu0 }
0x138e   :  { %v10769_v14 = vpop.f32.mrb[61].mxu0 }
0x138f   :  { %v10771_v2 = vpop.f32.mrb[62].mxu0 }
0x1390   :  { %v10773_v38 = vpop.f32.mrb[63].mxu0 }
0x1395   :  { %v7932_v27 = vpop.f32.mrb[64].mxu0 }
0x1396   :  { %v3200_v17 = vmul.f32 0.25, %v7932_v27  ;;  %v3167_v45 = vpop.f32.mrb[65].mxu0 }
0x1397   :  { %v3198_v35 = vmul.f32 0.25, %v3167_v45  ;;  %v7933_v49 = vpop.f32.mrb[66].mxu0 }
0x1398   :  { %v3208_v48 = vadd.f32 %v10655_v24, %v3200_v17  ;;  %v3201_v4 = vmul.f32 0.25, %v7933_v49  ;;  %v3170_v8 = vpop.f32.mrb[67].mxu0 }
0x1399   :  { %v3206_v54 = vadd.f32 %v10636_v23, %v3198_v35  ;;  %v3199_v15 = vmul.f32 0.25, %v3170_v8 }
0x139a   :  { %v3220_v9 = vsel %vm190_vm0, %v3208_v48, -inf  ;;  %v3209_v11 = vadd.f32 %v10642_v53, %v3201_v4 }
0x139b   :  { %v3207_v5 = vadd.f32 %v10648_v40, %v3199_v15  ;;  %3221 = vmax.xlane.f32.xlu0 %v3220_v9  ;;  %v3214_v26 = vsel %vm190_vm0, %v3206_v54, -inf }
0x139c   :  { %3215 = vmax.xlane.f32.xlu1 %v3214_v26  ;;  %v3223_v30 = vsel %vm190_vm0, %v3209_v11, -inf }
0x139d   :  { %v7936_v43 = vpop.f32.mrb[68].mxu0  ;;  %v3217_v59 = vsel %vm190_vm0, %v3207_v5, -inf }
0x139e   :  { %v3204_v47 = vmul.f32 0.25, %v7936_v43  ;;  %v3183_v36 = vpop.f32.mrb[69].mxu0 }
0x139f   :  { %v3202_v32 = vmul.f32 0.25, %v3183_v36  ;;  %3218 = vmax.xlane.f32.xlu0 %v3217_v59  ;;  %v7937_v62 = vpop.f32.mrb[70].mxu0 }
0x13a0   :  { %v3212_v51 = vadd.f32 %v10676_v6, %v3204_v47  ;;  %v3205_v3 = vmul.f32 0.25, %v7937_v62  ;;  %3224 = vmax.xlane.f32.xlu1 %v3223_v30  ;;  %v3186_v27 = vpop.f32.mrb[71].mxu0 }
0x13a1   :  { %v3203_v17 = vmul.f32 0.25, %v3186_v27  ;;  %v3210_v45 = vadd.f32 %v10664_v16, %v3202_v32 }
0x13a2   :  { %v3213_v35 = vadd.f32 %v10682_v52, %v3205_v3  ;;  %v3232_v49 = vsel %vm190_vm0, %v3212_v51, -inf }
0x13a3   :  { %3233 = vmax.xlane.f32.xlu0 %v3232_v49  ;;  %v3211_v4 = vadd.f32 %v10670_v57, %v3203_v17  ;;  %v3226_v15 = vsel %vm190_vm0, %v3210_v45, -inf }
0x13a4   :  { %v3235_v8 = vsel %vm190_vm0, %v3213_v35, -inf }
0x13a5   :  { %3236 = vmax.xlane.f32.xlu1 %v3235_v8  ;;  %v3229_v9 = vsel %vm190_vm0, %v3211_v4, -inf }
0x13a7   :  { %3227 = vmax.xlane.f32.xlu0 %v3226_v15 }
0x13a9   :  { %3230 = vmax.xlane.f32.xlu1 %v3229_v9 }
0x13ba   :  { %3409 = vrot.lane.b32.xlu1 %v10595_v20, %s9191_s20 }
0x13bd   :  { %3316 = vrot.lane.b32.xlu0 %v10613_v44, %s9192_s21 }
0x1428   :  { %v3222_v26 = vpop.xlane.xlu0 %3221 }
0x1429   :  { %v3240_v43 = vsub.f32 %v3208_v48, %v3222_v26  ;;  %v3216_v59 = vpop.xlane.xlu1 %3215 }
0x142a   :  { %v3238_v47 = vsub.f32 %v3206_v54, %v3216_v59 }
0x142b   :  { %v3250_v36 = vmul.f32 1.442695, %v3240_v43 }
0x142c   :  { %v3246_v32 = vmul.f32 1.442695, %v3238_v47  ;;  %v3219_v62 = vpop.xlane.xlu0 %3218 }
0x142d   :  { %8848 = vpow2.f32 %v3250_v36  ;;  %v3239_v30 = vsub.f32 %v3207_v5, %v3219_v62  ;;  %v3225_v3 = vpop.xlane.xlu1 %3224 }
0x142e   :  { %v3241_v27 = vsub.f32 %v3209_v11, %v3225_v3  ;;  %8850 = vpow2.f32 %v3246_v32 }
0x142f   :  { %v3248_v17 = vmul.f32 1.442695, %v3239_v30 }
0x1430   :  { %v3252_v49 = vmul.f32 1.442695, %v3241_v27  ;;  %v3234_v8 = vpop.xlane.xlu0 %3233 }
0x1432   :  { %8852 = vpow2.f32 %v3252_v49  ;;  %v3237_v47 = vpop.xlane.xlu1 %3236 }
0x1433   :  { %8854 = vpow2.f32 %v3248_v17  ;;  %v3245_v27 = vsub.f32 %v3213_v35, %v3237_v47 }
0x1434   :  { %v3228_v15 = vpop.xlane.xlu0 %3227 }
0x1435   :  { %v3242_v30 = vsub.f32 %v3210_v45, %v3228_v15  ;;  %v3260_v49 = vmul.f32 1.442695, %v3245_v27 }
0x1436   :  { %v3231_v36 = vpop.xlane.xlu1 %3230 }
0x1437   :  { %v10795_v9 = vpop.eup %8848  ;;  %v3243_v62 = vsub.f32 %v3211_v4, %v3231_v36  ;;  %v3254_v17 = vmul.f32 1.442695, %v3242_v30 }
0x1438   :  { %v3317_v46 = vpop.permute.xlu0 %3316  ;;  %v3268_v48 = vsel %vm190_vm0, %v10795_v9, 0.0  ;;  %v10799_v54 = vpop.eup %8850 }
0x1439   :  { %3269 = vadd.xlane.f32.xlu0 %v3268_v48  ;;  %7944 = vmatprep.subr.bf16.mxu1 %v3317_v46  ;;  %v3262_v11 = vsel %vm190_vm0, %v10799_v54, 0.0  ;;  %v3256_v3 = vmul.f32 1.442695, %v3243_v62 }
0x143a   :  { %7945 = vmatpush3.bf16.msra.mxu1 %v3317_v46  ;;  %v3244_v46 = vsub.f32 %v3212_v51, %v3234_v8 }
0x143c   :  { %v8853_v5 = vpop.eup %8852  ;;  %v3258_v32 = vmul.f32 1.442695, %v3244_v46 }
0x143d   :  { %3263 = vadd.xlane.f32.xlu0 %v3262_v11  ;;  %v3271_v26 = vsel %vm190_vm0, %v8853_v5, 0.0  ;;  %v8855_v43 = vpop.eup %8854 }
0x143e   :  { %3272 = vadd.xlane.f32.xlu1 %v3271_v26  ;;  %v3265_v59 = vsel %vm190_vm0, %v8855_v43, 0.0  ;;  %8856 = vpow2.f32 %v3258_v32 }
0x143f   :  { %8858 = vpow2.f32 %v3256_v3 }
0x1440   :  { %8860 = vpow2.f32 %v3254_v17 }
0x1441   :  { %8862 = vpow2.f32 %v3260_v49 }
0x1442   :  { %3266 = vadd.xlane.f32.xlu1 %v3265_v59  ;;  %v3410_v59 = vpop.permute.xlu1 %3409 }
0x1448   :  { %v10809_v48 = vpop.eup %8856 }
0x1449   :  { %v3280_v11 = vsel %vm190_vm0, %v10809_v48, 0.0  ;;  %v10813_v26 = vpop.eup %8858 }
0x144a   :  { %v10815_v51 = vpop.eup %8860  ;;  %v3277_v45 = vsel %vm190_vm0, %v10813_v26, 0.0 }
0x144b   :  { %v3274_v35 = vsel %vm190_vm0, %v10815_v51, 0.0  ;;  %v10821_v4 = vpop.eup %8862 }
0x144c   :  { %v3283_v8 = vsel %vm190_vm0, %v10821_v4, 0.0 }
0x1453   :  { %3407 = vrot.lane.b32.xlu0 %v10585_v34, %s9191_s20  ;;  %3411 = vrot.lane.b32.xlu1 %v10603_v33, %s9191_s20 }
0x1472   :  { %3281 = vadd.xlane.f32.xlu0 %v3280_v11 }
0x1476   :  { %3278 = vadd.xlane.f32.xlu0 %v3277_v45 }
0x1477   :  { %3275 = vadd.xlane.f32.xlu1 %v3274_v35 }
0x147b   :  { %3284 = vadd.xlane.f32.xlu1 %v3283_v8 }
0x148c   :  { %3399 = vrot.lane.b32.xlu1 %v10585_v34, %s9193_s22  ;;  %3413 = vrot.lane.b32.xlu0 %v10611_v25, %s9191_s20 }
0x1490   :  { %3403 = vrot.lane.b32.xlu1 %v10603_v33, %s9193_s22  ;;  %3401 = vrot.lane.b32.xlu0 %v10595_v20, %s9193_s22 }
0x1494   :  { %3614 = vrot.lane.b32.xlu1 %v10597_v21, %s9193_s22  ;;  %3405 = vrot.lane.b32.xlu0 %v10611_v25, %s9193_s22 }
0x1498   :  { %3616 = vrot.lane.b32.xlu1 %v10605_v42, %s9193_s22  ;;  %3612 = vrot.lane.b32.xlu0 %v10587_v22, %s9193_s22 }
0x14c6   :  { %v3270_v15 = vpop.xlane.xlu0 %3269 }
0x14ca   :  { %v3264_v47 = vpop.xlane.xlu0 %3263 }
0x14cb   :  { %v3273_v46 = vpop.xlane.xlu1 %3272 }
0x14cc   :  { %8864 = vrcp.f32 %v3273_v46 }
0x14cd   :  { %8866 = vrcp.f32 %v3264_v47  ;;  %v3431_v47 = vsel %vm572_vm1, %v3410_v59, 0 }
0x14ce   :  { %v3408_v36 = vpop.permute.xlu0 %3407  ;;  %8868 = vrcp.f32 %v3270_v15 }
0x14cf   :  { %8298 = vmatprep.subr.msk.bf16.mxu1 %vm572_vm1, %v3408_v36  ;;  %v3267_v32 = vpop.xlane.xlu1 %3266  ;;  %v3428_v15 = vsel %vm572_vm1, %v3408_v36, 0 }
0x14d0   :  { %8870 = vrcp.f32 %v3267_v32 }
0x14d3   :  { %v3412_v46 = vpop.permute.xlu1 %3411 }
0x14d6   :  { %v8865_v62 = vpop.eup %8864 }
0x14d7   :  { %v8867_v30 = vpop.eup %8866  ;;  %v3293_v17 = vmul.f32 %v8865_v62, %v8853_v5 }
0x14d8   :  { %v8869_v3 = vpop.eup %8868  ;;  %v3287_v49 = vmul.f32 %v8867_v30, %v10799_v54  ;;  %v3434_v54 = vsel %vm572_vm1, %v3412_v46, 0 }
0x14d9   :  { %v3291_v45 = vmul.f32 %v8869_v3, %v10795_v9 }
0x14da   :  { %v8871_v27 = vpop.eup %8870 }
0x14db   :  { %v3289_v11 = vmul.f32 %v8871_v27, %v8855_v43  ;;  %v3303_v8 = vpack.c.bf16 %v3293_v17, %v3291_v45 }
0x14dd   :  { %v3302_v35 = vpack.c.bf16 %v3289_v11, %v3287_v49 }
0x14df   :  { %7946 = vmatprep.mubr.msk.bf16.mxu1 %vm190_vm0, %v3302_v35 }
0x14e0   :  { %7947 = vmatmul.mubr.msk.bf16.vlgmr.msra.gmra.mrb[88].mxu1 %vm190_vm0, %v3303_v8 }
0x14e1   :  { %7955 = vmatpush3.bf16.xpose.msra.mxu1 %v3428_v15 }
0x14e2   :  { %8299 = vmatprep.subr.msk.bf16.mxu1 %vm572_vm1, %v3410_v59 }
0x14e9   :  { %7957 = vmatpush3.bf16.xpose.msra.mxu1 %v3431_v47 }
0x14ea   :  { %8300 = vmatprep.subr.msk.bf16.mxu1 %vm572_vm1, %v3412_v46 }
0x14f1   :  { %7959 = vmatpush3.bf16.xpose.msra.mxu1 %v3434_v54 }
0x14ff   :  { %v3282_v9 = vpop.xlane.xlu0 %3281 }
0x1503   :  { %v3279_v5 = vpop.xlane.xlu0 %3278 }
0x1504   :  { %8872 = vrcp.f32 %v3279_v5  ;;  %v3276_v43 = vpop.xlane.xlu1 %3275 }
0x1505   :  { %8874 = vrcp.f32 %v3276_v43 }
0x1506   :  { %8876 = vrcp.f32 %v3282_v9 }
0x1507   :  { %v3414_v32 = vpop.permute.xlu0 %3413 }
0x1508   :  { %8301 = vmatprep.subr.msk.bf16.mxu1 %vm572_vm1, %v3414_v32  ;;  %v3285_v36 = vpop.xlane.xlu1 %3284  ;;  %v3437_v62 = vsel %vm572_vm1, %v3414_v32, 0 }
0x1509   :  { %8878 = vrcp.f32 %v3285_v36  ;;  %7961 = vmatpush3.bf16.xpose.msra.mxu1 %v3437_v62 }
0x150b   :  { %v3402_v59 = vpop.permute.xlu0 %3401 }
0x150c   :  { %v3400_v30 = vpop.permute.xlu1 %3399 }
0x150e   :  { %v8873_v3 = vpop.eup %8872 }
0x150f   :  { %v8875_v27 = vpop.eup %8874  ;;  %v3406_v17 = vpop.permute.xlu0 %3405  ;;  %v3297_v49 = vmul.f32 %v8873_v3, %v10813_v26 }
0x1510   :  { %v3404_v11 = vpop.permute.xlu1 %3403  ;;  %v3295_v45 = vmul.f32 %v8875_v27, %v10815_v51  ;;  %v8877_v35 = vpop.eup %8876 }
0x1511   :  { %v3299_v54 = vmul.f32 %v8877_v35, %v10809_v48 }
0x1512   :  { %v3304_v8 = vpack.c.bf16 %v3297_v49, %v3295_v45 }
0x1513   :  { %v8879_v15 = vpop.eup %8878  ;;  %v3613_v47 = vpop.permute.xlu0 %3612 }
0x1514   :  { %7950 = vmatprep.mubr.msk.bf16.mxu1 %vm190_vm0, %v3304_v8  ;;  %7970 = vmatprep.subr.bf16.mxu0 %v3613_v47  ;;  %v3615_v46 = vpop.permute.xlu1 %3614  ;;  %v3301_v9 = vmul.f32 %v8879_v15, %v10821_v4 }
0x1515   :  { %7971 = vmatpush3.bf16.msra.mxu0 %v3613_v47 }
0x1516   :  { %7972 = vmatprep.subr.bf16.mxu0 %v3615_v46  ;;  %v3305_v5 = vpack.c.bf16 %v3301_v9, %v3299_v54 }
0x1518   :  { %7951 = vmatmul.mubr.msk.bf16.gmra.mrb[92].mxu1 %vm190_vm0, %v3305_v5  ;;  %v3617_v26 = vpop.permute.xlu1 %3616 }
0x1519   :  { %7962 = vmatprep.mubr.msk.bf16.mxu1 %vm572_vm1, %v3400_v30  ;;  %7973 = vmatpush3.bf16.msra.mxu0 %v3615_v46 }
0x151a   :  { %7974 = vmatprep.subr.bf16.mxu0 %v3617_v26 }
0x151d   :  { %7975 = vmatpush3.bf16.msra.mxu0 %v3617_v26 }
0x1520   :  { %7963 = vmatmul.mubr.msk.bf16.vlgmr.msra.gmra.mrb[96].mxu1 %vm572_vm1, %v3402_v59 }
0x1521   :  { %7966 = vmatprep.mubr.msk.bf16.mxu1 %vm572_vm1, %v3404_v11 }
0x1528   :  { %7967 = vmatmul.mubr.msk.bf16.gmra.mrb[100].mxu1 %vm572_vm1, %v3406_v17 }
0x15b3   :  { %v10863_v48 = vpop.f32.mrb[88].mxu1 }
0x15b4   :  { %v10865_v51 = vpop.f32.mrb[89].mxu1 }
0x15b5   :  { %v10867_v4 = vpop.f32.mrb[90].mxu1 }
0x15b6   :  { %v10871_v32 = vpop.f32.mrb[91].mxu1 }
0x15eb   :  { %v10875_v62 = vpop.f32.mrb[92].mxu1 }
0x15ec   :  { %v10877_v59 = vpop.f32.mrb[93].mxu1 }
0x15ed   :  { %v10879_v30 = vpop.f32.mrb[94].mxu1 }
0x15ee   :  { %v10883_v27 = vpop.f32.mrb[95].mxu1 }
0x15f3   :  { %v7964_v49 = vpop.f32.mrb[96].mxu1 }
0x15f4   :  { %v3506_v11 = vmul.f32 0.25, %v7964_v49  ;;  %v3473_v45 = vpop.f32.mrb[97].mxu1 }
0x15f5   :  { %v3504_v35 = vmul.f32 0.25, %v3473_v45  ;;  %v7965_v8 = vpop.f32.mrb[98].mxu1 }
0x15f6   :  { %v3514_v15 = vadd.f32 %v10655_v24, %v3506_v11  ;;  %v3507_v47 = vmul.f32 0.25, %v7965_v8  ;;  %v3476_v46 = vpop.f32.mrb[99].mxu1 }
0x15f7   :  { %v3512_v54 = vadd.f32 %v10636_v23, %v3504_v35  ;;  %v3505_v9 = vmul.f32 0.25, %v3476_v46 }
0x15f8   :  { %v3526_v5 = vsel %vm190_vm0, %v3514_v15, -inf  ;;  %v3515_v26 = vadd.f32 %v10642_v53, %v3507_v47 }
0x15f9   :  { %v3513_v3 = vadd.f32 %v10648_v40, %v3505_v9  ;;  %3527 = vmax.xlane.f32.xlu0 %v3526_v5  ;;  %v3520_v17 = vsel %vm190_vm0, %v3512_v54, -inf }
0x15fa   :  { %3521 = vmax.xlane.f32.xlu1 %v3520_v17  ;;  %v3529_v23 = vsel %vm190_vm0, %v3515_v26, -inf }
0x15fb   :  { %v7968_v49 = vpop.f32.mrb[100].mxu1  ;;  %v3523_v45 = vsel %vm190_vm0, %v3513_v3, -inf }
0x15fc   :  { %v3510_v43 = vmul.f32 0.25, %v7968_v49  ;;  %v3489_v24 = vpop.f32.mrb[101].mxu1 }
0x15fd   :  { %v3508_v11 = vmul.f32 0.25, %v3489_v24  ;;  %3524 = vmax.xlane.f32.xlu0 %v3523_v45  ;;  %v7969_v8 = vpop.f32.mrb[102].mxu1 }
0x15fe   :  { %v3518_v35 = vadd.f32 %v10676_v6, %v3510_v43  ;;  %v3511_v46 = vmul.f32 0.25, %v7969_v8  ;;  %3530 = vmax.xlane.f32.xlu1 %v3529_v23  ;;  %v3492_v53 = vpop.f32.mrb[103].mxu1 }
0x15ff   :  { %v3509_v40 = vmul.f32 0.25, %v3492_v53  ;;  %v3516_v47 = vadd.f32 %v10664_v16, %v3508_v11 }
0x1600   :  { %v3519_v17 = vadd.f32 %v10682_v52, %v3511_v46  ;;  %v3538_v9 = vsel %vm190_vm0, %v3518_v35, -inf }
0x1601   :  { %3539 = vmax.xlane.f32.xlu0 %v3538_v9  ;;  %v3517_v5 = vadd.f32 %v10670_v57, %v3509_v40  ;;  %v3532_v45 = vsel %vm190_vm0, %v3516_v47, -inf }
0x1602   :  { %v3541_v49 = vsel %vm190_vm0, %v3519_v17, -inf }
0x1603   :  { %3542 = vmax.xlane.f32.xlu1 %v3541_v49  ;;  %v3535_v6 = vsel %vm190_vm0, %v3517_v5, -inf }
0x1605   :  { %3533 = vmax.xlane.f32.xlu0 %v3532_v45 }
0x1607   :  { %3536 = vmax.xlane.f32.xlu1 %v3535_v6 }
0x1618   :  { %3711 = vrot.lane.b32.xlu1 %v10595_v20, %s9194_s23 }
0x161b   :  { %3618 = vrot.lane.b32.xlu0 %v10613_v44, %s9193_s22 }
0x1686   :  { %v3528_v16 = vpop.xlane.xlu0 %3527 }
0x1687   :  { %v3546_v52 = vsub.f32 %v3514_v15, %v3528_v16  ;;  %v3522_v43 = vpop.xlane.xlu1 %3521 }
0x1688   :  { %v3544_v24 = vsub.f32 %v3512_v54, %v3522_v43 }
0x1689   :  { %v3556_v57 = vmul.f32 1.442695, %v3546_v52 }
0x168a   :  { %v3552_v11 = vmul.f32 1.442695, %v3544_v24  ;;  %v3525_v8 = vpop.xlane.xlu0 %3524 }
0x168b   :  { %8880 = vpow2.f32 %v3556_v57  ;;  %v3545_v23 = vsub.f32 %v3513_v3, %v3525_v8  ;;  %v3531_v46 = vpop.xlane.xlu1 %3530 }
0x168c   :  { %v3547_v53 = vsub.f32 %v3515_v26, %v3531_v46  ;;  %8882 = vpow2.f32 %v3552_v11 }
0x168d   :  { %v3554_v40 = vmul.f32 1.442695, %v3545_v23 }
0x168e   :  { %v3558_v9 = vmul.f32 1.442695, %v3547_v53  ;;  %v3540_v49 = vpop.xlane.xlu0 %3539 }
0x168f   :  { %v3550_v57 = vsub.f32 %v3518_v35, %v3540_v49 }
0x1690   :  { %8884 = vpow2.f32 %v3558_v9  ;;  %v3543_v24 = vpop.xlane.xlu1 %3542 }
0x1691   :  { %8886 = vpow2.f32 %v3554_v40  ;;  %v3564_v11 = vmul.f32 1.442695, %v3550_v57  ;;  %v3551_v53 = vsub.f32 %v3519_v17, %v3543_v24 }
0x1692   :  { %v3534_v45 = vpop.xlane.xlu0 %3533 }
0x1693   :  { %v3548_v23 = vsub.f32 %v3516_v47, %v3534_v45  ;;  %8888 = vpow2.f32 %v3564_v11  ;;  %v3566_v9 = vmul.f32 1.442695, %v3551_v53 }
0x1695   :  { %v10907_v6 = vpop.eup %8880  ;;  %v3560_v40 = vmul.f32 1.442695, %v3548_v23 }
0x1696   :  { %v3619_v36 = vpop.permute.xlu0 %3618  ;;  %v3574_v15 = vsel %vm190_vm0, %v10907_v6, 0.0  ;;  %v8883_v54 = vpop.eup %8882 }
0x1697   :  { %3575 = vadd.xlane.f32.xlu0 %v3574_v15  ;;  %7976 = vmatprep.subr.bf16.mxu0 %v3619_v36  ;;  %v3568_v26 = vsel %vm190_vm0, %v8883_v54, 0.0 }
0x1698   :  { %7977 = vmatpush3.bf16.msra.mxu0 %v3619_v36  ;;  %v3537_v36 = vpop.xlane.xlu1 %3536 }
0x1699   :  { %v3549_v8 = vsub.f32 %v3517_v5, %v3537_v36 }
0x169a   :  { %v8885_v3 = vpop.eup %8884 }
0x169b   :  { %3569 = vadd.xlane.f32.xlu0 %v3568_v26  ;;  %v3577_v16 = vsel %vm190_vm0, %v8885_v3, 0.0  ;;  %v8887_v52 = vpop.eup %8886  ;;  %v3562_v46 = vmul.f32 1.442695, %v3549_v8 }
0x169c   :  { %3578 = vadd.xlane.f32.xlu1 %v3577_v16  ;;  %v3571_v43 = vsel %vm190_vm0, %v8887_v52, 0.0 }
0x169d   :  { %8890 = vpow2.f32 %v3562_v46  ;;  %v10918_v15 = vpop.eup %8888 }
0x169e   :  { %8892 = vpow2.f32 %v3560_v40  ;;  %v3586_v26 = vsel %vm190_vm0, %v10918_v15, 0.0 }
0x169f   :  { %8894 = vpow2.f32 %v3566_v9 }
0x16a0   :  { %3572 = vadd.xlane.f32.xlu1 %v3571_v43  ;;  %v3712_v43 = vpop.permute.xlu1 %3711 }
0x16a7   :  { %v8891_v16 = vpop.eup %8890 }
0x16a8   :  { %v8893_v35 = vpop.eup %8892  ;;  %v3583_v49 = vsel %vm190_vm0, %v8891_v16, 0.0 }
0x16a9   :  { %v3580_v47 = vsel %vm190_vm0, %v8893_v35, 0.0  ;;  %v8895_v5 = vpop.eup %8894 }
0x16aa   :  { %v3589_v17 = vsel %vm190_vm0, %v8895_v5, 0.0 }
0x16b1   :  { %3709 = vrot.lane.b32.xlu0 %v10585_v34, %s9194_s23  ;;  %3713 = vrot.lane.b32.xlu1 %v10603_v33, %s9194_s23 }
0x16d0   :  { %3587 = vadd.xlane.f32.xlu0 %v3586_v26 }
0x16d4   :  { %3584 = vadd.xlane.f32.xlu0 %v3583_v49  ;;  %v3733_v49 = vsel %vm572_vm1, %v3712_v43, 0 }
0x16d5   :  { %3581 = vadd.xlane.f32.xlu1 %v3580_v47 }
0x16d9   :  { %3590 = vadd.xlane.f32.xlu1 %v3589_v17 }
0x16ea   :  { %3701 = vrot.lane.b32.xlu1 %v10585_v34, %s9195_s24  ;;  %3715 = vrot.lane.b32.xlu0 %v10611_v25, %s9194_s23 }
0x16ee   :  { %3705 = vrot.lane.b32.xlu1 %v10603_v33, %s9195_s24  ;;  %3703 = vrot.lane.b32.xlu0 %v10595_v20, %s9195_s24 }
0x16f2   :  { %3707 = vrot.lane.b32.xlu0 %v10611_v25, %s9195_s24 }
0x1724   :  { %v3576_v45 = vpop.xlane.xlu0 %3575 }
0x1728   :  { %v3570_v24 = vpop.xlane.xlu0 %3569 }
0x1729   :  { %v3579_v57 = vpop.xlane.xlu1 %3578 }
0x172a   :  { %8896 = vrcp.f32 %v3579_v57 }
0x172b   :  { %8898 = vrcp.f32 %v3570_v24 }
0x172c   :  { %v3710_v36 = vpop.permute.xlu0 %3709  ;;  %8900 = vrcp.f32 %v3576_v45 }
0x172d   :  { %8302 = vmatprep.subr.msk.bf16.mxu0 %vm572_vm1, %v3710_v36  ;;  %v3573_v34 = vpop.xlane.xlu1 %3572  ;;  %v3730_v26 = vsel %vm572_vm1, %v3710_v36, 0 }
0x172e   :  { %8902 = vrcp.f32 %v3573_v34 }
0x1731   :  { %v3714_v47 = vpop.permute.xlu1 %3713 }
0x1734   :  { %v8897_v11 = vpop.eup %8896 }
0x1735   :  { %v8899_v33 = vpop.eup %8898  ;;  %v3599_v20 = vmul.f32 %v8897_v11, %v8885_v3 }
0x1736   :  { %v8901_v8 = vpop.eup %8900  ;;  %v3593_v46 = vmul.f32 %v8899_v33, %v8883_v54  ;;  %v3736_v54 = vsel %vm572_vm1, %v3714_v47, 0 }
0x1737   :  { %v3597_v25 = vmul.f32 %v8901_v8, %v10907_v6 }
0x1738   :  { %v8903_v23 = vpop.eup %8902 }
0x1739   :  { %v3595_v53 = vmul.f32 %v8903_v23, %v8887_v52  ;;  %v3609_v9 = vpack.c.bf16 %v3599_v20, %v3597_v25 }
0x173b   :  { %v3608_v40 = vpack.c.bf16 %v3595_v53, %v3593_v46 }
0x173d   :  { %7978 = vmatprep.mubr.msk.bf16.mxu0 %vm190_vm0, %v3608_v40 }
0x173e   :  { %7979 = vmatmul.mubr.msk.bf16.vlgmr.msra.gmra.mrb[72].mxu0 %vm190_vm0, %v3609_v9 }
0x173f   :  { %7987 = vmatpush3.bf16.xpose.msra.mxu0 %v3730_v26 }
0x1740   :  { %8303 = vmatprep.subr.msk.bf16.mxu0 %vm572_vm1, %v3712_v43 }
0x1747   :  { %7989 = vmatpush3.bf16.xpose.msra.mxu0 %v3733_v49 }
0x1748   :  { %8304 = vmatprep.subr.msk.bf16.mxu0 %vm572_vm1, %v3714_v47 }
0x174f   :  { %7991 = vmatpush3.bf16.xpose.msra.mxu0 %v3736_v54 }
0x175d   :  { %v3588_v6 = vpop.xlane.xlu0 %3587 }
0x1761   :  { %v3585_v3 = vpop.xlane.xlu0 %3584 }
0x1762   :  { %8904 = vrcp.f32 %v3585_v3  ;;  %v3582_v52 = vpop.xlane.xlu1 %3581 }
0x1763   :  { %8906 = vrcp.f32 %v3582_v52 }
0x1764   :  { %8908 = vrcp.f32 %v3588_v6 }
0x1765   :  { %v3716_v17 = vpop.permute.xlu0 %3715 }
0x1766   :  { %8305 = vmatprep.subr.msk.bf16.mxu0 %vm572_vm1, %v3716_v17  ;;  %v3591_v45 = vpop.xlane.xlu1 %3590  ;;  %v3739_v24 = vsel %vm572_vm1, %v3716_v17, 0  ;;  %v9166_v17 = vld [vmem:[%s12280_s3 + $0x20] sm:$0xff] }
0x1767   :  { %8910 = vrcp.f32 %v3591_v45  ;;  %7993 = vmatpush3.bf16.xpose.msra.mxu0 %v3739_v24 }
0x1769   :  { %v3704_v25 = vpop.permute.xlu0 %3703 }
0x176a   :  { %v3702_v53 = vpop.permute.xlu1 %3701 }
0x176c   :  { %v8905_v43 = vpop.eup %8904 }
0x176d   :  { %v8907_v57 = vpop.eup %8906  ;;  %v3603_v36 = vmul.f32 %v8905_v43, %v8891_v16  ;;  %v3708_v16 = vpop.permute.xlu0 %3707 }
0x176e   :  { %v3601_v34 = vmul.f32 %v8907_v57, %v8893_v35  ;;  %v8909_v11 = vpop.eup %8908  ;;  %v3706_v40 = vpop.permute.xlu1 %3705 }
0x176f   :  { %v3605_v23 = vmul.f32 %v8909_v11, %v10918_v15 }
0x1770   :  { %v3610_v33 = vpack.c.bf16 %v3603_v36, %v3601_v34 }
0x1771   :  { %v8911_v8 = vpop.eup %8910 }
0x1772   :  { %7982 = vmatprep.mubr.msk.bf16.mxu0 %vm190_vm0, %v3610_v33  ;;  %v3607_v20 = vmul.f32 %v8911_v8, %v8895_v5  ;;  %v9162_v33 = vld [vmem:[%s12280_s3] sm:$0xff] }
0x1774   :  { %v3611_v46 = vpack.c.bf16 %v3607_v20, %v3605_v23  ;;  %v9163_v20 = vld [vmem:[%s12280_s3 + $0x18] sm:$0xff] }
0x1776   :  { %7983 = vmatmul.mubr.msk.bf16.gmra.mrb[76].mxu0 %vm190_vm0, %v3611_v46 }
0x1777   :  { %7994 = vmatprep.mubr.msk.bf16.mxu0 %vm572_vm1, %v3702_v53  ;;  %v9164_v53 = vld [vmem:[%s12280_s3 + $0x8] sm:$0xff] }
0x177e   :  { %7995 = vmatmul.mubr.msk.bf16.vlgmr.msra.gmra.mrb[80].mxu0 %vm572_vm1, %v3704_v25 }
0x177f   :  { %7998 = vmatprep.mubr.msk.bf16.mxu0 %vm572_vm1, %v3706_v40 }
0x1786   :  { %7999 = vmatmul.mubr.msk.bf16.gmra.mrb[84].mxu0 %vm572_vm1, %v3708_v16  ;;  %v9165_v16 = vld [vmem:[%s12280_s3 + $0x10] sm:$0xff] }
0x1811   :  { %v10953_v35 = vpop.f32.mrb[72].mxu0 }
0x1812   :  { %v10955_v9 = vpop.f32.mrb[73].mxu0 }
0x1813   :  { %v10957_v15 = vpop.f32.mrb[74].mxu0 }
0x1814   :  { %v10961_v26 = vpop.f32.mrb[75].mxu0 }
0x1849   :  { %v10965_v47 = vpop.f32.mrb[76].mxu0 }
0x184a   :  { %v10967_v54 = vpop.f32.mrb[77].mxu0 }
0x184b   :  { %v10969_v6 = vpop.f32.mrb[78].mxu0 }
0x184c   :  { %v10973_v52 = vpop.f32.mrb[79].mxu0 }
0x1851   :  { %v7996_v45 = vpop.f32.mrb[80].mxu0 }
0x1852   :  { %v3775_v24 = vpop.f32.mrb[81].mxu0  ;;  %v3808_v36 = vmul.f32 0.25, %v7996_v45 }
0x1853   :  { %v3806_v43 = vmul.f32 0.25, %v3775_v24  ;;  %v7997_v57 = vpop.f32.mrb[82].mxu0 }
0x1854   :  { %v3809_v34 = vmul.f32 0.25, %v7997_v57  ;;  %v3778_v11 = vpop.f32.mrb[83].mxu0  ;;  %v3816_v45 = vadd.f32 %v9165_v16, %v3808_v36 }
0x1855   :  { %v3814_v8 = vadd.f32 %v9162_v33, %v3806_v43  ;;  %v3807_v23 = vmul.f32 0.25, %v3778_v11 }
0x1856   :  { %v3817_v46 = vadd.f32 %v9163_v20, %v3809_v34 }
0x1857   :  { %v3815_v25 = vadd.f32 %v9164_v53, %v3807_v23  ;;  %v3822_v40 = vsel %vm190_vm0, %v3814_v8, -inf  ;;  %v3828_v23 = vsel %vm190_vm0, %v3816_v45, -inf }
0x1858   :  { %3823 = vmax.xlane.f32.xlu1 %v3822_v40  ;;  %v3831_v33 = vsel %vm190_vm0, %v3817_v46, -inf }
0x1859   :  { %v8000_v24 = vpop.f32.mrb[84].mxu0  ;;  %v3825_v43 = vsel %vm190_vm0, %v3815_v25, -inf }
0x185a   :  { %3826 = vmax.xlane.f32.xlu0 %v3825_v43  ;;  %v3791_v57 = vpop.f32.mrb[85].mxu0  ;;  %v3812_v53 = vmul.f32 0.25, %v8000_v24  ;;  %v9167_v43 = vld [vmem:[%s12280_s3 + $0x28] sm:$0xff]  ;;  %v9169_v24 = vld [vmem:[%s12280_s3 + $0x38] sm:$0xff] }
0x185b   :  { %v3810_v11 = vmul.f32 0.25, %v3791_v57  ;;  %v8001_v34 = vpop.f32.mrb[86].mxu0 }
0x185c   :  { %3832 = vmax.xlane.f32.xlu1 %v3831_v33  ;;  %v3794_v20 = vpop.f32.mrb[87].mxu0  ;;  %v3813_v40 = vmul.f32 0.25, %v8001_v34  ;;  %v9168_v33 = vld [vmem:[%s12280_s3 + $0x30] sm:$0xff] }
0x185d   :  { %v3818_v36 = vadd.f32 %v9166_v17, %v3810_v11  ;;  %v3811_v16 = vmul.f32 0.25, %v3794_v20  ;;  %v3820_v3 = vadd.f32 %v9168_v33, %v3812_v53 }
0x185e   :  { %3829 = vmax.xlane.f32.xlu0 %v3828_v23  ;;  %v3821_v5 = vadd.f32 %v9169_v24, %v3813_v40 }
0x185f   :  { %v3819_v57 = vadd.f32 %v9167_v43, %v3811_v16  ;;  %v3834_v17 = vsel %vm190_vm0, %v3818_v36, -inf  ;;  %v3840_v34 = vsel %vm190_vm0, %v3820_v3, -inf }
0x1860   :  { %v3843_v20 = vsel %vm190_vm0, %v3821_v5, -inf }
0x1861   :  { %v3837_v11 = vsel %vm190_vm0, %v3819_v57, -inf }
0x1862   :  { %3835 = vmax.xlane.f32.xlu0 %v3834_v17  ;;  %3838 = vmax.xlane.f32.xlu1 %v3837_v11 }
0x1866   :  { %3841 = vmax.xlane.f32.xlu0 %v3840_v34  ;;  %3844 = vmax.xlane.f32.xlu1 %v3843_v20 }
0x187c   :  { %3914 = vrot.lane.b32.xlu0 %v10587_v22, %s9195_s24 }
0x18e5   :  { %v3824_v23 = vpop.xlane.xlu1 %3823 }
0x18e6   :  { %v3846_v40 = vsub.f32 %v3814_v8, %v3824_v23 }
0x18e7   :  { %v3827_v53 = vpop.xlane.xlu0 %3826 }
0x18e8   :  { %v3847_v16 = vsub.f32 %v3815_v25, %v3827_v53  ;;  %v3854_v11 = vmul.f32 1.442695, %v3846_v40 }
0x18e9   :  { %v3833_v43 = vpop.xlane.xlu1 %3832 }
0x18ea   :  { %v3849_v33 = vsub.f32 %v3817_v46, %v3833_v43  ;;  %v3856_v24 = vmul.f32 1.442695, %v3847_v16 }
0x18eb   :  { %v3830_v49 = vpop.xlane.xlu0 %3829 }
0x18ec   :  { %v3860_v50 = vmul.f32 1.442695, %v3849_v33  ;;  %v3848_v17 = vsub.f32 %v3816_v45, %v3830_v49 }
0x18ee   :  { %8912 = vpow2.f32 %v3860_v50  ;;  %v3858_v60 = vmul.f32 1.442695, %v3848_v17 }
0x18ef   :  { %8914 = vpow2.f32 %v3856_v24  ;;  %v3836_v41 = vpop.xlane.xlu0 %3835  ;;  %v3839_v34 = vpop.xlane.xlu1 %3838 }
0x18f0   :  { %8916 = vpow2.f32 %v3858_v60  ;;  %v3850_v20 = vsub.f32 %v3818_v36, %v3836_v41  ;;  %v3851_v41 = vsub.f32 %v3819_v57, %v3839_v34  ;;  %v12335_v34 = vpack.i.bf16 %v10871_v32, %v10865_v51 }
0x18f1   :  { %8918 = vpow2.f32 %v3854_v11 }
0x18f2   :  { %v3862_v25 = vmul.f32 1.442695, %v3850_v20  ;;  %v12336_v20 = vpack.i.bf16 %v10867_v4, %v10863_v48 }
0x18f3   :  { %v3842_v22 = vpop.xlane.xlu0 %3841  ;;  %v3845_v13 = vpop.xlane.xlu1 %3844 }
0x18f4   :  { %v3852_v29 = vsub.f32 %v3820_v3, %v3842_v22  ;;  %v3853_v8 = vsub.f32 %v3821_v5, %v3845_v13  ;;  %v3864_v3 = vmul.f32 1.442695, %v3851_v41 }
0x18f6   :  { %v3866_v53 = vmul.f32 1.442695, %v3852_v29  ;;  %v3868_v60 = vmul.f32 1.442695, %v3853_v8 }
0x18f7   :  { %v3915_v46 = vpop.permute.xlu0 %3914 }
0x18f8   :  { %v11011_v23 = vpop.eup %8912  ;;  %8920 = vpow2.f32 %v3866_v53  ;;  %8002 = vmatprep.subr.bf16.mxu1 %v3915_v46 }
0x18f9   :  { %v8915_v49 = vpop.eup %8914  ;;  %8003 = vmatpush3.bf16.msra.mxu1 %v3915_v46  ;;  %v3879_v50 = vsel %vm190_vm0, %v11011_v23, 0.0  ;;  %8922 = vpow2.f32 %v3862_v25 }
0x18fa   :  { %v11015_v45 = vpop.eup %8916  ;;  %3880 = vadd.xlane.f32.xlu1 %v3879_v50  ;;  %v3873_v5 = vsel %vm190_vm0, %v8915_v49, 0.0  ;;  %8924 = vpow2.f32 %v3868_v60 }
0x18fb   :  { %v3876_v29 = vsel %vm190_vm0, %v11015_v45, 0.0  ;;  %v8919_v13 = vpop.eup %8918  ;;  %8926 = vpow2.f32 %v3864_v3 }
0x18fc   :  { %3877 = vadd.xlane.f32.xlu0 %v3876_v29  ;;  %v3870_v36 = vsel %vm190_vm0, %v8919_v13, 0.0 }
0x18fe   :  { %3874 = vadd.xlane.f32.xlu1 %v3873_v5 }
0x1900   :  { %3871 = vadd.xlane.f32.xlu0 %v3870_v36 }
0x1902   :  { %v11021_v16 = vpop.eup %8920 }
0x1903   :  { %v3888_v57 = vsel %vm190_vm0, %v11021_v16, 0.0  ;;  %v8923_v43 = vpop.eup %8922 }
0x1904   :  { %3889 = vadd.xlane.f32.xlu1 %v3888_v57  ;;  %v3882_v40 = vsel %vm190_vm0, %v8923_v43, 0.0  ;;  %v8925_v33 = vpop.eup %8924 }
0x1905   :  { %v3891_v24 = vsel %vm190_vm0, %v8925_v33, 0.0  ;;  %v8927_v17 = vpop.eup %8926 }
0x1906   :  { %v3885_v11 = vsel %vm190_vm0, %v8927_v17, 0.0 }
0x1908   :  { %3883 = vadd.xlane.f32.xlu1 %v3882_v40 }
0x190c   :  { %3892 = vadd.xlane.f32.xlu1 %v3891_v24 }
0x1910   :  { %3886 = vadd.xlane.f32.xlu1 %v3885_v11 }
0x1916   :  { %3918 = vrot.lane.b32.xlu0 %v10605_v42, %s9195_s24  ;;  %v12337_v42 = vpack.i.bf16 %v10961_v26, %v10955_v9 }
0x191a   :  { %3920 = vrot.lane.b32.xlu0 %v10613_v44, %s9195_s24  ;;  %v12338_v44 = vpack.i.bf16 %v10957_v15, %v10953_v35 }
0x191e   :  { %8393 = vrot.lane.b32.xlu0 %v12335_v34, %s9194_s23 }
0x1921   :  { %3916 = vrot.lane.b32.xlu1 %v10597_v21, %s9195_s24 }
0x1922   :  { %8398 = vrot.lane.b32.xlu0 %v12336_v20, %s9194_s23 }
0x1925   :  { %8403 = vrot.lane.b32.xlu1 %v12337_v42, %s9191_s20 }
0x1926   :  { %8408 = vrot.lane.b32.xlu0 %v12338_v44, %s9191_s20 }
0x1987   :  { %v3881_v51 = vpop.xlane.xlu1 %3880 }
0x1989   :  { %v3878_v32 = vpop.xlane.xlu0 %3877 }
0x198b   :  { %v3875_v22 = vpop.xlane.xlu1 %3874 }
0x198c   :  { %8928 = vrcp.f32 %v3875_v22 }
0x198d   :  { %v3872_v21 = vpop.xlane.xlu0 %3871 }
0x198e   :  { %8930 = vrcp.f32 %v3872_v21 }
0x198f   :  { %8932 = vrcp.f32 %v3878_v32 }
0x1990   :  { %8934 = vrcp.f32 %v3881_v51 }
0x1991   :  { %v3890_v25 = vpop.xlane.xlu1 %3889  ;;  %v3919_v15 = vpop.permute.xlu0 %3918 }
0x1995   :  { %v3884_v53 = vpop.xlane.xlu1 %3883 }
0x1996   :  { %v8929_v48 = vpop.eup %8928  ;;  %8936 = vrcp.f32 %v3884_v53  ;;  %v12339_v53 = vpack.i.bf16 %v10879_v30, %v10875_v62  ;;  %v12342_v62 = vpack.i.bf16 %v10973_v52, %v10967_v54 }
0x1997   :  { %v3897_v50 = vmul.f32 %v8929_v48, %v8915_v49 }
0x1998   :  { %v8931_v4 = vpop.eup %8930 }
0x1999   :  { %v3893_v8 = vpop.xlane.xlu1 %3892  ;;  %v3895_v46 = vmul.f32 %v8931_v4, %v8919_v13  ;;  %v8933_v41 = vpop.eup %8932  ;;  %v12340_v4 = vpack.i.bf16 %v10883_v27, %v10877_v59 }
0x199a   :  { %v8935_v60 = vpop.eup %8934  ;;  %v3921_v13 = vpop.permute.xlu0 %3920  ;;  %v3899_v5 = vmul.f32 %v8933_v41, %v11015_v45  ;;  %v8577_v45 = vld [vmem:[%s12281_s5 + $0x28] sm:$0xff]  }
0x199b   :  { %v3910_v9 = vpack.c.bf16 %v3897_v50, %v3895_v46  ;;  %v3901_v36 = vmul.f32 %v8935_v60, %v11011_v23  ;;  %v8576_v23 = vld [vmem:[%s12281_s5 + $0x20] sm:$0xff]  }
0x199d   :  { %8010 = vmatprep.mubr.msk.bf16.mxu1 %vm190_vm0, %v3910_v9  ;;  %v3887_v35 = vpop.xlane.xlu1 %3886  ;;  %v3911_v40 = vpack.c.bf16 %v3901_v36, %v3899_v5 }
0x199e   :  { %8938 = vrcp.f32 %v3887_v35  ;;  %v12341_v35 = vpack.i.bf16 %v10969_v6, %v10965_v47  ;;  %v8394_v59 = vpop.permute.xlu0 %8393 }
0x199f   :  { %8940 = vrcp.f32 %v3893_v8 }
0x19a0   :  { %8942 = vrcp.f32 %v3890_v25  ;;  %v8937_v29 = vpop.eup %8936 }
0x19a1   :  { %v3917_v26 = vpop.permute.xlu1 %3916  ;;  %v3903_v57 = vmul.f32 %v8937_v29, %v8923_v43  ;;  %v8578_v43 = vld [vmem:[%s12281_s5 + $0x30] sm:$0xff]  }
0x19a2   :  { %8004 = vmatprep.subr.bf16.mxu1 %v3917_v26  ;;  %v8399_v30 = vpop.permute.xlu0 %8398 }
0x19a3   :  { %8005 = vmatpush3.bf16.msra.mxu1 %v3917_v26  ;;  %v8395_v26 = vunpack.i.l.bf16 %v8394_v59  ;;  %v8401_v60 = vunpack.i.h.bf16 %v8399_v30  ;;  %v8400_v29 = vunpack.i.l.bf16 %v8399_v30 }
0x19a4   :  { %8006 = vmatprep.subr.bf16.mxu1 %v3919_v15 }
0x19a5   :  { %v8404_v41 = vpop.permute.xlu1 %8403  ;;  %v4099_v52 = vsel %vm572_vm1, %v10761_v18, %v8395_v26  ;;  %v4101_v36 = vsel %vm572_vm1, %v10759_v31, %v8400_v29 }
0x19a6   :  { %v8409_v27 = vpop.permute.xlu0 %8408  ;;  %v8406_v6 = vunpack.i.h.bf16 %v8404_v41 }
0x19a7   :  { %8007 = vmatpush3.bf16.msra.mxu1 %v3919_v15  ;;  %v8396_v15 = vunpack.i.h.bf16 %v8394_v59  ;;  %v8410_v47 = vunpack.i.l.bf16 %v8409_v27 }
0x19a8   :  { %v8939_v49 = vpop.eup %8938  ;;  %8008 = vmatprep.subr.bf16.mxu1 %v3921_v13 }
0x19a9   :  { %v3905_v3 = vmul.f32 %v8939_v49, %v8927_v17  ;;  %v8941_v24 = vpop.eup %8940  ;;  %v8405_v49 = vunpack.i.l.bf16 %v8404_v41  ;;  %v4100_v54 = vsel %vm572_vm1, %v10765_v63, %v8396_v15 }
0x19aa   :  { %v8943_v34 = vpop.eup %8942  ;;  %v3909_v20 = vmul.f32 %v8941_v24, %v8925_v33  ;;  %v4108_v63 = vsel %vm1861_vm2, %v4100_v54, %v8406_v6 }
0x19ab   :  { %8009 = vmatpush3.bf16.msra.mxu1 %v3921_v13  ;;  %v3912_v11 = vpack.c.bf16 %v3905_v3, %v3903_v57  ;;  %v3907_v42 = vmul.f32 %v8943_v34, %v11021_v16  ;;  %v8579_v16 = vld [vmem:[%s12281_s5 + $0x38] sm:$0xff]   ;;  %v8411_v13 = vunpack.i.h.bf16 %v8409_v27  ;;  %v4102_v3 = vsel %vm572_vm1, %v10763_v58, %v8401_v60 }
0x19ac   :  { %8018 = vmatprep.subr.bf16.mxu1 %v8576_v23  ;;  %v4107_v18 = vsel %vm1861_vm2, %v4099_v52, %v8405_v49  ;;  %v11128_v49 = vld [vmem:[%s12279_s8 + $0x10] sm:$0xff] }
0x19ad   :  { %v3913_v44 = vpack.c.bf16 %v3909_v20, %v3907_v42  ;;  %v4110_v34 = vsel %vm1861_vm2, %v4102_v3, %v8411_v13  ;;  %v4139_v54 = vrot.slane %v11128_v49, %v10204_v19 }
0x19ae   :  { %8011 = vmatmul.mubr.msk.bf16.vlgmr.msra.gmra.mrb[104].mxu1 %vm190_vm0, %v3911_v40 }
0x19af   :  { %8014 = vmatprep.mubr.msk.bf16.mxu1 %vm190_vm0, %v3912_v11  ;;  %8019 = vmatpush3.bf16.msra.mxu1 %v8576_v23  ;;  %v4109_v11 = vsel %vm1861_vm2, %v4101_v36, %v8410_v47 }
0x19b0   :  { %8020 = vmatprep.subr.bf16.mxu1 %v8577_v45 }
0x19b3   :  { %8021 = vmatpush3.bf16.msra.mxu1 %v8577_v45 }
0x19b4   :  { %8022 = vmatprep.subr.bf16.mxu1 %v8578_v43 }
0x19b6   :  { %8015 = vmatmul.mubr.msk.bf16.gmra.mrb[108].mxu1 %vm190_vm0, %v3913_v44 }
0x19b7   :  { %8023 = vmatpush3.bf16.msra.mxu1 %v8578_v43 }
0x19b8   :  { %8024 = vmatprep.subr.bf16.mxu1 %v8579_v16 }
0x19bb   :  { %8025 = vmatpush3.bf16.msra.mxu1 %v8579_v16 }
0x1a81   :  { %v8012_v33 = vpop.f32.mrb[104].mxu1 }
0x1a82   :  { %v3972_v17 = vpop.f32.mrb[105].mxu1 }
0x1a83   :  { %v8013_v51 = vpop.f32.mrb[106].mxu1 }
0x1a84   :  { %v8417_v32 = vpack.i.bf16 %v8013_v51, %v8012_v33  ;;  %v3975_v22 = vpop.f32.mrb[107].mxu1 }
0x1a85   :  { %v8412_v21 = vpack.i.bf16 %v3975_v22, %v3972_v17 }
0x1a86   :  { %8418 = vrot.lane.b32.xlu0 %v8417_v32, %s9189_s19 }
0x1a87   :  { %8413 = vrot.lane.b32.xlu1 %v8412_v21, %s9189_s19 }
0x1a89   :  { %v8016_v25 = vpop.f32.mrb[108].mxu1 }
0x1a8a   :  { %8428 = vrot.lane.b32.xlu0 %v12339_v53, %s9194_s23  ;;  %v3988_v48 = vpop.f32.mrb[109].mxu1 }
0x1a8b   :  { %8423 = vrot.lane.b32.xlu1 %v12340_v4, %s9194_s23  ;;  %v8017_v8 = vpop.f32.mrb[110].mxu1 }
0x1a8c   :  { %v8447_v46 = vpack.i.bf16 %v8017_v8, %v8016_v25  ;;  %v3991_v50 = vpop.f32.mrb[111].mxu1 }
0x1a8d   :  { %v8442_v9 = vpack.i.bf16 %v3991_v50, %v3988_v48 }
0x1a8e   :  { %8438 = vrot.lane.b32.xlu0 %v12341_v35, %s9191_s20 }
0x1a8f   :  { %8433 = vrot.lane.b32.xlu1 %v12342_v62, %s9191_s20 }
0x1a92   :  { %8448 = vrot.lane.b32.xlu0 %v8447_v46, %s9189_s19 }
0x1a93   :  { %8443 = vrot.lane.b32.xlu1 %v8442_v9, %s9189_s19 }
0x1af8   :  { %v8419_v5 = vpop.permute.xlu0 %8418 }
0x1af9   :  { %v8421_v57 = vunpack.i.h.bf16 %v8419_v5  ;;  %v8420_v40 = vunpack.i.l.bf16 %v8419_v5  ;;  %v8414_v24 = vpop.permute.xlu1 %8413 }
0x1afa   :  { %v8416_v20 = vunpack.i.h.bf16 %v8414_v24  ;;  %v8415_v42 = vunpack.i.l.bf16 %v8414_v24 }
0x1afb   :  { %v4118_v44 = vsel %vm1870_vm3, %v4110_v34, %v8421_v57  ;;  %v4117_v58 = vsel %vm1870_vm3, %v4109_v11, %v8420_v40 }
0x1afc   :  { %v4124_v23 = vpack.c.bf16 %v4118_v44, %v4117_v58  ;;  %v4115_v31 = vsel %vm1870_vm3, %v4107_v18, %v8415_v42  ;;  %v4116_v45 = vsel %vm1870_vm3, %v4108_v63, %v8416_v20  ;;  %v8429_v43 = vpop.permute.xlu0 %8428 }
0x1afd   :  { %v8424_v16 = vpop.permute.xlu1 %8423  ;;  %v4123_v33 = vpack.c.bf16 %v4116_v45, %v4115_v31  ;;  %v8431_v17 = vunpack.i.h.bf16 %v8429_v43  ;;  %v8430_v51 = vunpack.i.l.bf16 %v8429_v43 }
0x1afe   :  { %v8426_v22 = vunpack.i.h.bf16 %v8424_v16  ;;  %v8425_v21 = vunpack.i.l.bf16 %v8424_v16 }
0x1aff   :  { %8026 = vmatprep.mubr.msk.bf16.mxu1 %vm190_vm0, %v4123_v33  ;;  %v4106_v46 = vsel %vm572_vm1, %v10771_v2, %v8431_v17  ;;  %v4105_v50 = vsel %vm572_vm1, %v10767_v37, %v8430_v51 }
0x1b00   :  { %v8439_v32 = vpop.permute.xlu0 %8438  ;;  %8027 = vmatmul.mubr.msk.bf16.vlgmr.msra.gmra.mrb[112].mxu1 %vm190_vm0, %v4124_v23  ;;  %v4104_v35 = vsel %vm572_vm1, %v10773_v38, %v8426_v22  ;;  %v4103_v62 = vsel %vm572_vm1, %v10769_v14, %v8425_v21 }
0x1b01   :  { %v8434_v25 = vpop.permute.xlu1 %8433  ;;  %v8441_v53 = vunpack.i.h.bf16 %v8439_v32  ;;  %v8440_v48 = vunpack.i.l.bf16 %v8439_v32 }
0x1b02   :  { %v8436_v4 = vunpack.i.h.bf16 %v8434_v25  ;;  %v8435_v8 = vunpack.i.l.bf16 %v8434_v25 }
0x1b03   :  { %v4113_v15 = vsel %vm1861_vm2, %v4105_v50, %v8440_v48  ;;  %v4114_v26 = vsel %vm1861_vm2, %v4106_v46, %v8441_v53 }
0x1b04   :  { %v8449_v9 = vpop.permute.xlu0 %8448  ;;  %v4111_v2 = vsel %vm1861_vm2, %v4103_v62, %v8435_v8  ;;  %v4112_v37 = vsel %vm1861_vm2, %v4104_v35, %v8436_v4 }
0x1b05   :  { %v8451_v59 = vunpack.i.h.bf16 %v8449_v9  ;;  %v8450_v30 = vunpack.i.l.bf16 %v8449_v9  ;;  %v8444_v27 = vpop.permute.xlu1 %8443 }
0x1b06   :  { %v8446_v41 = vunpack.i.h.bf16 %v8444_v27  ;;  %v8445_v60 = vunpack.i.l.bf16 %v8444_v27 }
0x1b07   :  { %v4122_v29 = vsel %vm1870_vm3, %v4114_v26, %v8451_v59  ;;  %v4121_v38 = vsel %vm1870_vm3, %v4113_v15, %v8450_v30 }
0x1b08   :  { %v4119_v13 = vsel %vm1870_vm3, %v4111_v2, %v8445_v60  ;;  %v4120_v14 = vsel %vm1870_vm3, %v4112_v37, %v8446_v41  ;;  %v4126_v47 = vpack.c.bf16 %v4122_v29, %v4121_v38 }
0x1b09   :  { %v4125_v6 = vpack.c.bf16 %v4120_v14, %v4119_v13 }
0x1b0b   :  { %8030 = vmatprep.mubr.msk.bf16.mxu1 %vm190_vm0, %v4125_v6 }
0x1b0c   :  { %8031 = vmatmul.mubr.msk.bf16.gmra.mrb[116].mxu1 %vm190_vm0, %v4126_v47 }
0x1bd3   :  { %v8028_v52 = vpop.f32.mrb[112].mxu1 }
0x1bd4   :  { %v4210_v5 = vpop.f32.mrb[113].mxu1  ;;  %v4219_v24 = vadd.f32 %v8028_v52, %v4139_v54 }
0x1bd5   :  { %v4211_v3 = vadd.f32 %v4210_v5, %v4139_v54  ;;  %v8029_v36 = vpop.f32.mrb[114].mxu1 }
0x1bd6   :  { %v4222_v57 = vadd.f32 %v8029_v36, %v4139_v54  ;;  %v4213_v40 = vpop.f32.mrb[115].mxu1  ;;  %v11144_v18 = vadd.f32 %v4219_v24, %v10455_v12 }
0x1bd7   :  { %v11133_v11 = vadd.f32 %v4211_v3, %v10447_v39  ;;  %v4214_v34 = vadd.f32 %v4213_v40, %v4139_v54 }
0x1bd8   :  { %v11136_v20 = vadd.f32 %v4222_v57, %v10449_v7 }
0x1bd9   :  { %v11139_v42 = vadd.f32 %v4214_v34, %v10451_v10  ;;  %v4249_v63 = vsel %vm190_vm0, %v11133_v11, 0.0  ;;  %v4255_v10 = vsel %vm190_vm0, %v11144_v18, 0.0 }
0x1bda   :  { %4250 = vadd.xlane.f32.xlu1 %v4249_v63  ;;  %v4258_v39 = vsel %vm190_vm0, %v11136_v20, 0.0 }
0x1bdb   :  { %v4252_v44 = vsel %vm190_vm0, %v11139_v42, 0.0 }
0x1bdc   :  { %4253 = vadd.xlane.f32.xlu0 %v4252_v44 }
0x1bde   :  { %4259 = vadd.xlane.f32.xlu1 %v4258_v39 }
0x1bdf   :  { %v8032_v7 = vpop.f32.mrb[116].mxu1 }
0x1be0   :  { %v4226_v58 = vpop.f32.mrb[117].mxu1  ;;  %4256 = vadd.xlane.f32.xlu0 %v4255_v10  ;;  %v4235_v23 = vadd.f32 %v8032_v7, %v4139_v54  ;;  %v8580_v10 = vld [vmem:[%s12282_s6 + $0x20] sm:$0xff]  }
0x1be1   :  { %v4227_v31 = vadd.f32 %v4226_v58, %v4139_v54  ;;  %v8033_v45 = vpop.f32.mrb[118].mxu1  ;;  %8034 = vmatprep.subr.bf16.mxu0 %v8580_v10  ;;  %v8581_v58 = vld [vmem:[%s12282_s6 + $0x28] sm:$0xff]  }
0x1be2   :  { %v4229_v43 = vpop.f32.mrb[119].mxu1  ;;  %v4238_v16 = vadd.f32 %v8033_v45, %v4139_v54  ;;  %v11156_v17 = vadd.f32 %v4235_v23, %v10469_v61  ;;  %8035 = vmatpush3.bf16.msra.mxu0 %v8580_v10  ;;  %v7296_v23 = vld [vmem:[%s12284_s9 + $0x48] sm:$0xff]  ;;  %v7295_v45 = vld [vmem:[%s12284_s9 + $0x40] sm:$0xff] }
0x1be3   :  { %v11153_v12 = vadd.f32 %v4227_v31, %v10465_v0  ;;  %v4230_v33 = vadd.f32 %v4229_v43, %v4139_v54  ;;  %8036 = vmatprep.subr.bf16.mxu0 %v8581_v58  ;;  %v8582_v31 = vld [vmem:[%s12282_s6 + $0x30] sm:$0xff]  }
0x1be4   :  { %v11164_v22 = vadd.f32 %v4238_v16, %v10475_v1  ;;  %v4267_v0 = vsel %vm190_vm0, %v11156_v17, 0.0  ;;  %v7297_v43 = vld [vmem:[%s12284_s9 + $0x50] sm:$0xff]  ;;  %v8583_v16 = vld [vmem:[%s12282_s6 + $0x38] sm:$0xff]  }
0x1be5   :  { %v11159_v51 = vadd.f32 %v4230_v33, %v10471_v28  ;;  %v4261_v32 = vsel %vm190_vm0, %v11153_v12, 0.0  ;;  %v7298_v33 = vld [vmem:[%s12284_s9 + $0x58] sm:$0xff] }
0x1be6   :  { %4262 = vadd.xlane.f32.xlu0 %v4261_v32  ;;  %v4270_v61 = vsel %vm190_vm0, %v11164_v22, 0.0  ;;  %8037 = vmatpush3.bf16.msra.mxu0 %v8581_v58  ;;  %v7299_v32 = vld [vmem:[%s12284_s9 + $0x60] sm:$0xff] }
0x1be7   :  { %v4264_v21 = vsel %vm190_vm0, %v11159_v51, 0.0  ;;  %8038 = vmatprep.subr.bf16.mxu0 %v8582_v31 }
0x1be8   :  { %4265 = vadd.xlane.f32.xlu1 %v4264_v21  ;;  %v7300_v21 = vld [vmem:[%s12284_s9 + $0x68] sm:$0xff] }
0x1bea   :  { %4268 = vadd.xlane.f32.xlu0 %v4267_v0  ;;  %8039 = vmatpush3.bf16.msra.mxu0 %v8582_v31  ;;  %v7301_v0 = vld [vmem:[%s12284_s9 + $0x70] sm:$0xff] }
0x1beb   :  { %8040 = vmatprep.subr.bf16.mxu0 %v8583_v16 }
0x1bec   :  { %4271 = vadd.xlane.f32.xlu1 %v4270_v61  ;;  %v7302_v61 = vld [vmem:[%s12284_s9 + $0x78] sm:$0xff] }
0x1bee   :  { %8041 = vmatpush3.bf16.msra.mxu0 %v8583_v16 }
0x1c67   :  { %v4251_v28 = vpop.xlane.xlu1 %4250 }
0x1c68   :  { %v4273_v25 = vmul.f32 0.015625, %v4251_v28 }
0x1c69   :  { %v4254_v53 = vpop.xlane.xlu0 %4253 }
0x1c6a   :  { %v11173_v48 = vsub.f32 %v11133_v11, %v4273_v25  ;;  %v4274_v1 = vmul.f32 0.015625, %v4254_v53 }
0x1c6b   :  { %v4260_v4 = vpop.xlane.xlu1 %4259 }
0x1c6c   :  { %v11176_v8 = vsub.f32 %v11139_v42, %v4274_v1  ;;  %v4276_v46 = vmul.f32 0.015625, %v4260_v4  ;;  %v4289_v50 = vmul.f32 %v11173_v48, %v11173_v48 }
0x1c6d   :  { %v4257_v9 = vpop.xlane.xlu0 %4256 }
0x1c6e   :  { %v11181_v35 = vsub.f32 %v11136_v20, %v4276_v46  ;;  %v4275_v62 = vmul.f32 0.015625, %v4257_v9  ;;  %v4297_v59 = vsel %vm190_vm0, %v4289_v50, 0.0  ;;  %v4290_v30 = vmul.f32 %v11176_v8, %v11176_v8 }
0x1c6f   :  { %4298 = vadd.xlane.f32.xlu0 %v4297_v59 }
0x1c70   :  { %v11187_v27 = vsub.f32 %v11144_v18, %v4275_v62  ;;  %v4300_v15 = vsel %vm190_vm0, %v4290_v30, 0.0  ;;  %v4292_v26 = vmul.f32 %v11181_v35, %v11181_v35 }
0x1c71   :  { %4301 = vadd.xlane.f32.xlu1 %v4300_v15 }
0x1c72   :  { %v4291_v41 = vmul.f32 %v11187_v27, %v11187_v27  ;;  %v4306_v29 = vsel %vm190_vm0, %v4292_v26, 0.0 }
0x1c73   :  { %v4263_v60 = vpop.xlane.xlu0 %4262 }
0x1c74   :  { %v4277_v2 = vmul.f32 0.015625, %v4263_v60  ;;  %v4303_v37 = vsel %vm190_vm0, %v4291_v41, 0.0  ;;  %v4356_v60 = vrot.slane %v11128_v49, %v10314_v55 }
0x1c75   :  { %4304 = vadd.xlane.f32.xlu0 %v4303_v37  ;;  %4307 = vadd.xlane.f32.xlu1 %v4306_v29  ;;  %v4266_v38 = vpop.xlane.xlu1 %4265 }
0x1c76   :  { %v11197_v13 = vsub.f32 %v11153_v12, %v4277_v2  ;;  %v4278_v14 = vmul.f32 0.015625, %v4266_v38 }
0x1c77   :  { %v4269_v47 = vpop.xlane.xlu0 %4268 }
0x1c78   :  { %v11200_v6 = vsub.f32 %v11159_v51, %v4278_v14  ;;  %v4279_v54 = vmul.f32 0.015625, %v4269_v47  ;;  %v4293_v52 = vmul.f32 %v11197_v13, %v11197_v13 }
0x1c79   :  { %v4272_v5 = vpop.xlane.xlu1 %4271 }
0x1c7a   :  { %v11205_v3 = vsub.f32 %v11156_v17, %v4279_v54  ;;  %v4280_v36 = vmul.f32 0.015625, %v4272_v5  ;;  %v4309_v57 = vsel %vm190_vm0, %v4293_v52, 0.0  ;;  %v4294_v40 = vmul.f32 %v11200_v6, %v11200_v6 }
0x1c7b   :  { %4310 = vadd.xlane.f32.xlu0 %v4309_v57 }
0x1c7c   :  { %v11211_v24 = vsub.f32 %v11164_v22, %v4280_v36  ;;  %v4312_v34 = vsel %vm190_vm0, %v4294_v40, 0.0  ;;  %v4295_v63 = vmul.f32 %v11205_v3, %v11205_v3  ;;  %v4368_v36 = vrot.slane %v11128_v49, %v10319_v56 }
0x1c7d   :  { %4313 = vadd.xlane.f32.xlu1 %v4312_v34 }
0x1c7e   :  { %v4315_v44 = vsel %vm190_vm0, %v4295_v63, 0.0  ;;  %v4296_v39 = vmul.f32 %v11211_v24, %v11211_v24 }
0x1c7f   :  { %4316 = vadd.xlane.f32.xlu0 %v4315_v44 }
0x1c80   :  { %v4318_v7 = vsel %vm190_vm0, %v4296_v39, 0.0 }
0x1c81   :  { %4319 = vadd.xlane.f32.xlu1 %v4318_v7 }
0x1c92   :  { %4729 = vperm.xlu1 %8391, %v7296_v23  }
0x1c95   :  { %4724 = vperm.xlu0 %8390, %v7295_v45  }
0x1c96   :  { %4734 = vperm.xlu1 %8391, %v7297_v43  }
0x1c99   :  { %4739 = vperm.xlu0 %8390, %v7298_v33  }
0x1c9a   :  { %4744 = vperm.xlu1 %8391, %v7299_v32  }
0x1c9d   :  { %4749 = vperm.xlu0 %8390, %v7300_v21  }
0x1c9e   :  { %4754 = vperm.xlu1 %8391, %v7301_v0  }
0x1ca1   :  { %4759 = vperm.xlu0 %8390, %v7302_v61  }
0x1cfc   :  { %v4299_v28 = vpop.xlane.xlu0 %4298 }
0x1cfd   :  { %v4321_v25 = vmul.f32 0.015625, %v4299_v28 }
0x1cfe   :  { %v4302_v53 = vpop.xlane.xlu1 %4301 }
0x1cff   :  { %v4329_v1 = vadd.f32 1e-06, %v4321_v25  ;;  %v4322_v4 = vmul.f32 0.015625, %v4302_v53 }
0x1d01   :  { %8944 = vrsqrt.f32 %v4329_v1  ;;  %v4330_v46 = vadd.f32 1e-06, %v4322_v4 }
0x1d02   :  { %v4305_v50 = vpop.xlane.xlu0 %4304  ;;  %v4308_v9 = vpop.xlane.xlu1 %4307 }
0x1d03   :  { %8946 = vrsqrt.f32 %v4330_v46  ;;  %v4323_v62 = vmul.f32 0.015625, %v4305_v50  ;;  %v4324_v59 = vmul.f32 0.015625, %v4308_v9 }
0x1d05   :  { %v4331_v30 = vadd.f32 1e-06, %v4323_v62  ;;  %v4332_v15 = vadd.f32 1e-06, %v4324_v59 }
0x1d07   :  { %8948 = vrsqrt.f32 %v4331_v30 }
0x1d08   :  { %8950 = vrsqrt.f32 %v4332_v15  ;;  %v4311_v26 = vpop.xlane.xlu0 %4310 }
0x1d09   :  { %v4325_v41 = vmul.f32 0.015625, %v4311_v26  ;;  %v12343_v26 = vmov 0  }
0x1d0a   :  { %v4314_v2 = vpop.xlane.xlu1 %4313 }
0x1d0b   :  { %v8945_v37 = vpop.eup %8944  ;;  %v4333_v29 = vadd.f32 1e-06, %v4325_v41  ;;  %v4326_v38 = vmul.f32 0.015625, %v4314_v2  ;;  %v8586_v41 = vld [vmem:[%s12283_s7 + $0x50] sm:$0xff]   ;;  %v8588_v2 = vld [vmem:[%s12283_s7 + $0x60] sm:$0xff]  }
0x1d0c   :  { %v4317_v14 = vpop.xlane.xlu0 %4316  ;;  %v4345_v47 = vmul.f32 %v8945_v37, %v11173_v48  ;;  %v8589_v37 = vld [vmem:[%s12283_s7 + $0x68] sm:$0xff]  }
0x1d0d   :  { %v8947_v54 = vpop.eup %8946  ;;  %8952 = vrsqrt.f32 %v4333_v29  ;;  %v4334_v52 = vadd.f32 1e-06, %v4326_v38  ;;  %v4327_v5 = vmul.f32 0.015625, %v4317_v14  ;;  %v8590_v29 = vld [vmem:[%s12283_s7 + $0x70] sm:$0xff]   ;;  %v8591_v38 = vld [vmem:[%s12283_s7 + $0x78] sm:$0xff]   ;;  %v12344_v14 = vld [vmem:[#allocation2_spill] sm:$0xff] }
0x1d0e   :  { %v4320_v57 = vpop.xlane.xlu1 %4319  ;;  %v4346_v40 = vmul.f32 %v8947_v54, %v11176_v8  ;;  %v4357_v34 = vmul.f32 %v4356_v60, %v4345_v47  ;;  %v4393_v47 = vrot.slane %v11128_v49, %v12344_v14 }
0x1d0f   :  { %8954 = vrsqrt.f32 %v4334_v52  ;;  %v4335_v63 = vadd.f32 1e-06, %v4327_v5  ;;  %v4328_v44 = vmul.f32 0.015625, %v4320_v57 }
0x1d10   :  { %v4358_v39 = vmul.f32 %v4356_v60, %v4346_v40  ;;  %v4369_v23 = vadd.f32 %v4368_v36, %v4357_v34 }
0x1d11   :  { %v8949_v7 = vpop.eup %8948  ;;  %8956 = vrsqrt.f32 %v4335_v63  ;;  %v4336_v10 = vadd.f32 1e-06, %v4328_v44 }
0x1d12   :  { %v8951_v58 = vpop.eup %8950  ;;  %v4347_v48 = vmul.f32 %v8949_v7, %v11187_v27  ;;  %v4370_v31 = vadd.f32 %v4368_v36, %v4358_v39 }
0x1d13   :  { %v4348_v45 = vmul.f32 %v8951_v58, %v11181_v35  ;;  %8958 = vrsqrt.f32 %v4336_v10 }
0x1d14   :  { %v4359_v43 = vmul.f32 %v4356_v60, %v4347_v48  ;;  %v4377_v16 = vpack.c.bf16 %v4370_v31, %v4369_v23 }
0x1d15   :  { %v4360_v33 = vmul.f32 %v4356_v60, %v4348_v45 }
0x1d16   :  { %v4371_v8 = vadd.f32 %v4368_v36, %v4359_v43  ;;  %8042 = vmatprep.mubr.msk.bf16.mxu0 %vm190_vm0, %v4377_v16 }
0x1d17   :  { %v8953_v32 = vpop.eup %8952  ;;  %v4372_v21 = vadd.f32 %v4368_v36, %v4360_v33 }
0x1d18   :  { %v4349_v0 = vmul.f32 %v8953_v32, %v11197_v13 }
0x1d19   :  { %v8955_v61 = vpop.eup %8954  ;;  %v4378_v28 = vpack.c.bf16 %v4372_v21, %v4371_v8 }
0x1d1a   :  { %v4350_v25 = vmul.f32 %v8955_v61, %v11200_v6  ;;  %v4361_v27 = vmul.f32 %v4356_v60, %v4349_v0 }
0x1d1b   :  { %v8957_v53 = vpop.eup %8956  ;;  %8043 = vmatmul.mubr.msk.bf16.vlgmr.msra.gmra.mrb[88].mxu0 %vm190_vm0, %v4378_v28 }
0x1d1c   :  { %v4362_v35 = vmul.f32 %v4356_v60, %v4350_v25  ;;  %v4351_v1 = vmul.f32 %v8957_v53, %v11205_v3  ;;  %v4373_v46 = vadd.f32 %v4368_v36, %v4361_v27  ;;  %v8584_v3 = vld [vmem:[%s12283_s7 + $0x40] sm:$0xff]  }
0x1d1d   :  { %v8959_v4 = vpop.eup %8958  ;;  %8050 = vmatprep.subr.bf16.mxu1 %v8584_v3 }
0x1d1e   :  { %v4374_v50 = vadd.f32 %v4368_v36, %v4362_v35  ;;  %v4352_v9 = vmul.f32 %v8959_v4, %v11211_v24  ;;  %v4363_v62 = vmul.f32 %v4356_v60, %v4351_v1  ;;  %8051 = vmatpush3.bf16.msra.mxu1 %v8584_v3  ;;  %v8585_v24 = vld [vmem:[%s12283_s7 + $0x48] sm:$0xff]  }
0x1d1f   :  { %8052 = vmatprep.subr.bf16.mxu1 %v8585_v24 }
0x1d20   :  { %v4379_v59 = vpack.c.bf16 %v4374_v50, %v4373_v46  ;;  %v4364_v30 = vmul.f32 %v4356_v60, %v4352_v9  ;;  %v4375_v13 = vadd.f32 %v4368_v36, %v4363_v62  ;;  %v8587_v60 = vld [vmem:[%s12283_s7 + $0x58] sm:$0xff]  }
0x1d22   :  { %8046 = vmatprep.mubr.msk.bf16.mxu0 %vm190_vm0, %v4379_v59  ;;  %v4376_v15 = vadd.f32 %v4368_v36, %v4364_v30  ;;  %8053 = vmatpush3.bf16.msra.mxu1 %v8585_v24 }
0x1d23   :  { %8054 = vmatprep.subr.bf16.mxu1 %v8586_v41 }
0x1d24   :  { %v4380_v6 = vpack.c.bf16 %v4376_v15, %v4375_v13 }
0x1d26   :  { %8047 = vmatmul.mubr.msk.bf16.gmra.mrb[92].mxu0 %vm190_vm0, %v4380_v6  ;;  %8055 = vmatpush3.bf16.msra.mxu1 %v8586_v41 }
0x1d27   :  { %5006 = vmatprep.mubr.bf16.mxu0 %v12343_v26  ;;  %8056 = vmatprep.subr.bf16.mxu1 %v8587_v60 }
0x1d2a   :  { %8057 = vmatpush3.bf16.msra.mxu1 %v8587_v60 }
0x1d2b   :  { %8058 = vmatprep.subr.bf16.mxu1 %v8588_v2 }
0x1d2e   :  { %8059 = vmatpush3.bf16.msra.mxu1 %v8588_v2 }
0x1d2f   :  { %8060 = vmatprep.subr.bf16.mxu1 %v8589_v37 }
0x1d32   :  { %8061 = vmatpush3.bf16.msra.mxu1 %v8589_v37 }
0x1d33   :  { %8062 = vmatprep.subr.bf16.mxu1 %v8590_v29 }
0x1d36   :  { %8063 = vmatpush3.bf16.msra.mxu1 %v8590_v29 }
0x1d37   :  { %8064 = vmatprep.subr.bf16.mxu1 %v8591_v38 }
0x1d3a   :  { %8065 = vmatpush3.bf16.msra.mxu1 %v8591_v38 }
0x1dee   :  { %v8044_v54 = vpop.f32.mrb[88].mxu0 }
0x1def   :  { %v11299_v52 = vadd.f32 %v8044_v54, %v4393_v47  ;;  %v4464_v5 = vpop.f32.mrb[89].mxu0 }
0x1df0   :  { %v11301_v36 = vadd.f32 %v4464_v5, %v4393_v47  ;;  %v8045_v57 = vpop.f32.mrb[90].mxu0 }
0x1df1   :  { %v4497_v40 = vmul.f32 %v11299_v52, %v11299_v52  ;;  %v11305_v34 = vadd.f32 %v8045_v57, %v4393_v47  ;;  %v4467_v63 = vpop.f32.mrb[91].mxu0 }
0x1df2   :  { %v4495_v44 = vmul.f32 %v11301_v36, %v11301_v36  ;;  %v11309_v39 = vadd.f32 %v4467_v63, %v4393_v47 }
0x1df3   :  { %v4505_v7 = vmul.f32 %v4497_v40, %v11299_v52  ;;  %v4498_v10 = vmul.f32 %v11305_v34, %v11305_v34 }
0x1df4   :  { %v4503_v58 = vmul.f32 %v4495_v44, %v11301_v36  ;;  %v4496_v48 = vmul.f32 %v11309_v39, %v11309_v39 }
0x1df5   :  { %v4513_v23 = vmul.f32 0.044715, %v4505_v7  ;;  %v4506_v31 = vmul.f32 %v4498_v10, %v11305_v34 }
0x1df6   :  { %v4511_v45 = vmul.f32 0.044715, %v4503_v58  ;;  %v4504_v43 = vmul.f32 %v4496_v48, %v11309_v39 }
0x1df7   :  { %v4521_v16 = vadd.f32 %v4513_v23, %v11299_v52  ;;  %v4514_v33 = vmul.f32 0.044715, %v4506_v31 }
0x1df8   :  { %v4519_v8 = vadd.f32 %v4511_v45, %v11301_v36  ;;  %v4512_v32 = vmul.f32 0.044715, %v4504_v43 }
0x1df9   :  { %v4529_v21 = vmul.f32 0.7978846, %v4521_v16  ;;  %v4522_v0 = vadd.f32 %v4514_v33, %v11305_v34  ;;  %v8048_v61 = vpop.f32.mrb[92].mxu0 }
0x1dfa   :  { %v4527_v28 = vmul.f32 0.7978846, %v4519_v8  ;;  %v4520_v25 = vadd.f32 %v4512_v32, %v11309_v39  ;;  %v11323_v27 = vadd.f32 %v8048_v61, %v4393_v47  ;;  %v4480_v53 = vpop.f32.mrb[93].mxu0 }
0x1dfb   :  { %8960 = vtanh.f32 %v4529_v21  ;;  %v4530_v35 = vmul.f32 0.7978846, %v4522_v0  ;;  %v11325_v1 = vadd.f32 %v4480_v53, %v4393_v47  ;;  %v8049_v4 = vpop.f32.mrb[94].mxu0 }
0x1dfc   :  { %8962 = vtanh.f32 %v4527_v28  ;;  %v4528_v46 = vmul.f32 0.7978846, %v4520_v25  ;;  %v4501_v50 = vmul.f32 %v11323_v27, %v11323_v27  ;;  %v4492_v9 = vadd.f32 %v8049_v4, %v4393_v47  ;;  %v4483_v62 = vpop.f32.mrb[95].mxu0 }
0x1dfd   :  { %8964 = vtanh.f32 %v4530_v35  ;;  %v4499_v59 = vmul.f32 %v11325_v1, %v11325_v1  ;;  %v4484_v30 = vadd.f32 %v4483_v62, %v4393_v47 }
0x1dfe   :  { %8966 = vtanh.f32 %v4528_v46  ;;  %v4509_v13 = vmul.f32 %v4501_v50, %v11323_v27  ;;  %v4502_v15 = vmul.f32 %v4492_v9, %v4492_v9 }
0x1dff   :  { %v4507_v6 = vmul.f32 %v4499_v59, %v11325_v1  ;;  %v4500_v3 = vmul.f32 %v4484_v30, %v4484_v30 }
0x1e00   :  { %v4517_v24 = vmul.f32 0.044715, %v4509_v13  ;;  %v4510_v41 = vmul.f32 %v4502_v15, %v4492_v9 }
0x1e01   :  { %v4515_v60 = vmul.f32 0.044715, %v4507_v6  ;;  %v4508_v2 = vmul.f32 %v4500_v3, %v4484_v30 }
0x1e02   :  { %v4525_v37 = vadd.f32 %v4517_v24, %v11323_v27  ;;  %v4518_v29 = vmul.f32 0.044715, %v4510_v41 }
0x1e03   :  { %v4523_v38 = vadd.f32 %v4515_v60, %v11325_v1  ;;  %v4516_v54 = vmul.f32 0.044715, %v4508_v2 }
0x1e04   :  { %v4533_v5 = vmul.f32 0.7978846, %v4525_v37  ;;  %v4526_v57 = vadd.f32 %v4518_v29, %v4492_v9  ;;  %v12345_v37 = vld [vmem:[#allocation4_spill] sm:$0xff] }
0x1e05   :  { %v8961_v47 = vpop.eup %8960  ;;  %v4531_v40 = vmul.f32 0.7978846, %v4523_v38  ;;  %v4524_v63 = vadd.f32 %v4516_v54, %v4484_v30  ;;  %v4591_v29 = vrot.slane %v11128_v49, %v12345_v37  ;;  %v4730_v38 = vpop.permute.xlu1 %4729 }
0x1e06   :  { %v8963_v44 = vpop.eup %8962  ;;  %v4545_v7 = vadd.f32 1.0, %v8961_v47  ;;  %8968 = vtanh.f32 %v4533_v5  ;;  %v4534_v10 = vmul.f32 0.7978846, %v4526_v57  ;;  %v4725_v5 = vpop.permute.xlu0 %4724 }
0x1e07   :  { %v8965_v58 = vpop.eup %8964  ;;  %8970 = vtanh.f32 %v4531_v40  ;;  %v4532_v48 = vmul.f32 0.7978846, %v4524_v63  ;;  %v4543_v23 = vadd.f32 1.0, %v8963_v44 }
0x1e08   :  { %v8967_v31 = vpop.eup %8966  ;;  %v4553_v45 = vmul.f32 0.5, %v4545_v7  ;;  %v4546_v43 = vadd.f32 1.0, %v8965_v58  ;;  %8972 = vtanh.f32 %v4534_v10 }
0x1e09   :  { %8974 = vtanh.f32 %v4532_v48  ;;  %v4544_v16 = vadd.f32 1.0, %v8967_v31  ;;  %v4551_v33 = vmul.f32 0.5, %v4543_v23  ;;  %v4735_v7 = vpop.permute.xlu1 %4734 }
0x1e0a   :  { %v4554_v8 = vmul.f32 0.5, %v4546_v43  ;;  %v4561_v21 = vmul.f32 %v4553_v45, %v11299_v52  ;;  %v4740_v48 = vpop.permute.xlu0 %4739 }
0x1e0b   :  { %v4552_v32 = vmul.f32 0.5, %v4544_v16  ;;  %v4559_v61 = vmul.f32 %v4551_v33, %v11301_v36 }
0x1e0c   :  { %v4562_v0 = vmul.f32 %v4554_v8, %v11305_v34 }
0x1e0d   :  { %v4560_v28 = vmul.f32 %v4552_v32, %v11309_v39  ;;  %v4745_v43 = vpop.permute.xlu1 %4744 }
0x1e0e   :  { %v4568_v25 = vpack.c.bf16 %v4562_v0, %v4561_v21  ;;  %v4750_v21 = vpop.permute.xlu0 %4749 }
0x1e0f   :  { %v4567_v53 = vpack.c.bf16 %v4560_v28, %v4559_v61 }
0x1e10   :  { %v8969_v35 = vpop.eup %8968 }
0x1e11   :  { %v8971_v4 = vpop.eup %8970  ;;  %8066 = vmatprep.mubr.bf16.mxu1 %v4567_v53  ;;  %v4549_v46 = vadd.f32 1.0, %v8969_v35 }
0x1e12   :  { %v8973_v50 = vpop.eup %8972  ;;  %8067 = vmatmul.mubr.bf16.vlgmr.msra.gmra.mrb[120].mxu1 %v4568_v25  ;;  %v4547_v62 = vadd.f32 1.0, %v8971_v4 }
0x1e13   :  { %v8975_v59 = vpop.eup %8974  ;;  %v4550_v13 = vadd.f32 1.0, %v8973_v50  ;;  %v4557_v15 = vmul.f32 0.5, %v4549_v46 }
0x1e14   :  { %v4548_v6 = vadd.f32 1.0, %v8975_v59  ;;  %v4555_v52 = vmul.f32 0.5, %v4547_v62  ;;  %v4755_v62 = vpop.permute.xlu1 %4754 }
0x1e15   :  { %v4558_v3 = vmul.f32 0.5, %v4550_v13  ;;  %v4565_v36 = vmul.f32 %v4557_v15, %v11323_v27 }
0x1e16   :  { %v4556_v34 = vmul.f32 0.5, %v4548_v6  ;;  %v4563_v39 = vmul.f32 %v4555_v52, %v11325_v1  ;;  %v4760_v6 = vpop.permute.xlu0 %4759 }
0x1e17   :  { %v4566_v24 = vmul.f32 %v4558_v3, %v4492_v9 }
0x1e18   :  { %v4564_v41 = vmul.f32 %v4556_v34, %v4484_v30 }
0x1e19   :  { %v4570_v60 = vpack.c.bf16 %v4566_v24, %v4565_v36 }
0x1e1a   :  { %v4569_v2 = vpack.c.bf16 %v4564_v41, %v4563_v39 }
0x1e1c   :  { %8070 = vmatprep.mubr.bf16.mxu1 %v4569_v2 }
0x1e1d   :  { %8071 = vmatmul.mubr.bf16.gmra.mrb[124].mxu1 %v4570_v60 }
0x1ee5   :  { %v8068_v54 = vpop.f32.mrb[120].mxu1 }
0x1ee6   :  { %v4674_v57 = vpop.f32.mrb[121].mxu1  ;;  %v4683_v47 = vadd.f32 %v8068_v54, %v4591_v29 }
0x1ee7   :  { %v4675_v40 = vadd.f32 %v4674_v57, %v4591_v29  ;;  %v8069_v63 = vpop.f32.mrb[122].mxu1 }
0x1ee8   :  { %v4686_v44 = vadd.f32 %v8069_v63, %v4591_v29  ;;  %v4677_v27 = vpop.f32.mrb[123].mxu1  ;;  %v4707_v10 = vadd.f32 %v4683_v47, %v11144_v18 }
0x1ee9   :  { %v4705_v9 = vadd.f32 %v4675_v40, %v11133_v11  ;;  %v4678_v1 = vadd.f32 %v4677_v27, %v4591_v29 }
0x1eea   :  { %v4708_v30 = vadd.f32 %v4686_v44, %v11136_v20  ;;  %v11355_v11 = vmul.f32 %v4735_v7, %v4707_v10 }
0x1eeb   :  { %v11346_v58 = vmul.f32 %v4725_v5, %v4705_v9  ;;  %v4706_v49 = vadd.f32 %v4678_v1, %v11139_v42 }
0x1eec   :  { %v11349_v23 = vmul.f32 %v4740_v48, %v4708_v30  ;;  %v4779_v28 = vsel %vm190_vm0, %v11355_v11, 0.0 }
0x1eed   :  { %v11351_v31 = vmul.f32 %v4730_v38, %v4706_v49  ;;  %v4773_v45 = vsel %vm190_vm0, %v11346_v58, 0.0 }
0x1eee   :  { %4774 = vadd.xlane.f32.xlu1 %v4773_v45  ;;  %v4782_v42 = vsel %vm190_vm0, %v11349_v23, 0.0 }
0x1eef   :  { %v4776_v20 = vsel %vm190_vm0, %v11351_v31, 0.0 }
0x1ef0   :  { %4777 = vadd.xlane.f32.xlu0 %v4776_v20  ;;  %v8072_v18 = vpop.f32.mrb[124].mxu1 }
0x1ef1   :  { %v4699_v16 = vadd.f32 %v8072_v18, %v4591_v29  ;;  %v4690_v33 = vpop.f32.mrb[125].mxu1 }
0x1ef2   :  { %4783 = vadd.xlane.f32.xlu1 %v4782_v42  ;;  %v4691_v8 = vadd.f32 %v4690_v33, %v4591_v29  ;;  %v8073_v32 = vpop.f32.mrb[126].mxu1 }
0x1ef3   :  { %v4702_v0 = vadd.f32 %v8073_v32, %v4591_v29  ;;  %v4693_v61 = vpop.f32.mrb[127].mxu1  ;;  %v4711_v25 = vadd.f32 %v4699_v16, %v11156_v17 }
0x1ef4   :  { %v4709_v53 = vadd.f32 %v4691_v8, %v11153_v12  ;;  %v4694_v35 = vadd.f32 %v4693_v61, %v4591_v29  ;;  %4780 = vadd.xlane.f32.xlu0 %v4779_v28 }
0x1ef5   :  { %v4712_v46 = vadd.f32 %v4702_v0, %v11164_v22  ;;  %v11369_v59 = vmul.f32 %v4755_v62, %v4711_v25  ;;  %v8600_v62 = vld [vmem:[%s12278_s4 + $0xa4] ss:$8 sps:$4 sm:$0xff]  }
0x1ef6   :  { %v11365_v4 = vmul.f32 %v4745_v43, %v4709_v53  ;;  %v4710_v50 = vadd.f32 %v4694_v35, %v11159_v51  ;;  %v8594_v53 = vld [vmem:[%s12278_s4 + $0x84] ss:$8 sps:$4 sm:$0xff]   ;;  %v8592_v35 = vld [vmem:[%s12278_s4 + $0x80] ss:$8 sps:$4 sm:$0xff]  }
0x1ef7   :  { %v11375_v17 = vmul.f32 %v4760_v6, %v4712_v46  ;;  %v4791_v22 = vsel %vm190_vm0, %v11369_v59, 0.0  ;;  %4974 = vmatprep.subr.bf16.mxu0 %v8594_v53  ;;  %v8597_v46 = vld [vmem:[%s12278_s4 + $0x94] ss:$8 sps:$4 sm:$0xff]  }
0x1ef8   :  { %v11371_v13 = vmul.f32 %v4750_v21, %v4710_v50  ;;  %v4785_v15 = vsel %vm190_vm0, %v11365_v4, 0.0  ;;  %4975 = vmatpush1.bf16.msra.mxu0 %v8592_v35  ;;  %v8595_v50 = vld [vmem:[%s12278_s4 + $0x90] ss:$8 sps:$4 sm:$0xff]   ;;  %v8603_v6 = vld [vmem:[%s12278_s4 + $0xb4] ss:$8 sps:$4 sm:$0xff]  }
0x1ef9   :  { %4786 = vadd.xlane.f32.xlu0 %v4785_v15  ;;  %v4794_v51 = vsel %vm190_vm0, %v11375_v17, 0.0  ;;  %4976 = vmatprep.subr.bf16.mxu0 %v8597_v46  ;;  %v8598_v15 = vld [vmem:[%s12278_s4 + $0xa0] ss:$8 sps:$4 sm:$0xff]  }
0x1efa   :  { %v4788_v12 = vsel %vm190_vm0, %v11371_v13, 0.0 }
0x1efb   :  { %4789 = vadd.xlane.f32.xlu1 %v4788_v12  ;;  %v8601_v12 = vld [vmem:[%s12278_s4 + $0xb0] ss:$8 sps:$4 sm:$0xff]  }
0x1efc   :  { %4977 = vmatpush1.bf16.msra.mxu0 %v8595_v50 }
0x1efd   :  { %4792 = vadd.xlane.f32.xlu0 %v4791_v22  ;;  %4978 = vmatprep.subr.bf16.mxu0 %v8600_v62 }
0x1eff   :  { %4795 = vadd.xlane.f32.xlu1 %v4794_v51 }
0x1f00   :  { %4979 = vmatpush1.bf16.msra.mxu0 %v8598_v15 }
0x1f01   :  { %4980 = vmatprep.subr.bf16.mxu0 %v8603_v6 }
0x1f04   :  { %4981 = vmatpush1.bf16.msra.mxu0 %v8601_v12 }
0x1f7b   :  { %v4775_v52 = vpop.xlane.xlu1 %4774 }
0x1f7c   :  { %v4797_v3 = vmul.f32 0.015625, %v4775_v52 }
0x1f7d   :  { %v4778_v34 = vpop.xlane.xlu0 %4777 }
0x1f7e   :  { %v11384_v36 = vsub.f32 %v11346_v58, %v4797_v3  ;;  %v4798_v24 = vmul.f32 0.015625, %v4778_v34 }
0x1f7f   :  { %v4784_v39 = vpop.xlane.xlu1 %4783 }
0x1f80   :  { %v11387_v41 = vsub.f32 %v11351_v31, %v4798_v24  ;;  %v4800_v60 = vmul.f32 0.015625, %v4784_v39  ;;  %v4813_v2 = vmul.f32 %v11384_v36, %v11384_v36 }
0x1f81   :  { %v4781_v29 = vpop.xlane.xlu0 %4780 }
0x1f82   :  { %v11392_v38 = vsub.f32 %v11349_v23, %v4800_v60  ;;  %v4799_v54 = vmul.f32 0.015625, %v4781_v29  ;;  %v4821_v5 = vsel %vm190_vm0, %v4813_v2, 0.0  ;;  %v4814_v57 = vmul.f32 %v11387_v41, %v11387_v41 }
0x1f83   :  { %4822 = vadd.xlane.f32.xlu0 %v4821_v5 }
0x1f84   :  { %v11398_v47 = vsub.f32 %v11355_v11, %v4799_v54  ;;  %v4824_v40 = vsel %vm190_vm0, %v4814_v57, 0.0  ;;  %v4816_v63 = vmul.f32 %v11392_v38, %v11392_v38  ;;  %v11458_v57 = vld [vmem:[%s12279_s8 + $0x20] sm:$0xff] }
0x1f85   :  { %4825 = vadd.xlane.f32.xlu1 %v4824_v40 }
0x1f86   :  { %v4787_v44 = vpop.xlane.xlu0 %4786  ;;  %v4815_v27 = vmul.f32 %v11398_v47, %v11398_v47  ;;  %v4830_v30 = vsel %vm190_vm0, %v4816_v63, 0.0 }
0x1f87   :  { %v4801_v9 = vmul.f32 0.015625, %v4787_v44 }
0x1f88   :  { %v4827_v1 = vsel %vm190_vm0, %v4815_v27, 0.0  ;;  %v4790_v7 = vpop.xlane.xlu1 %4789  ;;  %v12346_v27 = vld [vmem:[#allocation10_spill] sm:$0xff] }
0x1f89   :  { %v11408_v10 = vsub.f32 %v11365_v4, %v4801_v9  ;;  %4828 = vadd.xlane.f32.xlu0 %v4827_v1  ;;  %4831 = vadd.xlane.f32.xlu1 %v4830_v30  ;;  %v4802_v49 = vmul.f32 0.015625, %v4790_v7  ;;  %v4880_v9 = vrot.slane %v11458_v57, %v12346_v27 }
0x1f8a   :  { %v4793_v48 = vpop.xlane.xlu0 %4792 }
0x1f8b   :  { %v11411_v45 = vsub.f32 %v11371_v13, %v4802_v49  ;;  %v4803_v20 = vmul.f32 0.015625, %v4793_v48  ;;  %v4817_v18 = vmul.f32 %v11408_v10, %v11408_v10 }
0x1f8c   :  { %v4796_v43 = vpop.xlane.xlu1 %4795 }
0x1f8d   :  { %v11416_v16 = vsub.f32 %v11369_v59, %v4803_v20  ;;  %v4804_v42 = vmul.f32 0.015625, %v4796_v43  ;;  %v4833_v33 = vsel %vm190_vm0, %v4817_v18, 0.0  ;;  %v4818_v8 = vmul.f32 %v11411_v45, %v11411_v45 }
0x1f8e   :  { %4834 = vadd.xlane.f32.xlu0 %v4833_v33  ;;  %v12347_v33 = vld [vmem:[#allocation11_spill] sm:$0xff] }
0x1f8f   :  { %v11422_v32 = vsub.f32 %v11375_v17, %v4804_v42  ;;  %v4836_v21 = vsel %vm190_vm0, %v4818_v8, 0.0  ;;  %v4819_v0 = vmul.f32 %v11416_v16, %v11416_v16  ;;  %v4892_v8 = vrot.slane %v11458_v57, %v12347_v33 }
0x1f90   :  { %4837 = vadd.xlane.f32.xlu1 %v4836_v21 }
0x1f91   :  { %v4839_v61 = vsel %vm190_vm0, %v4819_v0, 0.0  ;;  %v4820_v28 = vmul.f32 %v11422_v32, %v11422_v32 }
0x1f92   :  { %4840 = vadd.xlane.f32.xlu0 %v4839_v61 }
0x1f93   :  { %v4842_v25 = vsel %vm190_vm0, %v4820_v28, 0.0 }
0x1f94   :  { %4843 = vadd.xlane.f32.xlu1 %v4842_v25 }
0x2010   :  { %v4823_v22 = vpop.xlane.xlu0 %4822 }
0x2011   :  { %v4845_v51 = vmul.f32 0.015625, %v4823_v22 }
0x2012   :  { %v4826_v52 = vpop.xlane.xlu1 %4825 }
0x2013   :  { %v4853_v3 = vadd.f32 1e-06, %v4845_v51  ;;  %v4846_v34 = vmul.f32 0.015625, %v4826_v52 }
0x2015   :  { %8976 = vrsqrt.f32 %v4853_v3  ;;  %v4854_v24 = vadd.f32 1e-06, %v4846_v34 }
0x2016   :  { %v4829_v39 = vpop.xlane.xlu0 %4828  ;;  %v4832_v60 = vpop.xlane.xlu1 %4831 }
0x2017   :  { %8978 = vrsqrt.f32 %v4854_v24  ;;  %v4847_v2 = vmul.f32 0.015625, %v4829_v39  ;;  %v4848_v29 = vmul.f32 0.015625, %v4832_v60 }
0x2019   :  { %v4855_v54 = vadd.f32 1e-06, %v4847_v2  ;;  %v4856_v5 = vadd.f32 1e-06, %v4848_v29 }
0x201b   :  { %8980 = vrsqrt.f32 %v4855_v54  ;;  %v4835_v40 = vpop.xlane.xlu0 %4834 }
0x201c   :  { %8982 = vrsqrt.f32 %v4856_v5  ;;  %v4849_v63 = vmul.f32 0.015625, %v4835_v40 }
0x201d   :  { %v4838_v44 = vpop.xlane.xlu1 %4837 }
0x201e   :  { %v4857_v1 = vadd.f32 1e-06, %v4849_v63  ;;  %v4850_v30 = vmul.f32 0.015625, %v4838_v44 }
0x201f   :  { %v8977_v7 = vpop.eup %8976  ;;  %v4841_v49 = vpop.xlane.xlu0 %4840 }
0x2020   :  { %v4869_v48 = vmul.f32 %v8977_v7, %v11384_v36  ;;  %v4858_v20 = vadd.f32 1e-06, %v4850_v30  ;;  %8984 = vrsqrt.f32 %v4857_v1  ;;  %v4851_v43 = vmul.f32 0.015625, %v4841_v49  ;;  %v7304_v30 = vld [vmem:[%s12279_s8 + $0x28] sm:$0xff] }
0x2021   :  { %v8979_v18 = vpop.eup %8978  ;;  %v4844_v42 = vpop.xlane.xlu1 %4843 }
0x2022   :  { %v4881_v21 = vmul.f32 %v4880_v9, %v4869_v48  ;;  %v4870_v0 = vmul.f32 %v8979_v18, %v11387_v41  ;;  %8986 = vrsqrt.f32 %v4858_v20  ;;  %v4852_v61 = vmul.f32 0.015625, %v4844_v42 }
0x2023   :  { %v4859_v53 = vadd.f32 1e-06, %v4851_v43 }
0x2024   :  { %v4882_v28 = vmul.f32 %v4880_v9, %v4870_v0  ;;  %v4860_v35 = vadd.f32 1e-06, %v4852_v61  ;;  %v4893_v50 = vadd.f32 %v4892_v8, %v4881_v21 }
0x2025   :  { %v8981_v25 = vpop.eup %8980 }
0x2026   :  { %v8983_v46 = vpop.eup %8982  ;;  %v4894_v36 = vadd.f32 %v4892_v8, %v4882_v28  ;;  %v4871_v62 = vmul.f32 %v8981_v25, %v11398_v47  ;;  %8988 = vrsqrt.f32 %v4860_v35 }
0x2027   :  { %v4872_v15 = vmul.f32 %v8983_v46, %v11392_v38  ;;  %8990 = vrsqrt.f32 %v4859_v53 }
0x2028   :  { %v4901_v6 = vpack.c.bf16 %v4894_v36, %v4893_v50  ;;  %v4883_v12 = vmul.f32 %v4880_v9, %v4871_v62 }
0x2029   :  { %v4884_v22 = vmul.f32 %v4880_v9, %v4872_v15 }
0x202a   :  { %7321 = vmatmul.mubr.msk.bf16.vlgmr.msra.gmra.mrb[96].mxu0 %vm190_vm0, %v4901_v6  ;;  %v8985_v41 = vpop.eup %8984  ;;  %v4895_v52 = vadd.f32 %v4892_v8, %v4883_v12 }
0x202b   :  { %5016 = vmatprep.mubr.bf16.mxu0 %v12343_v26  ;;  %v4896_v3 = vadd.f32 %v4892_v8, %v4884_v22  ;;  %v4873_v24 = vmul.f32 %v8985_v41, %v11408_v10 }
0x202c   :  { %v8987_v51 = vpop.eup %8986 }
0x202d   :  { %v4874_v34 = vmul.f32 %v8987_v51, %v11411_v45  ;;  %v4902_v47 = vpack.c.bf16 %v4896_v3, %v4895_v52  ;;  %v4885_v38 = vmul.f32 %v4880_v9, %v4873_v24 }
0x202f   :  { %v4886_v39 = vmul.f32 %v4880_v9, %v4874_v34  ;;  %v4897_v5 = vadd.f32 %v4892_v8, %v4885_v38 }
0x2030   :  { %v8989_v60 = vpop.eup %8988 }
0x2031   :  { %v8991_v2 = vpop.eup %8990  ;;  %v4898_v29 = vadd.f32 %v4892_v8, %v4886_v39  ;;  %v4876_v54 = vmul.f32 %v8989_v60, %v11422_v32  ;;  %v12348_v32 = vld [vmem:[#allocation12_spill] sm:$0xff] }
0x2032   :  { %7322 = vmatmul.mubr.msk.bf16.gmra.mrb[100].mxu0 %vm190_vm0, %v4902_v47  ;;  %v4875_v40 = vmul.f32 %v8991_v2, %v11416_v16  ;;  %v4917_v7 = vrot.slane %v11458_v57, %v12348_v32  ;;  %v4921_v49 = vrot.slane %v7304_v30, %v12348_v32 }
0x2033   :  { %5026 = vmatprep.mubr.bf16.mxu0 %v12343_v26  ;;  %v4903_v63 = vpack.c.bf16 %v4898_v29, %v4897_v5  ;;  %v4888_v44 = vmul.f32 %v4880_v9, %v4876_v54 }
0x2034   :  { %v4887_v10 = vmul.f32 %v4880_v9, %v4875_v40 }
0x2035   :  { %v4900_v45 = vadd.f32 %v4892_v8, %v4888_v44 }
0x2036   :  { %v4899_v27 = vadd.f32 %v4892_v8, %v4887_v10 }
0x2038   :  { %v4904_v1 = vpack.c.bf16 %v4900_v45, %v4899_v27 }
0x203a   :  { %7323 = vmatmul.mubr.msk.bf16.gmra.mrb[104].mxu0 %vm190_vm0, %v4903_v63 }
0x203b   :  { %5036 = vmatprep.mubr.bf16.mxu0 %v12343_v26 }
0x2042   :  { %7324 = vmatmul.mubr.msk.bf16.gmra.mrb[108].mxu0 %vm190_vm0, %v4904_v1 }
0x20fd   :  { %v5008_v16 = vpop.f32.mrb[96].mxu0 }
0x20fe   :  { %v5010_v48 = vpop.f32.mrb[97].mxu0  ;;  %v5009_v9 = vadd.f32 %v5008_v16, %v4917_v7 }
0x20ff   :  { %v5012_v20 = vpop.f32.mrb[98].mxu0  ;;  %v5011_v43 = vadd.f32 %v5010_v48, %v4921_v49 }
0x2100   :  { %v5013_v18 = vadd.f32 %v5012_v20, %v4917_v7  ;;  %v5014_v26 = vpop.f32.mrb[99].mxu0 }
0x2101   :  { %v5015_v42 = vadd.f32 %v5014_v26, %v4921_v49 }
0x2102   :  { %v11485_v33 = vpack.c.bf16 %v5013_v18, %v5009_v9  ;;  %v11536_v18 = vld [vmem:[%s12280_s3] sm:$0xff] }
0x2103   :  { %v11487_v8 = vpack.c.bf16 %v5015_v42, %v5011_v43  ;;  %v11542_v42 = vld [vmem:[%s12280_s3 + $0x18] sm:$0xff] }
0x2104   :  { %5059 = vrot.lane.b32.xlu0 %v11485_v33, %s9190_s2  ;;  %8082 = vmatprep.mubr.msk.bf16.mxu0 %vm572_vm1, %v11485_v33 }
0x2105   :  { %v5018_v57 = vpop.f32.mrb[100].mxu0  ;;  %8090 = vmatprep.subr.bf16.mxu1 %v11487_v8 }
0x2106   :  { %v5020_v21 = vpop.f32.mrb[101].mxu0  ;;  %8091 = vmatpush3.bf16.msra.mxu1 %v11487_v8  ;;  %v5019_v61 = vadd.f32 %v5018_v57, %v4917_v7 }
0x2107   :  { %v5022_v0 = vpop.f32.mrb[102].mxu0  ;;  %v5021_v53 = vadd.f32 %v5020_v21, %v4921_v49  ;;  %v11548_v21 = vld [vmem:[%s12280_s3 + $0x8] sm:$0xff] }
0x2108   :  { %v5023_v28 = vadd.f32 %v5022_v0, %v4917_v7  ;;  %v5024_v25 = vpop.f32.mrb[103].mxu0 }
0x2109   :  { %v5025_v35 = vadd.f32 %v5024_v25, %v4921_v49 }
0x210a   :  { %v11495_v46 = vpack.c.bf16 %v5023_v28, %v5019_v61  ;;  %v11555_v28 = vld [vmem:[%s12280_s3 + $0x10] sm:$0xff] }
0x210b   :  { %v11497_v50 = vpack.c.bf16 %v5025_v35, %v5021_v53 }
0x210c   :  { %5061 = vrot.lane.b32.xlu1 %v11495_v46, %s9190_s2 }
0x210d   :  { %v5028_v36 = vpop.f32.mrb[104].mxu0  ;;  %8092 = vmatprep.subr.bf16.mxu1 %v11497_v50 }
0x210e   :  { %v5030_v62 = vpop.f32.mrb[105].mxu0  ;;  %8093 = vmatpush3.bf16.msra.mxu1 %v11497_v50  ;;  %v5029_v6 = vadd.f32 %v5028_v36, %v4917_v7 }
0x210f   :  { %v5032_v15 = vpop.f32.mrb[106].mxu0  ;;  %v5031_v41 = vadd.f32 %v5030_v62, %v4921_v49 }
0x2110   :  { %v5033_v12 = vadd.f32 %v5032_v15, %v4917_v7  ;;  %v5034_v22 = vpop.f32.mrb[107].mxu0 }
0x2111   :  { %v5035_v51 = vadd.f32 %v5034_v22, %v4921_v49 }
0x2112   :  { %v11503_v52 = vpack.c.bf16 %v5033_v12, %v5029_v6 }
0x2113   :  { %v11505_v3 = vpack.c.bf16 %v5035_v51, %v5031_v41  ;;  %v11564_v51 = vld [vmem:[%s12280_s3 + $0x20] sm:$0xff] }
0x2114   :  { %5063 = vrot.lane.b32.xlu1 %v11503_v52, %s9190_s2 }
0x2115   :  { %v5038_v34 = vpop.f32.mrb[108].mxu0  ;;  %8094 = vmatprep.subr.bf16.mxu1 %v11505_v3 }
0x2116   :  { %v5040_v24 = vpop.f32.mrb[109].mxu0  ;;  %8095 = vmatpush3.bf16.msra.mxu1 %v11505_v3  ;;  %v5039_v39 = vadd.f32 %v5038_v34, %v4917_v7 }
0x2117   :  { %v5042_v47 = vpop.f32.mrb[110].mxu0  ;;  %v5041_v2 = vadd.f32 %v5040_v24, %v4921_v49 }
0x2118   :  { %v5043_v60 = vadd.f32 %v5042_v47, %v4917_v7  ;;  %v5044_v38 = vpop.f32.mrb[111].mxu0 }
0x2119   :  { %v5045_v29 = vadd.f32 %v5044_v38, %v4921_v49  ;;  %v11576_v38 = vld [vmem:[%s12280_s3 + $0x30] sm:$0xff] }
0x211a   :  { %v11511_v54 = vpack.c.bf16 %v5043_v60, %v5039_v39  ;;  %v11570_v39 = vld [vmem:[%s12280_s3 + $0x28] sm:$0xff] }
0x211b   :  { %v11513_v5 = vpack.c.bf16 %v5045_v29, %v5041_v2  ;;  %v11582_v29 = vld [vmem:[%s12280_s3 + $0x38] sm:$0xff] }
0x211c   :  { %5065 = vrot.lane.b32.xlu0 %v11511_v54, %s9190_s2 }
0x211d   :  { %8096 = vmatprep.subr.bf16.mxu1 %v11513_v5 }
0x211e   :  { %8097 = vmatpush3.bf16.msra.mxu1 %v11513_v5 }
0x2176   :  { %v5060_v40 = vpop.permute.xlu0 %5059 }
0x2177   :  { %8306 = vmatprep.subr.msk.bf16.mxu0 %vm572_vm1, %v5060_v40  ;;  %v5080_v63 = vsel %vm572_vm1, %v5060_v40, 0 }
0x2178   :  { %8075 = vmatpush3.bf16.xpose.msra.mxu0 %v5080_v63 }
0x217e   :  { %v5062_v44 = vpop.permute.xlu1 %5061 }
0x217f   :  { %8307 = vmatprep.subr.msk.bf16.mxu0 %vm572_vm1, %v5062_v44  ;;  %v5083_v10 = vsel %vm572_vm1, %v5062_v44, 0 }
0x2180   :  { %8077 = vmatpush3.bf16.xpose.msra.mxu0 %v5083_v10 }
0x2186   :  { %v5064_v45 = vpop.permute.xlu1 %5063 }
0x2187   :  { %8308 = vmatprep.subr.msk.bf16.mxu0 %vm572_vm1, %v5064_v45  ;;  %v5086_v27 = vsel %vm572_vm1, %v5064_v45, 0 }
0x2188   :  { %8079 = vmatpush3.bf16.xpose.msra.mxu0 %v5086_v27 }
0x218e   :  { %v5066_v1 = vpop.permute.xlu0 %5065 }
0x218f   :  { %8309 = vmatprep.subr.msk.bf16.mxu0 %vm572_vm1, %v5066_v1  ;;  %v5089_v30 = vsel %vm572_vm1, %v5066_v1, 0 }
0x2190   :  { %8081 = vmatpush3.bf16.xpose.msra.mxu0 %v5089_v30 }
0x2197   :  { %8083 = vmatmul.mubr.msk.bf16.vlgmr.msra.gmra.mrb[112].mxu0 %vm572_vm1, %v11495_v46 }
0x2198   :  { %8086 = vmatprep.mubr.msk.bf16.mxu0 %vm572_vm1, %v11503_v52 }
0x219f   :  { %8087 = vmatmul.mubr.msk.bf16.gmra.mrb[116].mxu0 %vm572_vm1, %v11511_v54 }
0x226a   :  { %v8084_v32 = vpop.f32.mrb[112].mxu0 }
0x226b   :  { %v5125_v7 = vpop.f32.mrb[113].mxu0  ;;  %v5158_v48 = vmul.f32 0.25, %v8084_v32 }
0x226c   :  { %v5156_v16 = vmul.f32 0.25, %v5125_v7  ;;  %v8085_v49 = vpop.f32.mrb[114].mxu0 }
0x226d   :  { %v5159_v20 = vmul.f32 0.25, %v8085_v49  ;;  %v5128_v9 = vpop.f32.mrb[115].mxu0  ;;  %v5166_v25 = vadd.f32 %v11555_v28, %v5158_v48 }
0x226e   :  { %v5164_v26 = vadd.f32 %v11536_v18, %v5156_v16  ;;  %v5157_v43 = vmul.f32 0.25, %v5128_v9 }
0x226f   :  { %v5167_v57 = vadd.f32 %v11542_v42, %v5159_v20  ;;  %v5178_v22 = vsel %vm190_vm0, %v5166_v25, -inf }
0x2270   :  { %v5165_v0 = vadd.f32 %v11548_v21, %v5157_v43  ;;  %v5172_v61 = vsel %vm190_vm0, %v5164_v26, -inf }
0x2271   :  { %5173 = vmax.xlane.f32.xlu1 %v5172_v61  ;;  %v5181_v6 = vsel %vm190_vm0, %v5167_v57, -inf }
0x2272   :  { %v8088_v53 = vpop.f32.mrb[116].mxu0  ;;  %v5175_v35 = vsel %vm190_vm0, %v5165_v0, -inf }
0x2273   :  { %5176 = vmax.xlane.f32.xlu0 %v5175_v35  ;;  %v5141_v36 = vpop.f32.mrb[117].mxu0  ;;  %v5162_v41 = vmul.f32 0.25, %v8088_v53 }
0x2274   :  { %v5160_v62 = vmul.f32 0.25, %v5141_v36  ;;  %v8089_v15 = vpop.f32.mrb[118].mxu0 }
0x2275   :  { %5182 = vmax.xlane.f32.xlu1 %v5181_v6  ;;  %v5144_v12 = vpop.f32.mrb[119].mxu0  ;;  %v5163_v24 = vmul.f32 0.25, %v8089_v15  ;;  %v5170_v2 = vadd.f32 %v11576_v38, %v5162_v41 }
0x2276   :  { %v5168_v34 = vadd.f32 %v11564_v51, %v5160_v62  ;;  %v5161_v47 = vmul.f32 0.25, %v5144_v12 }
0x2277   :  { %5179 = vmax.xlane.f32.xlu0 %v5178_v22  ;;  %v5171_v40 = vadd.f32 %v11582_v29, %v5163_v24  ;;  %v5190_v10 = vsel %vm190_vm0, %v5170_v2, -inf }
0x2278   :  { %v5169_v60 = vadd.f32 %v11570_v39, %v5161_v47  ;;  %v5184_v63 = vsel %vm190_vm0, %v5168_v34, -inf }
0x2279   :  { %v5193_v45 = vsel %vm190_vm0, %v5171_v40, -inf }
0x227a   :  { %v5187_v44 = vsel %vm190_vm0, %v5169_v60, -inf }
0x227b   :  { %5185 = vmax.xlane.f32.xlu0 %v5184_v63  ;;  %5188 = vmax.xlane.f32.xlu1 %v5187_v44 }
0x227f   :  { %5191 = vmax.xlane.f32.xlu0 %v5190_v10  ;;  %5194 = vmax.xlane.f32.xlu1 %v5193_v45 }
0x22fe   :  { %v5174_v27 = vpop.xlane.xlu1 %5173 }
0x22ff   :  { %v5196_v7 = vsub.f32 %v5164_v26, %v5174_v27 }
0x2300   :  { %v5177_v1 = vpop.xlane.xlu0 %5176 }
0x2301   :  { %v5197_v30 = vsub.f32 %v5165_v0, %v5177_v1  ;;  %v5204_v43 = vmul.f32 1.442695, %v5196_v7 }
0x2302   :  { %v5183_v32 = vpop.xlane.xlu1 %5182 }
0x2303   :  { %v5199_v16 = vsub.f32 %v5167_v57, %v5183_v32  ;;  %v5206_v49 = vmul.f32 1.442695, %v5197_v30 }
0x2304   :  { %v5180_v48 = vpop.xlane.xlu0 %5179 }
0x2305   :  { %v5210_v20 = vmul.f32 1.442695, %v5199_v16  ;;  %v5198_v9 = vsub.f32 %v5166_v25, %v5180_v48 }
0x2307   :  { %8992 = vpow2.f32 %v5210_v20  ;;  %v5208_v61 = vmul.f32 1.442695, %v5198_v9 }
0x2308   :  { %8994 = vpow2.f32 %v5206_v49  ;;  %v5189_v15 = vpop.xlane.xlu1 %5188  ;;  %v5186_v6 = vpop.xlane.xlu0 %5185 }
0x2309   :  { %8996 = vpow2.f32 %v5208_v61  ;;  %v5201_v47 = vsub.f32 %v5169_v60, %v5189_v15  ;;  %v5200_v44 = vsub.f32 %v5168_v34, %v5186_v6 }
0x230a   :  { %8998 = vpow2.f32 %v5204_v43 }
0x230b   :  { %v5214_v45 = vmul.f32 1.442695, %v5201_v47  ;;  %v5212_v27 = vmul.f32 1.442695, %v5200_v44 }
0x230c   :  { %v5195_v12 = vpop.xlane.xlu1 %5194  ;;  %v5192_v22 = vpop.xlane.xlu0 %5191 }
0x230d   :  { %v5203_v41 = vsub.f32 %v5171_v40, %v5195_v12  ;;  %v5202_v24 = vsub.f32 %v5170_v2, %v5192_v22 }
0x230f   :  { %v5218_v63 = vmul.f32 1.442695, %v5203_v41  ;;  %v5216_v10 = vmul.f32 1.442695, %v5202_v24 }
0x2311   :  { %v11589_v53 = vpop.eup %8992  ;;  %9000 = vpow2.f32 %v5218_v63 }
0x2312   :  { %v11591_v35 = vpop.eup %8994  ;;  %v5229_v0 = vsel %vm190_vm0, %v11589_v53, 0.0  ;;  %9002 = vpow2.f32 %v5216_v10 }
0x2313   :  { %v8997_v36 = vpop.eup %8996  ;;  %5230 = vadd.xlane.f32.xlu1 %v5229_v0  ;;  %v5223_v25 = vsel %vm190_vm0, %v11591_v35, 0.0  ;;  %9004 = vpow2.f32 %v5214_v45 }
0x2314   :  { %v5226_v26 = vsel %vm190_vm0, %v8997_v36, 0.0  ;;  %v8999_v57 = vpop.eup %8998  ;;  %9006 = vpow2.f32 %v5212_v27 }
0x2315   :  { %5227 = vadd.xlane.f32.xlu0 %v5226_v26  ;;  %v5220_v62 = vsel %vm190_vm0, %v8999_v57, 0.0 }
0x2317   :  { %5224 = vadd.xlane.f32.xlu1 %v5223_v25 }
0x2319   :  { %5221 = vadd.xlane.f32.xlu0 %v5220_v62 }
0x231b   :  { %v11603_v1 = vpop.eup %9000 }
0x231c   :  { %v11605_v30 = vpop.eup %9002  ;;  %v5241_v32 = vsel %vm190_vm0, %v11603_v1, 0.0 }
0x231d   :  { %v11609_v7 = vpop.eup %9004  ;;  %v5238_v34 = vsel %vm190_vm0, %v11605_v30, 0.0 }
0x231e   :  { %v11613_v60 = vpop.eup %9006  ;;  %v5235_v2 = vsel %vm190_vm0, %v11609_v7, 0.0 }
0x231f   :  { %v5232_v40 = vsel %vm190_vm0, %v11613_v60, 0.0 }
0x2328   :  { %5351 = vrot.lane.b32.xlu1 %v11495_v46, %s9189_s19 }
0x232f   :  { %5349 = vrot.lane.b32.xlu0 %v11485_v33, %s9189_s19 }
0x234c   :  { %5242 = vadd.xlane.f32.xlu1 %v5241_v32 }
0x234e   :  { %5239 = vadd.xlane.f32.xlu0 %v5238_v34 }
0x2350   :  { %5236 = vadd.xlane.f32.xlu1 %v5235_v2 }
0x2352   :  { %5233 = vadd.xlane.f32.xlu0 %v5232_v40 }
0x2361   :  { %5353 = vrot.lane.b32.xlu1 %v11503_v52, %s9189_s19 }
0x2365   :  { %5341 = vrot.lane.b32.xlu1 %v11485_v33, %s9192_s21 }
0x2368   :  { %5355 = vrot.lane.b32.xlu0 %v11511_v54, %s9189_s19 }
0x2369   :  { %5345 = vrot.lane.b32.xlu1 %v11503_v52, %s9192_s21 }
0x236c   :  { %5343 = vrot.lane.b32.xlu0 %v11495_v46, %s9192_s21 }
0x236d   :  { %5560 = vrot.lane.b32.xlu1 %v11497_v50, %s9192_s21 }
0x2370   :  { %5347 = vrot.lane.b32.xlu0 %v11511_v54, %s9192_s21 }
0x2371   :  { %5562 = vrot.lane.b32.xlu1 %v11505_v3, %s9192_s21 }
0x2374   :  { %5558 = vrot.lane.b32.xlu0 %v11487_v8, %s9192_s21 }
0x23a0   :  { %v5231_v16 = vpop.xlane.xlu1 %5230 }
0x23a2   :  { %v5228_v49 = vpop.xlane.xlu0 %5227 }
0x23a3   :  { %9008 = vrcp.f32 %v5228_v49 }
0x23a4   :  { %v5225_v48 = vpop.xlane.xlu1 %5224 }
0x23a5   :  { %9010 = vrcp.f32 %v5225_v48 }
0x23a6   :  { %9012 = vrcp.f32 %v5231_v16  ;;  %v5222_v20 = vpop.xlane.xlu0 %5221 }
0x23a7   :  { %9014 = vrcp.f32 %v5222_v20 }
0x23a8   :  { %v5352_v24 = vpop.permute.xlu1 %5351 }
0x23a9   :  { %v5373_v47 = vsel %vm572_vm1, %v5352_v24, 0 }
0x23aa   :  { %v5350_v9 = vpop.permute.xlu0 %5349 }
0x23ab   :  { %8310 = vmatprep.subr.msk.bf16.mxu1 %vm572_vm1, %v5350_v9  ;;  %v5370_v41 = vsel %vm572_vm1, %v5350_v9, 0 }
0x23ad   :  { %v9009_v43 = vpop.eup %9008 }
0x23ae   :  { %v5249_v25 = vmul.f32 %v9009_v43, %v8997_v36 }
0x23af   :  { %v9011_v61 = vpop.eup %9010 }
0x23b0   :  { %v9013_v0 = vpop.eup %9012  ;;  %v5247_v15 = vmul.f32 %v9011_v61, %v11591_v35 }
0x23b1   :  { %v9015_v26 = vpop.eup %9014  ;;  %v5251_v6 = vmul.f32 %v9013_v0, %v11589_v53 }
0x23b2   :  { %v5245_v62 = vmul.f32 %v9015_v26, %v8999_v57 }
0x23b3   :  { %v5261_v22 = vpack.c.bf16 %v5251_v6, %v5249_v25 }
0x23b4   :  { %v5260_v12 = vpack.c.bf16 %v5247_v15, %v5245_v62 }
0x23b6   :  { %8098 = vmatprep.mubr.msk.bf16.mxu1 %vm190_vm0, %v5260_v12 }
0x23b7   :  { %8099 = vmatmul.mubr.msk.bf16.vlgmr.msra.gmra.mrb[128].mxu1 %vm190_vm0, %v5261_v22 }
0x23b8   :  { %8107 = vmatpush3.bf16.xpose.msra.mxu1 %v5370_v41 }
0x23b9   :  { %8311 = vmatprep.subr.msk.bf16.mxu1 %vm572_vm1, %v5352_v24 }
0x23c0   :  { %8109 = vmatpush3.bf16.xpose.msra.mxu1 %v5373_v47 }
0x23d9   :  { %v5243_v36 = vpop.xlane.xlu1 %5242 }
0x23db   :  { %v5240_v57 = vpop.xlane.xlu0 %5239 }
0x23dc   :  { %9016 = vrcp.f32 %v5240_v57 }
0x23dd   :  { %v5237_v35 = vpop.xlane.xlu1 %5236 }
0x23de   :  { %9018 = vrcp.f32 %v5237_v35 }
0x23df   :  { %9020 = vrcp.f32 %v5243_v36  ;;  %v5234_v53 = vpop.xlane.xlu0 %5233 }
0x23e0   :  { %9022 = vrcp.f32 %v5234_v53 }
0x23e1   :  { %v5354_v63 = vpop.permute.xlu1 %5353 }
0x23e2   :  { %8312 = vmatprep.subr.msk.bf16.mxu1 %vm572_vm1, %v5354_v63  ;;  %v5376_v44 = vsel %vm572_vm1, %v5354_v63, 0 }
0x23e3   :  { %v5356_v10 = vpop.permute.xlu0 %5355  ;;  %8111 = vmatpush3.bf16.xpose.msra.mxu1 %v5376_v44 }
0x23e4   :  { %8313 = vmatprep.subr.msk.bf16.mxu1 %vm572_vm1, %v5356_v10  ;;  %v5379_v49 = vsel %vm572_vm1, %v5356_v10, 0 }
0x23e5   :  { %v5342_v45 = vpop.permute.xlu1 %5341 }
0x23e6   :  { %v9017_v27 = vpop.eup %9016 }
0x23e7   :  { %v5344_v32 = vpop.permute.xlu0 %5343  ;;  %v5257_v48 = vmul.f32 %v9017_v27, %v11605_v30 }
0x23e8   :  { %v9019_v34 = vpop.eup %9018 }
0x23e9   :  { %v9021_v2 = vpop.eup %9020  ;;  %v5346_v40 = vpop.permute.xlu1 %5345  ;;  %v5255_v43 = vmul.f32 %v9019_v34, %v11609_v7 }
0x23ea   :  { %v9023_v16 = vpop.eup %9022  ;;  %v5259_v61 = vmul.f32 %v9021_v2, %v11603_v1 }
0x23eb   :  { %v5348_v20 = vpop.permute.xlu0 %5347  ;;  %8113 = vmatpush3.bf16.xpose.msra.mxu1 %v5379_v49  ;;  %v5253_v9 = vmul.f32 %v9023_v16, %v11613_v60 }
0x23ec   :  { %v5263_v26 = vpack.c.bf16 %v5259_v61, %v5257_v48 }
0x23ed   :  { %v5262_v0 = vpack.c.bf16 %v5255_v43, %v5253_v9  ;;  %v5561_v25 = vpop.permute.xlu1 %5560 }
0x23ef   :  { %v5559_v62 = vpop.permute.xlu0 %5558  ;;  %8102 = vmatprep.mubr.msk.bf16.mxu1 %vm190_vm0, %v5262_v0 }
0x23f0   :  { %8103 = vmatmul.mubr.msk.bf16.gmra.mrb[132].mxu1 %vm190_vm0, %v5263_v26  ;;  %8122 = vmatprep.subr.bf16.mxu0 %v5559_v62 }
0x23f1   :  { %8114 = vmatprep.mubr.msk.bf16.mxu1 %vm572_vm1, %v5342_v45  ;;  %8123 = vmatpush3.bf16.msra.mxu0 %v5559_v62  ;;  %v5563_v30 = vpop.permute.xlu1 %5562 }
0x23f2   :  { %8124 = vmatprep.subr.bf16.mxu0 %v5561_v25 }
0x23f5   :  { %8125 = vmatpush3.bf16.msra.mxu0 %v5561_v25 }
0x23f6   :  { %8126 = vmatprep.subr.bf16.mxu0 %v5563_v30 }
0x23f8   :  { %8115 = vmatmul.mubr.msk.bf16.vlgmr.msra.gmra.mrb[136].mxu1 %vm572_vm1, %v5344_v32 }
0x23f9   :  { %8118 = vmatprep.mubr.msk.bf16.mxu1 %vm572_vm1, %v5346_v40  ;;  %8127 = vmatpush3.bf16.msra.mxu0 %v5563_v30 }
0x2400   :  { %8119 = vmatmul.mubr.msk.bf16.gmra.mrb[140].mxu1 %vm572_vm1, %v5348_v20 }
0x248a   :  { %v11659_v1 = vpop.f32.mrb[128].mxu1 }
0x248b   :  { %v11661_v7 = vpop.f32.mrb[129].mxu1 }
0x248c   :  { %v11663_v60 = vpop.f32.mrb[130].mxu1 }
0x248d   :  { %v11665_v15 = vpop.f32.mrb[131].mxu1 }
0x24c3   :  { %v11667_v6 = vpop.f32.mrb[132].mxu1 }
0x24c4   :  { %v11669_v12 = vpop.f32.mrb[133].mxu1 }
0x24c5   :  { %v11671_v22 = vpop.f32.mrb[134].mxu1 }
0x24c6   :  { %v11673_v41 = vpop.f32.mrb[135].mxu1 }
0x24cb   :  { %v8116_v24 = vpop.f32.mrb[136].mxu1 }
0x24cc   :  { %v5448_v47 = vmul.f32 0.25, %v8116_v24  ;;  %v5415_v36 = vpop.f32.mrb[137].mxu1 }
0x24cd   :  { %v5446_v57 = vmul.f32 0.25, %v5415_v36  ;;  %v8117_v35 = vpop.f32.mrb[138].mxu1 }
0x24ce   :  { %v5456_v53 = vadd.f32 %v11555_v28, %v5448_v47  ;;  %v5449_v63 = vmul.f32 0.25, %v8117_v35  ;;  %v5418_v44 = vpop.f32.mrb[139].mxu1 }
0x24cf   :  { %v5454_v10 = vadd.f32 %v11536_v18, %v5446_v57  ;;  %v5447_v45 = vmul.f32 0.25, %v5418_v44 }
0x24d0   :  { %v5468_v27 = vsel %vm190_vm0, %v5456_v53, -inf  ;;  %v5457_v32 = vadd.f32 %v11542_v42, %v5449_v63 }
0x24d1   :  { %v5455_v34 = vadd.f32 %v11548_v21, %v5447_v45  ;;  %5469 = vmax.xlane.f32.xlu0 %v5468_v27  ;;  %v5462_v2 = vsel %vm190_vm0, %v5454_v10, -inf }
0x24d2   :  { %5463 = vmax.xlane.f32.xlu1 %v5462_v2  ;;  %v5471_v43 = vsel %vm190_vm0, %v5457_v32, -inf }
0x24d3   :  { %v8120_v40 = vpop.f32.mrb[140].mxu1  ;;  %v5465_v16 = vsel %vm190_vm0, %v5455_v34, -inf }
0x24d4   :  { %v5452_v49 = vmul.f32 0.25, %v8120_v40  ;;  %v5431_v48 = vpop.f32.mrb[141].mxu1 }
0x24d5   :  { %v5450_v20 = vmul.f32 0.25, %v5431_v48  ;;  %5466 = vmax.xlane.f32.xlu0 %v5465_v16  ;;  %v8121_v9 = vpop.f32.mrb[142].mxu1 }
0x24d6   :  { %v5460_v61 = vadd.f32 %v11576_v38, %v5452_v49  ;;  %v5453_v0 = vmul.f32 0.25, %v8121_v9  ;;  %5472 = vmax.xlane.f32.xlu1 %v5471_v43  ;;  %v5434_v26 = vpop.f32.mrb[143].mxu1 }
0x24d7   :  { %v5451_v25 = vmul.f32 0.25, %v5434_v26  ;;  %v5458_v62 = vadd.f32 %v11564_v51, %v5450_v20 }
0x24d8   :  { %v5461_v30 = vadd.f32 %v11582_v29, %v5453_v0  ;;  %v5480_v24 = vsel %vm190_vm0, %v5460_v61, -inf }
0x24d9   :  { %5481 = vmax.xlane.f32.xlu0 %v5480_v24  ;;  %v5459_v47 = vadd.f32 %v11570_v39, %v5451_v25  ;;  %v5474_v57 = vsel %vm190_vm0, %v5458_v62, -inf }
0x24da   :  { %v5483_v36 = vsel %vm190_vm0, %v5461_v30, -inf }
0x24db   :  { %5484 = vmax.xlane.f32.xlu1 %v5483_v36  ;;  %v5477_v35 = vsel %vm190_vm0, %v5459_v47, -inf }
0x24dd   :  { %5475 = vmax.xlane.f32.xlu0 %v5474_v57 }
0x24df   :  { %5478 = vmax.xlane.f32.xlu1 %v5477_v35 }
0x24f0   :  { %5657 = vrot.lane.b32.xlu1 %v11495_v46, %s9191_s20 }
0x24f3   :  { %5564 = vrot.lane.b32.xlu0 %v11513_v5, %s9192_s21 }
0x255e   :  { %v5470_v63 = vpop.xlane.xlu0 %5469 }
0x255f   :  { %v5488_v44 = vsub.f32 %v5456_v53, %v5470_v63  ;;  %v5464_v45 = vpop.xlane.xlu1 %5463 }
0x2560   :  { %v5486_v27 = vsub.f32 %v5454_v10, %v5464_v45 }
0x2561   :  { %v5498_v2 = vmul.f32 1.442695, %v5488_v44 }
0x2562   :  { %v5494_v40 = vmul.f32 1.442695, %v5486_v27  ;;  %v5467_v16 = vpop.xlane.xlu0 %5466 }
0x2563   :  { %9024 = vpow2.f32 %v5498_v2  ;;  %v5487_v49 = vsub.f32 %v5455_v34, %v5467_v16  ;;  %v5473_v48 = vpop.xlane.xlu1 %5472 }
0x2564   :  { %v5489_v20 = vsub.f32 %v5457_v32, %v5473_v48  ;;  %9026 = vpow2.f32 %v5494_v40 }
0x2565   :  { %v5496_v9 = vmul.f32 1.442695, %v5487_v49 }
0x2566   :  { %v5500_v43 = vmul.f32 1.442695, %v5489_v20  ;;  %v5482_v0 = vpop.xlane.xlu0 %5481 }
0x2567   :  { %v5492_v44 = vsub.f32 %v5460_v61, %v5482_v0 }
0x2568   :  { %9028 = vpow2.f32 %v5500_v43  ;;  %v5485_v63 = vpop.xlane.xlu1 %5484 }
0x2569   :  { %9030 = vpow2.f32 %v5496_v9  ;;  %v5506_v27 = vmul.f32 1.442695, %v5492_v44  ;;  %v5493_v49 = vsub.f32 %v5461_v30, %v5485_v63 }
0x256a   :  { %v5476_v26 = vpop.xlane.xlu0 %5475 }
0x256b   :  { %v5490_v40 = vsub.f32 %v5458_v62, %v5476_v26  ;;  %9032 = vpow2.f32 %v5506_v27  ;;  %v5508_v20 = vmul.f32 1.442695, %v5493_v49 }
0x256c   :  { %v5479_v45 = vpop.xlane.xlu1 %5478 }
0x256d   :  { %v11695_v25 = vpop.eup %9024  ;;  %v5491_v2 = vsub.f32 %v5459_v47, %v5479_v45  ;;  %v5502_v48 = vmul.f32 1.442695, %v5490_v40 }
0x256e   :  { %v5565_v24 = vpop.permute.xlu0 %5564  ;;  %v5516_v53 = vsel %vm190_vm0, %v11695_v25, 0.0  ;;  %v11699_v10 = vpop.eup %9026 }
0x256f   :  { %5517 = vadd.xlane.f32.xlu0 %v5516_v53  ;;  %8128 = vmatprep.subr.bf16.mxu0 %v5565_v24  ;;  %v5510_v32 = vsel %vm190_vm0, %v11699_v10, 0.0  ;;  %v5504_v16 = vmul.f32 1.442695, %v5491_v2 }
0x2570   :  { %8129 = vmatpush3.bf16.msra.mxu0 %v5565_v24  ;;  %v5658_v53 = vpop.permute.xlu1 %5657 }
0x2571   :  { %9034 = vpow2.f32 %v5504_v16 }
0x2572   :  { %v9029_v34 = vpop.eup %9028  ;;  %9036 = vpow2.f32 %v5502_v48 }
0x2573   :  { %5511 = vadd.xlane.f32.xlu0 %v5510_v32  ;;  %v5519_v36 = vsel %vm190_vm0, %v9029_v34, 0.0  ;;  %v9031_v57 = vpop.eup %9030  ;;  %9038 = vpow2.f32 %v5508_v20 }
0x2574   :  { %5520 = vadd.xlane.f32.xlu1 %v5519_v36  ;;  %v5513_v35 = vsel %vm190_vm0, %v9031_v57, 0.0 }
0x2575   :  { %v11709_v9 = vpop.eup %9032 }
0x2576   :  { %v5528_v43 = vsel %vm190_vm0, %v11709_v9, 0.0 }
0x2578   :  { %5514 = vadd.xlane.f32.xlu1 %v5513_v35 }
0x257b   :  { %v11713_v24 = vpop.eup %9034 }
0x257c   :  { %v11715_v61 = vpop.eup %9036  ;;  %v5525_v62 = vsel %vm190_vm0, %v11713_v24, 0.0 }
0x257d   :  { %v5522_v30 = vsel %vm190_vm0, %v11715_v61, 0.0  ;;  %v11721_v47 = vpop.eup %9038 }
0x257e   :  { %v5531_v0 = vsel %vm190_vm0, %v11721_v47, 0.0 }
0x2589   :  { %5655 = vrot.lane.b32.xlu0 %v11485_v33, %s9191_s20  ;;  %5659 = vrot.lane.b32.xlu1 %v11503_v52, %s9191_s20 }
0x25a8   :  { %5529 = vadd.xlane.f32.xlu0 %v5528_v43 }
0x25ac   :  { %5526 = vadd.xlane.f32.xlu0 %v5525_v62 }
0x25ad   :  { %5523 = vadd.xlane.f32.xlu1 %v5522_v30  ;;  %v5679_v30 = vsel %vm572_vm1, %v5658_v53, 0 }
0x25b1   :  { %5532 = vadd.xlane.f32.xlu1 %v5531_v0 }
0x25c2   :  { %5647 = vrot.lane.b32.xlu1 %v11485_v33, %s9193_s22  ;;  %5661 = vrot.lane.b32.xlu0 %v11511_v54, %s9191_s20 }
0x25c6   :  { %5651 = vrot.lane.b32.xlu1 %v11503_v52, %s9193_s22  ;;  %5649 = vrot.lane.b32.xlu0 %v11495_v46, %s9193_s22 }
0x25ca   :  { %5862 = vrot.lane.b32.xlu1 %v11497_v50, %s9193_s22  ;;  %5653 = vrot.lane.b32.xlu0 %v11511_v54, %s9193_s22 }
0x25ce   :  { %5864 = vrot.lane.b32.xlu1 %v11505_v3, %s9193_s22  ;;  %5860 = vrot.lane.b32.xlu0 %v11487_v8, %s9193_s22 }
0x25fc   :  { %v5518_v26 = vpop.xlane.xlu0 %5517 }
0x2600   :  { %v5512_v32 = vpop.xlane.xlu0 %5511 }
0x2601   :  { %v5521_v36 = vpop.xlane.xlu1 %5520 }
0x2602   :  { %9040 = vrcp.f32 %v5521_v36 }
0x2603   :  { %9042 = vrcp.f32 %v5512_v32 }
0x2604   :  { %v5656_v35 = vpop.permute.xlu0 %5655  ;;  %9044 = vrcp.f32 %v5518_v26 }
0x2605   :  { %8314 = vmatprep.subr.msk.bf16.mxu0 %vm572_vm1, %v5656_v35  ;;  %v5515_v63 = vpop.xlane.xlu1 %5514  ;;  %v5676_v62 = vsel %vm572_vm1, %v5656_v35, 0 }
0x2606   :  { %9046 = vrcp.f32 %v5515_v63 }
0x2609   :  { %v5660_v0 = vpop.permute.xlu1 %5659 }
0x260c   :  { %v9041_v44 = vpop.eup %9040 }
0x260d   :  { %v9043_v45 = vpop.eup %9042  ;;  %v5541_v40 = vmul.f32 %v9041_v44, %v9029_v34 }
0x260e   :  { %v9045_v27 = vpop.eup %9044  ;;  %v5535_v16 = vmul.f32 %v9043_v45, %v11699_v10  ;;  %v5682_v10 = vsel %vm572_vm1, %v5660_v0, 0 }
0x260f   :  { %v5539_v48 = vmul.f32 %v9045_v27, %v11695_v25 }
0x2610   :  { %v9047_v2 = vpop.eup %9046 }
0x2611   :  { %v5537_v49 = vmul.f32 %v9047_v2, %v9031_v57  ;;  %v5551_v43 = vpack.c.bf16 %v5541_v40, %v5539_v48 }
0x2613   :  { %v5550_v20 = vpack.c.bf16 %v5537_v49, %v5535_v16 }
0x2615   :  { %8130 = vmatprep.mubr.msk.bf16.mxu0 %vm190_vm0, %v5550_v20 }
0x2616   :  { %8131 = vmatmul.mubr.msk.bf16.vlgmr.msra.gmra.mrb[120].mxu0 %vm190_vm0, %v5551_v43 }
0x2617   :  { %8139 = vmatpush3.bf16.xpose.msra.mxu0 %v5676_v62 }
0x2618   :  { %8315 = vmatprep.subr.msk.bf16.mxu0 %vm572_vm1, %v5658_v53 }
0x261f   :  { %8141 = vmatpush3.bf16.xpose.msra.mxu0 %v5679_v30 }
0x2620   :  { %8316 = vmatprep.subr.msk.bf16.mxu0 %vm572_vm1, %v5660_v0 }
0x2627   :  { %8143 = vmatpush3.bf16.xpose.msra.mxu0 %v5682_v10 }
0x2635   :  { %v5530_v25 = vpop.xlane.xlu0 %5529 }
0x2639   :  { %v5527_v34 = vpop.xlane.xlu0 %5526 }
0x263a   :  { %9048 = vrcp.f32 %v5527_v34  ;;  %v5524_v57 = vpop.xlane.xlu1 %5523 }
0x263b   :  { %9050 = vrcp.f32 %v5524_v57 }
0x263c   :  { %9052 = vrcp.f32 %v5530_v25 }
0x263d   :  { %v5662_v26 = vpop.permute.xlu0 %5661 }
0x263e   :  { %v5685_v32 = vsel %vm572_vm1, %v5662_v26, 0  ;;  %8317 = vmatprep.subr.msk.bf16.mxu0 %vm572_vm1, %v5662_v26  ;;  %v5533_v36 = vpop.xlane.xlu1 %5532 }
0x263f   :  { %9054 = vrcp.f32 %v5533_v36  ;;  %8145 = vmatpush3.bf16.xpose.msra.mxu0 %v5685_v32 }
0x2641   :  { %v5650_v53 = vpop.permute.xlu0 %5649 }
0x2642   :  { %v5648_v35 = vpop.permute.xlu1 %5647 }
0x2644   :  { %v9049_v63 = vpop.eup %9048 }
0x2645   :  { %v9051_v44 = vpop.eup %9050  ;;  %v5654_v45 = vpop.permute.xlu0 %5653  ;;  %v5545_v27 = vmul.f32 %v9049_v63, %v11713_v24 }
0x2646   :  { %v5652_v2 = vpop.permute.xlu1 %5651  ;;  %v5543_v40 = vmul.f32 %v9051_v44, %v11715_v61  ;;  %v9053_v16 = vpop.eup %9052 }
0x2647   :  { %v5547_v62 = vmul.f32 %v9053_v16, %v11709_v9 }
0x2648   :  { %v5552_v49 = vpack.c.bf16 %v5545_v27, %v5543_v40 }
0x2649   :  { %v9055_v48 = vpop.eup %9054  ;;  %v5861_v20 = vpop.permute.xlu0 %5860 }
0x264a   :  { %8134 = vmatprep.mubr.msk.bf16.mxu0 %vm190_vm0, %v5552_v49  ;;  %8154 = vmatprep.subr.bf16.mxu1 %v5861_v20  ;;  %v5863_v43 = vpop.permute.xlu1 %5862  ;;  %v5549_v30 = vmul.f32 %v9055_v48, %v11721_v47 }
0x264b   :  { %8155 = vmatpush3.bf16.msra.mxu1 %v5861_v20 }
0x264c   :  { %8156 = vmatprep.subr.bf16.mxu1 %v5863_v43  ;;  %v5553_v0 = vpack.c.bf16 %v5549_v30, %v5547_v62 }
0x264e   :  { %8135 = vmatmul.mubr.msk.bf16.gmra.mrb[124].mxu0 %vm190_vm0, %v5553_v0  ;;  %v5865_v24 = vpop.permute.xlu1 %5864 }
0x264f   :  { %8146 = vmatprep.mubr.msk.bf16.mxu0 %vm572_vm1, %v5648_v35  ;;  %8157 = vmatpush3.bf16.msra.mxu1 %v5863_v43 }
0x2650   :  { %8158 = vmatprep.subr.bf16.mxu1 %v5865_v24 }
0x2653   :  { %8159 = vmatpush3.bf16.msra.mxu1 %v5865_v24 }
0x2656   :  { %8147 = vmatmul.mubr.msk.bf16.vlgmr.msra.gmra.mrb[128].mxu0 %vm572_vm1, %v5650_v53 }
0x2657   :  { %8150 = vmatprep.mubr.msk.bf16.mxu0 %vm572_vm1, %v5652_v2 }
0x265e   :  { %8151 = vmatmul.mubr.msk.bf16.gmra.mrb[132].mxu0 %vm572_vm1, %v5654_v45 }
0x26e9   :  { %v11763_v9 = vpop.f32.mrb[120].mxu0 }
0x26ea   :  { %v11765_v61 = vpop.f32.mrb[121].mxu0 }
0x26eb   :  { %v11767_v47 = vpop.f32.mrb[122].mxu0 }
0x26ec   :  { %v11771_v25 = vpop.f32.mrb[123].mxu0 }
0x2721   :  { %v11775_v57 = vpop.f32.mrb[124].mxu0 }
0x2722   :  { %v11777_v26 = vpop.f32.mrb[125].mxu0 }
0x2723   :  { %v11779_v32 = vpop.f32.mrb[126].mxu0 }
0x2724   :  { %v11783_v53 = vpop.f32.mrb[127].mxu0 }
0x2729   :  { %v8148_v63 = vpop.f32.mrb[128].mxu0 }
0x272a   :  { %v5754_v44 = vmul.f32 0.25, %v8148_v63  ;;  %v5721_v45 = vpop.f32.mrb[129].mxu0 }
0x272b   :  { %v5752_v27 = vmul.f32 0.25, %v5721_v45  ;;  %v8149_v2 = vpop.f32.mrb[130].mxu0 }
0x272c   :  { %v5762_v40 = vadd.f32 %v11555_v28, %v5754_v44  ;;  %v5755_v16 = vmul.f32 0.25, %v8149_v2  ;;  %v5724_v49 = vpop.f32.mrb[131].mxu0 }
0x272d   :  { %v5760_v48 = vadd.f32 %v11536_v18, %v5752_v27  ;;  %v5753_v20 = vmul.f32 0.25, %v5724_v49 }
0x272e   :  { %v5774_v43 = vsel %vm190_vm0, %v5762_v40, -inf  ;;  %v5763_v62 = vadd.f32 %v11542_v42, %v5755_v16 }
0x272f   :  { %v5761_v30 = vadd.f32 %v11548_v21, %v5753_v20  ;;  %5775 = vmax.xlane.f32.xlu0 %v5774_v43  ;;  %v5768_v0 = vsel %vm190_vm0, %v5760_v48, -inf }
0x2730   :  { %5769 = vmax.xlane.f32.xlu1 %v5768_v0  ;;  %v5777_v18 = vsel %vm190_vm0, %v5763_v62, -inf }
0x2731   :  { %v8152_v24 = vpop.f32.mrb[132].mxu0  ;;  %v5771_v63 = vsel %vm190_vm0, %v5761_v30, -inf }
0x2732   :  { %v5758_v45 = vmul.f32 0.25, %v8152_v24  ;;  %v5737_v28 = vpop.f32.mrb[133].mxu0 }
0x2733   :  { %v5756_v44 = vmul.f32 0.25, %v5737_v28  ;;  %5772 = vmax.xlane.f32.xlu0 %v5771_v63  ;;  %v8153_v2 = vpop.f32.mrb[134].mxu0 }
0x2734   :  { %v5766_v27 = vadd.f32 %v11576_v38, %v5758_v45  ;;  %v5759_v49 = vmul.f32 0.25, %v8153_v2  ;;  %5778 = vmax.xlane.f32.xlu1 %v5777_v18  ;;  %v5740_v42 = vpop.f32.mrb[135].mxu0 }
0x2735   :  { %v5757_v21 = vmul.f32 0.25, %v5740_v42  ;;  %v5764_v16 = vadd.f32 %v11564_v51, %v5756_v44 }
0x2736   :  { %v5767_v20 = vadd.f32 %v11582_v29, %v5759_v49  ;;  %v5786_v43 = vsel %vm190_vm0, %v5766_v27, -inf }
0x2737   :  { %5787 = vmax.xlane.f32.xlu0 %v5786_v43  ;;  %v5765_v0 = vadd.f32 %v11570_v39, %v5757_v21  ;;  %v5780_v63 = vsel %vm190_vm0, %v5764_v16, -inf }
0x2738   :  { %v5789_v24 = vsel %vm190_vm0, %v5767_v20, -inf }
0x2739   :  { %5790 = vmax.xlane.f32.xlu1 %v5789_v24  ;;  %v5783_v38 = vsel %vm190_vm0, %v5765_v0, -inf }
0x273b   :  { %5781 = vmax.xlane.f32.xlu0 %v5780_v63 }
0x273d   :  { %5784 = vmax.xlane.f32.xlu1 %v5783_v38 }
0x274e   :  { %5959 = vrot.lane.b32.xlu1 %v11495_v46, %s9194_s23 }
0x2751   :  { %5866 = vrot.lane.b32.xlu0 %v11513_v5, %s9193_s22 }
0x27bc   :  { %v5776_v51 = vpop.xlane.xlu0 %5775 }
0x27bd   :  { %v5794_v29 = vsub.f32 %v5762_v40, %v5776_v51  ;;  %v5770_v45 = vpop.xlane.xlu1 %5769 }
0x27be   :  { %v5792_v28 = vsub.f32 %v5760_v48, %v5770_v45 }
0x27bf   :  { %v5804_v39 = vmul.f32 1.442695, %v5794_v29 }
0x27c0   :  { %v5800_v44 = vmul.f32 1.442695, %v5792_v28  ;;  %v5773_v2 = vpop.xlane.xlu0 %5772 }
0x27c1   :  { %9056 = vpow2.f32 %v5804_v39  ;;  %v5793_v18 = vsub.f32 %v5761_v30, %v5773_v2  ;;  %v5779_v49 = vpop.xlane.xlu1 %5778 }
0x27c2   :  { %v5795_v42 = vsub.f32 %v5763_v62, %v5779_v49  ;;  %9058 = vpow2.f32 %v5800_v44 }
0x27c3   :  { %v5802_v21 = vmul.f32 1.442695, %v5793_v18 }
0x27c4   :  { %v5806_v43 = vmul.f32 1.442695, %v5795_v42  ;;  %v5788_v24 = vpop.xlane.xlu0 %5787 }
0x27c5   :  { %v5798_v39 = vsub.f32 %v5766_v27, %v5788_v24 }
0x27c6   :  { %9060 = vpow2.f32 %v5806_v43  ;;  %v5791_v28 = vpop.xlane.xlu1 %5790 }
0x27c7   :  { %9062 = vpow2.f32 %v5802_v21  ;;  %v5812_v44 = vmul.f32 1.442695, %v5798_v39  ;;  %v5799_v42 = vsub.f32 %v5767_v20, %v5791_v28 }
0x27c8   :  { %v5782_v63 = vpop.xlane.xlu0 %5781 }
0x27c9   :  { %v5796_v18 = vsub.f32 %v5764_v16, %v5782_v63  ;;  %9064 = vpow2.f32 %v5812_v44  ;;  %v5814_v43 = vmul.f32 1.442695, %v5799_v42 }
0x27cb   :  { %v11807_v38 = vpop.eup %9056  ;;  %v5808_v21 = vmul.f32 1.442695, %v5796_v18 }
0x27cc   :  { %v5867_v36 = vpop.permute.xlu0 %5866  ;;  %v5822_v40 = vsel %vm190_vm0, %v11807_v38, 0.0  ;;  %v9059_v48 = vpop.eup %9058 }
0x27cd   :  { %5823 = vadd.xlane.f32.xlu0 %v5822_v40  ;;  %8160 = vmatprep.subr.bf16.mxu1 %v5867_v36  ;;  %v5816_v62 = vsel %vm190_vm0, %v9059_v48, 0.0 }
0x27ce   :  { %8161 = vmatpush3.bf16.msra.mxu1 %v5867_v36  ;;  %v5785_v36 = vpop.xlane.xlu1 %5784 }
0x27cf   :  { %v5797_v2 = vsub.f32 %v5765_v0, %v5785_v36 }
0x27d0   :  { %v9061_v30 = vpop.eup %9060 }
0x27d1   :  { %5817 = vadd.xlane.f32.xlu0 %v5816_v62  ;;  %v5825_v51 = vsel %vm190_vm0, %v9061_v30, 0.0  ;;  %v9063_v29 = vpop.eup %9062  ;;  %v5810_v49 = vmul.f32 1.442695, %v5797_v2 }
0x27d2   :  { %5826 = vadd.xlane.f32.xlu1 %v5825_v51  ;;  %v5819_v45 = vsel %vm190_vm0, %v9063_v29, 0.0 }
0x27d3   :  { %9066 = vpow2.f32 %v5810_v49  ;;  %v11818_v40 = vpop.eup %9064 }
0x27d4   :  { %9068 = vpow2.f32 %v5808_v21  ;;  %v5834_v62 = vsel %vm190_vm0, %v11818_v40, 0.0 }
0x27d5   :  { %9070 = vpow2.f32 %v5814_v43 }
0x27d6   :  { %5820 = vadd.xlane.f32.xlu1 %v5819_v45  ;;  %v5960_v45 = vpop.permute.xlu1 %5959 }
0x27dd   :  { %v9067_v51 = vpop.eup %9066 }
0x27de   :  { %v9069_v27 = vpop.eup %9068  ;;  %v5831_v24 = vsel %vm190_vm0, %v9067_v51, 0.0 }
0x27df   :  { %v5828_v16 = vsel %vm190_vm0, %v9069_v27, 0.0  ;;  %v9071_v0 = vpop.eup %9070 }
0x27e0   :  { %v5837_v20 = vsel %vm190_vm0, %v9071_v0, 0.0 }
0x27e7   :  { %5957 = vrot.lane.b32.xlu0 %v11485_v33, %s9194_s23  ;;  %5961 = vrot.lane.b32.xlu1 %v11503_v52, %s9194_s23 }
0x2806   :  { %5835 = vadd.xlane.f32.xlu0 %v5834_v62 }
0x280a   :  { %5832 = vadd.xlane.f32.xlu0 %v5831_v24  ;;  %v5981_v24 = vsel %vm572_vm1, %v5960_v45, 0 }
0x280b   :  { %5829 = vadd.xlane.f32.xlu1 %v5828_v16 }
0x280f   :  { %5838 = vadd.xlane.f32.xlu1 %v5837_v20 }
0x2820   :  { %5949 = vrot.lane.b32.xlu1 %v11485_v33, %s9195_s24  ;;  %5963 = vrot.lane.b32.xlu0 %v11511_v54, %s9194_s23 }
0x2824   :  { %5953 = vrot.lane.b32.xlu1 %v11503_v52, %s9195_s24  ;;  %5951 = vrot.lane.b32.xlu0 %v11495_v46, %s9195_s24 }
0x2828   :  { %5955 = vrot.lane.b32.xlu0 %v11511_v54, %s9195_s24 }
0x285a   :  { %v5824_v63 = vpop.xlane.xlu0 %5823 }
0x285e   :  { %v5818_v28 = vpop.xlane.xlu0 %5817 }
0x285f   :  { %v5827_v39 = vpop.xlane.xlu1 %5826 }
0x2860   :  { %9072 = vrcp.f32 %v5827_v39 }
0x2861   :  { %9074 = vrcp.f32 %v5818_v28 }
0x2862   :  { %v5958_v36 = vpop.permute.xlu0 %5957  ;;  %9076 = vrcp.f32 %v5824_v63 }
0x2863   :  { %8318 = vmatprep.subr.msk.bf16.mxu1 %vm572_vm1, %v5958_v36  ;;  %v5821_v33 = vpop.xlane.xlu1 %5820  ;;  %v5978_v62 = vsel %vm572_vm1, %v5958_v36, 0 }
0x2864   :  { %9078 = vrcp.f32 %v5821_v33 }
0x2867   :  { %v5962_v16 = vpop.permute.xlu1 %5961 }
0x286a   :  { %v9073_v44 = vpop.eup %9072 }
0x286b   :  { %v9075_v52 = vpop.eup %9074  ;;  %v5847_v46 = vmul.f32 %v9073_v44, %v9061_v30 }
0x286c   :  { %v9077_v2 = vpop.eup %9076  ;;  %v5841_v49 = vmul.f32 %v9075_v52, %v9059_v48  ;;  %v5984_v48 = vsel %vm572_vm1, %v5962_v16, 0 }
0x286d   :  { %v5845_v54 = vmul.f32 %v9077_v2, %v11807_v38 }
0x286e   :  { %v9079_v18 = vpop.eup %9078 }
0x286f   :  { %v5843_v42 = vmul.f32 %v9079_v18, %v9063_v29  ;;  %v5857_v43 = vpack.c.bf16 %v5847_v46, %v5845_v54 }
0x2871   :  { %v5856_v21 = vpack.c.bf16 %v5843_v42, %v5841_v49 }
0x2873   :  { %8162 = vmatprep.mubr.msk.bf16.mxu1 %vm190_vm0, %v5856_v21 }
0x2874   :  { %8163 = vmatmul.mubr.msk.bf16.vlgmr.msra.gmra.mrb[144].mxu1 %vm190_vm0, %v5857_v43 }
0x2875   :  { %8171 = vmatpush3.bf16.xpose.msra.mxu1 %v5978_v62 }
0x2876   :  { %8319 = vmatprep.subr.msk.bf16.mxu1 %vm572_vm1, %v5960_v45 }
0x287d   :  { %8173 = vmatpush3.bf16.xpose.msra.mxu1 %v5981_v24 }
0x287e   :  { %8320 = vmatprep.subr.msk.bf16.mxu1 %vm572_vm1, %v5962_v16 }
0x2885   :  { %8175 = vmatpush3.bf16.xpose.msra.mxu1 %v5984_v48 }
0x2893   :  { %v5836_v38 = vpop.xlane.xlu0 %5835 }
0x2897   :  { %v5833_v30 = vpop.xlane.xlu0 %5832 }
0x2898   :  { %9080 = vrcp.f32 %v5833_v30  ;;  %v5830_v29 = vpop.xlane.xlu1 %5829 }
0x2899   :  { %9082 = vrcp.f32 %v5830_v29 }
0x289a   :  { %9084 = vrcp.f32 %v5836_v38 }
0x289b   :  { %v5964_v20 = vpop.permute.xlu0 %5963 }
0x289c   :  { %v5987_v63 = vsel %vm572_vm1, %v5964_v20, 0  ;;  %8321 = vmatprep.subr.msk.bf16.mxu1 %vm572_vm1, %v5964_v20  ;;  %v5839_v28 = vpop.xlane.xlu1 %5838  ;;  %v9183_v20 = vld [vmem:[%s12280_s3 + $0x20] sm:$0xff] }
0x289d   :  { %9086 = vrcp.f32 %v5839_v28  ;;  %8177 = vmatpush3.bf16.xpose.msra.mxu1 %v5987_v63 }
0x289f   :  { %v5952_v54 = vpop.permute.xlu0 %5951 }
0x28a0   :  { %v5950_v42 = vpop.permute.xlu1 %5949 }
0x28a2   :  { %v9081_v45 = vpop.eup %9080 }
0x28a3   :  { %v9083_v39 = vpop.eup %9082  ;;  %v5851_v36 = vmul.f32 %v9081_v45, %v9067_v51  ;;  %v5956_v51 = vpop.permute.xlu0 %5955 }
0x28a4   :  { %v5849_v33 = vmul.f32 %v9083_v39, %v9069_v27  ;;  %v9085_v44 = vpop.eup %9084  ;;  %v5954_v21 = vpop.permute.xlu1 %5953 }
0x28a5   :  { %v5853_v18 = vmul.f32 %v9085_v44, %v11818_v40 }
0x28a6   :  { %v5858_v52 = vpack.c.bf16 %v5851_v36, %v5849_v33 }
0x28a7   :  { %v9087_v2 = vpop.eup %9086 }
0x28a8   :  { %8166 = vmatprep.mubr.msk.bf16.mxu1 %vm190_vm0, %v5858_v52  ;;  %v5855_v46 = vmul.f32 %v9087_v2, %v9071_v0  ;;  %v9179_v52 = vld [vmem:[%s12280_s3] sm:$0xff] }
0x28aa   :  { %v5859_v49 = vpack.c.bf16 %v5855_v46, %v5853_v18  ;;  %v9180_v46 = vld [vmem:[%s12280_s3 + $0x18] sm:$0xff] }
0x28ac   :  { %8167 = vmatmul.mubr.msk.bf16.gmra.mrb[148].mxu1 %vm190_vm0, %v5859_v49 }
0x28ad   :  { %8178 = vmatprep.mubr.msk.bf16.mxu1 %vm572_vm1, %v5950_v42  ;;  %v9181_v42 = vld [vmem:[%s12280_s3 + $0x8] sm:$0xff] }
0x28b4   :  { %8179 = vmatmul.mubr.msk.bf16.vlgmr.msra.gmra.mrb[152].mxu1 %vm572_vm1, %v5952_v54 }
0x28b5   :  { %8182 = vmatprep.mubr.msk.bf16.mxu1 %vm572_vm1, %v5954_v21 }
0x28bc   :  { %8183 = vmatmul.mubr.msk.bf16.gmra.mrb[156].mxu1 %vm572_vm1, %v5956_v51  ;;  %v9182_v51 = vld [vmem:[%s12280_s3 + $0x10] sm:$0xff] }
0x2947   :  { %v11853_v27 = vpop.f32.mrb[144].mxu1 }
0x2948   :  { %v11855_v43 = vpop.f32.mrb[145].mxu1 }
0x2949   :  { %v11857_v40 = vpop.f32.mrb[146].mxu1 }
0x294a   :  { %v11861_v62 = vpop.f32.mrb[147].mxu1 }
0x297f   :  { %v11865_v16 = vpop.f32.mrb[148].mxu1 }
0x2980   :  { %v11867_v48 = vpop.f32.mrb[149].mxu1 }
0x2981   :  { %v11869_v38 = vpop.f32.mrb[150].mxu1 }
0x2982   :  { %v11873_v29 = vpop.f32.mrb[151].mxu1 }
0x2987   :  { %v8180_v63 = vpop.f32.mrb[152].mxu1 }
0x2988   :  { %v6023_v28 = vpop.f32.mrb[153].mxu1  ;;  %v6056_v36 = vmul.f32 0.25, %v8180_v63 }
0x2989   :  { %v6054_v45 = vmul.f32 0.25, %v6023_v28  ;;  %v8181_v39 = vpop.f32.mrb[154].mxu1 }
0x298a   :  { %v6057_v33 = vmul.f32 0.25, %v8181_v39  ;;  %v6026_v44 = vpop.f32.mrb[155].mxu1  ;;  %v6064_v63 = vadd.f32 %v9182_v51, %v6056_v36 }
0x298b   :  { %v6062_v2 = vadd.f32 %v9179_v52, %v6054_v45  ;;  %v6055_v18 = vmul.f32 0.25, %v6026_v44 }
0x298c   :  { %v6065_v49 = vadd.f32 %v9180_v46, %v6057_v33 }
0x298d   :  { %v6063_v54 = vadd.f32 %v9181_v42, %v6055_v18  ;;  %v6070_v21 = vsel %vm190_vm0, %v6062_v2, -inf  ;;  %v6076_v18 = vsel %vm190_vm0, %v6064_v63, -inf }
0x298e   :  { %6071 = vmax.xlane.f32.xlu1 %v6070_v21  ;;  %v6079_v52 = vsel %vm190_vm0, %v6065_v49, -inf }
0x298f   :  { %v8184_v28 = vpop.f32.mrb[156].mxu1  ;;  %v6073_v45 = vsel %vm190_vm0, %v6063_v54, -inf }
0x2990   :  { %6074 = vmax.xlane.f32.xlu0 %v6073_v45  ;;  %v6039_v39 = vpop.f32.mrb[157].mxu1  ;;  %v6060_v42 = vmul.f32 0.25, %v8184_v28  ;;  %v9184_v45 = vld [vmem:[%s12280_s3 + $0x28] sm:$0xff]  ;;  %v9186_v28 = vld [vmem:[%s12280_s3 + $0x38] sm:$0xff] }
0x2991   :  { %v6058_v44 = vmul.f32 0.25, %v6039_v39  ;;  %v8185_v33 = vpop.f32.mrb[158].mxu1 }
0x2992   :  { %6080 = vmax.xlane.f32.xlu1 %v6079_v52  ;;  %v6042_v46 = vpop.f32.mrb[159].mxu1  ;;  %v6061_v21 = vmul.f32 0.25, %v8185_v33  ;;  %v9185_v52 = vld [vmem:[%s12280_s3 + $0x30] sm:$0xff] }
0x2993   :  { %v6066_v36 = vadd.f32 %v9183_v20, %v6058_v44  ;;  %v6059_v51 = vmul.f32 0.25, %v6042_v46  ;;  %v6068_v30 = vadd.f32 %v9185_v52, %v6060_v42 }
0x2994   :  { %6077 = vmax.xlane.f32.xlu0 %v6076_v18  ;;  %v6069_v0 = vadd.f32 %v9186_v28, %v6061_v21 }
0x2995   :  { %v6067_v39 = vadd.f32 %v9184_v45, %v6059_v51  ;;  %v6082_v20 = vsel %vm190_vm0, %v6066_v36, -inf  ;;  %v6088_v33 = vsel %vm190_vm0, %v6068_v30, -inf }
0x2996   :  { %v6091_v46 = vsel %vm190_vm0, %v6069_v0, -inf }
0x2997   :  { %v6085_v44 = vsel %vm190_vm0, %v6067_v39, -inf }
0x2998   :  { %6083 = vmax.xlane.f32.xlu0 %v6082_v20  ;;  %6086 = vmax.xlane.f32.xlu1 %v6085_v44 }
0x299c   :  { %6089 = vmax.xlane.f32.xlu0 %v6088_v33  ;;  %6092 = vmax.xlane.f32.xlu1 %v6091_v46 }
0x29ad   :  { %6164 = vrot.lane.b32.xlu1 %v11497_v50, %s9195_s24 }
0x29b2   :  { %6162 = vrot.lane.b32.xlu0 %v11487_v8, %s9195_s24 }
0x2a1b   :  { %v6072_v18 = vpop.xlane.xlu1 %6071 }
0x2a1c   :  { %v6094_v45 = vsub.f32 %v6062_v2, %v6072_v18 }
0x2a1d   :  { %v6075_v42 = vpop.xlane.xlu0 %6074 }
0x2a1e   :  { %v6095_v21 = vsub.f32 %v6063_v54, %v6075_v42  ;;  %v6102_v10 = vmul.f32 1.442695, %v6094_v45 }
0x2a1f   :  { %v6081_v51 = vpop.xlane.xlu1 %6080 }
0x2a20   :  { %v6097_v52 = vsub.f32 %v6065_v49, %v6081_v51  ;;  %v6104_v28 = vmul.f32 1.442695, %v6095_v21 }
0x2a21   :  { %v6078_v20 = vpop.xlane.xlu0 %6077 }
0x2a22   :  { %v6108_v44 = vmul.f32 1.442695, %v6097_v52  ;;  %v6096_v35 = vsub.f32 %v6064_v63, %v6078_v20 }
0x2a24   :  { %9088 = vpow2.f32 %v6108_v44  ;;  %v6106_v33 = vmul.f32 1.442695, %v6096_v35 }
0x2a25   :  { %9090 = vpow2.f32 %v6104_v28  ;;  %v6084_v46 = vpop.xlane.xlu0 %6083  ;;  %v6087_v24 = vpop.xlane.xlu1 %6086 }
0x2a26   :  { %9092 = vpow2.f32 %v6106_v33  ;;  %v6098_v50 = vsub.f32 %v6066_v36, %v6084_v46  ;;  %v6099_v8 = vsub.f32 %v6067_v39, %v6087_v24 }
0x2a27   :  { %9094 = vpow2.f32 %v6102_v10 }
0x2a28   :  { %v6110_v2 = vmul.f32 1.442695, %v6098_v50  ;;  %v6112_v21 = vmul.f32 1.442695, %v6099_v8  ;;  %v12349_v50 = vpack.i.bf16 %v11771_v25, %v11765_v61  ;;  %v12350_v8 = vpack.i.bf16 %v11861_v62, %v11855_v43 }
0x2a29   :  { %v6090_v34 = vpop.xlane.xlu0 %6089  ;;  %v6093_v37 = vpop.xlane.xlu1 %6092  ;;  %v12353_v61 = vpack.i.bf16 %v11857_v40, %v11853_v27 }
0x2a2a   :  { %v6100_v54 = vsub.f32 %v6068_v30, %v6090_v34  ;;  %v6101_v42 = vsub.f32 %v6069_v0, %v6093_v37 }
0x2a2c   :  { %v6114_v49 = vmul.f32 1.442695, %v6100_v54  ;;  %v6116_v18 = vmul.f32 1.442695, %v6101_v42  ;;  %v12351_v54 = vpack.i.bf16 %v11767_v47, %v11763_v9 }
0x2a2d   :  { %v6163_v51 = vpop.permute.xlu0 %6162  ;;  %v6165_v45 = vpop.permute.xlu1 %6164 }
0x2a2e   :  { %v11913_v63 = vpop.eup %9088  ;;  %9096 = vpow2.f32 %v6114_v49  ;;  %8186 = vmatprep.subr.bf16.mxu0 %v6163_v51 }
0x2a2f   :  { %v9091_v35 = vpop.eup %9090  ;;  %9098 = vpow2.f32 %v6116_v18  ;;  %8187 = vmatpush3.bf16.msra.mxu0 %v6163_v51  ;;  %v6127_v10 = vsel %vm190_vm0, %v11913_v63, 0.0 }
0x2a30   :  { %v9093_v24 = vpop.eup %9092  ;;  %9100 = vpow2.f32 %v6110_v2  ;;  %6128 = vadd.xlane.f32.xlu1 %v6127_v10  ;;  %8188 = vmatprep.subr.bf16.mxu0 %v6165_v45  ;;  %v6121_v0 = vsel %vm190_vm0, %v9091_v35, 0.0 }
0x2a31   :  { %9102 = vpow2.f32 %v6112_v21  ;;  %v6124_v37 = vsel %vm190_vm0, %v9093_v24, 0.0  ;;  %v9095_v34 = vpop.eup %9094 }
0x2a32   :  { %6125 = vadd.xlane.f32.xlu0 %v6124_v37  ;;  %v6118_v30 = vsel %vm190_vm0, %v9095_v34, 0.0 }
0x2a33   :  { %8189 = vmatpush3.bf16.msra.mxu0 %v6165_v45 }
0x2a34   :  { %6122 = vadd.xlane.f32.xlu1 %v6121_v0 }
0x2a36   :  { %6119 = vadd.xlane.f32.xlu0 %v6118_v30 }
0x2a38   :  { %v9097_v36 = vpop.eup %9096 }
0x2a39   :  { %v9099_v39 = vpop.eup %9098  ;;  %v6136_v52 = vsel %vm190_vm0, %v9097_v36, 0.0 }
0x2a3a   :  { %v9101_v28 = vpop.eup %9100  ;;  %6137 = vadd.xlane.f32.xlu0 %v6136_v52  ;;  %v6139_v20 = vsel %vm190_vm0, %v9099_v39, 0.0 }
0x2a3b   :  { %v9103_v44 = vpop.eup %9102  ;;  %6140 = vadd.xlane.f32.xlu1 %v6139_v20  ;;  %v6130_v33 = vsel %vm190_vm0, %v9101_v28, 0.0 }
0x2a3c   :  { %v6133_v46 = vsel %vm190_vm0, %v9103_v44, 0.0 }
0x2a3e   :  { %6131 = vadd.xlane.f32.xlu0 %v6130_v33 }
0x2a3f   :  { %6134 = vadd.xlane.f32.xlu1 %v6133_v46 }
0x2a50   :  { %6166 = vrot.lane.b32.xlu1 %v11505_v3, %s9195_s24  ;;  %v12352_v3 = vpack.i.bf16 %v11783_v53, %v11777_v26 }
0x2a54   :  { %8453 = vrot.lane.b32.xlu1 %v12349_v50, %s9194_s23  ;;  %6168 = vrot.lane.b32.xlu0 %v11513_v5, %s9195_s24  ;;  %v12354_v5 = vpack.i.bf16 %v11779_v32, %v11775_v57 }
0x2a58   :  { %8463 = vrot.lane.b32.xlu1 %v12350_v8, %s9191_s20  ;;  %8458 = vrot.lane.b32.xlu0 %v12351_v54, %s9194_s23 }
0x2a5c   :  { %8473 = vrot.lane.b32.xlu1 %v12352_v3, %s9194_s23  ;;  %8468 = vrot.lane.b32.xlu0 %v12353_v61, %s9191_s20 }
0x2a60   :  { %8478 = vrot.lane.b32.xlu0 %v12354_v5, %s9194_s23 }
0x2abd   :  { %v6129_v25 = vpop.xlane.xlu1 %6128 }
0x2abf   :  { %v6126_v43 = vpop.xlane.xlu0 %6125 }
0x2ac1   :  { %v6123_v62 = vpop.xlane.xlu1 %6122 }
0x2ac2   :  { %9104 = vrcp.f32 %v6123_v62 }
0x2ac3   :  { %v6120_v9 = vpop.xlane.xlu0 %6119 }
0x2ac4   :  { %9106 = vrcp.f32 %v6120_v9  ;;  %v12356_v9 = vpack.i.bf16 %v11873_v29, %v11867_v48 }
0x2ac5   :  { %9108 = vrcp.f32 %v6126_v43  ;;  %v12355_v43 = vpack.i.bf16 %v11869_v38, %v11865_v16 }
0x2ac6   :  { %9110 = vrcp.f32 %v6129_v25 }
0x2ac7   :  { %v6138_v47 = vpop.xlane.xlu0 %6137 }
0x2ac8   :  { %v6141_v26 = vpop.xlane.xlu1 %6140  ;;  %9112 = vrcp.f32 %v6138_v47 }
0x2acb   :  { %v6132_v53 = vpop.xlane.xlu0 %6131 }
0x2acc   :  { %v9105_v42 = vpop.eup %9104  ;;  %9114 = vrcp.f32 %v6132_v53  ;;  %v6135_v27 = vpop.xlane.xlu1 %6134 }
0x2acd   :  { %9116 = vrcp.f32 %v6135_v27  ;;  %v6145_v32 = vmul.f32 %v9105_v42, %v9091_v35 }
0x2ace   :  { %v9107_v40 = vpop.eup %9106  ;;  %9118 = vrcp.f32 %v6141_v26 }
0x2acf   :  { %v6143_v57 = vmul.f32 %v9107_v40, %v9095_v34  ;;  %v9109_v2 = vpop.eup %9108  ;;  %v6169_v51 = vpop.permute.xlu0 %6168 }
0x2ad0   :  { %v6167_v49 = vpop.permute.xlu1 %6166  ;;  %v9111_v21 = vpop.eup %9110  ;;  %v6147_v45 = vmul.f32 %v9109_v2, %v9093_v24 }
0x2ad1   :  { %8190 = vmatprep.subr.bf16.mxu0 %v6167_v49  ;;  %v6158_v18 = vpack.c.bf16 %v6145_v32, %v6143_v57  ;;  %v6149_v37 = vmul.f32 %v9111_v21, %v11913_v63  ;;  %v8604_v63 = vld [vmem:[%s12281_s5 + $0x40] sm:$0xff]  }
0x2ad2   :  { %8191 = vmatpush3.bf16.msra.mxu0 %v6167_v49  ;;  %v9113_v10 = vpop.eup %9112 }
0x2ad3   :  { %8192 = vmatprep.subr.bf16.mxu0 %v6169_v51  ;;  %8194 = vmatprep.mubr.msk.bf16.mxu0 %vm190_vm0, %v6158_v18  ;;  %v6159_v52 = vpack.c.bf16 %v6149_v37, %v6147_v45  ;;  %v6155_v46 = vmul.f32 %v9113_v10, %v9097_v36  ;;  %v8606_v36 = vld [vmem:[%s12281_s5 + $0x50] sm:$0xff]   ;;  %v8459_v27 = vpop.permute.xlu0 %8458 }
0x2ad4   :  { %v8454_v40 = vpop.permute.xlu1 %8453  ;;  %v8461_v16 = vunpack.i.h.bf16 %v8459_v27  ;;  %v8460_v38 = vunpack.i.l.bf16 %v8459_v27 }
0x2ad5   :  { %v8456_v2 = vunpack.i.h.bf16 %v8454_v40  ;;  %v8455_v18 = vunpack.i.l.bf16 %v8454_v40 }
0x2ad6   :  { %v9115_v0 = vpop.eup %9114  ;;  %8193 = vmatpush3.bf16.msra.mxu0 %v6169_v51  ;;  %v6350_v10 = vsel %vm572_vm1, %v11663_v60, %v8461_v16  ;;  %v6349_v37 = vsel %vm572_vm1, %v11659_v1, %v8460_v38 }
0x2ad7   :  { %v9117_v30 = vpop.eup %9116  ;;  %v6151_v34 = vmul.f32 %v9115_v0, %v9101_v28  ;;  %v8605_v28 = vld [vmem:[%s12281_s5 + $0x48] sm:$0xff]   ;;  %8202 = vmatprep.subr.bf16.mxu0 %v8604_v63  ;;  %v8469_v57 = vpop.permute.xlu0 %8468  ;;  %v6348_v0 = vsel %vm572_vm1, %v11665_v15, %v8456_v2 }
0x2ad8   :  { %v9119_v35 = vpop.eup %9118  ;;  %v6153_v20 = vmul.f32 %v9117_v30, %v9103_v44  ;;  %v8464_v32 = vpop.permute.xlu1 %8463  ;;  %v8470_v21 = vunpack.i.l.bf16 %v8469_v57  ;;  %v8471_v29 = vunpack.i.h.bf16 %v8469_v57 }
0x2ad9   :  { %8195 = vmatmul.mubr.msk.bf16.vlgmr.msra.gmra.mrb[136].mxu0 %vm190_vm0, %v6159_v52  ;;  %v6157_v50 = vmul.f32 %v9119_v35, %v9099_v39  ;;  %v8607_v39 = vld [vmem:[%s12281_s5 + $0x58] sm:$0xff]   ;;  %v8465_v51 = vunpack.i.l.bf16 %v8464_v32  ;;  %v8466_v45 = vunpack.i.h.bf16 %v8464_v32  ;;  %v6347_v52 = vsel %vm572_vm1, %v11661_v7, %v8455_v18 }
0x2ada   :  { %v6160_v33 = vpack.c.bf16 %v6153_v20, %v6151_v34  ;;  %8203 = vmatpush3.bf16.msra.mxu0 %v8604_v63  ;;  %v6357_v34 = vsel %vm1861_vm2, %v6349_v37, %v8470_v21 }
0x2adb   :  { %v6161_v24 = vpack.c.bf16 %v6157_v50, %v6155_v46  ;;  %8204 = vmatprep.subr.bf16.mxu0 %v8605_v28  ;;  %v8479_v49 = vpop.permute.xlu0 %8478  ;;  %v6358_v46 = vsel %vm1861_vm2, %v6350_v10, %v8471_v29  ;;  %v6355_v50 = vsel %vm1861_vm2, %v6347_v52, %v8465_v51  ;;  %v6356_v1 = vsel %vm1861_vm2, %v6348_v0, %v8466_v45  ;;  %v12020_v51 = vld [vmem:[%s12279_s8 + $0x20] sm:$0xff] }
0x2adc   :  { %8198 = vmatprep.mubr.msk.bf16.mxu0 %vm190_vm0, %v6160_v33  ;;  %v8474_v48 = vpop.permute.xlu1 %8473  ;;  %v8481_v63 = vunpack.i.h.bf16 %v8479_v49  ;;  %v6387_v45 = vrot.slane %v12020_v51, %v10204_v19 }
0x2ade   :  { %8205 = vmatpush3.bf16.msra.mxu0 %v8605_v28 }
0x2adf   :  { %8206 = vmatprep.subr.bf16.mxu0 %v8606_v36 }
0x2ae1   :  { %8199 = vmatmul.mubr.msk.bf16.gmra.mrb[140].mxu0 %vm190_vm0, %v6161_v24 }
0x2ae2   :  { %8207 = vmatpush3.bf16.msra.mxu0 %v8606_v36  ;;  %v8480_v36 = vunpack.i.l.bf16 %v8479_v49 }
0x2ae3   :  { %8208 = vmatprep.subr.bf16.mxu0 %v8607_v39 }
0x2ae6   :  { %8209 = vmatpush3.bf16.msra.mxu0 %v8607_v39 }
0x2bac   :  { %v8196_v44 = vpop.f32.mrb[136].mxu0 }
0x2bad   :  { %v6220_v8 = vpop.f32.mrb[137].mxu0 }
0x2bae   :  { %v8197_v54 = vpop.f32.mrb[138].mxu0 }
0x2baf   :  { %v8482_v3 = vpack.i.bf16 %v8197_v54, %v8196_v44  ;;  %v6223_v61 = vpop.f32.mrb[139].mxu0  ;;  %v8476_v54 = vunpack.i.h.bf16 %v8474_v48 }
0x2bb0   :  { %v8487_v5 = vpack.i.bf16 %v6223_v61, %v6220_v8 }
0x2bb1   :  { %8483 = vrot.lane.b32.xlu0 %v8482_v3, %s9189_s19  ;;  %v8475_v3 = vunpack.i.l.bf16 %v8474_v48 }
0x2bb2   :  { %8488 = vrot.lane.b32.xlu1 %v8487_v5, %s9189_s19 }
0x2bb3   :  { %v6351_v27 = vsel %vm572_vm1, %v11669_v12, %v8475_v3 }
0x2bb4   :  { %v8200_v25 = vpop.f32.mrb[140].mxu0 }
0x2bb5   :  { %8498 = vrot.lane.b32.xlu0 %v12355_v43, %s9191_s20  ;;  %v6236_v62 = vpop.f32.mrb[141].mxu0 }
0x2bb6   :  { %8493 = vrot.lane.b32.xlu1 %v12356_v9, %s9191_s20  ;;  %v8201_v47 = vpop.f32.mrb[142].mxu0 }
0x2bb7   :  { %v8507_v26 = vpack.i.bf16 %v8201_v47, %v8200_v25  ;;  %v6239_v53 = vpop.f32.mrb[143].mxu0  ;;  %v6354_v47 = vsel %vm572_vm1, %v11671_v22, %v8481_v63 }
0x2bb8   :  { %v8502_v42 = vpack.i.bf16 %v6239_v53, %v6236_v62 }
0x2bb9   :  { %8508 = vrot.lane.b32.xlu0 %v8507_v26, %s9189_s19  ;;  %v6353_v26 = vsel %vm572_vm1, %v11667_v6, %v8480_v36 }
0x2bba   :  { %8503 = vrot.lane.b32.xlu1 %v8502_v42, %s9189_s19  ;;  %v6352_v42 = vsel %vm572_vm1, %v11673_v41, %v8476_v54 }
0x2c23   :  { %v8484_v30 = vpop.permute.xlu0 %8483 }
0x2c24   :  { %v8486_v35 = vunpack.i.h.bf16 %v8484_v30  ;;  %v8485_v20 = vunpack.i.l.bf16 %v8484_v30  ;;  %v8489_v33 = vpop.permute.xlu1 %8488 }
0x2c25   :  { %v8491_v60 = vunpack.i.h.bf16 %v8489_v33  ;;  %v8490_v24 = vunpack.i.l.bf16 %v8489_v33 }
0x2c26   :  { %v6366_v15 = vsel %vm1870_vm3, %v6358_v46, %v8486_v35  ;;  %v6365_v28 = vsel %vm1870_vm3, %v6357_v34, %v8485_v20 }
0x2c27   :  { %v6372_v7 = vpack.c.bf16 %v6366_v15, %v6365_v28  ;;  %v6363_v39 = vsel %vm1870_vm3, %v6355_v50, %v8490_v24  ;;  %v6364_v44 = vsel %vm1870_vm3, %v6356_v1, %v8491_v60  ;;  %v8499_v8 = vpop.permute.xlu0 %8498 }
0x2c28   :  { %v6371_v61 = vpack.c.bf16 %v6364_v44, %v6363_v39  ;;  %v8494_v5 = vpop.permute.xlu1 %8493  ;;  %v8501_v25 = vunpack.i.h.bf16 %v8499_v8  ;;  %v8500_v43 = vunpack.i.l.bf16 %v8499_v8 }
0x2c29   :  { %v8496_v62 = vunpack.i.h.bf16 %v8494_v5  ;;  %v8495_v9 = vunpack.i.l.bf16 %v8494_v5 }
0x2c2a   :  { %8210 = vmatprep.mubr.msk.bf16.mxu0 %vm190_vm0, %v6371_v61  ;;  %v6362_v16 = vsel %vm1861_vm2, %v6354_v47, %v8501_v25  ;;  %v6361_v38 = vsel %vm1861_vm2, %v6353_v26, %v8500_v43 }
0x2c2b   :  { %v8509_v53 = vpop.permute.xlu0 %8508  ;;  %8211 = vmatmul.mubr.msk.bf16.vlgmr.msra.gmra.mrb[144].mxu0 %vm190_vm0, %v6372_v7  ;;  %v6359_v6 = vsel %vm1861_vm2, %v6351_v27, %v8495_v9  ;;  %v6360_v49 = vsel %vm1861_vm2, %v6352_v42, %v8496_v62 }
0x2c2c   :  { %v8511_v40 = vunpack.i.h.bf16 %v8509_v53  ;;  %v8510_v57 = vunpack.i.l.bf16 %v8509_v53  ;;  %v8504_v32 = vpop.permute.xlu1 %8503 }
0x2c2d   :  { %v8506_v22 = vunpack.i.h.bf16 %v8504_v32  ;;  %v8505_v2 = vunpack.i.l.bf16 %v8504_v32 }
0x2c2e   :  { %v6370_v18 = vsel %vm1870_vm3, %v6362_v16, %v8511_v40  ;;  %v6369_v41 = vsel %vm1870_vm3, %v6361_v38, %v8510_v57 }
0x2c2f   :  { %v6374_v21 = vpack.c.bf16 %v6370_v18, %v6369_v41  ;;  %v6367_v12 = vsel %vm1870_vm3, %v6359_v6, %v8505_v2  ;;  %v6368_v48 = vsel %vm1870_vm3, %v6360_v49, %v8506_v22 }
0x2c30   :  { %v6373_v29 = vpack.c.bf16 %v6368_v48, %v6367_v12 }
0x2c32   :  { %8214 = vmatprep.mubr.msk.bf16.mxu0 %vm190_vm0, %v6373_v29 }
0x2c33   :  { %8215 = vmatmul.mubr.msk.bf16.gmra.mrb[148].mxu0 %vm190_vm0, %v6374_v21 }
0x2cfe   :  { %v8212_v10 = vpop.f32.mrb[144].mxu0 }
0x2cff   :  { %v6458_v37 = vpop.f32.mrb[145].mxu0  ;;  %v6467_v52 = vadd.f32 %v8212_v10, %v6387_v45 }
0x2d00   :  { %v6459_v0 = vadd.f32 %v6458_v37, %v6387_v45  ;;  %v8213_v30 = vpop.f32.mrb[146].mxu0 }
0x2d01   :  { %v6470_v34 = vadd.f32 %v8213_v30, %v6387_v45  ;;  %v6461_v35 = vpop.f32.mrb[147].mxu0  ;;  %v12036_v60 = vadd.f32 %v6467_v52, %v11355_v11 }
0x2d02   :  { %v12025_v20 = vadd.f32 %v6459_v0, %v11346_v58  ;;  %v6462_v33 = vadd.f32 %v6461_v35, %v6387_v45 }
0x2d03   :  { %v12028_v46 = vadd.f32 %v6470_v34, %v11349_v23  ;;  %v6503_v28 = vsel %vm190_vm0, %v12036_v60, 0.0 }
0x2d04   :  { %v12031_v50 = vadd.f32 %v6462_v33, %v11351_v31  ;;  %v6497_v19 = vsel %vm190_vm0, %v12025_v20, 0.0 }
0x2d05   :  { %6498 = vadd.xlane.f32.xlu1 %v6497_v19  ;;  %v6506_v23 = vsel %vm190_vm0, %v12028_v46, 0.0 }
0x2d06   :  { %v8216_v24 = vpop.f32.mrb[148].mxu0  ;;  %v6500_v1 = vsel %vm190_vm0, %v12031_v50, 0.0 }
0x2d07   :  { %v6474_v58 = vpop.f32.mrb[149].mxu0  ;;  %6501 = vadd.xlane.f32.xlu0 %v6500_v1  ;;  %v6483_v36 = vadd.f32 %v8216_v24, %v6387_v45 }
0x2d08   :  { %v6475_v63 = vadd.f32 %v6474_v58, %v6387_v45  ;;  %v8217_v15 = vpop.f32.mrb[150].mxu0 }
0x2d09   :  { %v6477_v31 = vpop.f32.mrb[151].mxu0  ;;  %6507 = vadd.xlane.f32.xlu1 %v6506_v23  ;;  %v6486_v7 = vadd.f32 %v8217_v15, %v6387_v45  ;;  %v12051_v8 = vadd.f32 %v6483_v36, %v11369_v59  ;;  %v8609_v15 = vld [vmem:[%s12282_s6 + $0x48] sm:$0xff]   ;;  %v8610_v23 = vld [vmem:[%s12282_s6 + $0x50] sm:$0xff]  }
0x2d0a   :  { %v12045_v11 = vadd.f32 %v6475_v63, %v11365_v4  ;;  %v6478_v39 = vadd.f32 %v6477_v31, %v6387_v45  ;;  %v8608_v63 = vld [vmem:[%s12282_s6 + $0x40] sm:$0xff]   ;;  %v8611_v31 = vld [vmem:[%s12282_s6 + $0x58] sm:$0xff]  }
0x2d0b   :  { %6504 = vadd.xlane.f32.xlu0 %v6503_v28  ;;  %v12054_v54 = vadd.f32 %v6486_v7, %v11375_v17  ;;  %v6515_v4 = vsel %vm190_vm0, %v12051_v8, 0.0  ;;  %8218 = vmatprep.subr.bf16.mxu1 %v8608_v63 }
0x2d0c   :  { %v12048_v44 = vadd.f32 %v6478_v39, %v11371_v13  ;;  %v6509_v3 = vsel %vm190_vm0, %v12045_v11, 0.0  ;;  %8219 = vmatpush3.bf16.msra.mxu1 %v8608_v63 }
0x2d0d   :  { %v6518_v13 = vsel %vm190_vm0, %v12054_v54, 0.0  ;;  %8220 = vmatprep.subr.bf16.mxu1 %v8609_v15 }
0x2d0e   :  { %v6512_v61 = vsel %vm190_vm0, %v12048_v44, 0.0 }
0x2d0f   :  { %6510 = vadd.xlane.f32.xlu0 %v6509_v3  ;;  %6513 = vadd.xlane.f32.xlu1 %v6512_v61 }
0x2d10   :  { %8221 = vmatpush3.bf16.msra.mxu1 %v8609_v15 }
0x2d11   :  { %8222 = vmatprep.subr.bf16.mxu1 %v8610_v23 }
0x2d13   :  { %6516 = vadd.xlane.f32.xlu0 %v6515_v4  ;;  %6519 = vadd.xlane.f32.xlu1 %v6518_v13 }
0x2d14   :  { %8223 = vmatpush3.bf16.msra.mxu1 %v8610_v23 }
0x2d15   :  { %8224 = vmatprep.subr.bf16.mxu1 %v8611_v31 }
0x2d18   :  { %8225 = vmatpush3.bf16.msra.mxu1 %v8611_v31 }
0x2d92   :  { %v6499_v59 = vpop.xlane.xlu1 %6498 }
0x2d93   :  { %v6521_v5 = vmul.f32 0.015625, %v6499_v59 }
0x2d94   :  { %v6502_v17 = vpop.xlane.xlu0 %6501 }
0x2d95   :  { %v12065_v25 = vsub.f32 %v12025_v20, %v6521_v5  ;;  %v6522_v43 = vmul.f32 0.015625, %v6502_v17 }
0x2d96   :  { %v6508_v62 = vpop.xlane.xlu1 %6507 }
0x2d97   :  { %v12068_v9 = vsub.f32 %v12031_v50, %v6522_v43  ;;  %v6524_v47 = vmul.f32 0.015625, %v6508_v62  ;;  %v6537_v26 = vmul.f32 %v12065_v25, %v12065_v25 }
0x2d98   :  { %v6505_v53 = vpop.xlane.xlu0 %6504 }
0x2d99   :  { %v12073_v42 = vsub.f32 %v12028_v46, %v6524_v47  ;;  %v6523_v27 = vmul.f32 0.015625, %v6505_v53  ;;  %v6545_v40 = vsel %vm190_vm0, %v6537_v26, 0.0  ;;  %v6538_v57 = vmul.f32 %v12068_v9, %v12068_v9 }
0x2d9a   :  { %6546 = vadd.xlane.f32.xlu0 %v6545_v40 }
0x2d9b   :  { %v12079_v32 = vsub.f32 %v12036_v60, %v6523_v27  ;;  %v6548_v16 = vsel %vm190_vm0, %v6538_v57, 0.0  ;;  %v6540_v38 = vmul.f32 %v12073_v42, %v12073_v42  ;;  %v6604_v57 = vrot.slane %v12020_v51, %v10314_v55 }
0x2d9c   :  { %v6511_v22 = vpop.xlane.xlu0 %6510  ;;  %6549 = vadd.xlane.f32.xlu1 %v6548_v16  ;;  %v6514_v2 = vpop.xlane.xlu1 %6513 }
0x2d9d   :  { %v6525_v6 = vmul.f32 0.015625, %v6511_v22  ;;  %v6526_v49 = vmul.f32 0.015625, %v6514_v2  ;;  %v6539_v18 = vmul.f32 %v12079_v32, %v12079_v32  ;;  %v6554_v48 = vsel %vm190_vm0, %v6540_v38, 0.0 }
0x2d9f   :  { %v12087_v41 = vsub.f32 %v12045_v11, %v6525_v6  ;;  %v12090_v21 = vsub.f32 %v12048_v44, %v6526_v49  ;;  %v6551_v12 = vsel %vm190_vm0, %v6539_v18, 0.0 }
0x2da0   :  { %v6517_v29 = vpop.xlane.xlu0 %6516  ;;  %6552 = vadd.xlane.f32.xlu0 %v6551_v12  ;;  %6555 = vadd.xlane.f32.xlu1 %v6554_v48  ;;  %v6520_v45 = vpop.xlane.xlu1 %6519 }
0x2da1   :  { %v6527_v10 = vmul.f32 0.015625, %v6517_v29  ;;  %v6528_v37 = vmul.f32 0.015625, %v6520_v45  ;;  %v6541_v0 = vmul.f32 %v12087_v41, %v12087_v41  ;;  %v6542_v30 = vmul.f32 %v12090_v21, %v12090_v21 }
0x2da2   :  { %v6616_v45 = vrot.slane %v12020_v51, %v10319_v56 }
0x2da3   :  { %v12099_v52 = vsub.f32 %v12051_v8, %v6527_v10  ;;  %v12102_v34 = vsub.f32 %v12054_v54, %v6528_v37  ;;  %v6557_v35 = vsel %vm190_vm0, %v6541_v0, 0.0  ;;  %v6560_v33 = vsel %vm190_vm0, %v6542_v30, 0.0 }
0x2da4   :  { %6558 = vadd.xlane.f32.xlu0 %v6557_v35  ;;  %6561 = vadd.xlane.f32.xlu1 %v6560_v33 }
0x2da5   :  { %v6543_v19 = vmul.f32 %v12099_v52, %v12099_v52  ;;  %v6544_v24 = vmul.f32 %v12102_v34, %v12102_v34 }
0x2da7   :  { %v6563_v1 = vsel %vm190_vm0, %v6543_v19, 0.0  ;;  %v6566_v58 = vsel %vm190_vm0, %v6544_v24, 0.0 }
0x2da8   :  { %6564 = vadd.xlane.f32.xlu0 %v6563_v1  ;;  %6567 = vadd.xlane.f32.xlu1 %v6566_v58 }
0x2e27   :  { %v6547_v28 = vpop.xlane.xlu0 %6546 }
0x2e28   :  { %v6569_v36 = vmul.f32 0.015625, %v6547_v28 }
0x2e29   :  { %v6550_v7 = vpop.xlane.xlu1 %6549 }
0x2e2a   :  { %v6577_v39 = vadd.f32 1e-06, %v6569_v36  ;;  %v6570_v3 = vmul.f32 0.015625, %v6550_v7 }
0x2e2c   :  { %9120 = vrsqrt.f32 %v6577_v39  ;;  %v6578_v61 = vadd.f32 1e-06, %v6570_v3 }
0x2e2d   :  { %v6553_v4 = vpop.xlane.xlu0 %6552  ;;  %v6556_v13 = vpop.xlane.xlu1 %6555 }
0x2e2e   :  { %9122 = vrsqrt.f32 %v6578_v61  ;;  %v6571_v59 = vmul.f32 0.015625, %v6553_v4  ;;  %v6572_v5 = vmul.f32 0.015625, %v6556_v13 }
0x2e30   :  { %v6579_v17 = vadd.f32 1e-06, %v6571_v59  ;;  %v6580_v43 = vadd.f32 1e-06, %v6572_v5 }
0x2e31   :  { %v6559_v62 = vpop.xlane.xlu0 %6558  ;;  %v6562_v47 = vpop.xlane.xlu1 %6561 }
0x2e32   :  { %9124 = vrsqrt.f32 %v6579_v17  ;;  %v6573_v26 = vmul.f32 0.015625, %v6559_v62  ;;  %v6574_v53 = vmul.f32 0.015625, %v6562_v47  ;;  %v8614_v17 = vld [vmem:[%s12283_s7 + $0x90] sm:$0xff]   ;;  %v8616_v62 = vld [vmem:[%s12283_s7 + $0xa0] sm:$0xff]   ;;  %v8617_v47 = vld [vmem:[%s12283_s7 + $0xa8] sm:$0xff]  }
0x2e33   :  { %9126 = vrsqrt.f32 %v6580_v43  ;;  %v8615_v43 = vld [vmem:[%s12283_s7 + $0x98] sm:$0xff]  }
0x2e34   :  { %v6581_v27 = vadd.f32 1e-06, %v6573_v26  ;;  %v6582_v40 = vadd.f32 1e-06, %v6574_v53  ;;  %v8618_v26 = vld [vmem:[%s12283_s7 + $0xb0] sm:$0xff]   ;;  %v8619_v53 = vld [vmem:[%s12283_s7 + $0xb8] sm:$0xff]  }
0x2e35   :  { %v6565_v16 = vpop.xlane.xlu0 %6564  ;;  %v6568_v38 = vpop.xlane.xlu1 %6567 }
0x2e36   :  { %v9121_v22 = vpop.eup %9120  ;;  %9128 = vrsqrt.f32 %v6581_v27  ;;  %v6575_v2 = vmul.f32 0.015625, %v6565_v16  ;;  %v6576_v6 = vmul.f32 0.015625, %v6568_v38  ;;  %v8620_v27 = vld [vmem:[%s12285_s10] sm:$0xff]  }
0x2e37   :  { %v6593_v49 = vmul.f32 %v9121_v22, %v12065_v25  ;;  %9130 = vrsqrt.f32 %v6582_v40  ;;  %v8621_v40 = vld [vmem:[%s12285_s10 + $0x8] sm:$0xff]   ;;  %8258 = vmatprep.subr.bf16.mxu1 %v8620_v27 }
0x2e38   :  { %v9123_v18 = vpop.eup %9122  ;;  %v6583_v12 = vadd.f32 1e-06, %v6575_v2  ;;  %v6584_v48 = vadd.f32 1e-06, %v6576_v6 }
0x2e39   :  { %v6594_v29 = vmul.f32 %v9123_v18, %v12068_v9  ;;  %v6605_v10 = vmul.f32 %v6604_v57, %v6593_v49 }
0x2e3a   :  { %9132 = vrsqrt.f32 %v6583_v12 }
0x2e3b   :  { %9134 = vrsqrt.f32 %v6584_v48  ;;  %v6606_v55 = vmul.f32 %v6604_v57, %v6594_v29  ;;  %v6617_v35 = vadd.f32 %v6616_v45, %v6605_v10 }
0x2e3c   :  { %v9125_v37 = vpop.eup %9124 }
0x2e3d   :  { %v9127_v0 = vpop.eup %9126  ;;  %v6595_v30 = vmul.f32 %v9125_v37, %v12079_v32  ;;  %v6618_v33 = vadd.f32 %v6616_v45, %v6606_v55 }
0x2e3e   :  { %v6596_v25 = vmul.f32 %v9127_v0, %v12073_v42 }
0x2e3f   :  { %v6607_v19 = vmul.f32 %v6604_v57, %v6595_v30  ;;  %v6625_v24 = vpack.c.bf16 %v6618_v33, %v6617_v35 }
0x2e40   :  { %v9129_v1 = vpop.eup %9128  ;;  %v6608_v58 = vmul.f32 %v6604_v57, %v6596_v25 }
0x2e41   :  { %v9131_v9 = vpop.eup %9130  ;;  %v6619_v63 = vadd.f32 %v6616_v45, %v6607_v19  ;;  %v6597_v56 = vmul.f32 %v9129_v1, %v12087_v41  ;;  %8226 = vmatprep.mubr.msk.bf16.mxu1 %vm190_vm0, %v6625_v24 }
0x2e42   :  { %v6620_v15 = vadd.f32 %v6616_v45, %v6608_v58  ;;  %v6598_v23 = vmul.f32 %v9131_v9, %v12090_v21 }
0x2e43   :  { %v6609_v31 = vmul.f32 %v6604_v57, %v6597_v56 }
0x2e44   :  { %v9133_v28 = vpop.eup %9132  ;;  %v6626_v32 = vpack.c.bf16 %v6620_v15, %v6619_v63  ;;  %v6610_v36 = vmul.f32 %v6604_v57, %v6598_v23 }
0x2e45   :  { %v9135_v7 = vpop.eup %9134  ;;  %v6599_v42 = vmul.f32 %v9133_v28, %v12099_v52  ;;  %v6621_v39 = vadd.f32 %v6616_v45, %v6609_v31  ;;  %v8612_v52 = vld [vmem:[%s12283_s7 + $0x80] sm:$0xff]  }
0x2e46   :  { %v6600_v3 = vmul.f32 %v9135_v7, %v12102_v34  ;;  %8227 = vmatmul.mubr.msk.bf16.vlgmr.msra.gmra.mrb[160].mxu1 %vm190_vm0, %v6626_v32  ;;  %v6622_v61 = vadd.f32 %v6616_v45, %v6610_v36  ;;  %8234 = vmatprep.subr.bf16.mxu0 %v8612_v52  ;;  %v8613_v34 = vld [vmem:[%s12283_s7 + $0x88] sm:$0xff]  }
0x2e47   :  { %v6611_v4 = vmul.f32 %v6604_v57, %v6599_v42  ;;  %8235 = vmatpush3.bf16.msra.mxu0 %v8612_v52  ;;  %8259 = vmatpush3.bf16.msra.mxu1 %v8620_v27 }
0x2e48   :  { %v6627_v41 = vpack.c.bf16 %v6622_v61, %v6621_v39  ;;  %v6612_v13 = vmul.f32 %v6604_v57, %v6600_v3  ;;  %8236 = vmatprep.subr.bf16.mxu0 %v8613_v34  ;;  %8260 = vmatprep.subr.bf16.mxu1 %v8621_v40  ;;  %v6641_v57 = vrot.slane %v12020_v51, %v12344_v14 }
0x2e49   :  { %v6623_v59 = vadd.f32 %v6616_v45, %v6611_v4 }
0x2e4a   :  { %8230 = vmatprep.mubr.msk.bf16.mxu1 %vm190_vm0, %v6627_v41  ;;  %v6624_v21 = vadd.f32 %v6616_v45, %v6612_v13 }
0x2e4b   :  { %8237 = vmatpush3.bf16.msra.mxu0 %v8613_v34  ;;  %8261 = vmatpush3.bf16.msra.mxu1 %v8621_v40 }
0x2e4c   :  { %v6628_v5 = vpack.c.bf16 %v6624_v21, %v6623_v59  ;;  %8238 = vmatprep.subr.bf16.mxu0 %v8614_v17 }
0x2e4e   :  { %8231 = vmatmul.mubr.msk.bf16.gmra.mrb[164].mxu1 %vm190_vm0, %v6628_v5 }
0x2e4f   :  { %8239 = vmatpush3.bf16.msra.mxu0 %v8614_v17 }
0x2e50   :  { %8240 = vmatprep.subr.bf16.mxu0 %v8615_v43 }
0x2e53   :  { %8241 = vmatpush3.bf16.msra.mxu0 %v8615_v43 }
0x2e54   :  { %8242 = vmatprep.subr.bf16.mxu0 %v8616_v62 }
0x2e57   :  { %8243 = vmatpush3.bf16.msra.mxu0 %v8616_v62 }
0x2e58   :  { %8244 = vmatprep.subr.bf16.mxu0 %v8617_v47 }
0x2e5b   :  { %8245 = vmatpush3.bf16.msra.mxu0 %v8617_v47 }
0x2e5c   :  { %8246 = vmatprep.subr.bf16.mxu0 %v8618_v26 }
0x2e5f   :  { %8247 = vmatpush3.bf16.msra.mxu0 %v8618_v26 }
0x2e60   :  { %8248 = vmatprep.subr.bf16.mxu0 %v8619_v53 }
0x2e63   :  { %8249 = vmatpush3.bf16.msra.mxu0 %v8619_v53 }
0x2f19   :  { %v8228_v16 = vpop.f32.mrb[160].mxu1 }
0x2f1a   :  { %v12172_v38 = vadd.f32 %v8228_v16, %v6641_v57  ;;  %v6712_v22 = vpop.f32.mrb[161].mxu1 }
0x2f1b   :  { %v12174_v2 = vadd.f32 %v6712_v22, %v6641_v57  ;;  %v8229_v6 = vpop.f32.mrb[162].mxu1 }
0x2f1c   :  { %v6745_v49 = vmul.f32 %v12172_v38, %v12172_v38  ;;  %v12178_v18 = vadd.f32 %v8229_v6, %v6641_v57  ;;  %v6715_v12 = vpop.f32.mrb[163].mxu1 }
0x2f1d   :  { %v6743_v48 = vmul.f32 %v12174_v2, %v12174_v2  ;;  %v12182_v29 = vadd.f32 %v6715_v12, %v6641_v57 }
0x2f1e   :  { %v6753_v14 = vmul.f32 %v6745_v49, %v12172_v38  ;;  %v6746_v45 = vmul.f32 %v12178_v18, %v12178_v18 }
0x2f1f   :  { %v6751_v10 = vmul.f32 %v6743_v48, %v12174_v2  ;;  %v6744_v55 = vmul.f32 %v12182_v29, %v12182_v29 }
0x2f20   :  { %v6761_v37 = vmul.f32 0.044715, %v6753_v14  ;;  %v6754_v0 = vmul.f32 %v6746_v45, %v12178_v18 }
0x2f21   :  { %v6759_v30 = vmul.f32 0.044715, %v6751_v10  ;;  %v6752_v35 = vmul.f32 %v6744_v55, %v12182_v29  ;;  %v8232_v33 = vpop.f32.mrb[164].mxu1 }
0x2f22   :  { %v6769_v25 = vadd.f32 %v6761_v37, %v12172_v38  ;;  %v6762_v19 = vmul.f32 0.044715, %v6754_v0  ;;  %v12193_v24 = vadd.f32 %v8232_v33, %v6641_v57  ;;  %v6728_v1 = vpop.f32.mrb[165].mxu1 }
0x2f23   :  { %v6767_v58 = vadd.f32 %v6759_v30, %v12174_v2  ;;  %v6760_v9 = vmul.f32 0.044715, %v6752_v35  ;;  %v12196_v63 = vadd.f32 %v6728_v1, %v6641_v57  ;;  %v8233_v56 = vpop.f32.mrb[166].mxu1 }
0x2f24   :  { %v6777_v15 = vmul.f32 0.7978846, %v6769_v25  ;;  %v6770_v23 = vadd.f32 %v6762_v19, %v12178_v18  ;;  %v6749_v31 = vmul.f32 %v12193_v24, %v12193_v24  ;;  %v12201_v28 = vadd.f32 %v8233_v56, %v6641_v57  ;;  %v6731_v32 = vpop.f32.mrb[167].mxu1 }
0x2f25   :  { %v6775_v36 = vmul.f32 0.7978846, %v6767_v58  ;;  %v6768_v7 = vadd.f32 %v6760_v9, %v12182_v29  ;;  %v6747_v42 = vmul.f32 %v12196_v63, %v12196_v63  ;;  %v12206_v39 = vadd.f32 %v6731_v32, %v6641_v57 }
0x2f26   :  { %9136 = vtanh.f32 %v6777_v15  ;;  %v6778_v3 = vmul.f32 0.7978846, %v6770_v23  ;;  %v6757_v61 = vmul.f32 %v6749_v31, %v12193_v24  ;;  %v6750_v4 = vmul.f32 %v12201_v28, %v12201_v28 }
0x2f27   :  { %9138 = vtanh.f32 %v6775_v36  ;;  %v6776_v41 = vmul.f32 0.7978846, %v6768_v7  ;;  %v6755_v13 = vmul.f32 %v6747_v42, %v12196_v63  ;;  %v6748_v59 = vmul.f32 %v12206_v39, %v12206_v39 }
0x2f28   :  { %9140 = vtanh.f32 %v6778_v3  ;;  %v6765_v21 = vmul.f32 0.044715, %v6757_v61  ;;  %v6758_v5 = vmul.f32 %v6750_v4, %v12201_v28 }
0x2f29   :  { %9142 = vtanh.f32 %v6776_v41  ;;  %v6763_v52 = vmul.f32 0.044715, %v6755_v13  ;;  %v6756_v34 = vmul.f32 %v6748_v59, %v12206_v39  ;;  %v8622_v59 = vld [vmem:[%s12285_s10 + $0x10] sm:$0xff]  }
0x2f2a   :  { %v6773_v17 = vadd.f32 %v6765_v21, %v12193_v24  ;;  %v6766_v43 = vmul.f32 0.044715, %v6758_v5  ;;  %8262 = vmatprep.subr.bf16.mxu1 %v8622_v59 }
0x2f2b   :  { %v6771_v62 = vadd.f32 %v6763_v52, %v12196_v63  ;;  %v6764_v47 = vmul.f32 0.044715, %v6756_v34  ;;  %8263 = vmatpush3.bf16.msra.mxu1 %v8622_v59 }
0x2f2c   :  { %v6781_v26 = vmul.f32 0.7978846, %v6773_v17  ;;  %v6774_v53 = vadd.f32 %v6766_v43, %v12201_v28 }
0x2f2d   :  { %v6779_v27 = vmul.f32 0.7978846, %v6771_v62  ;;  %v6772_v40 = vadd.f32 %v6764_v47, %v12206_v39 }
0x2f2e   :  { %9144 = vtanh.f32 %v6781_v26  ;;  %v6782_v57 = vmul.f32 0.7978846, %v6774_v53 }
0x2f2f   :  { %9146 = vtanh.f32 %v6779_v27  ;;  %v6780_v16 = vmul.f32 0.7978846, %v6772_v40 }
0x2f30   :  { %v9137_v22 = vpop.eup %9136  ;;  %9148 = vtanh.f32 %v6782_v57 }
0x2f31   :  { %v9139_v6 = vpop.eup %9138  ;;  %v6793_v49 = vadd.f32 1.0, %v9137_v22  ;;  %9150 = vtanh.f32 %v6780_v16 }
0x2f32   :  { %v9141_v12 = vpop.eup %9140  ;;  %v6791_v48 = vadd.f32 1.0, %v9139_v6 }
0x2f33   :  { %v9143_v14 = vpop.eup %9142  ;;  %v6801_v45 = vmul.f32 0.5, %v6793_v49  ;;  %v6794_v10 = vadd.f32 1.0, %v9141_v12 }
0x2f34   :  { %v6792_v55 = vadd.f32 1.0, %v9143_v14  ;;  %v6799_v37 = vmul.f32 0.5, %v6791_v48 }
0x2f35   :  { %v6802_v0 = vmul.f32 0.5, %v6794_v10  ;;  %v6809_v35 = vmul.f32 %v6801_v45, %v12172_v38 }
0x2f36   :  { %v6800_v30 = vmul.f32 0.5, %v6792_v55  ;;  %v6807_v19 = vmul.f32 %v6799_v37, %v12174_v2  ;;  %v7413_v55 = vld [vmem:[%s12286_s11] ss:$0 sm:$0xff] }
0x2f37   :  { %v6810_v33 = vmul.f32 %v6802_v0, %v12178_v18 }
0x2f38   :  { %v9145_v25 = vpop.eup %9144  ;;  %v6808_v1 = vmul.f32 %v6800_v30, %v12182_v29 }
0x2f39   :  { %v9147_v58 = vpop.eup %9146  ;;  %v6816_v9 = vpack.c.bf16 %v6810_v33, %v6809_v35  ;;  %v6797_v56 = vadd.f32 1.0, %v9145_v25 }
0x2f3a   :  { %v9149_v15 = vpop.eup %9148  ;;  %v6815_v23 = vpack.c.bf16 %v6808_v1, %v6807_v19  ;;  %v6795_v31 = vadd.f32 1.0, %v9147_v58 }
0x2f3b   :  { %v9151_v32 = vpop.eup %9150  ;;  %v6798_v36 = vadd.f32 1.0, %v9149_v15  ;;  %v6805_v7 = vmul.f32 0.5, %v6797_v56 }
0x2f3c   :  { %8250 = vmatprep.mubr.bf16.mxu0 %v6815_v23  ;;  %v6796_v42 = vadd.f32 1.0, %v9151_v32  ;;  %v6803_v3 = vmul.f32 0.5, %v6795_v31 }
0x2f3d   :  { %8251 = vmatmul.mubr.bf16.vlgmr.msra.gmra.mrb[152].mxu0 %v6816_v9  ;;  %v6806_v38 = vmul.f32 0.5, %v6798_v36  ;;  %v6813_v61 = vmul.f32 %v6805_v7, %v12193_v24  ;;  %v8623_v24 = vld [vmem:[%s12285_s10 + $0x18] sm:$0xff]  }
0x2f3e   :  { %v6804_v18 = vmul.f32 0.5, %v6796_v42  ;;  %v6811_v29 = vmul.f32 %v6803_v3, %v12196_v63  ;;  %8264 = vmatprep.subr.bf16.mxu1 %v8623_v24 }
0x2f3f   :  { %v6814_v2 = vmul.f32 %v6806_v38, %v12201_v28  ;;  %8265 = vmatpush3.bf16.msra.mxu1 %v8623_v24  ;;  %v12357_v28 = vld [vmem:[#allocation4_spill] sm:$0xff] }
0x2f40   :  { %v6812_v4 = vmul.f32 %v6804_v18, %v12206_v39  ;;  %v6839_v63 = vrot.slane %v12020_v51, %v12357_v28 }
0x2f41   :  { %v6818_v41 = vpack.c.bf16 %v6814_v2, %v6813_v61 }
0x2f42   :  { %v6817_v13 = vpack.c.bf16 %v6812_v4, %v6811_v29 }
0x2f44   :  { %8254 = vmatprep.mubr.bf16.mxu0 %v6817_v13 }
0x2f45   :  { %8255 = vmatmul.mubr.bf16.gmra.mrb[156].mxu0 %v6818_v41 }
0x3010   :  { %v8252_v39 = vpop.f32.mrb[152].mxu0 }
0x3011   :  { %v6931_v21 = vadd.f32 %v8252_v39, %v6839_v63  ;;  %v6922_v5 = vpop.f32.mrb[153].mxu0 }
0x3012   :  { %v6923_v52 = vadd.f32 %v6922_v5, %v6839_v63  ;;  %v8253_v34 = vpop.f32.mrb[154].mxu0 }
0x3013   :  { %v6934_v17 = vadd.f32 %v8253_v34, %v6839_v63  ;;  %v6925_v43 = vpop.f32.mrb[155].mxu0  ;;  %v6955_v47 = vadd.f32 %v6931_v21, %v12036_v60 }
0x3014   :  { %v6926_v62 = vadd.f32 %v6925_v43, %v6839_v63  ;;  %v6953_v53 = vadd.f32 %v6923_v52, %v12025_v20 }
0x3015   :  { %v6956_v26 = vadd.f32 %v6934_v17, %v12028_v46 }
0x3016   :  { %v6954_v27 = vadd.f32 %v6926_v62, %v12031_v50 }
0x3017   :  { %v6962_v40 = vpack.c.bf16 %v6956_v26, %v6955_v47 }
0x3018   :  { %v6961_v57 = vpack.c.bf16 %v6954_v27, %v6953_v53  ;;  %v8256_v16 = vpop.f32.mrb[156].mxu0 }
0x3019   :  { %v6947_v51 = vadd.f32 %v8256_v16, %v6839_v63  ;;  %v6938_v22 = vpop.f32.mrb[157].mxu0 }
0x301a   :  { %v6939_v6 = vadd.f32 %v6938_v22, %v6839_v63  ;;  %v8257_v49 = vpop.f32.mrb[158].mxu0  ;;  %8266 = vmatprep.mubr.msk.bf16.mxu1 %vm190_vm0, %v6961_v57 }
0x301b   :  { %v6950_v12 = vadd.f32 %v8257_v49, %v6839_v63  ;;  %v6941_v48 = vpop.f32.mrb[159].mxu0  ;;  %8267 = vmatmul.mubr.msk.bf16.vlgmr.msra.gmra.mrb[168].mxu1 %vm190_vm0, %v6962_v40  ;;  %v6959_v46 = vadd.f32 %v6947_v51, %v12051_v8 }
0x301c   :  { %v6942_v60 = vadd.f32 %v6941_v48, %v6839_v63  ;;  %v6957_v50 = vadd.f32 %v6939_v6, %v12045_v11 }
0x301d   :  { %v6960_v20 = vadd.f32 %v6950_v12, %v12054_v54 }
0x301e   :  { %v6958_v14 = vadd.f32 %v6942_v60, %v12048_v44 }
0x301f   :  { %v6964_v45 = vpack.c.bf16 %v6960_v20, %v6959_v46 }
0x3020   :  { %v6963_v10 = vpack.c.bf16 %v6958_v14, %v6957_v50 }
0x3022   :  { %8270 = vmatprep.mubr.msk.bf16.mxu1 %vm190_vm0, %v6963_v10 }
0x3023   :  { %8271 = vmatmul.mubr.msk.bf16.gmra.mrb[172].mxu1 %vm190_vm0, %v6964_v45 }
0x30ee   :  { %v8268_v37 = vpop.f32.mrb[168].mxu1 }
0x30ef   :  { %v7059_v0 = vadd.f32 %v8268_v37, %v7413_v55  ;;  %v7050_v30 = vpop.f32.mrb[169].mxu1 }
0x30f0   :  { %v7051_v8 = vadd.f32 %v7413_v55, %v7050_v30  ;;  %v8269_v35 = vpop.f32.mrb[170].mxu1 }
0x30f1   :  { %7083 = vst [vmem:[%s12287_s12 + $0x10] sm:$0xff] %v7059_v0  ;;  %v7062_v11 = vadd.f32 %v8269_v35, %v7413_v55  ;;  %v7053_v44 = vpop.f32.mrb[171].mxu1 }
0x30f2   :  { %7081 = vst [vmem:[%s12287_s12] sm:$0xff] %v7051_v8  ;;  %v7054_v54 = vadd.f32 %v7413_v55, %v7053_v44 }
0x30f3   :  { %7084 = vst [vmem:[%s12287_s12 + $0x18] sm:$0xff] %v7062_v11 }
0x30f4   :  { %7082 = vst [vmem:[%s12287_s12 + $0x8] sm:$0xff] %v7054_v54 }
0x30f6   :  { %v8272_v33 = vpop.f32.mrb[172].mxu1 }
0x30f7   :  { %v7075_v25 = vadd.f32 %v8272_v33, %v7413_v55  ;;  %v7066_v19 = vpop.f32.mrb[173].mxu1 }
0x30f8   :  { %v7067_v1 = vadd.f32 %v7413_v55, %v7066_v19  ;;  %v8273_v58 = vpop.f32.mrb[174].mxu1 }
0x30f9   :  { %7087 = vst [vmem:[%s12287_s12 + $0x30] sm:$0xff] %v7075_v25  ;;  %v7078_v9 = vadd.f32 %v8273_v58, %v7413_v55  ;;  %v7069_v56 = vpop.f32.mrb[175].mxu1 }
0x30fa   :  { %7085 = vst [vmem:[%s12287_s12 + $0x20] sm:$0xff] %v7067_v1  ;;  %v7070_v15 = vadd.f32 %v7413_v55, %v7069_v56 }
0x30fb   :  { %7088 = vst [vmem:[%s12287_s12 + $0x38] sm:$0xff] %v7078_v9 }
0x30fc   :  { %7086 = vst [vmem:[%s12287_s12 + $0x28] sm:$0xff] %v7070_v15 }

</bundles_post_ra>
